<compile_context>
chip_gen: v6e
topology: v6e:2x2x1
jax: 0.10.0
libtpu: 0.0.40
codegen_flags: <defaults>
</compile_context>

<pallas_src>
import functools

import jax
import jax.numpy as jnp
from jax.experimental import pallas as pl
from jax.experimental.pallas import tpu as pltpu


# --------------------------------------------------------------------------
# Pallas kernels
# --------------------------------------------------------------------------
def _conv_row_kernel(x_ref, w_ref, shift_ref, *rest, taps, Wo, N, KW, relu,
                     has_res):
    """One output row (all batches) of a conv, accumulated over the KH grid axis.

    x_ref    : (P*N, 1, Wp2, Cin)  phase-stacked padded input row, bf16
    w_ref    : (KH*KW, Cin, Cout)  BN-scale-folded weights, bf16 (VMEM resident)
    shift_ref: (1, Cout)           BN shift, f32
    [r_ref]  : (N, 1, Wo, Cout)    optional fused residual, bf16
    o_ref    : (N, 1, Wo, Cout)    output row, bf16
    acc_ref  : (N*Wo, Cout)        f32 accumulator scratch
    """
    if has_res:
        r_ref, o_ref, acc_ref = rest
    else:
        o_ref, acc_ref = rest
    ih = pl.program_id(1)
    cin = x_ref.shape[-1]

    @pl.when(ih == 0)
    def _init():
        acc_ref[...] = jnp.zeros_like(acc_ref)

    acc = acc_ref[...]
    for kw, (p, w0) in enumerate(taps):
        a = x_ref[p * N:(p + 1) * N, 0, w0:w0 + Wo, :].reshape(N * Wo, cin)
        w = w_ref[ih * KW + kw]  # (Cin, Cout), dynamic index on leading axis
        acc = acc + jnp.dot(a, w, preferred_element_type=jnp.float32)
    acc_ref[...] = acc

    @pl.when(ih == pl.num_programs(1) - 1)
    def _finalize():
        y = acc_ref[...] + shift_ref[...]
        if has_res:
            y = y + r_ref[...].reshape(y.shape).astype(jnp.float32)
        if relu:
            y = jnp.maximum(y, 0.0)
        o_ref[...] = y.reshape(o_ref.shape).astype(o_ref.dtype)


def _pool_row_kernel(x_ref, o_ref, acc_ref, *, taps, Wo, N):
    """One output row of maxpool(3,2,1); running max over the KH grid axis."""
    ih = pl.program_id(1)

    @pl.when(ih == 0)
    def _init():
        acc_ref[...] = jnp.full(acc_ref.shape, -jnp.inf, acc_ref.dtype)

    m = acc_ref[...]
    for (p, w0) in taps:
        win = x_ref[p * N:(p + 1) * N, 0, w0:w0 + Wo, :]
        m = jnp.maximum(m, win.astype(acc_ref.dtype))
    acc_ref[...] = m

    @pl.when(ih == pl.num_programs(1) - 1)
    def _finalize():
        o_ref[...] = acc_ref[...].reshape(o_ref.shape).astype(o_ref.dtype)


# --------------------------------------------------------------------------
# Pallas wrappers
# --------------------------------------------------------------------------
def _phase_split(xp, stride, dilation, KW):
    """Fold a W-stride of 2 into phase tensors stacked along the batch axis.

    Returns (x_in, taps, P) where taps[kw] = (phase_slot, w_offset) such that
    output col `ow`, tap `kw` reads x_in[phase_slot][..., w_offset + ow, :].
    """
    assert stride in (1, 2)
    if stride == 1:
        return xp, [(0, kw * dilation) for kw in range(KW)], 1
    Wp = xp.shape[2]
    if Wp % 2:
        xp = jnp.pad(xp, ((0, 0), (0, 0), (0, 1), (0, 0)))
    phases = sorted({(kw * dilation) % 2 for kw in range(KW)})
    slot = {ph: i for i, ph in enumerate(phases)}
    x_in = jnp.concatenate([xp[:, :, ph::2, :] for ph in phases], axis=0)
    taps = [(slot[(kw * dilation) % 2], (kw * dilation) // 2)
            for kw in range(KW)]
    return x_in, taps, len(phases)


def conv_bn_fused(x, w, shift, stride, dilation, padding, relu, residual=None):
    """conv2d + folded BN (+residual) (+ReLU) as one Pallas kernel.

    x: (N,H,W,Cin) bf16.  w: (KH,KW,Cin,Cout) bf16 (BN scale folded in).
    shift: (1,Cout) f32.  Returns (N,Ho,Wo,Cout) bf16.
    """
    N, H, W, Cin = x.shape
    KH, KW, _, Cout = w.shape
    Ho = (H + 2 * padding - dilation * (KH - 1) - 1) // stride + 1
    Wo = (W + 2 * padding - dilation * (KW - 1) - 1) // stride + 1

    xp = x
    if padding:
        xp = jnp.pad(x, ((0, 0), (padding, padding), (padding, padding), (0, 0)))
    x_in, taps, P = _phase_split(xp, stride, dilation, KW)
    Wp2 = x_in.shape[2]
    w_flat = w.reshape(KH * KW, Cin, Cout)

    kernel = functools.partial(_conv_row_kernel, taps=taps, Wo=Wo, N=N, KW=KW,
                               relu=relu, has_res=residual is not None)

    in_specs = [
        pl.BlockSpec((P * N, 1, Wp2, Cin),
                     lambda oh, ih: (0, stride * oh + dilation * ih, 0, 0)),
        pl.BlockSpec((KH * KW, Cin, Cout), lambda oh, ih: (0, 0, 0)),
        pl.BlockSpec((1, Cout), lambda oh, ih: (0, 0)),
    ]
    args = [x_in, w_flat, shift]
    if residual is not None:
        in_specs.append(pl.BlockSpec((N, 1, Wo, Cout),
                                     lambda oh, ih: (0, oh, 0, 0)))
        args.append(residual)

    return pl.pallas_call(
        kernel,
        out_shape=jax.ShapeDtypeStruct((N, Ho, Wo, Cout), jnp.bfloat16),
        grid=(Ho, KH),
        in_specs=in_specs,
        out_specs=pl.BlockSpec((N, 1, Wo, Cout), lambda oh, ih: (0, oh, 0, 0)),
        scratch_shapes=[pltpu.VMEM((N * Wo, Cout), jnp.float32)],
        compiler_params=pltpu.CompilerParams(
            dimension_semantics=("parallel", "arbitrary")),
    )(*args)


def maxpool_3x3_s2_p1(x):
    N, H, W, C = x.shape
    k, s, p = 3, 2, 1
    Ho = (H + 2 * p - k) // s + 1
    Wo = (W + 2 * p - k) // s + 1
    xp = jnp.pad(x, ((0, 0), (p, p), (p, p), (0, 0)),
                 constant_values=-jnp.inf)
    x_in, taps, P = _phase_split(xp, s, 1, k)
    Wp2 = x_in.shape[2]

    kernel = functools.partial(_pool_row_kernel, taps=taps, Wo=Wo, N=N)
    return pl.pallas_call(
        kernel,
        out_shape=jax.ShapeDtypeStruct((N, Ho, Wo, C), x.dtype),
        grid=(Ho, k),
        in_specs=[pl.BlockSpec((P * N, 1, Wp2, C),
                               lambda oh, ih: (0, s * oh + ih, 0, 0))],
        out_specs=pl.BlockSpec((N, 1, Wo, C), lambda oh, ih: (0, oh, 0, 0)),
        scratch_shapes=[pltpu.VMEM((N, Wo, C), jnp.float32)],
        compiler_params=pltpu.CompilerParams(
            dimension_semantics=("parallel", "arbitrary")),
    )(x_in)


# --------------------------------------------------------------------------
# Deterministic synthetic parameters (BN folded at prep time)
# --------------------------------------------------------------------------
def _make_conv(key, cout, cin, k):
    fan_in = cin * k * k
    return jax.random.normal(key, (cout, cin, k, k), jnp.float32) * (2.0 / fan_in) ** 0.5


def _make_bn_stats(key, c):
    k1, k2, k3, k4 = jax.random.split(key, 4)
    gamma = 1.0 + 0.1 * jax.random.normal(k1, (c,), jnp.float32)
    beta = 0.1 * jax.random.normal(k2, (c,), jnp.float32)
    mean = 0.1 * jax.random.normal(k3, (c,), jnp.float32)
    var = 1.0 + 0.1 * jnp.abs(jax.random.normal(k4, (c,), jnp.float32))
    return gamma, beta, mean, var


def _fold(w_oihw, bn, eps=1e-5):
    gamma, beta, mean, var = bn
    scale = gamma / jnp.sqrt(var + eps)
    shift = (beta - mean * scale).reshape(1, -1).astype(jnp.float32)
    w = jnp.transpose(w_oihw, (2, 3, 1, 0)) * scale  # (KH,KW,Cin,Cout) * (Cout,)
    return w.astype(jnp.bfloat16), shift


def _make_block(key, cin, cout, stride):
    ks = jax.random.split(key, 6)
    w1, b1 = _fold(_make_conv(ks[0], cout, cin, 3), _make_bn_stats(ks[1], cout))
    w2, b2 = _fold(_make_conv(ks[2], cout, cout, 3), _make_bn_stats(ks[3], cout))
    p = {"w1": w1, "b1": b1, "w2": w2, "b2": b2}
    if stride != 1 or cin != cout:
        wd, bd = _fold(_make_conv(ks[4], cout, cin, 1), _make_bn_stats(ks[5], cout))
        p["wd"], p["bd"] = wd, bd
    return p


def make_params(key, ic=3, widths=(64, 128, 256, 512), blocks_per_layer=2,
                strides=(2, 1, 2, 2, 2)):
    keys = jax.random.split(key, 2 + len(widths) * blocks_per_layer)
    w1, b1 = _fold(_make_conv(keys[0], widths[0], ic, 7),
                   _make_bn_stats(keys[1], widths[0]))
    params = {"conv1": (w1, b1), "layers": []}
    cin = widths[0]
    ki = 2
    for li, cout in enumerate(widths):
        layer = []
        for b in range(blocks_per_layer):
            st = strides[1 + li] if b == 0 else 1
            layer.append(_make_block(keys[ki], cin if b == 0 else cout, cout, st))
            ki += 1
        params["layers"].append(layer)
        cin = cout
    return params


# --------------------------------------------------------------------------
# Plain-JAX reference (for correctness checking only)
# --------------------------------------------------------------------------
def _conv_ref(x, w, shift, stride, dilation, padding, relu, residual=None):
    y = jax.lax.conv_general_dilated(
        x, w.astype(jnp.float32),
        window_strides=(stride, stride),
        padding=[(padding, padding), (padding, padding)],
        rhs_dilation=(dilation, dilation),
        dimension_numbers=("NHWC", "HWIO", "NHWC"))
    y = y + shift.reshape(1, 1, 1, -1)
    if residual is not None:
        y = y + residual
    if relu:
        y = jnp.maximum(y, 0.0)
    return y


def _maxpool_ref(x):
    return jax.lax.reduce_window(x, -jnp.inf, jax.lax.max,
                                 (1, 3, 3, 1), (1, 2, 2, 1),
                                 [(0, 0), (1, 1), (1, 1), (0, 0)])


# --------------------------------------------------------------------------
# ResNetEncoder forward (mode == "stride1")
# --------------------------------------------------------------------------
def _forward(x_nchw, params, conv_fn, pool_fn, act_dtype):
    s = [2, 1, 2, 2, 2]
    d = [1, 1, 1, 1, 1]
    x = jnp.transpose(x_nchw, (0, 2, 3, 1)).astype(act_dtype)  # NCHW -> NHWC

    def block(h, p, stride, dilation):
        out = conv_fn(h, p["w1"], p["b1"], stride, dilation, dilation, True)
        if "wd" in p:
            identity = conv_fn(h, p["wd"], p["bd"], stride, 1, 0, False)
        else:
            identity = h
        # residual add + ReLU fused into the second conv's epilogue
        return conv_fn(out, p["w2"], p["b2"], 1, dilation, dilation, True, identity)

    def layer(h, blocks, stride, dilation):
        for i, p in enumerate(blocks):
            h = block(h, p, stride if i == 0 else 1, dilation)
        return h

    o1 = conv_fn(x, params["conv1"][0], params["conv1"][1], s[0], 1, 3, True)
    o2 = pool_fn(o1)
    o3 = layer(o2, params["layers"][0], s[1], d[1])
    o4 = layer(o3, params["layers"][1], s[2], d[2])
    o5 = layer(o4, params["layers"][2], s[3], d[3])
    o6 = layer(o5, params["layers"][3], s[4], d[4])  # computed as in the module
    del o6                                           # not returned; DCE'd under jit

    to_nchw = lambda t: jnp.transpose(t, (0, 3, 1, 2)).astype(jnp.float32)
    # mode 'stride1' returns [x, o1, o3, o4, o5]
    return [x_nchw.astype(jnp.float32), to_nchw(o1), to_nchw(o3),
            to_nchw(o4), to_nchw(o5)]


def resnet_encoder_stride1(x_nchw, params):
    return _forward(x_nchw, params, conv_bn_fused, maxpool_3x3_s2_p1,
                    jnp.bfloat16)


def resnet_encoder_stride1_ref(x_nchw, params):
    return _forward(x_nchw, params, _conv_ref, _maxpool_ref, jnp.float32)


# --------------------------------------------------------------------------
if __name__ == "__main__":
    key = jax.random.PRNGKey(0)
    kx, kp = jax.random.split(key)

    # small input consistent with the module: NCHW, ic=3
    x = jax.random.normal(kx, (2, 3, 32, 32), jnp.float32)
    params = make_params(kp, ic=3)

    fwd = jax.jit(resnet_encoder_stride1)
    outs = [jax.block_until_ready(o) for o in fwd(x, params)]

    expected_shapes = [(2, 3, 32, 32), (2, 64, 16, 16), (2, 64, 8, 8),
                       (2, 128, 4, 4), (2, 256, 2, 2)]
    assert [tuple(o.shape) for o in outs] == expected_shapes, \
        [tuple(o.shape) for o in outs]
    assert all(bool(jnp.all(jnp.isfinite(o))) for o in outs)

    # correctness vs plain-JAX reference (generous tolerance for bf16 operands)
    refs = jax.jit(resnet_encoder_stride1_ref)(x, params)
    for o, r in zip(outs, refs):
        err = jnp.linalg.norm(o - r) / (jnp.linalg.norm(r) + 1e-6)
        assert float(err) < 0.08, float(err)

    print("KERNEL_OK")
</pallas_src>

<mosaic_0001>
module attributes {stable_mosaic.version = 11 : i64} {
  func.func @_conv_row_kernel(%arg0: i32, %arg1: i32, %arg2: memref<4x1x19x3xbf16, #tpu.memory_space<vmem>>, %arg3: memref<49x3x64xbf16, #tpu.memory_space<vmem>>, %arg4: memref<1x64xf32, #tpu.memory_space<vmem>>, %arg5: memref<2x1x16x64xbf16, #tpu.memory_space<vmem>>, %arg6: memref<32x64xf32, #tpu.memory_space<vmem>>) attributes {dimension_semantics = [#tpu.dimension_semantics<parallel>, #tpu.dimension_semantics<arbitrary>], iteration_bounds = array<i64: 16, 7>, scalar_prefetch = 0 : i64, scratch_operands = 1 : i64, tpu.core_type = #tpu.core_type<tc>, window_params = [{transform_indices = @transform_0, window_bounds = array<i64: 4, 1, 19, 3>}, {pipeline_mode = #tpu.pipeline_mode<synchronous>, transform_indices = @transform_1, window_bounds = array<i64: 49, 3, 64>}, {pipeline_mode = #tpu.pipeline_mode<synchronous>, transform_indices = @transform_2, window_bounds = array<i64: 1, 64>}, {transform_indices = @transform_3, window_bounds = array<i64: 2, 1, 16, 64>}]} {
    %c0_i32 = arith.constant 0 : i32
    %0 = arith.cmpi eq, %arg1, %c0_i32 : i32
    %1 = arith.extui %0 : i1 to i32
    %c0_i32_0 = arith.constant 0 : i32
    %2 = arith.cmpi ne, %1, %c0_i32_0 : i32
    scf.if %2 {
      %cst_58 = arith.constant 0.000000e+00 : f32
      %78 = vector.broadcast %cst_58 : f32 to vector<32x64xf32>
      %c0_59 = arith.constant 0 : index
      %c0_60 = arith.constant 0 : index
      %79 = vector.load %arg6[%c0_59, %c0_60] : memref<32x64xf32, #tpu.memory_space<vmem>>, vector<32x64xf32>
      tpu.vector_store %arg6[%c0_59, %c0_60], %78 {strides = array<i32>} : memref<32x64xf32, #tpu.memory_space<vmem>>, vector<32x64xf32>,
    } else {
    }
    %c0 = arith.constant 0 : index
    %c0_1 = arith.constant 0 : index
    %3 = vector.load %arg6[%c0, %c0_1] : memref<32x64xf32, #tpu.memory_space<vmem>>, vector<32x64xf32>
    %c0_2 = arith.constant 0 : index
    %c0_3 = arith.constant 0 : index
    %c0_4 = arith.constant 0 : index
    %c0_5 = arith.constant 0 : index
    %4 = vector.load %arg2[%c0_2, %c0_3, %c0_4, %c0_5] : memref<4x1x19x3xbf16, #tpu.memory_space<vmem>>, vector<2x1x16x3xbf16>
    %5 = vector.shape_cast %4 : vector<2x1x16x3xbf16> to vector<2x16x3xbf16>
    %6 = vector.shape_cast %5 : vector<2x16x3xbf16> to vector<32x3xbf16>
    %c7_i32 = arith.constant 7 : i32
    %7 = arith.muli %arg1, %c7_i32 : i32
    %c0_i32_6 = arith.constant 0 : i32
    %8 = arith.addi %7, %c0_i32_6 : i32
    %9 = arith.index_cast %8 : i32 to index
    %c0_7 = arith.constant 0 : index
    %c0_8 = arith.constant 0 : index
    %10 = vector.load %arg3[%9, %c0_7, %c0_8] : memref<49x3x64xbf16, #tpu.memory_space<vmem>>, vector<1x3x64xbf16>
    %11 = vector.shape_cast %10 : vector<1x3x64xbf16> to vector<3x64xbf16>
    %cst = arith.constant dense<0.000000e+00> : vector<32x64xf32>
    %12 = tpu.matmul %6, %11, %cst {dimension_numbers = #tpu.dot_dimension_numbers<[1], [0], [0], [1], [0, 0, 1, 1], [], []>} : vector<32x3xbf16>, vector<3x64xbf16>, vector<32x64xf32> -> vector<32x64xf32>
    %13 = arith.addf %3, %12 : vector<32x64xf32>
    %c2 = arith.constant 2 : index
    %c0_9 = arith.constant 0 : index
    %c0_10 = arith.constant 0 : index
    %c0_11 = arith.constant 0 : index
    %14 = vector.load %arg2[%c2, %c0_9, %c0_10, %c0_11] : memref<4x1x19x3xbf16, #tpu.memory_space<vmem>>, vector<2x1x16x3xbf16>
    %15 = vector.shape_cast %14 : vector<2x1x16x3xbf16> to vector<2x16x3xbf16>
    %16 = vector.shape_cast %15 : vector<2x16x3xbf16> to vector<32x3xbf16>
    %c7_i32_12 = arith.constant 7 : i32
    %17 = arith.muli %arg1, %c7_i32_12 : i32
    %c1_i32 = arith.constant 1 : i32
    %18 = arith.addi %17, %c1_i32 : i32
    %19 = arith.index_cast %18 : i32 to index
    %c0_13 = arith.constant 0 : index
    %c0_14 = arith.constant 0 : index
    %20 = vector.load %arg3[%19, %c0_13, %c0_14] : memref<49x3x64xbf16, #tpu.memory_space<vmem>>, vector<1x3x64xbf16>
    %21 = vector.shape_cast %20 : vector<1x3x64xbf16> to vector<3x64xbf16>
    %cst_15 = arith.constant dense<0.000000e+00> : vector<32x64xf32>
    %22 = tpu.matmul %16, %21, %cst_15 {dimension_numbers = #tpu.dot_dimension_numbers<[1], [0], [0], [1], [0, 0, 1, 1], [], []>} : vector<32x3xbf16>, vector<3x64xbf16>, vector<32x64xf32> -> vector<32x64xf32>
    %23 = arith.addf %13, %22 : vector<32x64xf32>
    %c0_16 = arith.constant 0 : index
    %c0_17 = arith.constant 0 : index
    %c1 = arith.constant 1 : index
    %c0_18 = arith.constant 0 : index
    %24 = vector.load %arg2[%c0_16, %c0_17, %c1, %c0_18] : memref<4x1x19x3xbf16, #tpu.memory_space<vmem>>, vector<2x1x16x3xbf16>
    %25 = vector.shape_cast %24 : vector<2x1x16x3xbf16> to vector<2x16x3xbf16>
    %26 = vector.shape_cast %25 : vector<2x16x3xbf16> to vector<32x3xbf16>
    %c7_i32_19 = arith.constant 7 : i32
    %27 = arith.muli %arg1, %c7_i32_19 : i32
    %c2_i32 = arith.constant 2 : i32
    %28 = arith.addi %27, %c2_i32 : i32
    %29 = arith.index_cast %28 : i32 to index
    %c0_20 = arith.constant 0 : index
    %c0_21 = arith.constant 0 : index
    %30 = vector.load %arg3[%29, %c0_20, %c0_21] : memref<49x3x64xbf16, #tpu.memory_space<vmem>>, vector<1x3x64xbf16>
    %31 = vector.shape_cast %30 : vector<1x3x64xbf16> to vector<3x64xbf16>
    %cst_22 = arith.constant dense<0.000000e+00> : vector<32x64xf32>
    %32 = tpu.matmul %26, %31, %cst_22 {dimension_numbers = #tpu.dot_dimension_numbers<[1], [0], [0], [1], [0, 0, 1, 1], [], []>} : vector<32x3xbf16>, vector<3x64xbf16>, vector<32x64xf32> -> vector<32x64xf32>
    %33 = arith.addf %23, %32 : vector<32x64xf32>
    %c2_23 = arith.constant 2 : index
    %c0_24 = arith.constant 0 : index
    %c1_25 = arith.constant 1 : index
    %c0_26 = arith.constant 0 : index
    %34 = vector.load %arg2[%c2_23, %c0_24, %c1_25, %c0_26] : memref<4x1x19x3xbf16, #tpu.memory_space<vmem>>, vector<2x1x16x3xbf16>
    %35 = vector.shape_cast %34 : vector<2x1x16x3xbf16> to vector<2x16x3xbf16>
    %36 = vector.shape_cast %35 : vector<2x16x3xbf16> to vector<32x3xbf16>
    %c7_i32_27 = arith.constant 7 : i32
    %37 = arith.muli %arg1, %c7_i32_27 : i32
    %c3_i32 = arith.constant 3 : i32
    %38 = arith.addi %37, %c3_i32 : i32
    %39 = arith.index_cast %38 : i32 to index
    %c0_28 = arith.constant 0 : index
    %c0_29 = arith.constant 0 : index
    %40 = vector.load %arg3[%39, %c0_28, %c0_29] : memref<49x3x64xbf16, #tpu.memory_space<vmem>>, vector<1x3x64xbf16>
    %41 = vector.shape_cast %40 : vector<1x3x64xbf16> to vector<3x64xbf16>
    %cst_30 = arith.constant dense<0.000000e+00> : vector<32x64xf32>
    %42 = tpu.matmul %36, %41, %cst_30 {dimension_numbers = #tpu.dot_dimension_numbers<[1], [0], [0], [1], [0, 0, 1, 1], [], []>} : vector<32x3xbf16>, vector<3x64xbf16>, vector<32x64xf32> -> vector<32x64xf32>
    %43 = arith.addf %33, %42 : vector<32x64xf32>
    %c0_31 = arith.constant 0 : index
    %c0_32 = arith.constant 0 : index
    %c2_33 = arith.constant 2 : index
    %c0_34 = arith.constant 0 : index
    %44 = vector.load %arg2[%c0_31, %c0_32, %c2_33, %c0_34] : memref<4x1x19x3xbf16, #tpu.memory_space<vmem>>, vector<2x1x16x3xbf16>
    %45 = vector.shape_cast %44 : vector<2x1x16x3xbf16> to vector<2x16x3xbf16>
    %46 = vector.shape_cast %45 : vector<2x16x3xbf16> to vector<32x3xbf16>
    %c7_i32_35 = arith.constant 7 : i32
    %47 = arith.muli %arg1, %c7_i32_35 : i32
    %c4_i32 = arith.constant 4 : i32
    %48 = arith.addi %47, %c4_i32 : i32
    %49 = arith.index_cast %48 : i32 to index
    %c0_36 = arith.constant 0 : index
    %c0_37 = arith.constant 0 : index
    %50 = vector.load %arg3[%49, %c0_36, %c0_37] : memref<49x3x64xbf16, #tpu.memory_space<vmem>>, vector<1x3x64xbf16>
    %51 = vector.shape_cast %50 : vector<1x3x64xbf16> to vector<3x64xbf16>
    %cst_38 = arith.constant dense<0.000000e+00> : vector<32x64xf32>
    %52 = tpu.matmul %46, %51, %cst_38 {dimension_numbers = #tpu.dot_dimension_numbers<[1], [0], [0], [1], [0, 0, 1, 1], [], []>} : vector<32x3xbf16>, vector<3x64xbf16>, vector<32x64xf32> -> vector<32x64xf32>
    %53 = arith.addf %43, %52 : vector<32x64xf32>
    %c2_39 = arith.constant 2 : index
    %c0_40 = arith.constant 0 : index
    %c2_41 = arith.constant 2 : index
    %c0_42 = arith.constant 0 : index
    %54 = vector.load %arg2[%c2_39, %c0_40, %c2_41, %c0_42] : memref<4x1x19x3xbf16, #tpu.memory_space<vmem>>, vector<2x1x16x3xbf16>
    %55 = vector.shape_cast %54 : vector<2x1x16x3xbf16> to vector<2x16x3xbf16>
    %56 = vector.shape_cast %55 : vector<2x16x3xbf16> to vector<32x3xbf16>
    %c7_i32_43 = arith.constant 7 : i32
    %57 = arith.muli %arg1, %c7_i32_43 : i32
    %c5_i32 = arith.constant 5 : i32
    %58 = arith.addi %57, %c5_i32 : i32
    %59 = arith.index_cast %58 : i32 to index
    %c0_44 = arith.constant 0 : index
    %c0_45 = arith.constant 0 : index
    %60 = vector.load %arg3[%59, %c0_44, %c0_45] : memref<49x3x64xbf16, #tpu.memory_space<vmem>>, vector<1x3x64xbf16>
    %61 = vector.shape_cast %60 : vector<1x3x64xbf16> to vector<3x64xbf16>
    %cst_46 = arith.constant dense<0.000000e+00> : vector<32x64xf32>
    %62 = tpu.matmul %56, %61, %cst_46 {dimension_numbers = #tpu.dot_dimension_numbers<[1], [0], [0], [1], [0, 0, 1, 1], [], []>} : vector<32x3xbf16>, vector<3x64xbf16>, vector<32x64xf32> -> vector<32x64xf32>
    %63 = arith.addf %53, %62 : vector<32x64xf32>
    %c0_47 = arith.constant 0 : index
    %c0_48 = arith.constant 0 : index
    %c3 = arith.constant 3 : index
    %c0_49 = arith.constant 0 : index
    %64 = vector.load %arg2[%c0_47, %c0_48, %c3, %c0_49] : memref<4x1x19x3xbf16, #tpu.memory_space<vmem>>, vector<2x1x16x3xbf16>
    %65 = vector.shape_cast %64 : vector<2x1x16x3xbf16> to vector<2x16x3xbf16>
    %66 = vector.shape_cast %65 : vector<2x16x3xbf16> to vector<32x3xbf16>
    %c7_i32_50 = arith.constant 7 : i32
    %67 = arith.muli %arg1, %c7_i32_50 : i32
    %c6_i32 = arith.constant 6 : i32
    %68 = arith.addi %67, %c6_i32 : i32
    %69 = arith.index_cast %68 : i32 to index
    %c0_51 = arith.constant 0 : index
    %c0_52 = arith.constant 0 : index
    %70 = vector.load %arg3[%69, %c0_51, %c0_52] : memref<49x3x64xbf16, #tpu.memory_space<vmem>>, vector<1x3x64xbf16>
    %71 = vector.shape_cast %70 : vector<1x3x64xbf16> to vector<3x64xbf16>
    %cst_53 = arith.constant dense<0.000000e+00> : vector<32x64xf32>
    %72 = tpu.matmul %66, %71, %cst_53 {dimension_numbers = #tpu.dot_dimension_numbers<[1], [0], [0], [1], [0, 0, 1, 1], [], []>} : vector<32x3xbf16>, vector<3x64xbf16>, vector<32x64xf32> -> vector<32x64xf32>
    %73 = arith.addf %63, %72 : vector<32x64xf32>
    %c0_54 = arith.constant 0 : index
    %c0_55 = arith.constant 0 : index
    %74 = vector.load %arg6[%c0_54, %c0_55] : memref<32x64xf32, #tpu.memory_space<vmem>>, vector<32x64xf32>
    tpu.vector_store %arg6[%c0_54, %c0_55], %73 {strides = array<i32>} : memref<32x64xf32, #tpu.memory_space<vmem>>, vector<32x64xf32>,
    %c6_i32_56 = arith.constant 6 : i32
    %75 = arith.cmpi eq, %arg1, %c6_i32_56 : i32
    %76 = arith.extui %75 : i1 to i32
    %c0_i32_57 = arith.constant 0 : i32
    %77 = arith.cmpi ne, %76, %c0_i32_57 : i32
    scf.if %77 {
      %c0_58 = arith.constant 0 : index
      %c0_59 = arith.constant 0 : index
      %78 = vector.load %arg6[%c0_58, %c0_59] : memref<32x64xf32, #tpu.memory_space<vmem>>, vector<32x64xf32>
      %c0_60 = arith.constant 0 : index
      %c0_61 = arith.constant 0 : index
      %79 = vector.load %arg4[%c0_60, %c0_61] : memref<1x64xf32, #tpu.memory_space<vmem>>, vector<1x64xf32>
      %80 = vector.broadcast %79 : vector<1x64xf32> to vector<32x64xf32>
      %81 = arith.addf %78, %80 : vector<32x64xf32>
      %cst_62 = arith.constant 0.000000e+00 : f32
      %82 = vector.broadcast %cst_62 : f32 to vector<32x64xf32>
      %83 = arith.maximumf %81, %82 : vector<32x64xf32>
      %84 = vector.shape_cast %83 : vector<32x64xf32> to vector<2x1x16x64xf32>
      %85 = arith.truncf %84 : vector<2x1x16x64xf32> to vector<2x1x16x64xbf16>
      %c0_63 = arith.constant 0 : index
      %c0_64 = arith.constant 0 : index
      %c0_65 = arith.constant 0 : index
      %c0_66 = arith.constant 0 : index
      %86 = vector.load %arg5[%c0_63, %c0_64, %c0_65, %c0_66] : memref<2x1x16x64xbf16, #tpu.memory_space<vmem>>, vector<2x1x16x64xbf16>
      tpu.vector_store %arg5[%c0_63, %c0_64, %c0_65, %c0_66], %85 {strides = array<i32>} : memref<2x1x16x64xbf16, #tpu.memory_space<vmem>>, vector<2x1x16x64xbf16>,
    } else {
    }
    return
  }
  func.func @transform_0(%arg0: i32, %arg1: i32) -> (i32, i32, i32, i32) {
    %c2_i32 = arith.constant 2 : i32
    %0 = arith.muli %c2_i32, %arg0 : i32
    %c1_i32 = arith.constant 1 : i32
    %1 = arith.muli %c1_i32, %arg1 : i32
    %2 = arith.addi %0, %1 : i32
    %c0_i32 = arith.constant 0 : i32
    %c0_i32_0 = arith.constant 0 : i32
    %c0_i32_1 = arith.constant 0 : i32
    %c0_i32_2 = arith.constant 0 : i32
    return %c0_i32, %2, %c0_i32_0, %c0_i32_1 : i32, i32, i32, i32
  }
  func.func @transform_1(%arg0: i32, %arg1: i32) -> (i32, i32, i32) {
    %c0_i32 = arith.constant 0 : i32
    %c0_i32_0 = arith.constant 0 : i32
    %c0_i32_1 = arith.constant 0 : i32
    %c0_i32_2 = arith.constant 0 : i32
    return %c0_i32, %c0_i32_0, %c0_i32_1 : i32, i32, i32
  }
  func.func @transform_2(%arg0: i32, %arg1: i32) -> (i32, i32) {
    %c0_i32 = arith.constant 0 : i32
    %c0_i32_0 = arith.constant 0 : i32
    %c0_i32_1 = arith.constant 0 : i32
    return %c0_i32, %c0_i32_0 : i32, i32
  }
  func.func @transform_3(%arg0: i32, %arg1: i32) -> (i32, i32, i32, i32) {
    %c0_i32 = arith.constant 0 : i32
    %c0_i32_0 = arith.constant 0 : i32
    %c0_i32_1 = arith.constant 0 : i32
    %c0_i32_2 = arith.constant 0 : i32
    return %c0_i32, %arg0, %c0_i32_0, %c0_i32_1 : i32, i32, i32, i32
  }
}

module attributes {stable_mosaic.version = 11 : i64} {
  func.func @_pool_row_kernel(%arg0: i32, %arg1: i32, %arg2: memref<4x1x9x64xbf16, #tpu.memory_space<vmem>>, %arg3: memref<2x1x8x64xbf16, #tpu.memory_space<vmem>>, %arg4: memref<2x8x64xf32, #tpu.memory_space<vmem>>) attributes {dimension_semantics = [#tpu.dimension_semantics<parallel>, #tpu.dimension_semantics<arbitrary>], iteration_bounds = array<i64: 8, 3>, scalar_prefetch = 0 : i64, scratch_operands = 1 : i64, tpu.core_type = #tpu.core_type<tc>, window_params = [{transform_indices = @transform_0, window_bounds = array<i64: 4, 1, 9, 64>}, {transform_indices = @transform_1, window_bounds = array<i64: 2, 1, 8, 64>}]} {
    %c0_i32 = arith.constant 0 : i32
    %0 = arith.cmpi eq, %arg1, %c0_i32 : i32
    %1 = arith.extui %0 : i1 to i32
    %c0_i32_0 = arith.constant 0 : i32
    %2 = arith.cmpi ne, %1, %c0_i32_0 : i32
    scf.if %2 {
      %cst = arith.constant 0xFF800000 : f32
      %20 = vector.broadcast %cst : f32 to vector<2x8x64xf32>
      %c0_17 = arith.constant 0 : index
      %c0_18 = arith.constant 0 : index
      %c0_19 = arith.constant 0 : index
      %21 = vector.load %arg4[%c0_17, %c0_18, %c0_19] : memref<2x8x64xf32, #tpu.memory_space<vmem>>, vector<2x8x64xf32>
      tpu.vector_store %arg4[%c0_17, %c0_18, %c0_19], %20 {strides = array<i32>} : memref<2x8x64xf32, #tpu.memory_space<vmem>>, vector<2x8x64xf32>,
    } else {
    }
    %c0 = arith.constant 0 : index
    %c0_1 = arith.constant 0 : index
    %c0_2 = arith.constant 0 : index
    %3 = vector.load %arg4[%c0, %c0_1, %c0_2] : memref<2x8x64xf32, #tpu.memory_space<vmem>>, vector<2x8x64xf32>
    %c0_3 = arith.constant 0 : index
    %c0_4 = arith.constant 0 : index
    %c0_5 = arith.constant 0 : index
    %c0_6 = arith.constant 0 : index
    %4 = vector.load %arg2[%c0_3, %c0_4, %c0_5, %c0_6] : memref<4x1x9x64xbf16, #tpu.memory_space<vmem>>, vector<2x1x8x64xbf16>
    %5 = vector.shape_cast %4 : vector<2x1x8x64xbf16> to vector<2x8x64xbf16>
    %6 = arith.extf %5 : vector<2x8x64xbf16> to vector<2x8x64xf32>
    %7 = arith.maximumf %3, %6 : vector<2x8x64xf32>
    %c2 = arith.constant 2 : index
    %c0_7 = arith.constant 0 : index
    %c0_8 = arith.constant 0 : index
    %c0_9 = arith.constant 0 : index
    %8 = vector.load %arg2[%c2, %c0_7, %c0_8, %c0_9] : memref<4x1x9x64xbf16, #tpu.memory_space<vmem>>, vector<2x1x8x64xbf16>
    %9 = vector.shape_cast %8 : vector<2x1x8x64xbf16> to vector<2x8x64xbf16>
    %10 = arith.extf %9 : vector<2x8x64xbf16> to vector<2x8x64xf32>
    %11 = arith.maximumf %7, %10 : vector<2x8x64xf32>
    %c0_10 = arith.constant 0 : index
    %c0_11 = arith.constant 0 : index
    %c1 = arith.constant 1 : index
    %c0_12 = arith.constant 0 : index
    %12 = vector.load %arg2[%c0_10, %c0_11, %c1, %c0_12] : memref<4x1x9x64xbf16, #tpu.memory_space<vmem>>, vector<2x1x8x64xbf16>
    %13 = vector.shape_cast %12 : vector<2x1x8x64xbf16> to vector<2x8x64xbf16>
    %14 = arith.extf %13 : vector<2x8x64xbf16> to vector<2x8x64xf32>
    %15 = arith.maximumf %11, %14 : vector<2x8x64xf32>
    %c0_13 = arith.constant 0 : index
    %c0_14 = arith.constant 0 : index
    %c0_15 = arith.constant 0 : index
    %16 = vector.load %arg4[%c0_13, %c0_14, %c0_15] : memref<2x8x64xf32, #tpu.memory_space<vmem>>, vector<2x8x64xf32>
    tpu.vector_store %arg4[%c0_13, %c0_14, %c0_15], %15 {strides = array<i32>} : memref<2x8x64xf32, #tpu.memory_space<vmem>>, vector<2x8x64xf32>,
    %c2_i32 = arith.constant 2 : i32
    %17 = arith.cmpi eq, %arg1, %c2_i32 : i32
    %18 = arith.extui %17 : i1 to i32
    %c0_i32_16 = arith.constant 0 : i32
    %19 = arith.cmpi ne, %18, %c0_i32_16 : i32
    scf.if %19 {
      %c0_17 = arith.constant 0 : index
      %c0_18 = arith.constant 0 : index
      %c0_19 = arith.constant 0 : index
      %20 = vector.load %arg4[%c0_17, %c0_18, %c0_19] : memref<2x8x64xf32, #tpu.memory_space<vmem>>, vector<2x8x64xf32>
      %21 = vector.shape_cast %20 : vector<2x8x64xf32> to vector<2x1x8x64xf32>
      %22 = arith.truncf %21 : vector<2x1x8x64xf32> to vector<2x1x8x64xbf16>
      %c0_20 = arith.constant 0 : index
      %c0_21 = arith.constant 0 : index
      %c0_22 = arith.constant 0 : index
      %c0_23 = arith.constant 0 : index
      %23 = vector.load %arg3[%c0_20, %c0_21, %c0_22, %c0_23] : memref<2x1x8x64xbf16, #tpu.memory_space<vmem>>, vector<2x1x8x64xbf16>
      tpu.vector_store %arg3[%c0_20, %c0_21, %c0_22, %c0_23], %22 {strides = array<i32>} : memref<2x1x8x64xbf16, #tpu.memory_space<vmem>>, vector<2x1x8x64xbf16>,
    } else {
    }
    return
  }
  func.func @transform_0(%arg0: i32, %arg1: i32) -> (i32, i32, i32, i32) {
    %c2_i32 = arith.constant 2 : i32
    %0 = arith.muli %c2_i32, %arg0 : i32
    %1 = arith.addi %0, %arg1 : i32
    %c0_i32 = arith.constant 0 : i32
    %c0_i32_0 = arith.constant 0 : i32
    %c0_i32_1 = arith.constant 0 : i32
    %c0_i32_2 = arith.constant 0 : i32
    return %c0_i32, %1, %c0_i32_0, %c0_i32_1 : i32, i32, i32, i32
  }
  func.func @transform_1(%arg0: i32, %arg1: i32) -> (i32, i32, i32, i32) {
    %c0_i32 = arith.constant 0 : i32
    %c0_i32_0 = arith.constant 0 : i32
    %c0_i32_1 = arith.constant 0 : i32
    %c0_i32_2 = arith.constant 0 : i32
    return %c0_i32, %arg0, %c0_i32_0, %c0_i32_1 : i32, i32, i32, i32
  }
}

module attributes {stable_mosaic.version = 11 : i64} {
  func.func @_conv_row_kernel(%arg0: i32, %arg1: i32, %arg2: memref<2x1x10x64xbf16, #tpu.memory_space<vmem>>, %arg3: memref<9x64x64xbf16, #tpu.memory_space<vmem>>, %arg4: memref<1x64xf32, #tpu.memory_space<vmem>>, %arg5: memref<2x1x8x64xbf16, #tpu.memory_space<vmem>>, %arg6: memref<16x64xf32, #tpu.memory_space<vmem>>) attributes {dimension_semantics = [#tpu.dimension_semantics<parallel>, #tpu.dimension_semantics<arbitrary>], iteration_bounds = array<i64: 8, 3>, scalar_prefetch = 0 : i64, scratch_operands = 1 : i64, tpu.core_type = #tpu.core_type<tc>, window_params = [{transform_indices = @transform_0, window_bounds = array<i64: 2, 1, 10, 64>}, {pipeline_mode = #tpu.pipeline_mode<synchronous>, transform_indices = @transform_1, window_bounds = array<i64: 9, 64, 64>}, {pipeline_mode = #tpu.pipeline_mode<synchronous>, transform_indices = @transform_2, window_bounds = array<i64: 1, 64>}, {transform_indices = @transform_3, window_bounds = array<i64: 2, 1, 8, 64>}]} {
    %c0_i32 = arith.constant 0 : i32
    %0 = arith.cmpi eq, %arg1, %c0_i32 : i32
    %1 = arith.extui %0 : i1 to i32
    %c0_i32_0 = arith.constant 0 : i32
    %2 = arith.cmpi ne, %1, %c0_i32_0 : i32
    scf.if %2 {
      %cst_27 = arith.constant 0.000000e+00 : f32
      %38 = vector.broadcast %cst_27 : f32 to vector<16x64xf32>
      %c0_28 = arith.constant 0 : index
      %c0_29 = arith.constant 0 : index
      %39 = vector.load %arg6[%c0_28, %c0_29] : memref<16x64xf32, #tpu.memory_space<vmem>>, vector<16x64xf32>
      tpu.vector_store %arg6[%c0_28, %c0_29], %38 {strides = array<i32>} : memref<16x64xf32, #tpu.memory_space<vmem>>, vector<16x64xf32>,
    } else {
    }
    %c0 = arith.constant 0 : index
    %c0_1 = arith.constant 0 : index
    %3 = vector.load %arg6[%c0, %c0_1] : memref<16x64xf32, #tpu.memory_space<vmem>>, vector<16x64xf32>
    %c0_2 = arith.constant 0 : index
    %c0_3 = arith.constant 0 : index
    %c0_4 = arith.constant 0 : index
    %c0_5 = arith.constant 0 : index
    %4 = vector.load %arg2[%c0_2, %c0_3, %c0_4, %c0_5] : memref<2x1x10x64xbf16, #tpu.memory_space<vmem>>, vector<2x1x8x64xbf16>
    %5 = vector.shape_cast %4 : vector<2x1x8x64xbf16> to vector<2x8x64xbf16>
    %6 = vector.shape_cast %5 : vector<2x8x64xbf16> to vector<16x64xbf16>
    %c3_i32 = arith.constant 3 : i32
    %7 = arith.muli %arg1, %c3_i32 : i32
    %c0_i32_6 = arith.constant 0 : i32
    %8 = arith.addi %7, %c0_i32_6 : i32
    %9 = arith.index_cast %8 : i32 to index
    %c0_7 = arith.constant 0 : index
    %c0_8 = arith.constant 0 : index
    %10 = vector.load %arg3[%9, %c0_7, %c0_8] : memref<9x64x64xbf16, #tpu.memory_space<vmem>>, vector<1x64x64xbf16>
    %11 = vector.shape_cast %10 : vector<1x64x64xbf16> to vector<64x64xbf16>
    %cst = arith.constant dense<0.000000e+00> : vector<16x64xf32>
    %12 = tpu.matmul %6, %11, %cst {dimension_numbers = #tpu.dot_dimension_numbers<[1], [0], [0], [1], [0, 0, 1, 1], [], []>} : vector<16x64xbf16>, vector<64x64xbf16>, vector<16x64xf32> -> vector<16x64xf32>
    %13 = arith.addf %3, %12 : vector<16x64xf32>
    %c0_9 = arith.constant 0 : index
    %c0_10 = arith.constant 0 : index
    %c1 = arith.constant 1 : index
    %c0_11 = arith.constant 0 : index
    %14 = vector.load %arg2[%c0_9, %c0_10, %c1, %c0_11] : memref<2x1x10x64xbf16, #tpu.memory_space<vmem>>, vector<2x1x8x64xbf16>
    %15 = vector.shape_cast %14 : vector<2x1x8x64xbf16> to vector<2x8x64xbf16>
    %16 = vector.shape_cast %15 : vector<2x8x64xbf16> to vector<16x64xbf16>
    %c3_i32_12 = arith.constant 3 : i32
    %17 = arith.muli %arg1, %c3_i32_12 : i32
    %c1_i32 = arith.constant 1 : i32
    %18 = arith.addi %17, %c1_i32 : i32
    %19 = arith.index_cast %18 : i32 to index
    %c0_13 = arith.constant 0 : index
    %c0_14 = arith.constant 0 : index
    %20 = vector.load %arg3[%19, %c0_13, %c0_14] : memref<9x64x64xbf16, #tpu.memory_space<vmem>>, vector<1x64x64xbf16>
    %21 = vector.shape_cast %20 : vector<1x64x64xbf16> to vector<64x64xbf16>
    %cst_15 = arith.constant dense<0.000000e+00> : vector<16x64xf32>
    %22 = tpu.matmul %16, %21, %cst_15 {dimension_numbers = #tpu.dot_dimension_numbers<[1], [0], [0], [1], [0, 0, 1, 1], [], []>} : vector<16x64xbf16>, vector<64x64xbf16>, vector<16x64xf32> -> vector<16x64xf32>
    %23 = arith.addf %13, %22 : vector<16x64xf32>
    %c0_16 = arith.constant 0 : index
    %c0_17 = arith.constant 0 : index
    %c2 = arith.constant 2 : index
    %c0_18 = arith.constant 0 : index
    %24 = vector.load %arg2[%c0_16, %c0_17, %c2, %c0_18] : memref<2x1x10x64xbf16, #tpu.memory_space<vmem>>, vector<2x1x8x64xbf16>
    %25 = vector.shape_cast %24 : vector<2x1x8x64xbf16> to vector<2x8x64xbf16>
    %26 = vector.shape_cast %25 : vector<2x8x64xbf16> to vector<16x64xbf16>
    %c3_i32_19 = arith.constant 3 : i32
    %27 = arith.muli %arg1, %c3_i32_19 : i32
    %c2_i32 = arith.constant 2 : i32
    %28 = arith.addi %27, %c2_i32 : i32
    %29 = arith.index_cast %28 : i32 to index
    %c0_20 = arith.constant 0 : index
    %c0_21 = arith.constant 0 : index
    %30 = vector.load %arg3[%29, %c0_20, %c0_21] : memref<9x64x64xbf16, #tpu.memory_space<vmem>>, vector<1x64x64xbf16>
    %31 = vector.shape_cast %30 : vector<1x64x64xbf16> to vector<64x64xbf16>
    %cst_22 = arith.constant dense<0.000000e+00> : vector<16x64xf32>
    %32 = tpu.matmul %26, %31, %cst_22 {dimension_numbers = #tpu.dot_dimension_numbers<[1], [0], [0], [1], [0, 0, 1, 1], [], []>} : vector<16x64xbf16>, vector<64x64xbf16>, vector<16x64xf32> -> vector<16x64xf32>
    %33 = arith.addf %23, %32 : vector<16x64xf32>
    %c0_23 = arith.constant 0 : index
    %c0_24 = arith.constant 0 : index
    %34 = vector.load %arg6[%c0_23, %c0_24] : memref<16x64xf32, #tpu.memory_space<vmem>>, vector<16x64xf32>
    tpu.vector_store %arg6[%c0_23, %c0_24], %33 {strides = array<i32>} : memref<16x64xf32, #tpu.memory_space<vmem>>, vector<16x64xf32>,
    %c2_i32_25 = arith.constant 2 : i32
    %35 = arith.cmpi eq, %arg1, %c2_i32_25 : i32
    %36 = arith.extui %35 : i1 to i32
    %c0_i32_26 = arith.constant 0 : i32
    %37 = arith.cmpi ne, %36, %c0_i32_26 : i32
    scf.if %37 {
      %c0_27 = arith.constant 0 : index
      %c0_28 = arith.constant 0 : index
      %38 = vector.load %arg6[%c0_27, %c0_28] : memref<16x64xf32, #tpu.memory_space<vmem>>, vector<16x64xf32>
      %c0_29 = arith.constant 0 : index
      %c0_30 = arith.constant 0 : index
      %39 = vector.load %arg4[%c0_29, %c0_30] : memref<1x64xf32, #tpu.memory_space<vmem>>, vector<1x64xf32>
      %40 = vector.broadcast %39 : vector<1x64xf32> to vector<16x64xf32>
      %41 = arith.addf %38, %40 : vector<16x64xf32>
      %cst_31 = arith.constant 0.000000e+00 : f32
      %42 = vector.broadcast %cst_31 : f32 to vector<16x64xf32>
      %43 = arith.maximumf %41, %42 : vector<16x64xf32>
      %44 = vector.shape_cast %43 : vector<16x64xf32> to vector<2x1x8x64xf32>
      %45 = arith.truncf %44 : vector<2x1x8x64xf32> to vector<2x1x8x64xbf16>
      %c0_32 = arith.constant 0 : index
      %c0_33 = arith.constant 0 : index
      %c0_34 = arith.constant 0 : index
      %c0_35 = arith.constant 0 : index
      %46 = vector.load %arg5[%c0_32, %c0_33, %c0_34, %c0_35] : memref<2x1x8x64xbf16, #tpu.memory_space<vmem>>, vector<2x1x8x64xbf16>
      tpu.vector_store %arg5[%c0_32, %c0_33, %c0_34, %c0_35], %45 {strides = array<i32>} : memref<2x1x8x64xbf16, #tpu.memory_space<vmem>>, vector<2x1x8x64xbf16>,
    } else {
    }
    return
  }
  func.func @transform_0(%arg0: i32, %arg1: i32) -> (i32, i32, i32, i32) {
    %c1_i32 = arith.constant 1 : i32
    %0 = arith.muli %c1_i32, %arg0 : i32
    %c1_i32_0 = arith.constant 1 : i32
    %1 = arith.muli %c1_i32_0, %arg1 : i32
    %2 = arith.addi %0, %1 : i32
    %c0_i32 = arith.constant 0 : i32
    %c0_i32_1 = arith.constant 0 : i32
    %c0_i32_2 = arith.constant 0 : i32
    %c0_i32_3 = arith.constant 0 : i32
    return %c0_i32, %2, %c0_i32_1, %c0_i32_2 : i32, i32, i32, i32
  }
  func.func @transform_1(%arg0: i32, %arg1: i32) -> (i32, i32, i32) {
    %c0_i32 = arith.constant 0 : i32
    %c0_i32_0 = arith.constant 0 : i32
    %c0_i32_1 = arith.constant 0 : i32
    %c0_i32_2 = arith.constant 0 : i32
    return %c0_i32, %c0_i32_0, %c0_i32_1 : i32, i32, i32
  }
  func.func @transform_2(%arg0: i32, %arg1: i32) -> (i32, i32) {
    %c0_i32 = arith.constant 0 : i32
    %c0_i32_0 = arith.constant 0 : i32
    %c0_i32_1 = arith.constant 0 : i32
    return %c0_i32, %c0_i32_0 : i32, i32
  }
  func.func @transform_3(%arg0: i32, %arg1: i32) -> (i32, i32, i32, i32) {
    %c0_i32 = arith.constant 0 : i32
    %c0_i32_0 = arith.constant 0 : i32
    %c0_i32_1 = arith.constant 0 : i32
    %c0_i32_2 = arith.constant 0 : i32
    return %c0_i32, %arg0, %c0_i32_0, %c0_i32_1 : i32, i32, i32, i32
  }
}

module attributes {stable_mosaic.version = 11 : i64} {
  func.func @_conv_row_kernel(%arg0: i32, %arg1: i32, %arg2: memref<2x1x10x64xbf16, #tpu.memory_space<vmem>>, %arg3: memref<9x64x64xbf16, #tpu.memory_space<vmem>>, %arg4: memref<1x64xf32, #tpu.memory_space<vmem>>, %arg5: memref<2x1x8x64xbf16, #tpu.memory_space<vmem>>, %arg6: memref<2x1x8x64xbf16, #tpu.memory_space<vmem>>, %arg7: memref<16x64xf32, #tpu.memory_space<vmem>>) attributes {dimension_semantics = [#tpu.dimension_semantics<parallel>, #tpu.dimension_semantics<arbitrary>], iteration_bounds = array<i64: 8, 3>, scalar_prefetch = 0 : i64, scratch_operands = 1 : i64, tpu.core_type = #tpu.core_type<tc>, window_params = [{transform_indices = @transform_0, window_bounds = array<i64: 2, 1, 10, 64>}, {pipeline_mode = #tpu.pipeline_mode<synchronous>, transform_indices = @transform_1, window_bounds = array<i64: 9, 64, 64>}, {pipeline_mode = #tpu.pipeline_mode<synchronous>, transform_indices = @transform_2, window_bounds = array<i64: 1, 64>}, {transform_indices = @transform_3, window_bounds = array<i64: 2, 1, 8, 64>}, {transform_indices = @transform_4, window_bounds = array<i64: 2, 1, 8, 64>}]} {
    %c0_i32 = arith.constant 0 : i32
    %0 = arith.cmpi eq, %arg1, %c0_i32 : i32
    %1 = arith.extui %0 : i1 to i32
    %c0_i32_0 = arith.constant 0 : i32
    %2 = arith.cmpi ne, %1, %c0_i32_0 : i32
    scf.if %2 {
      %cst_27 = arith.constant 0.000000e+00 : f32
      %38 = vector.broadcast %cst_27 : f32 to vector<16x64xf32>
      %c0_28 = arith.constant 0 : index
      %c0_29 = arith.constant 0 : index
      %39 = vector.load %arg7[%c0_28, %c0_29] : memref<16x64xf32, #tpu.memory_space<vmem>>, vector<16x64xf32>
      tpu.vector_store %arg7[%c0_28, %c0_29], %38 {strides = array<i32>} : memref<16x64xf32, #tpu.memory_space<vmem>>, vector<16x64xf32>,
    } else {
    }
    %c0 = arith.constant 0 : index
    %c0_1 = arith.constant 0 : index
    %3 = vector.load %arg7[%c0, %c0_1] : memref<16x64xf32, #tpu.memory_space<vmem>>, vector<16x64xf32>
    %c0_2 = arith.constant 0 : index
    %c0_3 = arith.constant 0 : index
    %c0_4 = arith.constant 0 : index
    %c0_5 = arith.constant 0 : index
    %4 = vector.load %arg2[%c0_2, %c0_3, %c0_4, %c0_5] : memref<2x1x10x64xbf16, #tpu.memory_space<vmem>>, vector<2x1x8x64xbf16>
    %5 = vector.shape_cast %4 : vector<2x1x8x64xbf16> to vector<2x8x64xbf16>
    %6 = vector.shape_cast %5 : vector<2x8x64xbf16> to vector<16x64xbf16>
    %c3_i32 = arith.constant 3 : i32
    %7 = arith.muli %arg1, %c3_i32 : i32
    %c0_i32_6 = arith.constant 0 : i32
    %8 = arith.addi %7, %c0_i32_6 : i32
    %9 = arith.index_cast %8 : i32 to index
    %c0_7 = arith.constant 0 : index
    %c0_8 = arith.constant 0 : index
    %10 = vector.load %arg3[%9, %c0_7, %c0_8] : memref<9x64x64xbf16, #tpu.memory_space<vmem>>, vector<1x64x64xbf16>
    %11 = vector.shape_cast %10 : vector<1x64x64xbf16> to vector<64x64xbf16>
    %cst = arith.constant dense<0.000000e+00> : vector<16x64xf32>
    %12 = tpu.matmul %6, %11, %cst {dimension_numbers = #tpu.dot_dimension_numbers<[1], [0], [0], [1], [0, 0, 1, 1], [], []>} : vector<16x64xbf16>, vector<64x64xbf16>, vector<16x64xf32> -> vector<16x64xf32>
    %13 = arith.addf %3, %12 : vector<16x64xf32>
    %c0_9 = arith.constant 0 : index
    %c0_10 = arith.constant 0 : index
    %c1 = arith.constant 1 : index
    %c0_11 = arith.constant 0 : index
    %14 = vector.load %arg2[%c0_9, %c0_10, %c1, %c0_11] : memref<2x1x10x64xbf16, #tpu.memory_space<vmem>>, vector<2x1x8x64xbf16>
    %15 = vector.shape_cast %14 : vector<2x1x8x64xbf16> to vector<2x8x64xbf16>
    %16 = vector.shape_cast %15 : vector<2x8x64xbf16> to vector<16x64xbf16>
    %c3_i32_12 = arith.constant 3 : i32
    %17 = arith.muli %arg1, %c3_i32_12 : i32
    %c1_i32 = arith.constant 1 : i32
    %18 = arith.addi %17, %c1_i32 : i32
    %19 = arith.index_cast %18 : i32 to index
    %c0_13 = arith.constant 0 : index
    %c0_14 = arith.constant 0 : index
    %20 = vector.load %arg3[%19, %c0_13, %c0_14] : memref<9x64x64xbf16, #tpu.memory_space<vmem>>, vector<1x64x64xbf16>
    %21 = vector.shape_cast %20 : vector<1x64x64xbf16> to vector<64x64xbf16>
    %cst_15 = arith.constant dense<0.000000e+00> : vector<16x64xf32>
    %22 = tpu.matmul %16, %21, %cst_15 {dimension_numbers = #tpu.dot_dimension_numbers<[1], [0], [0], [1], [0, 0, 1, 1], [], []>} : vector<16x64xbf16>, vector<64x64xbf16>, vector<16x64xf32> -> vector<16x64xf32>
    %23 = arith.addf %13, %22 : vector<16x64xf32>
    %c0_16 = arith.constant 0 : index
    %c0_17 = arith.constant 0 : index
    %c2 = arith.constant 2 : index
    %c0_18 = arith.constant 0 : index
    %24 = vector.load %arg2[%c0_16, %c0_17, %c2, %c0_18] : memref<2x1x10x64xbf16, #tpu.memory_space<vmem>>, vector<2x1x8x64xbf16>
    %25 = vector.shape_cast %24 : vector<2x1x8x64xbf16> to vector<2x8x64xbf16>
    %26 = vector.shape_cast %25 : vector<2x8x64xbf16> to vector<16x64xbf16>
    %c3_i32_19 = arith.constant 3 : i32
    %27 = arith.muli %arg1, %c3_i32_19 : i32
    %c2_i32 = arith.constant 2 : i32
    %28 = arith.addi %27, %c2_i32 : i32
    %29 = arith.index_cast %28 : i32 to index
    %c0_20 = arith.constant 0 : index
    %c0_21 = arith.constant 0 : index
    %30 = vector.load %arg3[%29, %c0_20, %c0_21] : memref<9x64x64xbf16, #tpu.memory_space<vmem>>, vector<1x64x64xbf16>
    %31 = vector.shape_cast %30 : vector<1x64x64xbf16> to vector<64x64xbf16>
    %cst_22 = arith.constant dense<0.000000e+00> : vector<16x64xf32>
    %32 = tpu.matmul %26, %31, %cst_22 {dimension_numbers = #tpu.dot_dimension_numbers<[1], [0], [0], [1], [0, 0, 1, 1], [], []>} : vector<16x64xbf16>, vector<64x64xbf16>, vector<16x64xf32> -> vector<16x64xf32>
    %33 = arith.addf %23, %32 : vector<16x64xf32>
    %c0_23 = arith.constant 0 : index
    %c0_24 = arith.constant 0 : index
    %34 = vector.load %arg7[%c0_23, %c0_24] : memref<16x64xf32, #tpu.memory_space<vmem>>, vector<16x64xf32>
    tpu.vector_store %arg7[%c0_23, %c0_24], %33 {strides = array<i32>} : memref<16x64xf32, #tpu.memory_space<vmem>>, vector<16x64xf32>,
    %c2_i32_25 = arith.constant 2 : i32
    %35 = arith.cmpi eq, %arg1, %c2_i32_25 : i32
    %36 = arith.extui %35 : i1 to i32
    %c0_i32_26 = arith.constant 0 : i32
    %37 = arith.cmpi ne, %36, %c0_i32_26 : i32
    scf.if %37 {
      %c0_27 = arith.constant 0 : index
      %c0_28 = arith.constant 0 : index
      %38 = vector.load %arg7[%c0_27, %c0_28] : memref<16x64xf32, #tpu.memory_space<vmem>>, vector<16x64xf32>
      %c0_29 = arith.constant 0 : index
      %c0_30 = arith.constant 0 : index
      %39 = vector.load %arg4[%c0_29, %c0_30] : memref<1x64xf32, #tpu.memory_space<vmem>>, vector<1x64xf32>
      %40 = vector.broadcast %39 : vector<1x64xf32> to vector<16x64xf32>
      %41 = arith.addf %38, %40 : vector<16x64xf32>
      %c0_31 = arith.constant 0 : index
      %c0_32 = arith.constant 0 : index
      %c0_33 = arith.constant 0 : index
      %c0_34 = arith.constant 0 : index
      %42 = vector.load %arg5[%c0_31, %c0_32, %c0_33, %c0_34] : memref<2x1x8x64xbf16, #tpu.memory_space<vmem>>, vector<2x1x8x64xbf16>
      %43 = vector.shape_cast %42 : vector<2x1x8x64xbf16> to vector<16x64xbf16>
      %44 = arith.extf %43 : vector<16x64xbf16> to vector<16x64xf32>
      %45 = arith.addf %41, %44 : vector<16x64xf32>
      %cst_35 = arith.constant 0.000000e+00 : f32
      %46 = vector.broadcast %cst_35 : f32 to vector<16x64xf32>
      %47 = arith.maximumf %45, %46 : vector<16x64xf32>
      %48 = vector.shape_cast %47 : vector<16x64xf32> to vector<2x1x8x64xf32>
      %49 = arith.truncf %48 : vector<2x1x8x64xf32> to vector<2x1x8x64xbf16>
      %c0_36 = arith.constant 0 : index
      %c0_37 = arith.constant 0 : index
      %c0_38 = arith.constant 0 : index
      %c0_39 = arith.constant 0 : index
      %50 = vector.load %arg6[%c0_36, %c0_37, %c0_38, %c0_39] : memref<2x1x8x64xbf16, #tpu.memory_space<vmem>>, vector<2x1x8x64xbf16>
      tpu.vector_store %arg6[%c0_36, %c0_37, %c0_38, %c0_39], %49 {strides = array<i32>} : memref<2x1x8x64xbf16, #tpu.memory_space<vmem>>, vector<2x1x8x64xbf16>,
    } else {
    }
    return
  }
  func.func @transform_0(%arg0: i32, %arg1: i32) -> (i32, i32, i32, i32) {
    %c1_i32 = arith.constant 1 : i32
    %0 = arith.muli %c1_i32, %arg0 : i32
    %c1_i32_0 = arith.constant 1 : i32
    %1 = arith.muli %c1_i32_0, %arg1 : i32
    %2 = arith.addi %0, %1 : i32
    %c0_i32 = arith.constant 0 : i32
    %c0_i32_1 = arith.constant 0 : i32
    %c0_i32_2 = arith.constant 0 : i32
    %c0_i32_3 = arith.constant 0 : i32
    return %c0_i32, %2, %c0_i32_1, %c0_i32_2 : i32, i32, i32, i32
  }
  func.func @transform_1(%arg0: i32, %arg1: i32) -> (i32, i32, i32) {
    %c0_i32 = arith.constant 0 : i32
    %c0_i32_0 = arith.constant 0 : i32
    %c0_i32_1 = arith.constant 0 : i32
    %c0_i32_2 = arith.constant 0 : i32
    return %c0_i32, %c0_i32_0, %c0_i32_1 : i32, i32, i32
  }
  func.func @transform_2(%arg0: i32, %arg1: i32) -> (i32, i32) {
    %c0_i32 = arith.constant 0 : i32
    %c0_i32_0 = arith.constant 0 : i32
    %c0_i32_1 = arith.constant 0 : i32
    return %c0_i32, %c0_i32_0 : i32, i32
  }
  func.func @transform_3(%arg0: i32, %arg1: i32) -> (i32, i32, i32, i32) {
    %c0_i32 = arith.constant 0 : i32
    %c0_i32_0 = arith.constant 0 : i32
    %c0_i32_1 = arith.constant 0 : i32
    %c0_i32_2 = arith.constant 0 : i32
    return %c0_i32, %arg0, %c0_i32_0, %c0_i32_1 : i32, i32, i32, i32
  }
  func.func @transform_4(%arg0: i32, %arg1: i32) -> (i32, i32, i32, i32) {
    %c0_i32 = arith.constant 0 : i32
    %c0_i32_0 = arith.constant 0 : i32
    %c0_i32_1 = arith.constant 0 : i32
    %c0_i32_2 = arith.constant 0 : i32
    return %c0_i32, %arg0, %c0_i32_0, %c0_i32_1 : i32, i32, i32, i32
  }
}

module attributes {stable_mosaic.version = 11 : i64} {
  func.func @_conv_row_kernel(%arg0: i32, %arg1: i32, %arg2: memref<4x1x5x64xbf16, #tpu.memory_space<vmem>>, %arg3: memref<9x64x128xbf16, #tpu.memory_space<vmem>>, %arg4: memref<1x128xf32, #tpu.memory_space<vmem>>, %arg5: memref<2x1x4x128xbf16, #tpu.memory_space<vmem>>, %arg6: memref<8x128xf32, #tpu.memory_space<vmem>>) attributes {dimension_semantics = [#tpu.dimension_semantics<parallel>, #tpu.dimension_semantics<arbitrary>], iteration_bounds = array<i64: 4, 3>, scalar_prefetch = 0 : i64, scratch_operands = 1 : i64, tpu.core_type = #tpu.core_type<tc>, window_params = [{transform_indices = @transform_0, window_bounds = array<i64: 4, 1, 5, 64>}, {pipeline_mode = #tpu.pipeline_mode<synchronous>, transform_indices = @transform_1, window_bounds = array<i64: 9, 64, 128>}, {pipeline_mode = #tpu.pipeline_mode<synchronous>, transform_indices = @transform_2, window_bounds = array<i64: 1, 128>}, {transform_indices = @transform_3, window_bounds = array<i64: 2, 1, 4, 128>}]} {
    %c0_i32 = arith.constant 0 : i32
    %0 = arith.cmpi eq, %arg1, %c0_i32 : i32
    %1 = arith.extui %0 : i1 to i32
    %c0_i32_0 = arith.constant 0 : i32
    %2 = arith.cmpi ne, %1, %c0_i32_0 : i32
    scf.if %2 {
      %cst_27 = arith.constant 0.000000e+00 : f32
      %38 = vector.broadcast %cst_27 : f32 to vector<8x128xf32>
      %c0_28 = arith.constant 0 : index
      %c0_29 = arith.constant 0 : index
      %39 = vector.load %arg6[%c0_28, %c0_29] : memref<8x128xf32, #tpu.memory_space<vmem>>, vector<8x128xf32>
      tpu.vector_store %arg6[%c0_28, %c0_29], %38 {strides = array<i32>} : memref<8x128xf32, #tpu.memory_space<vmem>>, vector<8x128xf32>,
    } else {
    }
    %c0 = arith.constant 0 : index
    %c0_1 = arith.constant 0 : index
    %3 = vector.load %arg6[%c0, %c0_1] : memref<8x128xf32, #tpu.memory_space<vmem>>, vector<8x128xf32>
    %c0_2 = arith.constant 0 : index
    %c0_3 = arith.constant 0 : index
    %c0_4 = arith.constant 0 : index
    %c0_5 = arith.constant 0 : index
    %4 = vector.load %arg2[%c0_2, %c0_3, %c0_4, %c0_5] : memref<4x1x5x64xbf16, #tpu.memory_space<vmem>>, vector<2x1x4x64xbf16>
    %5 = vector.shape_cast %4 : vector<2x1x4x64xbf16> to vector<2x4x64xbf16>
    %6 = vector.shape_cast %5 : vector<2x4x64xbf16> to vector<8x64xbf16>
    %c3_i32 = arith.constant 3 : i32
    %7 = arith.muli %arg1, %c3_i32 : i32
    %c0_i32_6 = arith.constant 0 : i32
    %8 = arith.addi %7, %c0_i32_6 : i32
    %9 = arith.index_cast %8 : i32 to index
    %c0_7 = arith.constant 0 : index
    %c0_8 = arith.constant 0 : index
    %10 = vector.load %arg3[%9, %c0_7, %c0_8] : memref<9x64x128xbf16, #tpu.memory_space<vmem>>, vector<1x64x128xbf16>
    %11 = vector.shape_cast %10 : vector<1x64x128xbf16> to vector<64x128xbf16>
    %cst = arith.constant dense<0.000000e+00> : vector<8x128xf32>
    %12 = tpu.matmul %6, %11, %cst {dimension_numbers = #tpu.dot_dimension_numbers<[1], [0], [0], [1], [0, 0, 1, 1], [], []>} : vector<8x64xbf16>, vector<64x128xbf16>, vector<8x128xf32> -> vector<8x128xf32>
    %13 = arith.addf %3, %12 : vector<8x128xf32>
    %c2 = arith.constant 2 : index
    %c0_9 = arith.constant 0 : index
    %c0_10 = arith.constant 0 : index
    %c0_11 = arith.constant 0 : index
    %14 = vector.load %arg2[%c2, %c0_9, %c0_10, %c0_11] : memref<4x1x5x64xbf16, #tpu.memory_space<vmem>>, vector<2x1x4x64xbf16>
    %15 = vector.shape_cast %14 : vector<2x1x4x64xbf16> to vector<2x4x64xbf16>
    %16 = vector.shape_cast %15 : vector<2x4x64xbf16> to vector<8x64xbf16>
    %c3_i32_12 = arith.constant 3 : i32
    %17 = arith.muli %arg1, %c3_i32_12 : i32
    %c1_i32 = arith.constant 1 : i32
    %18 = arith.addi %17, %c1_i32 : i32
    %19 = arith.index_cast %18 : i32 to index
    %c0_13 = arith.constant 0 : index
    %c0_14 = arith.constant 0 : index
    %20 = vector.load %arg3[%19, %c0_13, %c0_14] : memref<9x64x128xbf16, #tpu.memory_space<vmem>>, vector<1x64x128xbf16>
    %21 = vector.shape_cast %20 : vector<1x64x128xbf16> to vector<64x128xbf16>
    %cst_15 = arith.constant dense<0.000000e+00> : vector<8x128xf32>
    %22 = tpu.matmul %16, %21, %cst_15 {dimension_numbers = #tpu.dot_dimension_numbers<[1], [0], [0], [1], [0, 0, 1, 1], [], []>} : vector<8x64xbf16>, vector<64x128xbf16>, vector<8x128xf32> -> vector<8x128xf32>
    %23 = arith.addf %13, %22 : vector<8x128xf32>
    %c0_16 = arith.constant 0 : index
    %c0_17 = arith.constant 0 : index
    %c1 = arith.constant 1 : index
    %c0_18 = arith.constant 0 : index
    %24 = vector.load %arg2[%c0_16, %c0_17, %c1, %c0_18] : memref<4x1x5x64xbf16, #tpu.memory_space<vmem>>, vector<2x1x4x64xbf16>
    %25 = vector.shape_cast %24 : vector<2x1x4x64xbf16> to vector<2x4x64xbf16>
    %26 = vector.shape_cast %25 : vector<2x4x64xbf16> to vector<8x64xbf16>
    %c3_i32_19 = arith.constant 3 : i32
    %27 = arith.muli %arg1, %c3_i32_19 : i32
    %c2_i32 = arith.constant 2 : i32
    %28 = arith.addi %27, %c2_i32 : i32
    %29 = arith.index_cast %28 : i32 to index
    %c0_20 = arith.constant 0 : index
    %c0_21 = arith.constant 0 : index
    %30 = vector.load %arg3[%29, %c0_20, %c0_21] : memref<9x64x128xbf16, #tpu.memory_space<vmem>>, vector<1x64x128xbf16>
    %31 = vector.shape_cast %30 : vector<1x64x128xbf16> to vector<64x128xbf16>
    %cst_22 = arith.constant dense<0.000000e+00> : vector<8x128xf32>
    %32 = tpu.matmul %26, %31, %cst_22 {dimension_numbers = #tpu.dot_dimension_numbers<[1], [0], [0], [1], [0, 0, 1, 1], [], []>} : vector<8x64xbf16>, vector<64x128xbf16>, vector<8x128xf32> -> vector<8x128xf32>
    %33 = arith.addf %23, %32 : vector<8x128xf32>
    %c0_23 = arith.constant 0 : index
    %c0_24 = arith.constant 0 : index
    %34 = vector.load %arg6[%c0_23, %c0_24] : memref<8x128xf32, #tpu.memory_space<vmem>>, vector<8x128xf32>
    tpu.vector_store %arg6[%c0_23, %c0_24], %33 {strides = array<i32>} : memref<8x128xf32, #tpu.memory_space<vmem>>, vector<8x128xf32>,
    %c2_i32_25 = arith.constant 2 : i32
    %35 = arith.cmpi eq, %arg1, %c2_i32_25 : i32
    %36 = arith.extui %35 : i1 to i32
    %c0_i32_26 = arith.constant 0 : i32
    %37 = arith.cmpi ne, %36, %c0_i32_26 : i32
    scf.if %37 {
      %c0_27 = arith.constant 0 : index
      %c0_28 = arith.constant 0 : index
      %38 = vector.load %arg6[%c0_27, %c0_28] : memref<8x128xf32, #tpu.memory_space<vmem>>, vector<8x128xf32>
      %c0_29 = arith.constant 0 : index
      %c0_30 = arith.constant 0 : index
      %39 = vector.load %arg4[%c0_29, %c0_30] : memref<1x128xf32, #tpu.memory_space<vmem>>, vector<1x128xf32>
      %40 = vector.broadcast %39 : vector<1x128xf32> to vector<8x128xf32>
      %41 = arith.addf %38, %40 : vector<8x128xf32>
      %cst_31 = arith.constant 0.000000e+00 : f32
      %42 = vector.broadcast %cst_31 : f32 to vector<8x128xf32>
      %43 = arith.maximumf %41, %42 : vector<8x128xf32>
      %44 = vector.shape_cast %43 : vector<8x128xf32> to vector<2x1x4x128xf32>
      %45 = arith.truncf %44 : vector<2x1x4x128xf32> to vector<2x1x4x128xbf16>
      %c0_32 = arith.constant 0 : index
      %c0_33 = arith.constant 0 : index
      %c0_34 = arith.constant 0 : index
      %c0_35 = arith.constant 0 : index
      %46 = vector.load %arg5[%c0_32, %c0_33, %c0_34, %c0_35] : memref<2x1x4x128xbf16, #tpu.memory_space<vmem>>, vector<2x1x4x128xbf16>
      tpu.vector_store %arg5[%c0_32, %c0_33, %c0_34, %c0_35], %45 {strides = array<i32>} : memref<2x1x4x128xbf16, #tpu.memory_space<vmem>>, vector<2x1x4x128xbf16>,
    } else {
    }
    return
  }
  func.func @transform_0(%arg0: i32, %arg1: i32) -> (i32, i32, i32, i32) {
    %c2_i32 = arith.constant 2 : i32
    %0 = arith.muli %c2_i32, %arg0 : i32
    %c1_i32 = arith.constant 1 : i32
    %1 = arith.muli %c1_i32, %arg1 : i32
    %2 = arith.addi %0, %1 : i32
    %c0_i32 = arith.constant 0 : i32
    %c0_i32_0 = arith.constant 0 : i32
    %c0_i32_1 = arith.constant 0 : i32
    %c0_i32_2 = arith.constant 0 : i32
    return %c0_i32, %2, %c0_i32_0, %c0_i32_1 : i32, i32, i32, i32
  }
  func.func @transform_1(%arg0: i32, %arg1: i32) -> (i32, i32, i32) {
    %c0_i32 = arith.constant 0 : i32
    %c0_i32_0 = arith.constant 0 : i32
    %c0_i32_1 = arith.constant 0 : i32
    %c0_i32_2 = arith.constant 0 : i32
    return %c0_i32, %c0_i32_0, %c0_i32_1 : i32, i32, i32
  }
  func.func @transform_2(%arg0: i32, %arg1: i32) -> (i32, i32) {
    %c0_i32 = arith.constant 0 : i32
    %c0_i32_0 = arith.constant 0 : i32
    %c0_i32_1 = arith.constant 0 : i32
    return %c0_i32, %c0_i32_0 : i32, i32
  }
  func.func @transform_3(%arg0: i32, %arg1: i32) -> (i32, i32, i32, i32) {
    %c0_i32 = arith.constant 0 : i32
    %c0_i32_0 = arith.constant 0 : i32
    %c0_i32_1 = arith.constant 0 : i32
    %c0_i32_2 = arith.constant 0 : i32
    return %c0_i32, %arg0, %c0_i32_0, %c0_i32_1 : i32, i32, i32, i32
  }
}

module attributes {stable_mosaic.version = 11 : i64} {
  func.func @_conv_row_kernel(%arg0: i32, %arg1: i32, %arg2: memref<2x1x4x64xbf16, #tpu.memory_space<vmem>>, %arg3: memref<1x64x128xbf16, #tpu.memory_space<vmem>>, %arg4: memref<1x128xf32, #tpu.memory_space<vmem>>, %arg5: memref<2x1x4x128xbf16, #tpu.memory_space<vmem>>, %arg6: memref<8x128xf32, #tpu.memory_space<vmem>>) attributes {dimension_semantics = [#tpu.dimension_semantics<parallel>, #tpu.dimension_semantics<arbitrary>], iteration_bounds = array<i64: 4, 1>, scalar_prefetch = 0 : i64, scratch_operands = 1 : i64, tpu.core_type = #tpu.core_type<tc>, window_params = [{transform_indices = @transform_0, window_bounds = array<i64: 2, 1, 4, 64>}, {pipeline_mode = #tpu.pipeline_mode<synchronous>, transform_indices = @transform_1, window_bounds = array<i64: 1, 64, 128>}, {pipeline_mode = #tpu.pipeline_mode<synchronous>, transform_indices = @transform_2, window_bounds = array<i64: 1, 128>}, {transform_indices = @transform_3, window_bounds = array<i64: 2, 1, 4, 128>}]} {
    %c0_i32 = arith.constant 0 : i32
    %0 = arith.cmpi eq, %arg1, %c0_i32 : i32
    %1 = arith.extui %0 : i1 to i32
    %c0_i32_0 = arith.constant 0 : i32
    %2 = arith.cmpi ne, %1, %c0_i32_0 : i32
    scf.if %2 {
      %cst_13 = arith.constant 0.000000e+00 : f32
      %18 = vector.broadcast %cst_13 : f32 to vector<8x128xf32>
      %c0_14 = arith.constant 0 : index
      %c0_15 = arith.constant 0 : index
      %19 = vector.load %arg6[%c0_14, %c0_15] : memref<8x128xf32, #tpu.memory_space<vmem>>, vector<8x128xf32>
      tpu.vector_store %arg6[%c0_14, %c0_15], %18 {strides = array<i32>} : memref<8x128xf32, #tpu.memory_space<vmem>>, vector<8x128xf32>,
    } else {
    }
    %c0 = arith.constant 0 : index
    %c0_1 = arith.constant 0 : index
    %3 = vector.load %arg6[%c0, %c0_1] : memref<8x128xf32, #tpu.memory_space<vmem>>, vector<8x128xf32>
    %c0_2 = arith.constant 0 : index
    %c0_3 = arith.constant 0 : index
    %c0_4 = arith.constant 0 : index
    %c0_5 = arith.constant 0 : index
    %4 = vector.load %arg2[%c0_2, %c0_3, %c0_4, %c0_5] : memref<2x1x4x64xbf16, #tpu.memory_space<vmem>>, vector<2x1x4x64xbf16>
    %5 = vector.shape_cast %4 : vector<2x1x4x64xbf16> to vector<2x4x64xbf16>
    %6 = vector.shape_cast %5 : vector<2x4x64xbf16> to vector<8x64xbf16>
    %c1_i32 = arith.constant 1 : i32
    %7 = arith.muli %arg1, %c1_i32 : i32
    %c0_i32_6 = arith.constant 0 : i32
    %8 = arith.addi %7, %c0_i32_6 : i32
    %9 = arith.index_cast %8 : i32 to index
    %c0_7 = arith.constant 0 : index
    %c0_8 = arith.constant 0 : index
    %10 = vector.load %arg3[%9, %c0_7, %c0_8] : memref<1x64x128xbf16, #tpu.memory_space<vmem>>, vector<1x64x128xbf16>
    %11 = vector.shape_cast %10 : vector<1x64x128xbf16> to vector<64x128xbf16>
    %cst = arith.constant dense<0.000000e+00> : vector<8x128xf32>
    %12 = tpu.matmul %6, %11, %cst {dimension_numbers = #tpu.dot_dimension_numbers<[1], [0], [0], [1], [0, 0, 1, 1], [], []>} : vector<8x64xbf16>, vector<64x128xbf16>, vector<8x128xf32> -> vector<8x128xf32>
    %13 = arith.addf %3, %12 : vector<8x128xf32>
    %c0_9 = arith.constant 0 : index
    %c0_10 = arith.constant 0 : index
    %14 = vector.load %arg6[%c0_9, %c0_10] : memref<8x128xf32, #tpu.memory_space<vmem>>, vector<8x128xf32>
    tpu.vector_store %arg6[%c0_9, %c0_10], %13 {strides = array<i32>} : memref<8x128xf32, #tpu.memory_space<vmem>>, vector<8x128xf32>,
    %c0_i32_11 = arith.constant 0 : i32
    %15 = arith.cmpi eq, %arg1, %c0_i32_11 : i32
    %16 = arith.extui %15 : i1 to i32
    %c0_i32_12 = arith.constant 0 : i32
    %17 = arith.cmpi ne, %16, %c0_i32_12 : i32
    scf.if %17 {
      %c0_13 = arith.constant 0 : index
      %c0_14 = arith.constant 0 : index
      %18 = vector.load %arg6[%c0_13, %c0_14] : memref<8x128xf32, #tpu.memory_space<vmem>>, vector<8x128xf32>
      %c0_15 = arith.constant 0 : index
      %c0_16 = arith.constant 0 : index
      %19 = vector.load %arg4[%c0_15, %c0_16] : memref<1x128xf32, #tpu.memory_space<vmem>>, vector<1x128xf32>
      %20 = vector.broadcast %19 : vector<1x128xf32> to vector<8x128xf32>
      %21 = arith.addf %18, %20 : vector<8x128xf32>
      %22 = vector.shape_cast %21 : vector<8x128xf32> to vector<2x1x4x128xf32>
      %23 = arith.truncf %22 : vector<2x1x4x128xf32> to vector<2x1x4x128xbf16>
      %c0_17 = arith.constant 0 : index
      %c0_18 = arith.constant 0 : index
      %c0_19 = arith.constant 0 : index
      %c0_20 = arith.constant 0 : index
      %24 = vector.load %arg5[%c0_17, %c0_18, %c0_19, %c0_20] : memref<2x1x4x128xbf16, #tpu.memory_space<vmem>>, vector<2x1x4x128xbf16>
      tpu.vector_store %arg5[%c0_17, %c0_18, %c0_19, %c0_20], %23 {strides = array<i32>} : memref<2x1x4x128xbf16, #tpu.memory_space<vmem>>, vector<2x1x4x128xbf16>,
    } else {
    }
    return
  }
  func.func @transform_0(%arg0: i32, %arg1: i32) -> (i32, i32, i32, i32) {
    %c2_i32 = arith.constant 2 : i32
    %0 = arith.muli %c2_i32, %arg0 : i32
    %c1_i32 = arith.constant 1 : i32
    %1 = arith.muli %c1_i32, %arg1 : i32
    %2 = arith.addi %0, %1 : i32
    %c0_i32 = arith.constant 0 : i32
    %c0_i32_0 = arith.constant 0 : i32
    %c0_i32_1 = arith.constant 0 : i32
    %c0_i32_2 = arith.constant 0 : i32
    return %c0_i32, %2, %c0_i32_0, %c0_i32_1 : i32, i32, i32, i32
  }
  func.func @transform_1(%arg0: i32, %arg1: i32) -> (i32, i32, i32) {
    %c0_i32 = arith.constant 0 : i32
    %c0_i32_0 = arith.constant 0 : i32
    %c0_i32_1 = arith.constant 0 : i32
    %c0_i32_2 = arith.constant 0 : i32
    return %c0_i32, %c0_i32_0, %c0_i32_1 : i32, i32, i32
  }
  func.func @transform_2(%arg0: i32, %arg1: i32) -> (i32, i32) {
    %c0_i32 = arith.constant 0 : i32
    %c0_i32_0 = arith.constant 0 : i32
    %c0_i32_1 = arith.constant 0 : i32
    return %c0_i32, %c0_i32_0 : i32, i32
  }
  func.func @transform_3(%arg0: i32, %arg1: i32) -> (i32, i32, i32, i32) {
    %c0_i32 = arith.constant 0 : i32
    %c0_i32_0 = arith.constant 0 : i32
    %c0_i32_1 = arith.constant 0 : i32
    %c0_i32_2 = arith.constant 0 : i32
    return %c0_i32, %arg0, %c0_i32_0, %c0_i32_1 : i32, i32, i32, i32
  }
}

module attributes {stable_mosaic.version = 11 : i64} {
  func.func @_conv_row_kernel(%arg0: i32, %arg1: i32, %arg2: memref<2x1x6x128xbf16, #tpu.memory_space<vmem>>, %arg3: memref<9x128x128xbf16, #tpu.memory_space<vmem>>, %arg4: memref<1x128xf32, #tpu.memory_space<vmem>>, %arg5: memref<2x1x4x128xbf16, #tpu.memory_space<vmem>>, %arg6: memref<8x128xf32, #tpu.memory_space<vmem>>) attributes {dimension_semantics = [#tpu.dimension_semantics<parallel>, #tpu.dimension_semantics<arbitrary>], iteration_bounds = array<i64: 4, 3>, scalar_prefetch = 0 : i64, scratch_operands = 1 : i64, tpu.core_type = #tpu.core_type<tc>, window_params = [{transform_indices = @transform_0, window_bounds = array<i64: 2, 1, 6, 128>}, {pipeline_mode = #tpu.pipeline_mode<synchronous>, transform_indices = @transform_1, window_bounds = array<i64: 9, 128, 128>}, {pipeline_mode = #tpu.pipeline_mode<synchronous>, transform_indices = @transform_2, window_bounds = array<i64: 1, 128>}, {transform_indices = @transform_3, window_bounds = array<i64: 2, 1, 4, 128>}]} {
    %c0_i32 = arith.constant 0 : i32
    %0 = arith.cmpi eq, %arg1, %c0_i32 : i32
    %1 = arith.extui %0 : i1 to i32
    %c0_i32_0 = arith.constant 0 : i32
    %2 = arith.cmpi ne, %1, %c0_i32_0 : i32
    scf.if %2 {
      %cst_27 = arith.constant 0.000000e+00 : f32
      %38 = vector.broadcast %cst_27 : f32 to vector<8x128xf32>
      %c0_28 = arith.constant 0 : index
      %c0_29 = arith.constant 0 : index
      %39 = vector.load %arg6[%c0_28, %c0_29] : memref<8x128xf32, #tpu.memory_space<vmem>>, vector<8x128xf32>
      tpu.vector_store %arg6[%c0_28, %c0_29], %38 {strides = array<i32>} : memref<8x128xf32, #tpu.memory_space<vmem>>, vector<8x128xf32>,
    } else {
    }
    %c0 = arith.constant 0 : index
    %c0_1 = arith.constant 0 : index
    %3 = vector.load %arg6[%c0, %c0_1] : memref<8x128xf32, #tpu.memory_space<vmem>>, vector<8x128xf32>
    %c0_2 = arith.constant 0 : index
    %c0_3 = arith.constant 0 : index
    %c0_4 = arith.constant 0 : index
    %c0_5 = arith.constant 0 : index
    %4 = vector.load %arg2[%c0_2, %c0_3, %c0_4, %c0_5] : memref<2x1x6x128xbf16, #tpu.memory_space<vmem>>, vector<2x1x4x128xbf16>
    %5 = vector.shape_cast %4 : vector<2x1x4x128xbf16> to vector<2x4x128xbf16>
    %6 = vector.shape_cast %5 : vector<2x4x128xbf16> to vector<8x128xbf16>
    %c3_i32 = arith.constant 3 : i32
    %7 = arith.muli %arg1, %c3_i32 : i32
    %c0_i32_6 = arith.constant 0 : i32
    %8 = arith.addi %7, %c0_i32_6 : i32
    %9 = arith.index_cast %8 : i32 to index
    %c0_7 = arith.constant 0 : index
    %c0_8 = arith.constant 0 : index
    %10 = vector.load %arg3[%9, %c0_7, %c0_8] : memref<9x128x128xbf16, #tpu.memory_space<vmem>>, vector<1x128x128xbf16>
    %11 = vector.shape_cast %10 : vector<1x128x128xbf16> to vector<128x128xbf16>
    %cst = arith.constant dense<0.000000e+00> : vector<8x128xf32>
    %12 = tpu.matmul %6, %11, %cst {dimension_numbers = #tpu.dot_dimension_numbers<[1], [0], [0], [1], [0, 0, 1, 1], [], []>} : vector<8x128xbf16>, vector<128x128xbf16>, vector<8x128xf32> -> vector<8x128xf32>
    %13 = arith.addf %3, %12 : vector<8x128xf32>
    %c0_9 = arith.constant 0 : index
    %c0_10 = arith.constant 0 : index
    %c1 = arith.constant 1 : index
    %c0_11 = arith.constant 0 : index
    %14 = vector.load %arg2[%c0_9, %c0_10, %c1, %c0_11] : memref<2x1x6x128xbf16, #tpu.memory_space<vmem>>, vector<2x1x4x128xbf16>
    %15 = vector.shape_cast %14 : vector<2x1x4x128xbf16> to vector<2x4x128xbf16>
    %16 = vector.shape_cast %15 : vector<2x4x128xbf16> to vector<8x128xbf16>
    %c3_i32_12 = arith.constant 3 : i32
    %17 = arith.muli %arg1, %c3_i32_12 : i32
    %c1_i32 = arith.constant 1 : i32
    %18 = arith.addi %17, %c1_i32 : i32
    %19 = arith.index_cast %18 : i32 to index
    %c0_13 = arith.constant 0 : index
    %c0_14 = arith.constant 0 : index
    %20 = vector.load %arg3[%19, %c0_13, %c0_14] : memref<9x128x128xbf16, #tpu.memory_space<vmem>>, vector<1x128x128xbf16>
    %21 = vector.shape_cast %20 : vector<1x128x128xbf16> to vector<128x128xbf16>
    %cst_15 = arith.constant dense<0.000000e+00> : vector<8x128xf32>
    %22 = tpu.matmul %16, %21, %cst_15 {dimension_numbers = #tpu.dot_dimension_numbers<[1], [0], [0], [1], [0, 0, 1, 1], [], []>} : vector<8x128xbf16>, vector<128x128xbf16>, vector<8x128xf32> -> vector<8x128xf32>
    %23 = arith.addf %13, %22 : vector<8x128xf32>
    %c0_16 = arith.constant 0 : index
    %c0_17 = arith.constant 0 : index
    %c2 = arith.constant 2 : index
    %c0_18 = arith.constant 0 : index
    %24 = vector.load %arg2[%c0_16, %c0_17, %c2, %c0_18] : memref<2x1x6x128xbf16, #tpu.memory_space<vmem>>, vector<2x1x4x128xbf16>
    %25 = vector.shape_cast %24 : vector<2x1x4x128xbf16> to vector<2x4x128xbf16>
    %26 = vector.shape_cast %25 : vector<2x4x128xbf16> to vector<8x128xbf16>
    %c3_i32_19 = arith.constant 3 : i32
    %27 = arith.muli %arg1, %c3_i32_19 : i32
    %c2_i32 = arith.constant 2 : i32
    %28 = arith.addi %27, %c2_i32 : i32
    %29 = arith.index_cast %28 : i32 to index
    %c0_20 = arith.constant 0 : index
    %c0_21 = arith.constant 0 : index
    %30 = vector.load %arg3[%29, %c0_20, %c0_21] : memref<9x128x128xbf16, #tpu.memory_space<vmem>>, vector<1x128x128xbf16>
    %31 = vector.shape_cast %30 : vector<1x128x128xbf16> to vector<128x128xbf16>
    %cst_22 = arith.constant dense<0.000000e+00> : vector<8x128xf32>
    %32 = tpu.matmul %26, %31, %cst_22 {dimension_numbers = #tpu.dot_dimension_numbers<[1], [0], [0], [1], [0, 0, 1, 1], [], []>} : vector<8x128xbf16>, vector<128x128xbf16>, vector<8x128xf32> -> vector<8x128xf32>
    %33 = arith.addf %23, %32 : vector<8x128xf32>
    %c0_23 = arith.constant 0 : index
    %c0_24 = arith.constant 0 : index
    %34 = vector.load %arg6[%c0_23, %c0_24] : memref<8x128xf32, #tpu.memory_space<vmem>>, vector<8x128xf32>
    tpu.vector_store %arg6[%c0_23, %c0_24], %33 {strides = array<i32>} : memref<8x128xf32, #tpu.memory_space<vmem>>, vector<8x128xf32>,
    %c2_i32_25 = arith.constant 2 : i32
    %35 = arith.cmpi eq, %arg1, %c2_i32_25 : i32
    %36 = arith.extui %35 : i1 to i32
    %c0_i32_26 = arith.constant 0 : i32
    %37 = arith.cmpi ne, %36, %c0_i32_26 : i32
    scf.if %37 {
      %c0_27 = arith.constant 0 : index
      %c0_28 = arith.constant 0 : index
      %38 = vector.load %arg6[%c0_27, %c0_28] : memref<8x128xf32, #tpu.memory_space<vmem>>, vector<8x128xf32>
      %c0_29 = arith.constant 0 : index
      %c0_30 = arith.constant 0 : index
      %39 = vector.load %arg4[%c0_29, %c0_30] : memref<1x128xf32, #tpu.memory_space<vmem>>, vector<1x128xf32>
      %40 = vector.broadcast %39 : vector<1x128xf32> to vector<8x128xf32>
      %41 = arith.addf %38, %40 : vector<8x128xf32>
      %cst_31 = arith.constant 0.000000e+00 : f32
      %42 = vector.broadcast %cst_31 : f32 to vector<8x128xf32>
      %43 = arith.maximumf %41, %42 : vector<8x128xf32>
      %44 = vector.shape_cast %43 : vector<8x128xf32> to vector<2x1x4x128xf32>
      %45 = arith.truncf %44 : vector<2x1x4x128xf32> to vector<2x1x4x128xbf16>
      %c0_32 = arith.constant 0 : index
      %c0_33 = arith.constant 0 : index
      %c0_34 = arith.constant 0 : index
      %c0_35 = arith.constant 0 : index
      %46 = vector.load %arg5[%c0_32, %c0_33, %c0_34, %c0_35] : memref<2x1x4x128xbf16, #tpu.memory_space<vmem>>, vector<2x1x4x128xbf16>
      tpu.vector_store %arg5[%c0_32, %c0_33, %c0_34, %c0_35], %45 {strides = array<i32>} : memref<2x1x4x128xbf16, #tpu.memory_space<vmem>>, vector<2x1x4x128xbf16>,
    } else {
    }
    return
  }
  func.func @transform_0(%arg0: i32, %arg1: i32) -> (i32, i32, i32, i32) {
    %c1_i32 = arith.constant 1 : i32
    %0 = arith.muli %c1_i32, %arg0 : i32
    %c1_i32_0 = arith.constant 1 : i32
    %1 = arith.muli %c1_i32_0, %arg1 : i32
    %2 = arith.addi %0, %1 : i32
    %c0_i32 = arith.constant 0 : i32
    %c0_i32_1 = arith.constant 0 : i32
    %c0_i32_2 = arith.constant 0 : i32
    %c0_i32_3 = arith.constant 0 : i32
    return %c0_i32, %2, %c0_i32_1, %c0_i32_2 : i32, i32, i32, i32
  }
  func.func @transform_1(%arg0: i32, %arg1: i32) -> (i32, i32, i32) {
    %c0_i32 = arith.constant 0 : i32
    %c0_i32_0 = arith.constant 0 : i32
    %c0_i32_1 = arith.constant 0 : i32
    %c0_i32_2 = arith.constant 0 : i32
    return %c0_i32, %c0_i32_0, %c0_i32_1 : i32, i32, i32
  }
  func.func @transform_2(%arg0: i32, %arg1: i32) -> (i32, i32) {
    %c0_i32 = arith.constant 0 : i32
    %c0_i32_0 = arith.constant 0 : i32
    %c0_i32_1 = arith.constant 0 : i32
    return %c0_i32, %c0_i32_0 : i32, i32
  }
  func.func @transform_3(%arg0: i32, %arg1: i32) -> (i32, i32, i32, i32) {
    %c0_i32 = arith.constant 0 : i32
    %c0_i32_0 = arith.constant 0 : i32
    %c0_i32_1 = arith.constant 0 : i32
    %c0_i32_2 = arith.constant 0 : i32
    return %c0_i32, %arg0, %c0_i32_0, %c0_i32_1 : i32, i32, i32, i32
  }
}

module attributes {stable_mosaic.version = 11 : i64} {
  func.func @_conv_row_kernel(%arg0: i32, %arg1: i32, %arg2: memref<2x1x6x128xbf16, #tpu.memory_space<vmem>>, %arg3: memref<9x128x128xbf16, #tpu.memory_space<vmem>>, %arg4: memref<1x128xf32, #tpu.memory_space<vmem>>, %arg5: memref<2x1x4x128xbf16, #tpu.memory_space<vmem>>, %arg6: memref<2x1x4x128xbf16, #tpu.memory_space<vmem>>, %arg7: memref<8x128xf32, #tpu.memory_space<vmem>>) attributes {dimension_semantics = [#tpu.dimension_semantics<parallel>, #tpu.dimension_semantics<arbitrary>], iteration_bounds = array<i64: 4, 3>, scalar_prefetch = 0 : i64, scratch_operands = 1 : i64, tpu.core_type = #tpu.core_type<tc>, window_params = [{transform_indices = @transform_0, window_bounds = array<i64: 2, 1, 6, 128>}, {pipeline_mode = #tpu.pipeline_mode<synchronous>, transform_indices = @transform_1, window_bounds = array<i64: 9, 128, 128>}, {pipeline_mode = #tpu.pipeline_mode<synchronous>, transform_indices = @transform_2, window_bounds = array<i64: 1, 128>}, {transform_indices = @transform_3, window_bounds = array<i64: 2, 1, 4, 128>}, {transform_indices = @transform_4, window_bounds = array<i64: 2, 1, 4, 128>}]} {
    %c0_i32 = arith.constant 0 : i32
    %0 = arith.cmpi eq, %arg1, %c0_i32 : i32
    %1 = arith.extui %0 : i1 to i32
    %c0_i32_0 = arith.constant 0 : i32
    %2 = arith.cmpi ne, %1, %c0_i32_0 : i32
    scf.if %2 {
      %cst_27 = arith.constant 0.000000e+00 : f32
      %38 = vector.broadcast %cst_27 : f32 to vector<8x128xf32>
      %c0_28 = arith.constant 0 : index
      %c0_29 = arith.constant 0 : index
      %39 = vector.load %arg7[%c0_28, %c0_29] : memref<8x128xf32, #tpu.memory_space<vmem>>, vector<8x128xf32>
      tpu.vector_store %arg7[%c0_28, %c0_29], %38 {strides = array<i32>} : memref<8x128xf32, #tpu.memory_space<vmem>>, vector<8x128xf32>,
    } else {
    }
    %c0 = arith.constant 0 : index
    %c0_1 = arith.constant 0 : index
    %3 = vector.load %arg7[%c0, %c0_1] : memref<8x128xf32, #tpu.memory_space<vmem>>, vector<8x128xf32>
    %c0_2 = arith.constant 0 : index
    %c0_3 = arith.constant 0 : index
    %c0_4 = arith.constant 0 : index
    %c0_5 = arith.constant 0 : index
    %4 = vector.load %arg2[%c0_2, %c0_3, %c0_4, %c0_5] : memref<2x1x6x128xbf16, #tpu.memory_space<vmem>>, vector<2x1x4x128xbf16>
    %5 = vector.shape_cast %4 : vector<2x1x4x128xbf16> to vector<2x4x128xbf16>
    %6 = vector.shape_cast %5 : vector<2x4x128xbf16> to vector<8x128xbf16>
    %c3_i32 = arith.constant 3 : i32
    %7 = arith.muli %arg1, %c3_i32 : i32
    %c0_i32_6 = arith.constant 0 : i32
    %8 = arith.addi %7, %c0_i32_6 : i32
    %9 = arith.index_cast %8 : i32 to index
    %c0_7 = arith.constant 0 : index
    %c0_8 = arith.constant 0 : index
    %10 = vector.load %arg3[%9, %c0_7, %c0_8] : memref<9x128x128xbf16, #tpu.memory_space<vmem>>, vector<1x128x128xbf16>
    %11 = vector.shape_cast %10 : vector<1x128x128xbf16> to vector<128x128xbf16>
    %cst = arith.constant dense<0.000000e+00> : vector<8x128xf32>
    %12 = tpu.matmul %6, %11, %cst {dimension_numbers = #tpu.dot_dimension_numbers<[1], [0], [0], [1], [0, 0, 1, 1], [], []>} : vector<8x128xbf16>, vector<128x128xbf16>, vector<8x128xf32> -> vector<8x128xf32>
    %13 = arith.addf %3, %12 : vector<8x128xf32>
    %c0_9 = arith.constant 0 : index
    %c0_10 = arith.constant 0 : index
    %c1 = arith.constant 1 : index
    %c0_11 = arith.constant 0 : index
    %14 = vector.load %arg2[%c0_9, %c0_10, %c1, %c0_11] : memref<2x1x6x128xbf16, #tpu.memory_space<vmem>>, vector<2x1x4x128xbf16>
    %15 = vector.shape_cast %14 : vector<2x1x4x128xbf16> to vector<2x4x128xbf16>
    %16 = vector.shape_cast %15 : vector<2x4x128xbf16> to vector<8x128xbf16>
    %c3_i32_12 = arith.constant 3 : i32
    %17 = arith.muli %arg1, %c3_i32_12 : i32
    %c1_i32 = arith.constant 1 : i32
    %18 = arith.addi %17, %c1_i32 : i32
    %19 = arith.index_cast %18 : i32 to index
    %c0_13 = arith.constant 0 : index
    %c0_14 = arith.constant 0 : index
    %20 = vector.load %arg3[%19, %c0_13, %c0_14] : memref<9x128x128xbf16, #tpu.memory_space<vmem>>, vector<1x128x128xbf16>
    %21 = vector.shape_cast %20 : vector<1x128x128xbf16> to vector<128x128xbf16>
    %cst_15 = arith.constant dense<0.000000e+00> : vector<8x128xf32>
    %22 = tpu.matmul %16, %21, %cst_15 {dimension_numbers = #tpu.dot_dimension_numbers<[1], [0], [0], [1], [0, 0, 1, 1], [], []>} : vector<8x128xbf16>, vector<128x128xbf16>, vector<8x128xf32> -> vector<8x128xf32>
    %23 = arith.addf %13, %22 : vector<8x128xf32>
    %c0_16 = arith.constant 0 : index
    %c0_17 = arith.constant 0 : index
    %c2 = arith.constant 2 : index
    %c0_18 = arith.constant 0 : index
    %24 = vector.load %arg2[%c0_16, %c0_17, %c2, %c0_18] : memref<2x1x6x128xbf16, #tpu.memory_space<vmem>>, vector<2x1x4x128xbf16>
    %25 = vector.shape_cast %24 : vector<2x1x4x128xbf16> to vector<2x4x128xbf16>
    %26 = vector.shape_cast %25 : vector<2x4x128xbf16> to vector<8x128xbf16>
    %c3_i32_19 = arith.constant 3 : i32
    %27 = arith.muli %arg1, %c3_i32_19 : i32
    %c2_i32 = arith.constant 2 : i32
    %28 = arith.addi %27, %c2_i32 : i32
    %29 = arith.index_cast %28 : i32 to index
    %c0_20 = arith.constant 0 : index
    %c0_21 = arith.constant 0 : index
    %30 = vector.load %arg3[%29, %c0_20, %c0_21] : memref<9x128x128xbf16, #tpu.memory_space<vmem>>, vector<1x128x128xbf16>
    %31 = vector.shape_cast %30 : vector<1x128x128xbf16> to vector<128x128xbf16>
    %cst_22 = arith.constant dense<0.000000e+00> : vector<8x128xf32>
    %32 = tpu.matmul %26, %31, %cst_22 {dimension_numbers = #tpu.dot_dimension_numbers<[1], [0], [0], [1], [0, 0, 1, 1], [], []>} : vector<8x128xbf16>, vector<128x128xbf16>, vector<8x128xf32> -> vector<8x128xf32>
    %33 = arith.addf %23, %32 : vector<8x128xf32>
    %c0_23 = arith.constant 0 : index
    %c0_24 = arith.constant 0 : index
    %34 = vector.load %arg7[%c0_23, %c0_24] : memref<8x128xf32, #tpu.memory_space<vmem>>, vector<8x128xf32>
    tpu.vector_store %arg7[%c0_23, %c0_24], %33 {strides = array<i32>} : memref<8x128xf32, #tpu.memory_space<vmem>>, vector<8x128xf32>,
    %c2_i32_25 = arith.constant 2 : i32
    %35 = arith.cmpi eq, %arg1, %c2_i32_25 : i32
    %36 = arith.extui %35 : i1 to i32
    %c0_i32_26 = arith.constant 0 : i32
    %37 = arith.cmpi ne, %36, %c0_i32_26 : i32
    scf.if %37 {
      %c0_27 = arith.constant 0 : index
      %c0_28 = arith.constant 0 : index
      %38 = vector.load %arg7[%c0_27, %c0_28] : memref<8x128xf32, #tpu.memory_space<vmem>>, vector<8x128xf32>
      %c0_29 = arith.constant 0 : index
      %c0_30 = arith.constant 0 : index
      %39 = vector.load %arg4[%c0_29, %c0_30] : memref<1x128xf32, #tpu.memory_space<vmem>>, vector<1x128xf32>
      %40 = vector.broadcast %39 : vector<1x128xf32> to vector<8x128xf32>
      %41 = arith.addf %38, %40 : vector<8x128xf32>
      %c0_31 = arith.constant 0 : index
      %c0_32 = arith.constant 0 : index
      %c0_33 = arith.constant 0 : index
      %c0_34 = arith.constant 0 : index
      %42 = vector.load %arg5[%c0_31, %c0_32, %c0_33, %c0_34] : memref<2x1x4x128xbf16, #tpu.memory_space<vmem>>, vector<2x1x4x128xbf16>
      %43 = vector.shape_cast %42 : vector<2x1x4x128xbf16> to vector<8x128xbf16>
      %44 = arith.extf %43 : vector<8x128xbf16> to vector<8x128xf32>
      %45 = arith.addf %41, %44 : vector<8x128xf32>
      %cst_35 = arith.constant 0.000000e+00 : f32
      %46 = vector.broadcast %cst_35 : f32 to vector<8x128xf32>
      %47 = arith.maximumf %45, %46 : vector<8x128xf32>
      %48 = vector.shape_cast %47 : vector<8x128xf32> to vector<2x1x4x128xf32>
      %49 = arith.truncf %48 : vector<2x1x4x128xf32> to vector<2x1x4x128xbf16>
      %c0_36 = arith.constant 0 : index
      %c0_37 = arith.constant 0 : index
      %c0_38 = arith.constant 0 : index
      %c0_39 = arith.constant 0 : index
      %50 = vector.load %arg6[%c0_36, %c0_37, %c0_38, %c0_39] : memref<2x1x4x128xbf16, #tpu.memory_space<vmem>>, vector<2x1x4x128xbf16>
      tpu.vector_store %arg6[%c0_36, %c0_37, %c0_38, %c0_39], %49 {strides = array<i32>} : memref<2x1x4x128xbf16, #tpu.memory_space<vmem>>, vector<2x1x4x128xbf16>,
    } else {
    }
    return
  }
  func.func @transform_0(%arg0: i32, %arg1: i32) -> (i32, i32, i32, i32) {
    %c1_i32 = arith.constant 1 : i32
    %0 = arith.muli %c1_i32, %arg0 : i32
    %c1_i32_0 = arith.constant 1 : i32
    %1 = arith.muli %c1_i32_0, %arg1 : i32
    %2 = arith.addi %0, %1 : i32
    %c0_i32 = arith.constant 0 : i32
    %c0_i32_1 = arith.constant 0 : i32
    %c0_i32_2 = arith.constant 0 : i32
    %c0_i32_3 = arith.constant 0 : i32
    return %c0_i32, %2, %c0_i32_1, %c0_i32_2 : i32, i32, i32, i32
  }
  func.func @transform_1(%arg0: i32, %arg1: i32) -> (i32, i32, i32) {
    %c0_i32 = arith.constant 0 : i32
    %c0_i32_0 = arith.constant 0 : i32
    %c0_i32_1 = arith.constant 0 : i32
    %c0_i32_2 = arith.constant 0 : i32
    return %c0_i32, %c0_i32_0, %c0_i32_1 : i32, i32, i32
  }
  func.func @transform_2(%arg0: i32, %arg1: i32) -> (i32, i32) {
    %c0_i32 = arith.constant 0 : i32
    %c0_i32_0 = arith.constant 0 : i32
    %c0_i32_1 = arith.constant 0 : i32
    return %c0_i32, %c0_i32_0 : i32, i32
  }
  func.func @transform_3(%arg0: i32, %arg1: i32) -> (i32, i32, i32, i32) {
    %c0_i32 = arith.constant 0 : i32
    %c0_i32_0 = arith.constant 0 : i32
    %c0_i32_1 = arith.constant 0 : i32
    %c0_i32_2 = arith.constant 0 : i32
    return %c0_i32, %arg0, %c0_i32_0, %c0_i32_1 : i32, i32, i32, i32
  }
  func.func @transform_4(%arg0: i32, %arg1: i32) -> (i32, i32, i32, i32) {
    %c0_i32 = arith.constant 0 : i32
    %c0_i32_0 = arith.constant 0 : i32
    %c0_i32_1 = arith.constant 0 : i32
    %c0_i32_2 = arith.constant 0 : i32
    return %c0_i32, %arg0, %c0_i32_0, %c0_i32_1 : i32, i32, i32, i32
  }
}

module attributes {stable_mosaic.version = 11 : i64} {
  func.func @_conv_row_kernel(%arg0: i32, %arg1: i32, %arg2: memref<4x1x3x128xbf16, #tpu.memory_space<vmem>>, %arg3: memref<9x128x256xbf16, #tpu.memory_space<vmem>>, %arg4: memref<1x256xf32, #tpu.memory_space<vmem>>, %arg5: memref<2x1x2x256xbf16, #tpu.memory_space<vmem>>, %arg6: memref<4x256xf32, #tpu.memory_space<vmem>>) attributes {dimension_semantics = [#tpu.dimension_semantics<parallel>, #tpu.dimension_semantics<arbitrary>], iteration_bounds = array<i64: 2, 3>, scalar_prefetch = 0 : i64, scratch_operands = 1 : i64, tpu.core_type = #tpu.core_type<tc>, window_params = [{transform_indices = @transform_0, window_bounds = array<i64: 4, 1, 3, 128>}, {pipeline_mode = #tpu.pipeline_mode<synchronous>, transform_indices = @transform_1, window_bounds = array<i64: 9, 128, 256>}, {pipeline_mode = #tpu.pipeline_mode<synchronous>, transform_indices = @transform_2, window_bounds = array<i64: 1, 256>}, {transform_indices = @transform_3, window_bounds = array<i64: 2, 1, 2, 256>}]} {
    %c0_i32 = arith.constant 0 : i32
    %0 = arith.cmpi eq, %arg1, %c0_i32 : i32
    %1 = arith.extui %0 : i1 to i32
    %c0_i32_0 = arith.constant 0 : i32
    %2 = arith.cmpi ne, %1, %c0_i32_0 : i32
    scf.if %2 {
      %cst_27 = arith.constant 0.000000e+00 : f32
      %38 = vector.broadcast %cst_27 : f32 to vector<4x256xf32>
      %c0_28 = arith.constant 0 : index
      %c0_29 = arith.constant 0 : index
      %39 = vector.load %arg6[%c0_28, %c0_29] : memref<4x256xf32, #tpu.memory_space<vmem>>, vector<4x256xf32>
      tpu.vector_store %arg6[%c0_28, %c0_29], %38 {strides = array<i32>} : memref<4x256xf32, #tpu.memory_space<vmem>>, vector<4x256xf32>,
    } else {
    }
    %c0 = arith.constant 0 : index
    %c0_1 = arith.constant 0 : index
    %3 = vector.load %arg6[%c0, %c0_1] : memref<4x256xf32, #tpu.memory_space<vmem>>, vector<4x256xf32>
    %c0_2 = arith.constant 0 : index
    %c0_3 = arith.constant 0 : index
    %c0_4 = arith.constant 0 : index
    %c0_5 = arith.constant 0 : index
    %4 = vector.load %arg2[%c0_2, %c0_3, %c0_4, %c0_5] : memref<4x1x3x128xbf16, #tpu.memory_space<vmem>>, vector<2x1x2x128xbf16>
    %5 = vector.shape_cast %4 : vector<2x1x2x128xbf16> to vector<2x2x128xbf16>
    %6 = vector.shape_cast %5 : vector<2x2x128xbf16> to vector<4x128xbf16>
    %c3_i32 = arith.constant 3 : i32
    %7 = arith.muli %arg1, %c3_i32 : i32
    %c0_i32_6 = arith.constant 0 : i32
    %8 = arith.addi %7, %c0_i32_6 : i32
    %9 = arith.index_cast %8 : i32 to index
    %c0_7 = arith.constant 0 : index
    %c0_8 = arith.constant 0 : index
    %10 = vector.load %arg3[%9, %c0_7, %c0_8] : memref<9x128x256xbf16, #tpu.memory_space<vmem>>, vector<1x128x256xbf16>
    %11 = vector.shape_cast %10 : vector<1x128x256xbf16> to vector<128x256xbf16>
    %cst = arith.constant dense<0.000000e+00> : vector<4x256xf32>
    %12 = tpu.matmul %6, %11, %cst {dimension_numbers = #tpu.dot_dimension_numbers<[1], [0], [0], [1], [0, 0, 1, 1], [], []>} : vector<4x128xbf16>, vector<128x256xbf16>, vector<4x256xf32> -> vector<4x256xf32>
    %13 = arith.addf %3, %12 : vector<4x256xf32>
    %c2 = arith.constant 2 : index
    %c0_9 = arith.constant 0 : index
    %c0_10 = arith.constant 0 : index
    %c0_11 = arith.constant 0 : index
    %14 = vector.load %arg2[%c2, %c0_9, %c0_10, %c0_11] : memref<4x1x3x128xbf16, #tpu.memory_space<vmem>>, vector<2x1x2x128xbf16>
    %15 = vector.shape_cast %14 : vector<2x1x2x128xbf16> to vector<2x2x128xbf16>
    %16 = vector.shape_cast %15 : vector<2x2x128xbf16> to vector<4x128xbf16>
    %c3_i32_12 = arith.constant 3 : i32
    %17 = arith.muli %arg1, %c3_i32_12 : i32
    %c1_i32 = arith.constant 1 : i32
    %18 = arith.addi %17, %c1_i32 : i32
    %19 = arith.index_cast %18 : i32 to index
    %c0_13 = arith.constant 0 : index
    %c0_14 = arith.constant 0 : index
    %20 = vector.load %arg3[%19, %c0_13, %c0_14] : memref<9x128x256xbf16, #tpu.memory_space<vmem>>, vector<1x128x256xbf16>
    %21 = vector.shape_cast %20 : vector<1x128x256xbf16> to vector<128x256xbf16>
    %cst_15 = arith.constant dense<0.000000e+00> : vector<4x256xf32>
    %22 = tpu.matmul %16, %21, %cst_15 {dimension_numbers = #tpu.dot_dimension_numbers<[1], [0], [0], [1], [0, 0, 1, 1], [], []>} : vector<4x128xbf16>, vector<128x256xbf16>, vector<4x256xf32> -> vector<4x256xf32>
    %23 = arith.addf %13, %22 : vector<4x256xf32>
    %c0_16 = arith.constant 0 : index
    %c0_17 = arith.constant 0 : index
    %c1 = arith.constant 1 : index
    %c0_18 = arith.constant 0 : index
    %24 = vector.load %arg2[%c0_16, %c0_17, %c1, %c0_18] : memref<4x1x3x128xbf16, #tpu.memory_space<vmem>>, vector<2x1x2x128xbf16>
    %25 = vector.shape_cast %24 : vector<2x1x2x128xbf16> to vector<2x2x128xbf16>
    %26 = vector.shape_cast %25 : vector<2x2x128xbf16> to vector<4x128xbf16>
    %c3_i32_19 = arith.constant 3 : i32
    %27 = arith.muli %arg1, %c3_i32_19 : i32
    %c2_i32 = arith.constant 2 : i32
    %28 = arith.addi %27, %c2_i32 : i32
    %29 = arith.index_cast %28 : i32 to index
    %c0_20 = arith.constant 0 : index
    %c0_21 = arith.constant 0 : index
    %30 = vector.load %arg3[%29, %c0_20, %c0_21] : memref<9x128x256xbf16, #tpu.memory_space<vmem>>, vector<1x128x256xbf16>
    %31 = vector.shape_cast %30 : vector<1x128x256xbf16> to vector<128x256xbf16>
    %cst_22 = arith.constant dense<0.000000e+00> : vector<4x256xf32>
    %32 = tpu.matmul %26, %31, %cst_22 {dimension_numbers = #tpu.dot_dimension_numbers<[1], [0], [0], [1], [0, 0, 1, 1], [], []>} : vector<4x128xbf16>, vector<128x256xbf16>, vector<4x256xf32> -> vector<4x256xf32>
    %33 = arith.addf %23, %32 : vector<4x256xf32>
    %c0_23 = arith.constant 0 : index
    %c0_24 = arith.constant 0 : index
    %34 = vector.load %arg6[%c0_23, %c0_24] : memref<4x256xf32, #tpu.memory_space<vmem>>, vector<4x256xf32>
    tpu.vector_store %arg6[%c0_23, %c0_24], %33 {strides = array<i32>} : memref<4x256xf32, #tpu.memory_space<vmem>>, vector<4x256xf32>,
    %c2_i32_25 = arith.constant 2 : i32
    %35 = arith.cmpi eq, %arg1, %c2_i32_25 : i32
    %36 = arith.extui %35 : i1 to i32
    %c0_i32_26 = arith.constant 0 : i32
    %37 = arith.cmpi ne, %36, %c0_i32_26 : i32
    scf.if %37 {
      %c0_27 = arith.constant 0 : index
      %c0_28 = arith.constant 0 : index
      %38 = vector.load %arg6[%c0_27, %c0_28] : memref<4x256xf32, #tpu.memory_space<vmem>>, vector<4x256xf32>
      %c0_29 = arith.constant 0 : index
      %c0_30 = arith.constant 0 : index
      %39 = vector.load %arg4[%c0_29, %c0_30] : memref<1x256xf32, #tpu.memory_space<vmem>>, vector<1x256xf32>
      %40 = vector.broadcast %39 : vector<1x256xf32> to vector<4x256xf32>
      %41 = arith.addf %38, %40 : vector<4x256xf32>
      %cst_31 = arith.constant 0.000000e+00 : f32
      %42 = vector.broadcast %cst_31 : f32 to vector<4x256xf32>
      %43 = arith.maximumf %41, %42 : vector<4x256xf32>
      %44 = vector.shape_cast %43 : vector<4x256xf32> to vector<2x1x2x256xf32>
      %45 = arith.truncf %44 : vector<2x1x2x256xf32> to vector<2x1x2x256xbf16>
      %c0_32 = arith.constant 0 : index
      %c0_33 = arith.constant 0 : index
      %c0_34 = arith.constant 0 : index
      %c0_35 = arith.constant 0 : index
      %46 = vector.load %arg5[%c0_32, %c0_33, %c0_34, %c0_35] : memref<2x1x2x256xbf16, #tpu.memory_space<vmem>>, vector<2x1x2x256xbf16>
      tpu.vector_store %arg5[%c0_32, %c0_33, %c0_34, %c0_35], %45 {strides = array<i32>} : memref<2x1x2x256xbf16, #tpu.memory_space<vmem>>, vector<2x1x2x256xbf16>,
    } else {
    }
    return
  }
  func.func @transform_0(%arg0: i32, %arg1: i32) -> (i32, i32, i32, i32) {
    %c2_i32 = arith.constant 2 : i32
    %0 = arith.muli %c2_i32, %arg0 : i32
    %c1_i32 = arith.constant 1 : i32
    %1 = arith.muli %c1_i32, %arg1 : i32
    %2 = arith.addi %0, %1 : i32
    %c0_i32 = arith.constant 0 : i32
    %c0_i32_0 = arith.constant 0 : i32
    %c0_i32_1 = arith.constant 0 : i32
    %c0_i32_2 = arith.constant 0 : i32
    return %c0_i32, %2, %c0_i32_0, %c0_i32_1 : i32, i32, i32, i32
  }
  func.func @transform_1(%arg0: i32, %arg1: i32) -> (i32, i32, i32) {
    %c0_i32 = arith.constant 0 : i32
    %c0_i32_0 = arith.constant 0 : i32
    %c0_i32_1 = arith.constant 0 : i32
    %c0_i32_2 = arith.constant 0 : i32
    return %c0_i32, %c0_i32_0, %c0_i32_1 : i32, i32, i32
  }
  func.func @transform_2(%arg0: i32, %arg1: i32) -> (i32, i32) {
    %c0_i32 = arith.constant 0 : i32
    %c0_i32_0 = arith.constant 0 : i32
    %c0_i32_1 = arith.constant 0 : i32
    return %c0_i32, %c0_i32_0 : i32, i32
  }
  func.func @transform_3(%arg0: i32, %arg1: i32) -> (i32, i32, i32, i32) {
    %c0_i32 = arith.constant 0 : i32
    %c0_i32_0 = arith.constant 0 : i32
    %c0_i32_1 = arith.constant 0 : i32
    %c0_i32_2 = arith.constant 0 : i32
    return %c0_i32, %arg0, %c0_i32_0, %c0_i32_1 : i32, i32, i32, i32
  }
}

module attributes {stable_mosaic.version = 11 : i64} {
  func.func @_conv_row_kernel(%arg0: i32, %arg1: i32, %arg2: memref<2x1x2x128xbf16, #tpu.memory_space<vmem>>, %arg3: memref<1x128x256xbf16, #tpu.memory_space<vmem>>, %arg4: memref<1x256xf32, #tpu.memory_space<vmem>>, %arg5: memref<2x1x2x256xbf16, #tpu.memory_space<vmem>>, %arg6: memref<4x256xf32, #tpu.memory_space<vmem>>) attributes {dimension_semantics = [#tpu.dimension_semantics<parallel>, #tpu.dimension_semantics<arbitrary>], iteration_bounds = array<i64: 2, 1>, scalar_prefetch = 0 : i64, scratch_operands = 1 : i64, tpu.core_type = #tpu.core_type<tc>, window_params = [{transform_indices = @transform_0, window_bounds = array<i64: 2, 1, 2, 128>}, {pipeline_mode = #tpu.pipeline_mode<synchronous>, transform_indices = @transform_1, window_bounds = array<i64: 1, 128, 256>}, {pipeline_mode = #tpu.pipeline_mode<synchronous>, transform_indices = @transform_2, window_bounds = array<i64: 1, 256>}, {transform_indices = @transform_3, window_bounds = array<i64: 2, 1, 2, 256>}]} {
    %c0_i32 = arith.constant 0 : i32
    %0 = arith.cmpi eq, %arg1, %c0_i32 : i32
    %1 = arith.extui %0 : i1 to i32
    %c0_i32_0 = arith.constant 0 : i32
    %2 = arith.cmpi ne, %1, %c0_i32_0 : i32
    scf.if %2 {
      %cst_13 = arith.constant 0.000000e+00 : f32
      %18 = vector.broadcast %cst_13 : f32 to vector<4x256xf32>
      %c0_14 = arith.constant 0 : index
      %c0_15 = arith.constant 0 : index
      %19 = vector.load %arg6[%c0_14, %c0_15] : memref<4x256xf32, #tpu.memory_space<vmem>>, vector<4x256xf32>
      tpu.vector_store %arg6[%c0_14, %c0_15], %18 {strides = array<i32>} : memref<4x256xf32, #tpu.memory_space<vmem>>, vector<4x256xf32>,
    } else {
    }
    %c0 = arith.constant 0 : index
    %c0_1 = arith.constant 0 : index
    %3 = vector.load %arg6[%c0, %c0_1] : memref<4x256xf32, #tpu.memory_space<vmem>>, vector<4x256xf32>
    %c0_2 = arith.constant 0 : index
    %c0_3 = arith.constant 0 : index
    %c0_4 = arith.constant 0 : index
    %c0_5 = arith.constant 0 : index
    %4 = vector.load %arg2[%c0_2, %c0_3, %c0_4, %c0_5] : memref<2x1x2x128xbf16, #tpu.memory_space<vmem>>, vector<2x1x2x128xbf16>
    %5 = vector.shape_cast %4 : vector<2x1x2x128xbf16> to vector<2x2x128xbf16>
    %6 = vector.shape_cast %5 : vector<2x2x128xbf16> to vector<4x128xbf16>
    %c1_i32 = arith.constant 1 : i32
    %7 = arith.muli %arg1, %c1_i32 : i32
    %c0_i32_6 = arith.constant 0 : i32
    %8 = arith.addi %7, %c0_i32_6 : i32
    %9 = arith.index_cast %8 : i32 to index
    %c0_7 = arith.constant 0 : index
    %c0_8 = arith.constant 0 : index
    %10 = vector.load %arg3[%9, %c0_7, %c0_8] : memref<1x128x256xbf16, #tpu.memory_space<vmem>>, vector<1x128x256xbf16>
    %11 = vector.shape_cast %10 : vector<1x128x256xbf16> to vector<128x256xbf16>
    %cst = arith.constant dense<0.000000e+00> : vector<4x256xf32>
    %12 = tpu.matmul %6, %11, %cst {dimension_numbers = #tpu.dot_dimension_numbers<[1], [0], [0], [1], [0, 0, 1, 1], [], []>} : vector<4x128xbf16>, vector<128x256xbf16>, vector<4x256xf32> -> vector<4x256xf32>
    %13 = arith.addf %3, %12 : vector<4x256xf32>
    %c0_9 = arith.constant 0 : index
    %c0_10 = arith.constant 0 : index
    %14 = vector.load %arg6[%c0_9, %c0_10] : memref<4x256xf32, #tpu.memory_space<vmem>>, vector<4x256xf32>
    tpu.vector_store %arg6[%c0_9, %c0_10], %13 {strides = array<i32>} : memref<4x256xf32, #tpu.memory_space<vmem>>, vector<4x256xf32>,
    %c0_i32_11 = arith.constant 0 : i32
    %15 = arith.cmpi eq, %arg1, %c0_i32_11 : i32
    %16 = arith.extui %15 : i1 to i32
    %c0_i32_12 = arith.constant 0 : i32
    %17 = arith.cmpi ne, %16, %c0_i32_12 : i32
    scf.if %17 {
      %c0_13 = arith.constant 0 : index
      %c0_14 = arith.constant 0 : index
      %18 = vector.load %arg6[%c0_13, %c0_14] : memref<4x256xf32, #tpu.memory_space<vmem>>, vector<4x256xf32>
      %c0_15 = arith.constant 0 : index
      %c0_16 = arith.constant 0 : index
      %19 = vector.load %arg4[%c0_15, %c0_16] : memref<1x256xf32, #tpu.memory_space<vmem>>, vector<1x256xf32>
      %20 = vector.broadcast %19 : vector<1x256xf32> to vector<4x256xf32>
      %21 = arith.addf %18, %20 : vector<4x256xf32>
      %22 = vector.shape_cast %21 : vector<4x256xf32> to vector<2x1x2x256xf32>
      %23 = arith.truncf %22 : vector<2x1x2x256xf32> to vector<2x1x2x256xbf16>
      %c0_17 = arith.constant 0 : index
      %c0_18 = arith.constant 0 : index
      %c0_19 = arith.constant 0 : index
      %c0_20 = arith.constant 0 : index
      %24 = vector.load %arg5[%c0_17, %c0_18, %c0_19, %c0_20] : memref<2x1x2x256xbf16, #tpu.memory_space<vmem>>, vector<2x1x2x256xbf16>
      tpu.vector_store %arg5[%c0_17, %c0_18, %c0_19, %c0_20], %23 {strides = array<i32>} : memref<2x1x2x256xbf16, #tpu.memory_space<vmem>>, vector<2x1x2x256xbf16>,
    } else {
    }
    return
  }
  func.func @transform_0(%arg0: i32, %arg1: i32) -> (i32, i32, i32, i32) {
    %c2_i32 = arith.constant 2 : i32
    %0 = arith.muli %c2_i32, %arg0 : i32
    %c1_i32 = arith.constant 1 : i32
    %1 = arith.muli %c1_i32, %arg1 : i32
    %2 = arith.addi %0, %1 : i32
    %c0_i32 = arith.constant 0 : i32
    %c0_i32_0 = arith.constant 0 : i32
    %c0_i32_1 = arith.constant 0 : i32
    %c0_i32_2 = arith.constant 0 : i32
    return %c0_i32, %2, %c0_i32_0, %c0_i32_1 : i32, i32, i32, i32
  }
  func.func @transform_1(%arg0: i32, %arg1: i32) -> (i32, i32, i32) {
    %c0_i32 = arith.constant 0 : i32
    %c0_i32_0 = arith.constant 0 : i32
    %c0_i32_1 = arith.constant 0 : i32
    %c0_i32_2 = arith.constant 0 : i32
    return %c0_i32, %c0_i32_0, %c0_i32_1 : i32, i32, i32
  }
  func.func @transform_2(%arg0: i32, %arg1: i32) -> (i32, i32) {
    %c0_i32 = arith.constant 0 : i32
    %c0_i32_0 = arith.constant 0 : i32
    %c0_i32_1 = arith.constant 0 : i32
    return %c0_i32, %c0_i32_0 : i32, i32
  }
  func.func @transform_3(%arg0: i32, %arg1: i32) -> (i32, i32, i32, i32) {
    %c0_i32 = arith.constant 0 : i32
    %c0_i32_0 = arith.constant 0 : i32
    %c0_i32_1 = arith.constant 0 : i32
    %c0_i32_2 = arith.constant 0 : i32
    return %c0_i32, %arg0, %c0_i32_0, %c0_i32_1 : i32, i32, i32, i32
  }
}

module attributes {stable_mosaic.version = 11 : i64} {
  func.func @_conv_row_kernel(%arg0: i32, %arg1: i32, %arg2: memref<2x1x4x256xbf16, #tpu.memory_space<vmem>>, %arg3: memref<9x256x256xbf16, #tpu.memory_space<vmem>>, %arg4: memref<1x256xf32, #tpu.memory_space<vmem>>, %arg5: memref<2x1x2x256xbf16, #tpu.memory_space<vmem>>, %arg6: memref<2x1x2x256xbf16, #tpu.memory_space<vmem>>, %arg7: memref<4x256xf32, #tpu.memory_space<vmem>>) attributes {dimension_semantics = [#tpu.dimension_semantics<parallel>, #tpu.dimension_semantics<arbitrary>], iteration_bounds = array<i64: 2, 3>, scalar_prefetch = 0 : i64, scratch_operands = 1 : i64, tpu.core_type = #tpu.core_type<tc>, window_params = [{transform_indices = @transform_0, window_bounds = array<i64: 2, 1, 4, 256>}, {pipeline_mode = #tpu.pipeline_mode<synchronous>, transform_indices = @transform_1, window_bounds = array<i64: 9, 256, 256>}, {pipeline_mode = #tpu.pipeline_mode<synchronous>, transform_indices = @transform_2, window_bounds = array<i64: 1, 256>}, {transform_indices = @transform_3, window_bounds = array<i64: 2, 1, 2, 256>}, {transform_indices = @transform_4, window_bounds = array<i64: 2, 1, 2, 256>}]} {
    %c0_i32 = arith.constant 0 : i32
    %0 = arith.cmpi eq, %arg1, %c0_i32 : i32
    %1 = arith.extui %0 : i1 to i32
    %c0_i32_0 = arith.constant 0 : i32
    %2 = arith.cmpi ne, %1, %c0_i32_0 : i32
    scf.if %2 {
      %cst_27 = arith.constant 0.000000e+00 : f32
      %38 = vector.broadcast %cst_27 : f32 to vector<4x256xf32>
      %c0_28 = arith.constant 0 : index
      %c0_29 = arith.constant 0 : index
      %39 = vector.load %arg7[%c0_28, %c0_29] : memref<4x256xf32, #tpu.memory_space<vmem>>, vector<4x256xf32>
      tpu.vector_store %arg7[%c0_28, %c0_29], %38 {strides = array<i32>} : memref<4x256xf32, #tpu.memory_space<vmem>>, vector<4x256xf32>,
    } else {
    }
    %c0 = arith.constant 0 : index
    %c0_1 = arith.constant 0 : index
    %3 = vector.load %arg7[%c0, %c0_1] : memref<4x256xf32, #tpu.memory_space<vmem>>, vector<4x256xf32>
    %c0_2 = arith.constant 0 : index
    %c0_3 = arith.constant 0 : index
    %c0_4 = arith.constant 0 : index
    %c0_5 = arith.constant 0 : index
    %4 = vector.load %arg2[%c0_2, %c0_3, %c0_4, %c0_5] : memref<2x1x4x256xbf16, #tpu.memory_space<vmem>>, vector<2x1x2x256xbf16>
    %5 = vector.shape_cast %4 : vector<2x1x2x256xbf16> to vector<2x2x256xbf16>
    %6 = vector.shape_cast %5 : vector<2x2x256xbf16> to vector<4x256xbf16>
    %c3_i32 = arith.constant 3 : i32
    %7 = arith.muli %arg1, %c3_i32 : i32
    %c0_i32_6 = arith.constant 0 : i32
    %8 = arith.addi %7, %c0_i32_6 : i32
    %9 = arith.index_cast %8 : i32 to index
    %c0_7 = arith.constant 0 : index
    %c0_8 = arith.constant 0 : index
    %10 = vector.load %arg3[%9, %c0_7, %c0_8] : memref<9x256x256xbf16, #tpu.memory_space<vmem>>, vector<1x256x256xbf16>
    %11 = vector.shape_cast %10 : vector<1x256x256xbf16> to vector<256x256xbf16>
    %cst = arith.constant dense<0.000000e+00> : vector<4x256xf32>
    %12 = tpu.matmul %6, %11, %cst {dimension_numbers = #tpu.dot_dimension_numbers<[1], [0], [0], [1], [0, 0, 1, 1], [], []>} : vector<4x256xbf16>, vector<256x256xbf16>, vector<4x256xf32> -> vector<4x256xf32>
    %13 = arith.addf %3, %12 : vector<4x256xf32>
    %c0_9 = arith.constant 0 : index
    %c0_10 = arith.constant 0 : index
    %c1 = arith.constant 1 : index
    %c0_11 = arith.constant 0 : index
    %14 = vector.load %arg2[%c0_9, %c0_10, %c1, %c0_11] : memref<2x1x4x256xbf16, #tpu.memory_space<vmem>>, vector<2x1x2x256xbf16>
    %15 = vector.shape_cast %14 : vector<2x1x2x256xbf16> to vector<2x2x256xbf16>
    %16 = vector.shape_cast %15 : vector<2x2x256xbf16> to vector<4x256xbf16>
    %c3_i32_12 = arith.constant 3 : i32
    %17 = arith.muli %arg1, %c3_i32_12 : i32
    %c1_i32 = arith.constant 1 : i32
    %18 = arith.addi %17, %c1_i32 : i32
    %19 = arith.index_cast %18 : i32 to index
    %c0_13 = arith.constant 0 : index
    %c0_14 = arith.constant 0 : index
    %20 = vector.load %arg3[%19, %c0_13, %c0_14] : memref<9x256x256xbf16, #tpu.memory_space<vmem>>, vector<1x256x256xbf16>
    %21 = vector.shape_cast %20 : vector<1x256x256xbf16> to vector<256x256xbf16>
    %cst_15 = arith.constant dense<0.000000e+00> : vector<4x256xf32>
    %22 = tpu.matmul %16, %21, %cst_15 {dimension_numbers = #tpu.dot_dimension_numbers<[1], [0], [0], [1], [0, 0, 1, 1], [], []>} : vector<4x256xbf16>, vector<256x256xbf16>, vector<4x256xf32> -> vector<4x256xf32>
    %23 = arith.addf %13, %22 : vector<4x256xf32>
    %c0_16 = arith.constant 0 : index
    %c0_17 = arith.constant 0 : index
    %c2 = arith.constant 2 : index
    %c0_18 = arith.constant 0 : index
    %24 = vector.load %arg2[%c0_16, %c0_17, %c2, %c0_18] : memref<2x1x4x256xbf16, #tpu.memory_space<vmem>>, vector<2x1x2x256xbf16>
    %25 = vector.shape_cast %24 : vector<2x1x2x256xbf16> to vector<2x2x256xbf16>
    %26 = vector.shape_cast %25 : vector<2x2x256xbf16> to vector<4x256xbf16>
    %c3_i32_19 = arith.constant 3 : i32
    %27 = arith.muli %arg1, %c3_i32_19 : i32
    %c2_i32 = arith.constant 2 : i32
    %28 = arith.addi %27, %c2_i32 : i32
    %29 = arith.index_cast %28 : i32 to index
    %c0_20 = arith.constant 0 : index
    %c0_21 = arith.constant 0 : index
    %30 = vector.load %arg3[%29, %c0_20, %c0_21] : memref<9x256x256xbf16, #tpu.memory_space<vmem>>, vector<1x256x256xbf16>
    %31 = vector.shape_cast %30 : vector<1x256x256xbf16> to vector<256x256xbf16>
    %cst_22 = arith.constant dense<0.000000e+00> : vector<4x256xf32>
    %32 = tpu.matmul %26, %31, %cst_22 {dimension_numbers = #tpu.dot_dimension_numbers<[1], [0], [0], [1], [0, 0, 1, 1], [], []>} : vector<4x256xbf16>, vector<256x256xbf16>, vector<4x256xf32> -> vector<4x256xf32>
    %33 = arith.addf %23, %32 : vector<4x256xf32>
    %c0_23 = arith.constant 0 : index
    %c0_24 = arith.constant 0 : index
    %34 = vector.load %arg7[%c0_23, %c0_24] : memref<4x256xf32, #tpu.memory_space<vmem>>, vector<4x256xf32>
    tpu.vector_store %arg7[%c0_23, %c0_24], %33 {strides = array<i32>} : memref<4x256xf32, #tpu.memory_space<vmem>>, vector<4x256xf32>,
    %c2_i32_25 = arith.constant 2 : i32
    %35 = arith.cmpi eq, %arg1, %c2_i32_25 : i32
    %36 = arith.extui %35 : i1 to i32
    %c0_i32_26 = arith.constant 0 : i32
    %37 = arith.cmpi ne, %36, %c0_i32_26 : i32
    scf.if %37 {
      %c0_27 = arith.constant 0 : index
      %c0_28 = arith.constant 0 : index
      %38 = vector.load %arg7[%c0_27, %c0_28] : memref<4x256xf32, #tpu.memory_space<vmem>>, vector<4x256xf32>
      %c0_29 = arith.constant 0 : index
      %c0_30 = arith.constant 0 : index
      %39 = vector.load %arg4[%c0_29, %c0_30] : memref<1x256xf32, #tpu.memory_space<vmem>>, vector<1x256xf32>
      %40 = vector.broadcast %39 : vector<1x256xf32> to vector<4x256xf32>
      %41 = arith.addf %38, %40 : vector<4x256xf32>
      %c0_31 = arith.constant 0 : index
      %c0_32 = arith.constant 0 : index
      %c0_33 = arith.constant 0 : index
      %c0_34 = arith.constant 0 : index
      %42 = vector.load %arg5[%c0_31, %c0_32, %c0_33, %c0_34] : memref<2x1x2x256xbf16, #tpu.memory_space<vmem>>, vector<2x1x2x256xbf16>
      %43 = vector.shape_cast %42 : vector<2x1x2x256xbf16> to vector<4x256xbf16>
      %44 = arith.extf %43 : vector<4x256xbf16> to vector<4x256xf32>
      %45 = arith.addf %41, %44 : vector<4x256xf32>
      %cst_35 = arith.constant 0.000000e+00 : f32
      %46 = vector.broadcast %cst_35 : f32 to vector<4x256xf32>
      %47 = arith.maximumf %45, %46 : vector<4x256xf32>
      %48 = vector.shape_cast %47 : vector<4x256xf32> to vector<2x1x2x256xf32>
      %49 = arith.truncf %48 : vector<2x1x2x256xf32> to vector<2x1x2x256xbf16>
      %c0_36 = arith.constant 0 : index
      %c0_37 = arith.constant 0 : index
      %c0_38 = arith.constant 0 : index
      %c0_39 = arith.constant 0 : index
      %50 = vector.load %arg6[%c0_36, %c0_37, %c0_38, %c0_39] : memref<2x1x2x256xbf16, #tpu.memory_space<vmem>>, vector<2x1x2x256xbf16>
      tpu.vector_store %arg6[%c0_36, %c0_37, %c0_38, %c0_39], %49 {strides = array<i32>} : memref<2x1x2x256xbf16, #tpu.memory_space<vmem>>, vector<2x1x2x256xbf16>,
    } else {
    }
    return
  }
  func.func @transform_0(%arg0: i32, %arg1: i32) -> (i32, i32, i32, i32) {
    %c1_i32 = arith.constant 1 : i32
    %0 = arith.muli %c1_i32, %arg0 : i32
    %c1_i32_0 = arith.constant 1 : i32
    %1 = arith.muli %c1_i32_0, %arg1 : i32
    %2 = arith.addi %0, %1 : i32
    %c0_i32 = arith.constant 0 : i32
    %c0_i32_1 = arith.constant 0 : i32
    %c0_i32_2 = arith.constant 0 : i32
    %c0_i32_3 = arith.constant 0 : i32
    return %c0_i32, %2, %c0_i32_1, %c0_i32_2 : i32, i32, i32, i32
  }
  func.func @transform_1(%arg0: i32, %arg1: i32) -> (i32, i32, i32) {
    %c0_i32 = arith.constant 0 : i32
    %c0_i32_0 = arith.constant 0 : i32
    %c0_i32_1 = arith.constant 0 : i32
    %c0_i32_2 = arith.constant 0 : i32
    return %c0_i32, %c0_i32_0, %c0_i32_1 : i32, i32, i32
  }
  func.func @transform_2(%arg0: i32, %arg1: i32) -> (i32, i32) {
    %c0_i32 = arith.constant 0 : i32
    %c0_i32_0 = arith.constant 0 : i32
    %c0_i32_1 = arith.constant 0 : i32
    return %c0_i32, %c0_i32_0 : i32, i32
  }
  func.func @transform_3(%arg0: i32, %arg1: i32) -> (i32, i32, i32, i32) {
    %c0_i32 = arith.constant 0 : i32
    %c0_i32_0 = arith.constant 0 : i32
    %c0_i32_1 = arith.constant 0 : i32
    %c0_i32_2 = arith.constant 0 : i32
    return %c0_i32, %arg0, %c0_i32_0, %c0_i32_1 : i32, i32, i32, i32
  }
  func.func @transform_4(%arg0: i32, %arg1: i32) -> (i32, i32, i32, i32) {
    %c0_i32 = arith.constant 0 : i32
    %c0_i32_0 = arith.constant 0 : i32
    %c0_i32_1 = arith.constant 0 : i32
    %c0_i32_2 = arith.constant 0 : i32
    return %c0_i32, %arg0, %c0_i32_0, %c0_i32_1 : i32, i32, i32, i32
  }
}

module attributes {stable_mosaic.version = 11 : i64} {
  func.func @_conv_row_kernel(%arg0: i32, %arg1: i32, %arg2: memref<2x1x4x256xbf16, #tpu.memory_space<vmem>>, %arg3: memref<9x256x256xbf16, #tpu.memory_space<vmem>>, %arg4: memref<1x256xf32, #tpu.memory_space<vmem>>, %arg5: memref<2x1x2x256xbf16, #tpu.memory_space<vmem>>, %arg6: memref<4x256xf32, #tpu.memory_space<vmem>>) attributes {dimension_semantics = [#tpu.dimension_semantics<parallel>, #tpu.dimension_semantics<arbitrary>], iteration_bounds = array<i64: 2, 3>, scalar_prefetch = 0 : i64, scratch_operands = 1 : i64, tpu.core_type = #tpu.core_type<tc>, window_params = [{transform_indices = @transform_0, window_bounds = array<i64: 2, 1, 4, 256>}, {pipeline_mode = #tpu.pipeline_mode<synchronous>, transform_indices = @transform_1, window_bounds = array<i64: 9, 256, 256>}, {pipeline_mode = #tpu.pipeline_mode<synchronous>, transform_indices = @transform_2, window_bounds = array<i64: 1, 256>}, {transform_indices = @transform_3, window_bounds = array<i64: 2, 1, 2, 256>}]} {
    %c0_i32 = arith.constant 0 : i32
    %0 = arith.cmpi eq, %arg1, %c0_i32 : i32
    %1 = arith.extui %0 : i1 to i32
    %c0_i32_0 = arith.constant 0 : i32
    %2 = arith.cmpi ne, %1, %c0_i32_0 : i32
    scf.if %2 {
      %cst_27 = arith.constant 0.000000e+00 : f32
      %38 = vector.broadcast %cst_27 : f32 to vector<4x256xf32>
      %c0_28 = arith.constant 0 : index
      %c0_29 = arith.constant 0 : index
      %39 = vector.load %arg6[%c0_28, %c0_29] : memref<4x256xf32, #tpu.memory_space<vmem>>, vector<4x256xf32>
      tpu.vector_store %arg6[%c0_28, %c0_29], %38 {strides = array<i32>} : memref<4x256xf32, #tpu.memory_space<vmem>>, vector<4x256xf32>,
    } else {
    }
    %c0 = arith.constant 0 : index
    %c0_1 = arith.constant 0 : index
    %3 = vector.load %arg6[%c0, %c0_1] : memref<4x256xf32, #tpu.memory_space<vmem>>, vector<4x256xf32>
    %c0_2 = arith.constant 0 : index
    %c0_3 = arith.constant 0 : index
    %c0_4 = arith.constant 0 : index
    %c0_5 = arith.constant 0 : index
    %4 = vector.load %arg2[%c0_2, %c0_3, %c0_4, %c0_5] : memref<2x1x4x256xbf16, #tpu.memory_space<vmem>>, vector<2x1x2x256xbf16>
    %5 = vector.shape_cast %4 : vector<2x1x2x256xbf16> to vector<2x2x256xbf16>
    %6 = vector.shape_cast %5 : vector<2x2x256xbf16> to vector<4x256xbf16>
    %c3_i32 = arith.constant 3 : i32
    %7 = arith.muli %arg1, %c3_i32 : i32
    %c0_i32_6 = arith.constant 0 : i32
    %8 = arith.addi %7, %c0_i32_6 : i32
    %9 = arith.index_cast %8 : i32 to index
    %c0_7 = arith.constant 0 : index
    %c0_8 = arith.constant 0 : index
    %10 = vector.load %arg3[%9, %c0_7, %c0_8] : memref<9x256x256xbf16, #tpu.memory_space<vmem>>, vector<1x256x256xbf16>
    %11 = vector.shape_cast %10 : vector<1x256x256xbf16> to vector<256x256xbf16>
    %cst = arith.constant dense<0.000000e+00> : vector<4x256xf32>
    %12 = tpu.matmul %6, %11, %cst {dimension_numbers = #tpu.dot_dimension_numbers<[1], [0], [0], [1], [0, 0, 1, 1], [], []>} : vector<4x256xbf16>, vector<256x256xbf16>, vector<4x256xf32> -> vector<4x256xf32>
    %13 = arith.addf %3, %12 : vector<4x256xf32>
    %c0_9 = arith.constant 0 : index
    %c0_10 = arith.constant 0 : index
    %c1 = arith.constant 1 : index
    %c0_11 = arith.constant 0 : index
    %14 = vector.load %arg2[%c0_9, %c0_10, %c1, %c0_11] : memref<2x1x4x256xbf16, #tpu.memory_space<vmem>>, vector<2x1x2x256xbf16>
    %15 = vector.shape_cast %14 : vector<2x1x2x256xbf16> to vector<2x2x256xbf16>
    %16 = vector.shape_cast %15 : vector<2x2x256xbf16> to vector<4x256xbf16>
    %c3_i32_12 = arith.constant 3 : i32
    %17 = arith.muli %arg1, %c3_i32_12 : i32
    %c1_i32 = arith.constant 1 : i32
    %18 = arith.addi %17, %c1_i32 : i32
    %19 = arith.index_cast %18 : i32 to index
    %c0_13 = arith.constant 0 : index
    %c0_14 = arith.constant 0 : index
    %20 = vector.load %arg3[%19, %c0_13, %c0_14] : memref<9x256x256xbf16, #tpu.memory_space<vmem>>, vector<1x256x256xbf16>
    %21 = vector.shape_cast %20 : vector<1x256x256xbf16> to vector<256x256xbf16>
    %cst_15 = arith.constant dense<0.000000e+00> : vector<4x256xf32>
    %22 = tpu.matmul %16, %21, %cst_15 {dimension_numbers = #tpu.dot_dimension_numbers<[1], [0], [0], [1], [0, 0, 1, 1], [], []>} : vector<4x256xbf16>, vector<256x256xbf16>, vector<4x256xf32> -> vector<4x256xf32>
    %23 = arith.addf %13, %22 : vector<4x256xf32>
    %c0_16 = arith.constant 0 : index
    %c0_17 = arith.constant 0 : index
    %c2 = arith.constant 2 : index
    %c0_18 = arith.constant 0 : index
    %24 = vector.load %arg2[%c0_16, %c0_17, %c2, %c0_18] : memref<2x1x4x256xbf16, #tpu.memory_space<vmem>>, vector<2x1x2x256xbf16>
    %25 = vector.shape_cast %24 : vector<2x1x2x256xbf16> to vector<2x2x256xbf16>
    %26 = vector.shape_cast %25 : vector<2x2x256xbf16> to vector<4x256xbf16>
    %c3_i32_19 = arith.constant 3 : i32
    %27 = arith.muli %arg1, %c3_i32_19 : i32
    %c2_i32 = arith.constant 2 : i32
    %28 = arith.addi %27, %c2_i32 : i32
    %29 = arith.index_cast %28 : i32 to index
    %c0_20 = arith.constant 0 : index
    %c0_21 = arith.constant 0 : index
    %30 = vector.load %arg3[%29, %c0_20, %c0_21] : memref<9x256x256xbf16, #tpu.memory_space<vmem>>, vector<1x256x256xbf16>
    %31 = vector.shape_cast %30 : vector<1x256x256xbf16> to vector<256x256xbf16>
    %cst_22 = arith.constant dense<0.000000e+00> : vector<4x256xf32>
    %32 = tpu.matmul %26, %31, %cst_22 {dimension_numbers = #tpu.dot_dimension_numbers<[1], [0], [0], [1], [0, 0, 1, 1], [], []>} : vector<4x256xbf16>, vector<256x256xbf16>, vector<4x256xf32> -> vector<4x256xf32>
    %33 = arith.addf %23, %32 : vector<4x256xf32>
    %c0_23 = arith.constant 0 : index
    %c0_24 = arith.constant 0 : index
    %34 = vector.load %arg6[%c0_23, %c0_24] : memref<4x256xf32, #tpu.memory_space<vmem>>, vector<4x256xf32>
    tpu.vector_store %arg6[%c0_23, %c0_24], %33 {strides = array<i32>} : memref<4x256xf32, #tpu.memory_space<vmem>>, vector<4x256xf32>,
    %c2_i32_25 = arith.constant 2 : i32
    %35 = arith.cmpi eq, %arg1, %c2_i32_25 : i32
    %36 = arith.extui %35 : i1 to i32
    %c0_i32_26 = arith.constant 0 : i32
    %37 = arith.cmpi ne, %36, %c0_i32_26 : i32
    scf.if %37 {
      %c0_27 = arith.constant 0 : index
      %c0_28 = arith.constant 0 : index
      %38 = vector.load %arg6[%c0_27, %c0_28] : memref<4x256xf32, #tpu.memory_space<vmem>>, vector<4x256xf32>
      %c0_29 = arith.constant 0 : index
      %c0_30 = arith.constant 0 : index
      %39 = vector.load %arg4[%c0_29, %c0_30] : memref<1x256xf32, #tpu.memory_space<vmem>>, vector<1x256xf32>
      %40 = vector.broadcast %39 : vector<1x256xf32> to vector<4x256xf32>
      %41 = arith.addf %38, %40 : vector<4x256xf32>
      %cst_31 = arith.constant 0.000000e+00 : f32
      %42 = vector.broadcast %cst_31 : f32 to vector<4x256xf32>
      %43 = arith.maximumf %41, %42 : vector<4x256xf32>
      %44 = vector.shape_cast %43 : vector<4x256xf32> to vector<2x1x2x256xf32>
      %45 = arith.truncf %44 : vector<2x1x2x256xf32> to vector<2x1x2x256xbf16>
      %c0_32 = arith.constant 0 : index
      %c0_33 = arith.constant 0 : index
      %c0_34 = arith.constant 0 : index
      %c0_35 = arith.constant 0 : index
      %46 = vector.load %arg5[%c0_32, %c0_33, %c0_34, %c0_35] : memref<2x1x2x256xbf16, #tpu.memory_space<vmem>>, vector<2x1x2x256xbf16>
      tpu.vector_store %arg5[%c0_32, %c0_33, %c0_34, %c0_35], %45 {strides = array<i32>} : memref<2x1x2x256xbf16, #tpu.memory_space<vmem>>, vector<2x1x2x256xbf16>,
    } else {
    }
    return
  }
  func.func @transform_0(%arg0: i32, %arg1: i32) -> (i32, i32, i32, i32) {
    %c1_i32 = arith.constant 1 : i32
    %0 = arith.muli %c1_i32, %arg0 : i32
    %c1_i32_0 = arith.constant 1 : i32
    %1 = arith.muli %c1_i32_0, %arg1 : i32
    %2 = arith.addi %0, %1 : i32
    %c0_i32 = arith.constant 0 : i32
    %c0_i32_1 = arith.constant 0 : i32
    %c0_i32_2 = arith.constant 0 : i32
    %c0_i32_3 = arith.constant 0 : i32
    return %c0_i32, %2, %c0_i32_1, %c0_i32_2 : i32, i32, i32, i32
  }
  func.func @transform_1(%arg0: i32, %arg1: i32) -> (i32, i32, i32) {
    %c0_i32 = arith.constant 0 : i32
    %c0_i32_0 = arith.constant 0 : i32
    %c0_i32_1 = arith.constant 0 : i32
    %c0_i32_2 = arith.constant 0 : i32
    return %c0_i32, %c0_i32_0, %c0_i32_1 : i32, i32, i32
  }
  func.func @transform_2(%arg0: i32, %arg1: i32) -> (i32, i32) {
    %c0_i32 = arith.constant 0 : i32
    %c0_i32_0 = arith.constant 0 : i32
    %c0_i32_1 = arith.constant 0 : i32
    return %c0_i32, %c0_i32_0 : i32, i32
  }
  func.func @transform_3(%arg0: i32, %arg1: i32) -> (i32, i32, i32, i32) {
    %c0_i32 = arith.constant 0 : i32
    %c0_i32_0 = arith.constant 0 : i32
    %c0_i32_1 = arith.constant 0 : i32
    %c0_i32_2 = arith.constant 0 : i32
    return %c0_i32, %arg0, %c0_i32_0, %c0_i32_1 : i32, i32, i32, i32
  }
}

</mosaic_0001>

<bundles_post_ra>
// kernel: resnet_encoder_stride1.17
= control target key start
LH: loop header
LB: loop body
LE: loop exit
PB: predicated region body
PF: predicated region fallthrough
CT: control target
= control target key end

     0   :  { %s560_s6 = smov 0   ;;  %s562_s7 = smov 0   ;;  %s686_s0 = inlined_call_operand.vmem [shape: bf16[4,18,9,64], index: 0, kind: input, shape index: {}]   ;;  %s687_s1 = inlined_call_operand.vmem [shape: bf16[2,8,8,64], index: 1, kind: output, shape index: {}]  }
   0x1   :  { %s564_s8 = smov 0   ;;  %s566_s9 = smov 0  }
   0x2   :  { %s568_s10 = smov 0   ;;  %s570_s11 = smov 0  }
   0x3   :  { %s572_s12 = smov 0   ;;  %s574_s13 = smov 0  }
   0x4   :  { %s576_s14 = smov 0  }
   0x5 LB: > { %s382_s15 = sadd.s32 4294967295, %s547_s14   ;;  %s20_s16 = sadd.s32 1, %s539_s12  ;;  %s547_s14 = sphi %s576_s14, %s11_s14   ;;  %s543_s13 = sphi %s574_s13, %s696_s13   ;;  %s539_s12 = sphi %s572_s12, %s695_s12   ;;  %s535_s11 = sphi %s570_s11, %s694_s11   ;;  %s531_s10 = sphi %s568_s10, %s693_s10   ;;  %s527_s9 = sphi %s566_s9, %s692_s9   ;;  %s523_s8 = sphi %s564_s8, %s691_s8   ;;  %s519_s7 = sphi %s562_s7, %s690_s7   ;;  %s515_s6 = sphi %s560_s6, %s689_s6  }
   0x6   : > { %p21_p0 = scmp.ge.s32.totalorder %s20_s16, 3  ;;  %s23_s17 = sadd.s32 1, %s543_s13 }
   0x7   : > { %s384_s18 = sshll.u32 %s543_s13, 1  ;;  %s34_s19 = sadd.s32 1, %s527_s9 }
   0x8   : > { %s698_s16 = smov (%p21_p0, %s20_s16), 0  ;;  %s700_s17 = smov (!%p21_p0, %s23_s17), %s543_s13 }
   0x9   : > { %s28_s20 = sadd.s32 %s539_s12, %s384_s18  ;;  %p41_p1 = scmp.ne.s32.totalorder %s527_s9, %s523_s8 }
   0xa   : > { %p25_p2 = scmp.ge.s32.totalorder %s700_s17, 8  ;;  %p42_p3 = scmp.eq.s32.totalorder %s547_s14, 0 }
   0xb   : > { %s60_s21 = sadd.s32 1, %s519_s7  ;;  %p70_p4 = scmp.ne.s32.totalorder %s519_s7, %s515_s6 }
   0xc   : > { %s702_s17 = smov (%p25_p2, %s700_s17), 0  ;;  %p43_p5 = por %p42_p3, %p41_p1 }
   0xd   : > { %p71_p6 = scmp.eq.s32.totalorder %s382_s15, 23  ;;  %s385_s22 = sshll.u32 %s702_s17, 1 }
   0xe   : > { %s57_s23 = ssub.s32 %s543_s13, %s702_s17  ;;  %s30_s24 = sadd.s32 %s385_s22, %s698_s16 }
   0xf   : > { %p58_p7 = scmp.eq.s32.totalorder %s57_s23, 0  ;;  %s31_s25 = ssub.s32 %s28_s20, %s30_s24 }
  0x10   : > { %p626_p8 = por %p71_p6, %p70_p4  ;;  %p32_p9 = scmp.eq.s32.totalorder %s31_s25, 0 }
  0x11   : > { %s631_s27 = scalar_select %p58_p7, %s519_s7, %s60_s21  }
  0x12   : > { %s634_s28 = scalar_select %p32_p9, %s527_s9, %s34_s19  }
  0x13   : > { %p387_p10 = scmp.ge.s32.totalorder %s547_s14, 24 }
  0x15   : > { %93 = sbr.rel (%p387_p10) target bundleno = 32 (0x20), region = 16 }
  0x1a   : > { %96 = sbr.rel (!%p43_p5) target bundleno = 32 (0x20), region = 20  ;;  %s98_s29 = sand.u32 (%p43_p5), 1, %s527_s9  }
  0x1b   : > { %s403_s30 = sshll.u32 (%p43_p5), %s28_s20, 3  ;;  %s388_s2 = sshll.u32 (%p43_p5), %s98_s29, 5 }
  0x1c   : > { %s105_s5 = scalar_lea.vmem (%p43_p5), %s686_s0, %s403_s30  ;;  %s100_s15 = scalar_lea.vmem (%p43_p5), [#allocation3], %s388_s2 }
  0x1d   : > { %v122_v0 = vld [vmem:[%s105_s5] sm:$0xff] (%p43_p5)   ;;  %v126_v1 = vld [vmem:[%s105_s5 + $0x90] sm:$0xff] (%p43_p5)  }
  0x1e   : > { %v130_v2 = vld [vmem:[%s105_s5 + $0x120] sm:$0xff] (%p43_p5)   ;;  %123 = vst [vmem:[%s100_s15] sm:$0xff] (%p43_p5), %v122_v0   ;;  %127 = vst [vmem:[%s100_s15 + $0x8] sm:$0xff] (%p43_p5), %v126_v1   ;;  %v134_v3 = vld [vmem:[%s105_s5 + $0x1b0] sm:$0xff] (%p43_p5)  }
  0x1f   : > { %131 = vst [vmem:[%s100_s15 + $0x10] sm:$0xff] %v130_v2   ;;  %135 = vst [vmem:[%s100_s15 + $0x18] sm:$0xff] %v134_v3  }
  0x20 PF: > { %p392_p11 = scmp.ge.s32.totalorder %s547_s14, 1  ;;  %p176_p12 = scmp.lt.s32.totalorder %s547_s14, 25 }
  0x22   : > { %p177_p13 = pnand %p392_p11, %p176_p12 }
  0x23   : > { %s183_s18 = sand.u32 (!%p177_p13), 1, %s523_s8   ;;  %s198_s19 = sand.u32 (!%p177_p13), 1, %s515_s6  }
  0x24   : > { %180 = sbr.rel (%p177_p13) target bundleno = 80 (0x50), region = 61  ;;  %s393_s20 = sshll.u32 (!%p177_p13), %s183_s18, 5 }
  0x25   : > { %s394_s21 = sshll.u32 (!%p177_p13), %s198_s19, 3  ;;  %s185_s22 = scalar_lea.vmem (!%p177_p13), [#allocation3], %s393_s20 }
  0x26   : > { %s645_s23 = scalar_lea.vmem (!%p177_p13), [#allocation4], %s394_s21  ;;  %p395_p0 = scmp.ne.s32.totalorder (!%p177_p13), %s531_s10, 0 }
  0x29   : > { %206 = sbr.rel (%p395_p0) target bundleno = 48 (0x30), region = 69 }
  0x2e   : > { %vm207_vm0 = vcmask 523264   ;;  %v549_v4 = vmov -inf  }
  0x2f   : > { %208 = vst.msk [vmem:[#allocation2] sm:$0xff] %vm207_vm0, %v549_v4  ;;  %209 = vst.msk [vmem:[#allocation2 + $0x8] sm:$0xff] %vm207_vm0, %v549_v4 }
  0x30 PF: > { %v212_v6 = vld [vmem:[%s185_s22] ss:$16 sps:$4 sm:$0xff]   ;;  %v225_v7 = vld [vmem:[%s185_s22 + $0x4] sm:$0x1]  ;;  %v213_v12 = vld [vmem:[%s185_s22 + $0x8] ss:$16 sps:$4 sm:$0xff]  }
  0x31   : > { %v214_v8 = vunpack.c.l.bf16 %v212_v6  ;;  %v221_v9 = vunpack.c.h.bf16 %v212_v6  ;;  %v227_v10 = vunpack.c.l.bf16 %v225_v7  ;;  %v226_v13 = vld [vmem:[%s185_s22 + $0xc] sm:$0x1]  ;;  %vm233_vm1 = vcmask 1046528   ;;  %p398_p1 = scmp.ne.s32.totalorder %s531_s10, 2 }
  0x32   : > { %v215_v14 = vunpack.c.l.bf16 %v213_v12  ;;  %v222_v15 = vunpack.c.h.bf16 %v213_v12  ;;  %v228_v16 = vunpack.c.l.bf16 %v226_v13  ;;  %vm244_vm2 = vcmask 523264  }
  0x33   : > { %v234_v18 = vrot.slane %v214_v8, 1  ;;  %v235_v19 = vrot.slane %v227_v10, 1 }
  0x34   : > { %v237_v21 = vrot.slane %v215_v14, 1  ;;  %v238_v22 = vrot.slane %v228_v16, 1 }
  0x35   : > { %v236_v24 = vsel %vm233_vm1, %v234_v18, %v235_v19 }
  0x36   : > { %v210_v5 = vld [vmem:[#allocation2] sm:$0xff]  ;;  %v211_v11 = vld [vmem:[#allocation2 + $0x8] sm:$0xff]  ;;  %v239_v26 = vsel %vm233_vm1, %v237_v21, %v238_v22 }
  0x37   : > { %v216_v17 = vmax.f32 %v210_v5, %v214_v8  ;;  %v217_v20 = vmax.f32 %v211_v11, %v215_v14 }
  0x39   : > { %v223_v23 = vmax.f32 %v216_v17, %v221_v9  ;;  %v224_v25 = vmax.f32 %v217_v20, %v222_v15  ;;  %250 = sbr.rel (%p398_p1) target bundleno = 72 (0x48), region = 73 }
  0x3b   : > { %v242_v27 = vmax.f32 %v223_v23, %v236_v24  ;;  %v243_v28 = vmax.f32 %v224_v25, %v239_v26 }
  0x3d   : > { %245 = vst.msk [vmem:[#allocation2] sm:$0xff] %vm244_vm2, %v242_v27  ;;  %246 = vst.msk [vmem:[#allocation2 + $0x8] sm:$0xff] %vm244_vm2, %v243_v28 }
  0x3e   : > { %vm255_vm3 = vcmask 519168  }
  0x44   : > { %v251_v29 = vld [vmem:[#allocation2] sm:$0xff]  ;;  %v252_v30 = vld [vmem:[#allocation2 + $0x8] sm:$0xff] }
  0x45   : > { %v253_v31 = vpack.c.bf16 %v251_v29, %v251_v29  ;;  %v254_v32 = vpack.c.bf16 %v252_v30, %v252_v30 }
  0x47   : > { %256 = vst.msk [vmem:[%s645_s23] sm:$0xf] %vm255_vm3, %v253_v31  ;;  %257 = vst.msk [vmem:[%s645_s23 + $0x4] sm:$0xf] %vm255_vm3, %v254_v32 }
  0x48 PF: > { %264 = sbr.rel (!%p626_p8) target bundleno = 80 (0x50), region = 77  ;;  %s400_s6 = sshll.u32 (%p626_p8), %s535_s11, 2 }
  0x49   : > { %s266_s24 = scalar_lea.vmem (%p626_p8), %s687_s1, %s400_s6 }
  0x4e   : > { %v283_v33 = vld [vmem:[%s645_s23] sm:$0xf]  ;;  %v285_v34 = vld [vmem:[%s645_s23 + $0x4] sm:$0xf] }
  0x4f   : > { %284 = vst [vmem:[%s266_s24] sm:$0xf] %v283_v33  ;;  %286 = vst [vmem:[%s266_s24 + $0x20] sm:$0xf] %v285_v34 }
  0x50 PF: > { %s11_s14 = sadd.s32 1, %s547_s14   ;;  %s689_s6 = smov %s519_s7 }
  0x51   : > { %p8_p2 = scmp.ge.s32.totalorder %s11_s14, 26   ;;  %s690_s7 = smov %s631_s27 }
  0x52   : > { %s691_s8 = smov %s527_s9  ;;  %s692_s9 = smov %s634_s28 }
  0x53   : > { %s693_s10 = smov %s539_s12  ;;  %s694_s11 = smov %s543_s13 }
  0x54   : > { %s695_s12 = smov %s698_s16  ;;  %s696_s13 = smov %s702_s17 }
  0x55   :  { %10 = sbr.rel (!%p8_p2) target bundleno = 5 (0x5), region = 150 }

// kernel: resnet_encoder_stride1.16
= control target key start
LH: loop header
LB: loop body
LE: loop exit
PB: predicated region body
PF: predicated region fallthrough
CT: control target
= control target key end

     0   :  { %s1553_s12 = smov 0   ;;  %s1555_s13 = smov 0   ;;  %s1868_s0 = inlined_call_operand.vmem [shape: bf16[4,38,19,3], index: 0, kind: input, shape index: {}]   ;;  %s1869_s1 = inlined_call_operand.vmem [shape: bf16[49,3,64], index: 1, kind: input, shape index: {}]   ;;  %s1870_s2 = inlined_call_operand.vmem [shape: f32[1,64], index: 2, kind: input, shape index: {}]   ;;  %s1871_s3 = inlined_call_operand.vmem [shape: bf16[2,16,16,64], index: 3, kind: output, shape index: {}]  }
   0x1   :  { %s1557_s14 = smov 0   ;;  %s1559_s15 = smov 0  }
   0x2   :  { %s1561_s16 = smov 0   ;;  %s1563_s17 = smov 0  }
   0x3   :  { %s1565_s18 = smov 0   ;;  %s1567_s19 = smov 0  }
   0x4   :  { %s1569_s20 = smov 0  }
   0x5 LB: > { %s1230_s21 = sadd.s32 4294967295, %s1529_s20   ;;  %s22_s22 = sadd.s32 1, %s1521_s18  ;;  %s1529_s20 = sphi %s1569_s20, %s13_s20   ;;  %s1525_s19 = sphi %s1567_s19, %s1886_s19   ;;  %s1521_s18 = sphi %s1565_s18, %s1885_s18   ;;  %s1517_s17 = sphi %s1563_s17, %s1884_s17   ;;  %s1513_s16 = sphi %s1561_s16, %s1883_s16   ;;  %s1509_s15 = sphi %s1559_s15, %s1882_s15   ;;  %s1505_s14 = sphi %s1557_s14, %s1881_s14   ;;  %s1501_s13 = sphi %s1555_s13, %s1880_s13   ;;  %s1497_s12 = sphi %s1553_s12, %s1879_s12  }
   0x6   : > { %p23_p0 = scmp.ge.s32.totalorder %s22_s22, 7  ;;  %s25_s23 = sadd.s32 1, %s1525_s19 }
   0x7   : > { %s1232_s24 = sshll.u32 %s1525_s19, 1  ;;  %s36_s25 = sadd.s32 1, %s1509_s15 }
   0x8   : > { %s1888_s22 = smov (%p23_p0, %s22_s22), 0  ;;  %s1890_s23 = smov (!%p23_p0, %s25_s23), %s1525_s19 }
   0x9   : > { %s30_s26 = sadd.s32 %s1521_s18, %s1232_s24  ;;  %p43_p1 = scmp.ne.s32.totalorder %s1509_s15, %s1505_s14 }
   0xa   : > { %p27_p2 = scmp.ge.s32.totalorder %s1890_s23, 16  ;;  %p44_p3 = scmp.eq.s32.totalorder %s1529_s20, 0 }
   0xb   : > { %s104_s27 = sadd.s32 1, %s1501_s13  ;;  %p114_p4 = scmp.ne.s32.totalorder %s1501_s13, %s1497_s12 }
   0xc   : > { %s1892_s23 = smov (%p27_p2, %s1890_s23), 0  ;;  %p45_p5 = por %p44_p3, %p43_p1 }
   0xd   : > { %p115_p6 = scmp.eq.s32.totalorder %s1230_s21, 111  ;;  %s1233_s28 = sshll.u32 %s1892_s23, 1 }
   0xe   : > { %s101_s29 = ssub.s32 %s1525_s19, %s1892_s23  ;;  %s32_s30 = sadd.s32 %s1233_s28, %s1888_s22 }
   0xf   : > { %p102_p7 = scmp.eq.s32.totalorder %s101_s29, 0  ;;  %s33_s4 = ssub.s32 %s30_s26, %s32_s30 }
  0x10   : > { %p1619_p8 = por %p115_p6, %p114_p4  ;;  %p34_p9 = scmp.eq.s32.totalorder %s33_s4, 0 }
  0x11   : > { %s1624_s6 = scalar_select %p102_p7, %s1501_s13, %s104_s27  }
  0x12   : > { %s1627_s7 = scalar_select %p34_p9, %s1509_s15, %s36_s25  }
  0x13   : > { %p1235_p10 = scmp.ge.s32.totalorder %s1529_s20, 112 }
  0x15   : > { %143 = sbr.rel (%p1235_p10) target bundleno = 35 (0x23), region = 24 }
  0x1a   : > { %146 = sbr.rel (!%p45_p5) target bundleno = 35 (0x23), region = 28  ;;  %s148_s8 = sand.u32 (%p45_p5), 1, %s1509_s15  }
  0x1b   : > { %s1379_s9 = smul.u32 (%p45_p5), 12, %s30_s26 }
  0x1c   : > { %s1378_s10 = smul.u32 (%p45_p5), 48, %s148_s8 }
  0x1d   : > { %s155_s24 = scalar_lea.vmem (%p45_p5), %s1868_s0, %s1379_s9 }
  0x1e   : > { %v172_v0 = vld [vmem:[%s155_s24] sm:$0xff] (%p45_p5)   ;;  %v176_v1 = vld [vmem:[%s155_s24 + $0x8] sm:$0xf] (%p45_p5)  ;;  %s150_s28 = scalar_lea.vmem (%p45_p5), [#allocation3], %s1378_s10  ;;  %v182_v3 = vld [vmem:[%s155_s24 + $0x1d0] sm:$0xf] (%p45_p5) }
  0x1f   : > { %v178_v2 = vld [vmem:[%s155_s24 + $0x1c8] sm:$0xff]   ;;  %173 = vst [vmem:[%s150_s28] sm:$0xff] %v172_v0   ;;  %177 = vst [vmem:[%s150_s28 + $0x8] sm:$0xf] %v176_v1  ;;  %v184_v4 = vld [vmem:[%s155_s24 + $0x390] sm:$0xff]  }
  0x20   : > { %179 = vst [vmem:[%s150_s28 + $0xc] sm:$0xff] %v178_v2   ;;  %v188_v5 = vld [vmem:[%s155_s24 + $0x398] sm:$0xf]  ;;  %183 = vst [vmem:[%s150_s28 + $0x14] sm:$0xf] %v182_v3 }
  0x21   : > { %185 = vst [vmem:[%s150_s28 + $0x18] sm:$0xff] %v184_v4   ;;  %189 = vst [vmem:[%s150_s28 + $0x20] sm:$0xf] %v188_v5  ;;  %v190_v6 = vld [vmem:[%s155_s24 + $0x558] sm:$0xff]   ;;  %v194_v7 = vld [vmem:[%s155_s24 + $0x560] sm:$0xf] }
  0x22   : > { %191 = vst [vmem:[%s150_s28 + $0x24] sm:$0xff] %v190_v6   ;;  %195 = vst [vmem:[%s150_s28 + $0x2c] sm:$0xf] %v194_v7 }
  0x23 PF: > { %p1238_p11 = scmp.ge.s32.totalorder %s1529_s20, 1  ;;  %p242_p12 = scmp.lt.s32.totalorder %s1529_s20, 113 }
  0x25   : > { %p243_p13 = pnand %p1238_p11, %p242_p12 }
  0x26   : > { %s249_s25 = sand.u32 (!%p243_p13), 1, %s1505_s14   ;;  %s268_s26 = sand.u32 (!%p243_p13), 1, %s1497_s12  }
  0x27   : > { %246 = sbr.rel (%p243_p13) target bundleno = 321 (0x141), region = 69  ;;  %s1239_s29 = sshll.u32 (!%p243_p13), %s268_s26, 4 }
  0x28   : > { %s1380_s27 = smul.u32 (!%p243_p13), 48, %s249_s25  ;;  %s1640_s4 = scalar_lea.vmem (!%p243_p13), [#allocation4], %s1239_s29 }
  0x29   : > { %p1240_p0 = scmp.ne.s32.totalorder (!%p243_p13), %s1513_s16, 0 }
  0x2a   : > { %s1638_s30 = scalar_lea.vmem (!%p243_p13), [#allocation3], %s1380_s27 }
  0x2c   : > { %277 = sbr.rel (%p1240_p0) target bundleno = 52 (0x34), region = 77 }
  0x31   : > { %vm278_vm0 = vcmask 523264   ;;  %v1531_v8 = vmov 0.0  }
  0x32   : > { %279 = vst.msk [vmem:[#allocation2] sm:$0xff] %vm278_vm0, %v1531_v8  ;;  %280 = vst.msk [vmem:[#allocation2 + $0x8] sm:$0xff] %vm278_vm0, %v1531_v8 }
  0x33   : > { %281 = vst.msk [vmem:[#allocation2 + $0x10] sm:$0xff] %vm278_vm0, %v1531_v8  ;;  %282 = vst.msk [vmem:[#allocation2 + $0x18] sm:$0xff] %vm278_vm0, %v1531_v8 }
  0x34 PF: > { %s1309_s12 = smul.u32 14, %s1513_s16  ;;  %vm312_vm1 = vcmask 1040384   ;;  %vm313_vm2 = vcmask 1041408   ;;  %v1532_v9 = vmov 65535   ;;  %v1455_v11 = vld [vmem:[%s1638_s30] sm:$0xff]   ;;  %vm305_vm3 = vcmask 23552  }
  0x35   : > { %v314_v10 = vsel %vm312_vm1, 4294967295, %v1532_v9  ;;  %v1457_v13 = vld [vmem:[%s1638_s30 + $0x18] sm:$0xff]   ;;  %1338 = vmatprep.mubr.msk.bf16.mxu0 %vm305_vm3, %v1455_v11  ;;  %v1456_v18 = vld [vmem:[%s1638_s30 + $0xc] sm:$0xff]   ;;  %v1458_v21 = vld [vmem:[%s1638_s30 + $0x24] sm:$0xff]   ;;  %vm459_vm4 = vsmask.f32 3328 }
  0x36   : > { %s1648_s9 = scalar_lea.vmem %s1869_s1, %s1309_s12  ;;  %v1650_v12 = vsel %vm313_vm2, %v314_v10, 0  ;;  %1344 = vmatprep.mubr.msk.bf16.mxu1 %vm305_vm3, %v1457_v13  ;;  %v453_v24 = vld [vmem:[%s1638_s30] sm:$0xf]  ;;  %v1667_v25 = vld [vmem:[%s1638_s30 + $0x4] sm:$0xf]  ;;  %vm716_vm7 = vcmask 1042432  }
  0x37   : > { %v294_v14 = vld [vmem:[%s1648_s9] sm:$0x3]  ;;  %v1251_v15 = vld [vmem:[%s1648_s9 + $0x2] sm:$0x3]  ;;  %v1257_v19 = vld [vmem:[%s1648_s9 + $0x4] sm:$0x3] }
  0x38   : > { %v317_v16 = vand.u32 %v1650_v12, %v294_v14  ;;  %v398_v17 = vand.u32 %v1251_v15, %v1650_v12  ;;  %v527_v20 = vand.u32 %v1257_v19, %v1650_v12  ;;  %v1269_v22 = vld [vmem:[%s1648_s9 + $0x6] sm:$0x3]  ;;  %v1670_v26 = vld [vmem:[%s1638_s30 + $0x8] sm:$0x1]  ;;  %vm460_vm5 = vsmask.f32 7440 }
  0x39   : > { %v653_v23 = vand.u32 %v1269_v22, %v1650_v12  ;;  %v463_v27 = vshrl.u32 %v453_v24, 16  ;;  %v466_v28 = vshll.u32 %v453_v24, 16  ;;  %v472_v29 = vshll.u32 %v1667_v25, 16  ;;  %v456_v32 = vld [vmem:[%s1638_s30 + $0xc] sm:$0xf]  ;;  %vm1693_vm6 = vmor %vm459_vm4, %vm460_vm5  ;;  %p1298_p1 = scmp.ne.s32.totalorder %s1513_s16, 6 }
  0x3a   : > { %1336 = vmatprep.subr.bf16.mxu0 %v317_v16  ;;  %1342 = vmatprep.subr.bf16.mxu1 %v398_v17  ;;  %v476_v30 = vshrl.u32 %v1667_v25, 16  ;;  %v482_v31 = vshll.u32 %v1670_v26, 16  ;;  %v1677_v35 = vld [vmem:[%s1638_s30 + $0x10] sm:$0xf]  ;;  %v1680_v36 = vld [vmem:[%s1638_s30 + $0x14] sm:$0x1] }
  0x3b   : > { %1337 = vmatpush3.bf16.msra.mxu0 %v317_v16  ;;  %1343 = vmatpush3.bf16.msra.mxu1 %v398_v17  ;;  %v465_v33 = vrot.slane %v463_v27, 4  ;;  %v468_v34 = vrot.slane %v466_v28, 5  ;;  %v474_v37 = vrot.slane %v472_v29, 5  ;;  %v487_v40 = vshrl.u32 %v456_v32, 16  ;;  %v1262_v41 = vld [vmem:[%s1638_s30 + $0x18] sm:$0xf] }
  0x3c   : > { %1348 = vmatprep.subr.bf16.mxu0 %v527_v20  ;;  %1354 = vmatprep.subr.bf16.mxu1 %v653_v23  ;;  %v478_v38 = vrot.slane %v476_v30, 4  ;;  %v484_v39 = vrot.slane %v482_v31, 5  ;;  %v490_v43 = vshll.u32 %v456_v32, 16  ;;  %v496_v44 = vshll.u32 %v1677_v35, 16  ;;  %v1699_v50 = vld [vmem:[%s1638_s30 + $0x1c] sm:$0xf] }
  0x3d   : > { %v469_v42 = vor.u32 %v468_v34, %v465_v33  ;;  %v500_v45 = vshrl.u32 %v1677_v35, 16  ;;  %v489_v48 = vrot.slane %v487_v40, 4  ;;  %v506_v49 = vshll.u32 %v1680_v36, 16  ;;  %v1706_v56 = vld [vmem:[%s1638_s30 + $0x20] sm:$0x1] }
  0x3e   : > { %1339 = vmatmul.mubr.msk.bf16.vlgmr.msra.gmra.mxu0 %vm305_vm3, %v1456_v18  ;;  %1345 = vmatmul.mubr.msk.bf16.vlgmr.msra.gmra.mxu1 %vm305_vm3, %v1458_v21  ;;  %v479_v47 = vor.u32 %v478_v38, %v474_v37  ;;  %v589_v51 = vshrl.u32 %v1262_v41, 16  ;;  %vm717_vm8 = vcmask 1046532   ;;  %v492_v53 = vrot.slane %v490_v43, 5  ;;  %v1277_v1 = vld [vmem:[%s1648_s9 + $0x8] sm:$0x3] }
  0x3f   : > { %1349 = vmatpush3.bf16.msra.mxu0 %v527_v20  ;;  %1355 = vmatpush3.bf16.msra.mxu1 %v653_v23  ;;  %v470_v52 = vrot.slane %v469_v42, 4  ;;  %v498_v54 = vrot.slane %v496_v44, 5  ;;  %v502_v55 = vrot.slane %v500_v45, 4  ;;  %v508_v58 = vrot.slane %v506_v49, 5  ;;  %v1265_v6 = vld [vmem:[%s1638_s30 + $0x24] sm:$0xf]  ;;  %vm1745_vm9 = vmor %vm716_vm7, %vm717_vm8 }
  0x40   : > { %v480_v57 = vrot.slane %v479_v47, 4  ;;  %v591_v59 = vrot.slane %v589_v51, 4  ;;  %v592_v60 = vshll.u32 %v1262_v41, 16  ;;  %v493_v62 = vor.u32 %v492_v53, %v489_v48  ;;  %v1718_v11 = vld [vmem:[%s1638_s30 + $0x28] sm:$0xf] }
  0x41   : > { %v475_v61 = vsel %vm1693_vm6, %v470_v52, %v474_v37  ;;  %v503_v63 = vor.u32 %v502_v55, %v498_v54  ;;  %v598_v0 = vshll.u32 %v1699_v50, 16  ;;  %v602_v4 = vshrl.u32 %v1699_v50, 16  ;;  %v1722_v17 = vld [vmem:[%s1638_s30 + $0x2c] sm:$0x1]  ;;  %v1287_v22 = vld [vmem:[%s1648_s9 + $0xa] sm:$0x3] }
  0x42   : > { %v485_v2 = vsel %vm1693_vm6, %v480_v57, %v484_v39  ;;  %v594_v3 = vrot.slane %v592_v60, 5  ;;  %v608_v5 = vshll.u32 %v1706_v56, 16  ;;  %v494_v8 = vrot.slane %v493_v62, 4  ;;  %v1732_v31 = vld [vmem:[%s1638_s30] sm:$0xe] }
  0x43   : > { %v1258_v7 = vcombine.low %v475_v61, %v485_v2  ;;  %v504_v9 = vrot.slane %v503_v63, 4  ;;  %v600_v10 = vrot.slane %v598_v0, 5  ;;  %v604_v14 = vrot.slane %v602_v4, 4  ;;  %v1737_v38 = vld [vmem:[%s1638_s30 + $0xc] sm:$0xe] }
  0x44   : > { %v595_v13 = vor.u32 %v594_v3, %v591_v59  ;;  %v610_v15 = vrot.slane %v608_v5, 5  ;;  %v750_v16 = vand.u32 %v1277_v1, %v1650_v12  ;;  %v499_v18 = vsel %vm1693_vm6, %v494_v8, %v498_v54  ;;  %v1282_v52 = vld [vmem:[%s1638_s30 + $0x18] sm:$0xe]  ;;  %v1293_v62 = vld [vmem:[%s1648_s9 + $0xc] sm:$0x3] }
  0x45   : > { %1350 = vmatprep.mubr.msk.bf16.mxu0 %vm305_vm3, %v1258_v7  ;;  %v509_v19 = vsel %vm1693_vm6, %v504_v9, %v508_v58  ;;  %v613_v20 = vshrl.u32 %v1265_v6, 16  ;;  %v616_v21 = vshll.u32 %v1265_v6, 16  ;;  %v605_v27 = vor.u32 %v604_v14, %v600_v10  ;;  %v1283_v3 = vld [vmem:[%s1638_s30 + $0x24] sm:$0xe] }
  0x46   : > { %v1259_v23 = vcombine.low %v499_v18, %v509_v19  ;;  %v596_v24 = vrot.slane %v595_v13, 4  ;;  %1360 = vmatprep.subr.bf16.mxu0 %v750_v16  ;;  %v622_v28 = vshll.u32 %v1718_v11, 16  ;;  %v626_v34 = vshrl.u32 %v1718_v11, 16 }
  0x47   : > { %v615_v32 = vrot.slane %v613_v20, 4  ;;  %v618_v33 = vrot.slane %v616_v21, 5  ;;  %v632_v37 = vshll.u32 %v1722_v17, 16  ;;  %v606_v40 = vrot.slane %v605_v27, 4 }
  0x48   : > { %1351 = vmatmul.mubr.msk.bf16.vlgmr.msra.gmra.mxu0 %vm305_vm3, %v1259_v23  ;;  %v601_v39 = vsel %vm1693_vm6, %v596_v24, %v600_v10  ;;  %v624_v41 = vrot.slane %v622_v28, 5  ;;  %v844_v42 = vand.u32 %v1287_v22, %v1650_v12  ;;  %v628_v47 = vrot.slane %v626_v34, 4 }
  0x49   : > { %v619_v43 = vor.u32 %v618_v33, %v615_v32  ;;  %v634_v48 = vrot.slane %v632_v37, 5  ;;  %1361 = vmatpush3.bf16.msra.mxu0 %v750_v16  ;;  %v1274_v51 = vrot.slane %v1732_v31, 9  ;;  %v611_v53 = vsel %vm1693_vm6, %v606_v40, %v610_v15  ;;  %v900_v37 = vld [vmem:[%s1638_s30 + $0x14] sm:$0x3] }
  0x4a   : > { %1366 = vmatprep.subr.bf16.mxu1 %v844_v42  ;;  %v721_v54 = vrot.slane %v1667_v25, 5  ;;  %v724_v55 = vrot.slane %v1670_v26, 5  ;;  %v1275_v57 = vrot.slane %v1737_v38, 9  ;;  %v1270_v58 = vcombine.low %v601_v39, %v611_v53 }
  0x4b   : > { %v620_v59 = vrot.slane %v619_v43, 4  ;;  %v629_v60 = vor.u32 %v628_v47, %v624_v41  ;;  %v728_v61 = vrot.slane %v1677_v35, 5  ;;  %v731_v1 = vrot.slane %v1680_v36, 5 }
  0x4c   : > { %v722_v63 = vsel %vm1745_vm9, %v1274_v51, %v721_v54  ;;  %v723_v0 = vrot.slane %v721_v54, 4  ;;  %v1284_v2 = vrot.slane %v1282_v52, 9  ;;  %1356 = vmatprep.mubr.msk.bf16.mxu1 %vm305_vm3, %v1270_v58  ;;  %v815_v8 = vrot.slane %v1699_v50, 5  ;;  %v899_v50 = vld [vmem:[%s1638_s30 + $0x8] sm:$0x3] }
  0x4d   : > { %v625_v26 = vsel %vm1693_vm6, %v620_v59, %v624_v41  ;;  %v630_v4 = vrot.slane %v629_v60, 4  ;;  %v729_v5 = vsel %vm1745_vm9, %v1275_v57, %v728_v61  ;;  %v730_v6 = vrot.slane %v728_v61, 4 }
  0x4e   : > { %v725_v7 = vsel %vm1745_vm9, %v723_v0, %v724_v55  ;;  %v818_v36 = vrot.slane %v1706_v56, 5  ;;  %v967_v9 = vand.u32 %v1293_v62, %v1650_v12  ;;  %v1285_v15 = vrot.slane %v1283_v3, 9 }
  0x4f   : > { %v635_v10 = vsel %vm1693_vm6, %v630_v4, %v634_v48  ;;  %v1278_v13 = vcombine.low %v722_v63, %v725_v7  ;;  %v732_v14 = vsel %vm1745_vm9, %v730_v6, %v731_v1  ;;  %v816_v19 = vsel %vm1745_vm9, %v1284_v2, %v815_v8 }
  0x50   : > { %v1271_v16 = vcombine.low %v625_v26, %v635_v10  ;;  %v1279_v18 = vcombine.low %v729_v5, %v732_v14  ;;  %v817_v20 = vrot.slane %v815_v8, 4  ;;  %1372 = vmatprep.subr.bf16.mxu0 %v967_v9  ;;  %v822_v12 = vrot.slane %v1718_v11, 5 }
  0x51   : > { %1362 = vmatprep.mubr.msk.bf16.mxu0 %vm305_vm3, %v1278_v13  ;;  %v825_v46 = vrot.slane %v1722_v17, 5  ;;  %vm901_vm10 = vsmask.f32 2304  ;;  %vm902_vm11 = vsmask.f32 6416  ;;  %v905_v21 = vshrl.u32 %v1732_v31, 16 }
  0x52   : > { %1357 = vmatmul.mubr.msk.bf16.vlgmr.msra.gmra.mxu1 %vm305_vm3, %v1271_v16  ;;  %1363 = vmatmul.mubr.msk.bf16.vlgmr.msra.gmra.mxu0 %vm305_vm3, %v1279_v18  ;;  %v819_v56 = vsel %vm1745_vm9, %v817_v20, %v818_v36  ;;  %v908_v22 = vshll.u32 %v1732_v31, 16  ;;  %v913_v23 = vrot.slane %v476_v30, 5  ;;  %v823_v17 = vsel %vm1745_vm9, %v1285_v15, %v822_v12  ;;  %vm1802_vm12 = vmor %vm901_vm10, %vm902_vm11  ;;  %v285_v13 = vld [vmem:[#allocation2 + $0x10] sm:$0xff]  ;;  %v283_v16 = vld [vmem:[#allocation2] sm:$0xff] }
  0x53   : > { %1367 = vmatpush3.bf16.msra.mxu1 %v844_v42  ;;  %v1288_v11 = vcombine.low %v816_v19, %v819_v56  ;;  %v824_v24 = vrot.slane %v822_v12, 4  ;;  %1373 = vmatpush3.bf16.msra.mxu0 %v967_v9  ;;  %v914_v27 = vrot.slane %v472_v29, 6  ;;  %v907_v28 = vrot.slane %v905_v21, 5  ;;  %v286_v19 = vld [vmem:[#allocation2 + $0x18] sm:$0xff] }
  0x54   : > { %v910_v32 = vrot.slane %v908_v22, 6  ;;  %v919_v33 = vshrl.u32 %v899_v50, 16  ;;  %v922_v34 = vshll.u32 %v899_v50, 16  ;;  %v928_v39 = vshrl.u32 %v1737_v38, 16 }
  0x55   : > { %1368 = vmatprep.mubr.msk.bf16.mxu1 %vm305_vm3, %v1288_v11  ;;  %v826_v31 = vsel %vm1745_vm9, %v824_v24, %v825_v46  ;;  %v915_v30 = vor.u32 %v914_v27, %v913_v23  ;;  %v931_v40 = vshll.u32 %v1737_v38, 16  ;;  %v936_v51 = vrot.slane %v500_v45, 5  ;;  %v284_v46 = vld [vmem:[#allocation2 + $0x8] sm:$0xff] }
  0x56   : > { %v1289_v41 = vcombine.low %v823_v17, %v826_v31  ;;  %v911_v42 = vor.u32 %v910_v32, %v907_v28  ;;  %v921_v43 = vrot.slane %v919_v33, 5  ;;  %v924_v25 = vrot.slane %v922_v34, 6 }
  0x57   : > { %v917_v47 = vrot.slane %v915_v30, 4  ;;  %v930_v48 = vrot.slane %v928_v39, 5  ;;  %v933_v49 = vrot.slane %v931_v40, 6  ;;  %v937_v38 = vrot.slane %v496_v44, 6 }
  0x58   : > { %v912_v52 = vrot.slane %v911_v42, 4  ;;  %v925_v53 = vor.u32 %v924_v25, %v921_v43  ;;  %v942_v54 = vshrl.u32 %v900_v37, 16  ;;  %v945_v57 = vshll.u32 %v900_v37, 16 }
  0x59   : > { %v934_v55 = vor.u32 %v933_v49, %v930_v48  ;;  %v938_v60 = vor.u32 %v937_v38, %v936_v51  ;;  %vm1022_vm13 = vcmask 523264  }
  0x5a   : > { %1369 = vmatmul.mubr.msk.bf16.vlgmr.msra.gmra.mxu1 %vm305_vm3, %v1289_v41  ;;  %v916_v58 = vsel %vm1802_vm12, %v912_v52, %v915_v30  ;;  %v926_v59 = vsel %vm1802_vm12, %v917_v47, %v925_v53  ;;  %v944_v61 = vrot.slane %v942_v54, 5  ;;  %v947_v63 = vrot.slane %v945_v57, 6 }
  0x5b   : > { %v1294_v62 = vcombine.low %v916_v58, %v926_v59  ;;  %v935_v45 = vrot.slane %v934_v55, 4  ;;  %v940_v0 = vrot.slane %v938_v60, 4 }
  0x5c   : > { %v948_v44 = vor.u32 %v947_v63, %v944_v61 }
  0x5d   : > { %1374 = vmatprep.mubr.msk.bf16.mxu0 %vm305_vm3, %v1294_v62  ;;  %v939_v35 = vsel %vm1802_vm12, %v935_v45, %v938_v60 }
  0x5e   : > { %v949_v1 = vsel %vm1802_vm12, %v940_v0, %v948_v44 }
  0x5f   : > { %v1295_v2 = vcombine.low %v939_v35, %v949_v1 }
  0x61   : > { %1375 = vmatmul.mubr.msk.bf16.vlgmr.msra.gmra.mxu0 %vm305_vm3, %v1295_v2 }
  0xfe   : > { %v1340_v3 = vpop.f32.mrf.mxu0  ;;  %v1346_v5 = vpop.f32.mrf.mxu1 }
  0xff   : > { %v370_v18 = vadd.f32 %v1340_v3, %v285_v13 }
 0x100   : > { %v353_v26 = vpop.f32.mrf.mxu0  ;;  %v434_v7 = vpop.f32.mrf.mxu1 }
 0x101   : > { %v368_v12 = vadd.f32 %v353_v26, %v283_v16  ;;  %v451_v21 = vadd.f32 %v1346_v5, %v370_v18 }
 0x102   : > { %v1341_v4 = vpop.f32.mrf.mxu0  ;;  %v1347_v36 = vpop.f32.mrf.mxu1 }
 0x103   : > { %v371_v22 = vadd.f32 %v1341_v4, %v286_v19  ;;  %v449_v17 = vadd.f32 %v434_v7, %v368_v12 }
 0x104   : > { %v356_v6 = vpop.f32.mrf.mxu0  ;;  %v437_v14 = vpop.f32.mrf.mxu1 }
 0x105   : > { %v369_v24 = vadd.f32 %v356_v6, %v284_v46  ;;  %v452_v32 = vadd.f32 %v1347_v36, %v371_v22 }
 0x107   : > { %v450_v30 = vadd.f32 %v437_v14, %v369_v24 }
 0x108   : > { %v1352_v8 = vpop.f32.mrf.mxu0 }
 0x109   : > { %v580_v27 = vadd.f32 %v1352_v8, %v451_v21 }
 0x10a   : > { %v563_v9 = vpop.f32.mrf.mxu0 }
 0x10b   : > { %v578_v33 = vadd.f32 %v563_v9, %v449_v17 }
 0x10c   : > { %v1353_v10 = vpop.f32.mrf.mxu0 }
 0x10d   : > { %v581_v39 = vadd.f32 %v1353_v10, %v452_v32 }
 0x10e   : > { %v566_v15 = vpop.f32.mrf.mxu0 }
 0x10f   : > { %v579_v41 = vadd.f32 %v566_v15, %v450_v30 }
 0x112   : > { %v1358_v20 = vpop.f32.mrf.mxu1  ;;  %v1364_v50 = vpop.f32.mrf.mxu0 }
 0x113   : > { %v706_v37 = vadd.f32 %v1358_v20, %v580_v27 }
 0x114   : > { %v689_v56 = vpop.f32.mrf.mxu1  ;;  %v786_v11 = vpop.f32.mrf.mxu0 }
 0x115   : > { %v704_v40 = vadd.f32 %v689_v56, %v578_v33  ;;  %v803_v42 = vadd.f32 %v1364_v50, %v706_v37 }
 0x116   : > { %v1359_v23 = vpop.f32.mrf.mxu1  ;;  %v1365_v31 = vpop.f32.mrf.mxu0 }
 0x117   : > { %v707_v29 = vadd.f32 %v1359_v23, %v581_v39  ;;  %v801_v47 = vadd.f32 %v786_v11, %v704_v40 }
 0x118   : > { %v692_v28 = vpop.f32.mrf.mxu1  ;;  %v789_v25 = vpop.f32.mrf.mxu0 }
 0x119   : > { %v705_v48 = vadd.f32 %v692_v28, %v579_v41  ;;  %v804_v51 = vadd.f32 %v1365_v31, %v707_v29 }
 0x11a   : > { %v1370_v34 = vpop.f32.mrf.mxu1 }
 0x11b   : > { %v897_v49 = vadd.f32 %v1370_v34, %v803_v42  ;;  %v802_v54 = vadd.f32 %v789_v25, %v705_v48 }
 0x11c   : > { %v880_v43 = vpop.f32.mrf.mxu1 }
 0x11d   : > { %v895_v38 = vadd.f32 %v880_v43, %v801_v47 }
 0x11e   : > { %v1371_v52 = vpop.f32.mrf.mxu1 }
 0x11f   : > { %v898_v58 = vadd.f32 %v1371_v52, %v804_v51 }
 0x120   : > { %v883_v60 = vpop.f32.mrf.mxu1 }
 0x121   : > { %v1376_v53 = vpop.f32.mrf.mxu0  ;;  %v896_v62 = vadd.f32 %v883_v60, %v802_v54 }
 0x122   : > { %v1020_v55 = vadd.f32 %v1376_v53, %v897_v49 }
 0x123   : > { %v1003_v57 = vpop.f32.mrf.mxu0 }
 0x124   : > { %1025 = vst.msk [vmem:[#allocation2 + $0x10] sm:$0xff] %vm1022_vm13, %v1020_v55  ;;  %v1018_v59 = vadd.f32 %v1003_v57, %v895_v38 }
 0x125   : > { %v1377_v61 = vpop.f32.mrf.mxu0 }
 0x126   : > { %1023 = vst.msk [vmem:[#allocation2] sm:$0xff] %vm1022_vm13, %v1018_v59  ;;  %v1021_v45 = vadd.f32 %v1377_v61, %v898_v58  ;;  %1030 = sbr.rel (%p1298_p1) target bundleno = 313 (0x139), region = 81 }
 0x127   : > { %v1006_v63 = vpop.f32.mrf.mxu0 }
 0x128   : > { %1026 = vst.msk [vmem:[#allocation2 + $0x18] sm:$0xff] %vm1022_vm13, %v1021_v45  ;;  %v1019_v0 = vadd.f32 %v1006_v63, %v896_v62 }
 0x12a   : > { %1024 = vst.msk [vmem:[#allocation2 + $0x8] sm:$0xff] %vm1022_vm13, %v1019_v0 }
 0x12b   : > { %v1299_v44 = vld [vmem:[%s1870_s2] ss:$0 sm:$0xff]  ;;  %v1033_v26 = vld [vmem:[#allocation2 + $0x10] sm:$0xff]  ;;  %vm1066_vm14 = vcmask 519168  }
 0x12c   : > { %v1044_v5 = vadd.f32 %v1299_v44, %v1033_v26 }
 0x12d   : > { %v1031_v35 = vld [vmem:[#allocation2] sm:$0xff] }
 0x12e   : > { %v1042_v2 = vadd.f32 %v1299_v44, %v1031_v35  ;;  %v1048_v36 = vmax.f32 %v1044_v5, 0.0 }
 0x12f   : > { %v1034_v4 = vld [vmem:[#allocation2 + $0x18] sm:$0xff] }
 0x130   : > { %v1045_v6 = vadd.f32 %v1299_v44, %v1034_v4  ;;  %v1046_v7 = vmax.f32 %v1042_v2, 0.0  ;;  %v1312_v14 = vpack.c.bf16 %v1048_v36, %v1048_v36 }
 0x131   : > { %v1032_v1 = vld [vmem:[#allocation2 + $0x8] sm:$0xff] }
 0x132   : > { %v1043_v3 = vadd.f32 %v1299_v44, %v1032_v1  ;;  %v1049_v9 = vmax.f32 %v1045_v6, 0.0  ;;  %v1310_v10 = vpack.c.bf16 %v1046_v7, %v1046_v7  ;;  %1069 = vst.msk [vmem:[%s1640_s4 + $0x8] sm:$0xf] %vm1066_vm14, %v1312_v14 }
 0x134   : > { %v1047_v8 = vmax.f32 %v1043_v3, 0.0  ;;  %v1313_v15 = vpack.c.bf16 %v1049_v9, %v1049_v9  ;;  %1067 = vst.msk [vmem:[%s1640_s4] sm:$0xf] %vm1066_vm14, %v1310_v10 }
 0x136   : > { %v1311_v13 = vpack.c.bf16 %v1047_v8, %v1047_v8  ;;  %1070 = vst.msk [vmem:[%s1640_s4 + $0xc] sm:$0xf] %vm1066_vm14, %v1313_v15 }
 0x138   : > { %1068 = vst.msk [vmem:[%s1640_s4 + $0x4] sm:$0xf] %vm1066_vm14, %v1311_v13 }
 0x139 PF: > { %1077 = sbr.rel (!%p1619_p8) target bundleno = 321 (0x141), region = 85  ;;  %s1314_s16 = sshll.u32 (%p1619_p8), %s1517_s17, 3 }
 0x13a   : > { %s1080_s28 = scalar_lea.vmem (%p1619_p8), %s1871_s3, %s1314_s16 }
 0x13d   : > { %v1101_v18 = vld [vmem:[%s1640_s4 + $0x8] sm:$0xff] (%p1619_p8)  }
 0x13e   : > { %1102 = vst [vmem:[%s1080_s28 + $0x80] sm:$0xff] %v1101_v18  }
 0x13f   : > { %v1097_v16 = vld [vmem:[%s1640_s4] sm:$0xff]  }
 0x140   : > { %1098 = vst [vmem:[%s1080_s28] sm:$0xff] %v1097_v16  }
 0x141 PF: > { %s13_s20 = sadd.s32 1, %s1529_s20   ;;  %s1879_s12 = smov %s1501_s13 }
 0x142   : > { %p10_p2 = scmp.ge.s32.totalorder %s13_s20, 114   ;;  %s1880_s13 = smov %s1624_s6 }
 0x143   : > { %s1881_s14 = smov %s1509_s15  ;;  %s1882_s15 = smov %s1627_s7 }
 0x144   : > { %s1883_s16 = smov %s1521_s18  ;;  %s1884_s17 = smov %s1525_s19 }
 0x145   : > { %s1885_s18 = smov %s1888_s22  ;;  %s1886_s19 = smov %s1892_s23 }
 0x146   :  { %12 = sbr.rel (!%p10_p2) target bundleno = 5 (0x5), region = 165 }

// kernel: resnet_encoder_stride1.18
= control target key start
LH: loop header
LB: loop body
LE: loop exit
PB: predicated region body
PF: predicated region fallthrough
CT: control target
= control target key end

     0   :  { %s1009_s12 = smov 0   ;;  %s1011_s13 = smov 0   ;;  %s1206_s0 = inlined_call_operand.vmem [shape: bf16[2,10,10,64], index: 0, kind: input, shape index: {}]   ;;  %s1207_s1 = inlined_call_operand.vmem [shape: bf16[9,64,64], index: 1, kind: input, shape index: {}]   ;;  %s1208_s2 = inlined_call_operand.vmem [shape: f32[1,64], index: 2, kind: input, shape index: {}]   ;;  %s1209_s3 = inlined_call_operand.vmem [shape: bf16[2,8,8,64], index: 3, kind: output, shape index: {}]  }
   0x1   :  { %s1013_s14 = smov 0   ;;  %s1015_s15 = smov 0  }
   0x2   :  { %s1017_s16 = smov 0   ;;  %s1019_s17 = smov 0  }
   0x3   :  { %s1021_s18 = smov 0   ;;  %s1023_s19 = smov 0  }
   0x4   :  { %s1025_s20 = smov 0  }
   0x5 LB: > { %s22_s21 = sadd.s32 1, %s976_s18  ;;  %s25_s22 = sadd.s32 1, %s980_s19  ;;  %s984_s20 = sphi %s1025_s20, %s13_s20   ;;  %s980_s19 = sphi %s1023_s19, %s1221_s19   ;;  %s976_s18 = sphi %s1021_s18, %s1220_s18   ;;  %s972_s17 = sphi %s1019_s17, %s1219_s17   ;;  %s968_s16 = sphi %s1017_s16, %s1218_s16   ;;  %s964_s15 = sphi %s1015_s15, %s1217_s15   ;;  %s960_s14 = sphi %s1013_s14, %s1216_s14   ;;  %s956_s13 = sphi %s1011_s13, %s1215_s13   ;;  %s952_s12 = sphi %s1009_s12, %s1214_s12  }
   0x6   : > { %p23_p0 = scmp.ge.s32.totalorder %s22_s21, 3  ;;  %s716_s23 = sadd.s32 4294967295, %s984_s20  }
   0x7   : > { %s29_s24 = sadd.s32 %s976_s18, %s980_s19  ;;  %p41_p1 = scmp.ne.s32.totalorder %s964_s15, %s960_s14 }
   0x8   : > { %s1223_s21 = smov (%p23_p0, %s22_s21), 0  ;;  %s1225_s22 = smov (!%p23_p0, %s25_s22), %s980_s19 }
   0x9   : > { %p42_p2 = scmp.eq.s32.totalorder %s984_s20, 0  ;;  %p27_p3 = scmp.ge.s32.totalorder %s1225_s22, 8 }
   0xa   : > { %s34_s25 = sadd.s32 1, %s964_s15  ;;  %p112_p5 = scmp.ne.s32.totalorder %s956_s13, %s952_s12 }
   0xb   : > { %p1066_p4 = por %p42_p2, %p41_p1  ;;  %s1227_s22 = smov (%p27_p3, %s1225_s22), 0 }
   0xc   : > { %s102_s27 = sadd.s32 1, %s956_s13  ;;  %p113_p6 = scmp.eq.s32.totalorder %s716_s23, 23 }
   0xd   : > { %s30_s28 = sadd.s32 %s1227_s22, %s1223_s21  ;;  %s99_s29 = ssub.s32 %s980_s19, %s1227_s22 }
   0xe   : > { %s31_s30 = ssub.s32 %s29_s24, %s30_s28  ;;  %p100_p7 = scmp.eq.s32.totalorder %s99_s29, 0 }
   0xf   : > { %p32_p8 = scmp.eq.s32.totalorder %s31_s30, 0  ;;  %p1079_p9 = por %p113_p6, %p112_p5 }
  0x10   : > { %s1084_s5 = scalar_select %p100_p7, %s956_s13, %s102_s27  }
  0x11   : > { %s1087_s6 = scalar_select %p32_p8, %s964_s15, %s34_s25  }
  0x12   : > { %p719_p10 = scmp.ge.s32.totalorder %s984_s20, 24 }
  0x14   : > { %141 = sbr.rel (%p719_p10) target bundleno = 30 (0x1e), region = 24 }
  0x19   : > { %144 = sbr.rel (!%p1066_p4) target bundleno = 30 (0x1e), region = 28  ;;  %s146_s7 = sand.u32 (%p1066_p4), 1, %s964_s15  }
  0x1a   : > { %s773_s8 = sshll.u32 (%p1066_p4), %s29_s24, 3  ;;  %s720_s9 = sshll.u32 (%p1066_p4), %s146_s7, 4 }
  0x1b   : > { %s152_s23 = scalar_lea.vmem (%p1066_p4), %s1206_s0, %s773_s8  ;;  %s148_s27 = scalar_lea.vmem (%p1066_p4), [#allocation3], %s720_s9 }
  0x1c   : > { %v169_v0 = vld [vmem:[%s152_s23] sm:$0xff] (%p1066_p4)   ;;  %v173_v1 = vld [vmem:[%s152_s23 + $0x50] sm:$0xff] (%p1066_p4)  }
  0x1d   : > { %170 = vst [vmem:[%s148_s27] sm:$0xff] (%p1066_p4), %v169_v0   ;;  %174 = vst [vmem:[%s148_s27 + $0x8] sm:$0xff] (%p1066_p4), %v173_v1  }
  0x1e PF: > { %p723_p11 = scmp.ge.s32.totalorder %s984_s20, 1  ;;  %p207_p12 = scmp.lt.s32.totalorder %s984_s20, 25 }
  0x20   : > { %p208_p13 = pnand %p723_p11, %p207_p12 }
  0x21   : > { %s214_s24 = sand.u32 (!%p208_p13), 1, %s960_s14   ;;  %s233_s25 = sand.u32 (!%p208_p13), 1, %s952_s12  }
  0x22   : > { %211 = sbr.rel (%p208_p13) target bundleno = 303 (0x12f), region = 69  ;;  %s724_s26 = sshll.u32 (!%p208_p13), %s214_s24, 4 }
  0x23   : > { %s725_s28 = sshll.u32 (!%p208_p13), %s233_s25, 3  ;;  %s1100_s29 = scalar_lea.vmem (!%p208_p13), [#allocation3], %s724_s26 }
  0x24   : > { %s1102_s30 = scalar_lea.vmem (!%p208_p13), [#allocation4], %s725_s28  ;;  %p726_p0 = scmp.ne.s32.totalorder (!%p208_p13), %s968_s16, 0 }
  0x27   : > { %241 = sbr.rel (%p726_p0) target bundleno = 46 (0x2e), region = 77 }
  0x2c   : > { %vm242_vm0 = vcmask 523264   ;;  %v986_v2 = vmov 0.0  }
  0x2d   : > { %243 = vst.msk [vmem:[#allocation2] sm:$0xff] %vm242_vm0, %v986_v2  ;;  %244 = vst.msk [vmem:[#allocation2 + $0x8] sm:$0xff] %vm242_vm0, %v986_v2 }
  0x2e PF: > { %s774_s7 = smul.u32 96, %s968_s16  ;;  %v987_v3 = vmov 0.0   ;;  %v337_v4 = vld [vmem:[%s1100_s29] sm:$0xf]  ;;  %vm988_vm1 = vmmov 0   ;;  %vm290_vm5 = vcmask 523264  }
  0x2f   : > { %790 = vmatprep.subr.bf16.mxu0 %v987_v3  ;;  %802 = vmatprep.subr.bf16.mxu1 %v987_v3  ;;  %v339_v6 = vld [vmem:[%s1100_s29 + $0x8] sm:$0xf]  ;;  %v345_v7 = vshrl.u32 %v337_v4, 16  ;;  %v348_v9 = vshll.u32 %v337_v4, 16  ;;  %v1123_v11 = vld [vmem:[%s1100_s29 + $0x4] sm:$0x1] }
  0x30   : > { %s1112_s8 = scalar_lea.vmem %s1207_s1, %s774_s7  ;;  %798 = vmatprep.mubr.msk.bf16.mxu0 %vm988_vm1, %v987_v3  ;;  %810 = vmatprep.mubr.msk.bf16.mxu1 %vm988_vm1, %v987_v3  ;;  %v340_v15 = vld [vmem:[%s1100_s29 + $0xc] sm:$0x1]  ;;  %v359_v16 = vshrl.u32 %v339_v6, 16  ;;  %v354_v20 = vshll.u32 %v1123_v11, 16  ;;  %vm341_vm2 = vsmask.f32 3328 }
  0x31   : > { %v901_v5 = vld [vmem:[%s1112_s8 + $0x18] sm:$0xff]   ;;  %v903_v10 = vld [vmem:[%s1112_s8 + $0x10] sm:$0xff]   ;;  %v347_v12 = vrot.slane %v345_v7, 4  ;;  %v350_v14 = vrot.slane %v348_v9, 5  ;;  %v905_v17 = vld [vmem:[%s1112_s8 + $0x8] sm:$0xff]   ;;  %v362_v22 = vshll.u32 %v339_v6, 16 }
  0x32   : > { %v902_v8 = vld [vmem:[%s1112_s8 + $0x38] sm:$0xff]   ;;  %791 = vmatpush3.bf16.msra.mxu0 %v901_v5  ;;  %v904_v13 = vld [vmem:[%s1112_s8 + $0x30] sm:$0xff]   ;;  %v906_v18 = vld [vmem:[%s1112_s8 + $0x28] sm:$0xff]   ;;  %v361_v21 = vrot.slane %v359_v16, 4  ;;  %vm342_vm3 = vsmask.f32 7440 }
  0x33   : > { %803 = vmatpush3.bf16.msra.mxu1 %v902_v8  ;;  %792 = vmatprep.subr.bf16.mxu0 %v987_v3  ;;  %v351_v19 = vor.u32 %v350_v14, %v347_v12  ;;  %v368_v23 = vshll.u32 %v340_v15, 16  ;;  %v907_v24 = vld [vmem:[%s1112_s8] sm:$0xff]   ;;  %vm1137_vm4 = vmor %vm341_vm2, %vm342_vm3  ;;  %v356_v28 = vrot.slane %v354_v20, 5  ;;  %v364_v29 = vrot.slane %v362_v22, 5  ;;  %v910_v33 = vld [vmem:[%s1112_s8 + $0x58] sm:$0xff]   ;;  %p767_p1 = scmp.ne.s32.totalorder %s968_s16, 2 }
  0x34   : > { %804 = vmatprep.subr.bf16.mxu1 %v987_v3  ;;  %v908_v25 = vld [vmem:[%s1112_s8 + $0x20] sm:$0xff]   ;;  %v911_v38 = vld [vmem:[%s1112_s8 + $0x50] sm:$0xff]   ;;  %v458_v40 = vld [vmem:[%s1100_s29 + $0x8] sm:$0xe]  ;;  %vm463_vm6 = vcmask 1042432   ;;  %vm464_vm7 = vcmask 1046532  }
  0x35   : > { %v352_v27 = vrot.slane %v351_v19, 4  ;;  %v909_v30 = vld [vmem:[%s1100_s29] ss:$8 sps:$4 sm:$0xff]   ;;  %v365_v31 = vor.u32 %v364_v29, %v361_v21  ;;  %v370_v32 = vrot.slane %v368_v23, 5  ;;  %v468_v41 = vrot.slane %v1123_v11, 5  ;;  %vm465_vm8 = vmor %vm463_vm6, %vm464_vm7 }
  0x36   : > { %793 = vmatpush3.bf16.msra.mxu0 %v903_v10  ;;  %v457_v39 = vld [vmem:[%s1100_s29] sm:$0xe]  ;;  %v472_v42 = vrot.slane %v340_v15, 5  ;;  %v912_v43 = vld [vmem:[%s1112_s8 + $0x48] sm:$0xff]   ;;  %v751_v45 = vrot.slane %v458_v40, 9 }
  0x37   : > { %805 = vmatpush3.bf16.msra.mxu1 %v904_v13  ;;  %794 = vmatprep.subr.bf16.mxu0 %v987_v3  ;;  %v357_v34 = vsel %vm1137_vm4, %v352_v27, %v356_v28  ;;  %v366_v35 = vrot.slane %v365_v31, 4  ;;  %v750_v44 = vrot.slane %v457_v39, 9  ;;  %v913_v46 = vld [vmem:[%s1112_s8 + $0x40] sm:$0xff]   ;;  %v246_v60 = vld [vmem:[#allocation2 + $0x8] sm:$0xff] }
  0x38   : > { %806 = vmatprep.subr.bf16.mxu1 %v987_v3  ;;  %v473_v48 = vsel %vm465_vm8, %v751_v45, %v472_v42  ;;  %v245_v57 = vld [vmem:[#allocation2] sm:$0xff] }
  0x39   : > { %v371_v36 = vsel %vm1137_vm4, %v366_v35, %v370_v32  ;;  %v469_v47 = vsel %vm465_vm8, %v750_v44, %v468_v41 }
  0x3a   : > { %795 = vmatpush3.bf16.msra.mxu0 %v905_v17  ;;  %v744_v37 = vcombine.low %v357_v34, %v371_v36  ;;  %v761_v49 = vcombine.low %v469_v47, %v473_v48 }
  0x3b   : > { %807 = vmatpush3.bf16.msra.mxu1 %v906_v18  ;;  %796 = vmatprep.subr.bf16.mxu0 %v987_v3 }
  0x3c   : > { %808 = vmatprep.subr.bf16.mxu1 %v987_v3 }
  0x3e   : > { %797 = vmatpush3.bf16.msra.mxu0 %v907_v24 }
  0x3f   : > { %809 = vmatpush3.bf16.msra.mxu1 %v908_v25  ;;  %814 = vmatprep.subr.bf16.mxu0 %v987_v3 }
  0x41   : > { %799 = vmatmul.mubr.msk.bf16.vlgmr.msra.gmra.mxu0 %vm290_vm5, %v909_v30 }
  0x42   : > { %815 = vmatpush3.bf16.msra.mxu0 %v910_v33  ;;  %822 = vmatprep.mubr.msk.bf16.mxu0 %vm988_vm1, %v987_v3 }
  0x43   : > { %816 = vmatprep.subr.bf16.mxu0 %v987_v3  ;;  %811 = vmatmul.mubr.msk.bf16.vlgmr.msra.gmra.mxu1 %vm290_vm5, %v744_v37 }
  0x46   : > { %817 = vmatpush3.bf16.msra.mxu0 %v911_v38 }
  0x47   : > { %818 = vmatprep.subr.bf16.mxu0 %v987_v3 }
  0x4a   : > { %819 = vmatpush3.bf16.msra.mxu0 %v912_v43 }
  0x4b   : > { %820 = vmatprep.subr.bf16.mxu0 %v987_v3 }
  0x4e   : > { %821 = vmatpush3.bf16.msra.mxu0 %v913_v46 }
  0x51   : > { %823 = vmatmul.mubr.msk.bf16.vlgmr.msra.gmra.mxu0 %vm290_vm5, %v761_v49 }
 0x101   : > { %v328_v50 = vpop.f32.mrf.mxu0 }
 0x102   : > { %v335_v59 = vadd.f32 %v328_v50, %v245_v57 }
 0x103   : > { %v800_v51 = vpop.f32.mrf.mxu0  ;;  %v448_v52 = vpop.f32.mrf.mxu1 }
 0x104   : > { %v455_v61 = vadd.f32 %v448_v52, %v335_v59 }
 0x105   : > { %v331_v53 = vpop.f32.mrf.mxu0  ;;  %v812_v54 = vpop.f32.mrf.mxu1 }
 0x106   : > { %v336_v62 = vadd.f32 %v331_v53, %v246_v60 }
 0x107   : > { %v801_v55 = vpop.f32.mrf.mxu0  ;;  %v451_v56 = vpop.f32.mrf.mxu1 }
 0x108   : > { %v456_v2 = vadd.f32 %v451_v56, %v336_v62 }
 0x109   : > { %v813_v58 = vpop.f32.mrf.mxu1 }
 0x111   : > { %v550_v63 = vpop.f32.mrf.mxu0 }
 0x112   : > { %v557_v0 = vadd.f32 %v550_v63, %v455_v61 }
 0x113   : > { %v824_v1 = vpop.f32.mrf.mxu0 }
 0x114   : > { %559 = vst.msk [vmem:[#allocation2] sm:$0xff] %vm290_vm5, %v557_v0  ;;  %564 = sbr.rel (%p767_p1) target bundleno = 295 (0x127), region = 81 }
 0x115   : > { %v553_v3 = vpop.f32.mrf.mxu0 }
 0x116   : > { %v558_v4 = vadd.f32 %v553_v3, %v456_v2 }
 0x117   : > { %v825_v5 = vpop.f32.mrf.mxu0 }
 0x118   : > { %560 = vst.msk [vmem:[#allocation2 + $0x8] sm:$0xff] %vm290_vm5, %v558_v4 }
 0x119   : > { %v768_v7 = vld [vmem:[%s1208_s2] ss:$0 sm:$0xff]  ;;  %vm580_vm9 = vcmask 519168  }
 0x11b   : > { %v565_v6 = vld [vmem:[#allocation2] sm:$0xff] }
 0x11c   : > { %v574_v9 = vadd.f32 %v768_v7, %v565_v6 }
 0x11e   : > { %v576_v11 = vmax.f32 %v574_v9, 0.0 }
 0x11f   : > { %v566_v8 = vld [vmem:[#allocation2 + $0x8] sm:$0xff] }
 0x120   : > { %v575_v10 = vadd.f32 %v768_v7, %v566_v8  ;;  %v578_v13 = vpack.c.bf16 %v576_v11, %v576_v11 }
 0x122   : > { %v577_v12 = vmax.f32 %v575_v10, 0.0  ;;  %581 = vst.msk [vmem:[%s1102_s30] sm:$0xf] %vm580_vm9, %v578_v13 }
 0x124   : > { %v579_v14 = vpack.c.bf16 %v577_v12, %v577_v12 }
 0x126   : > { %582 = vst.msk [vmem:[%s1102_s30 + $0x4] sm:$0xf] %vm580_vm9, %v579_v14 }
 0x127 PF: > { %589 = sbr.rel (!%p1079_p9) target bundleno = 303 (0x12f), region = 85  ;;  %s770_s16 = sshll.u32 (%p1079_p9), %s972_s17, 2 }
 0x128   : > { %s591_s27 = scalar_lea.vmem (%p1079_p9), %s1209_s3, %s770_s16 }
 0x129   : > { %v608_v15 = vld [vmem:[%s1102_s30] sm:$0xf] (%p1079_p9) }
 0x12a   : > { %609 = vst [vmem:[%s591_s27] sm:$0xf] (%p1079_p9), %v608_v15 }
 0x12d   : > { %v610_v16 = vld [vmem:[%s1102_s30 + $0x4] sm:$0xf] }
 0x12e   : > { %611 = vst [vmem:[%s591_s27 + $0x20] sm:$0xf] %v610_v16 }
 0x12f PF: > { %s13_s20 = sadd.s32 1, %s984_s20   ;;  %s1214_s12 = smov %s956_s13 }
 0x130   : > { %p10_p2 = scmp.ge.s32.totalorder %s13_s20, 26   ;;  %s1215_s13 = smov %s1084_s5 }
 0x131   : > { %s1216_s14 = smov %s964_s15  ;;  %s1217_s15 = smov %s1087_s6 }
 0x132   : > { %s1218_s16 = smov %s976_s18  ;;  %s1219_s17 = smov %s980_s19 }
 0x133   : > { %s1220_s18 = smov %s1223_s21  ;;  %s1221_s19 = smov %s1227_s22 }
 0x134   :  { %12 = sbr.rel (!%p10_p2) target bundleno = 5 (0x5), region = 160 }

// kernel: resnet_encoder_stride1.19
= control target key start
LH: loop header
LB: loop body
LE: loop exit
PB: predicated region body
PF: predicated region fallthrough
CT: control target
= control target key end

     0   :  { %s1139_s15 = smov 0   ;;  %s1141_s16 = smov 0   ;;  %s1353_s0 = inlined_call_operand.vmem [shape: bf16[2,10,10,64], index: 0, kind: input, shape index: {}]   ;;  %s1354_s1 = inlined_call_operand.vmem [shape: bf16[9,64,64], index: 1, kind: input, shape index: {}]   ;;  %s1355_s2 = inlined_call_operand.vmem [shape: f32[1,64], index: 2, kind: input, shape index: {}]   ;;  %s1356_s3 = inlined_call_operand.vmem [shape: bf16[2,8,8,64], index: 3, kind: input, shape index: {}]   ;;  %s1357_s4 = inlined_call_operand.vmem [shape: bf16[2,8,8,64], index: 4, kind: output, shape index: {}]  }
   0x1   :  { %s1143_s17 = smov 0   ;;  %s1145_s18 = smov 0  }
   0x2   :  { %s1147_s19 = smov 0   ;;  %s1149_s20 = smov 0  }
   0x3   :  { %s1151_s21 = smov 0   ;;  %s1153_s22 = smov 0  }
   0x4   :  { %s1155_s23 = smov 0  }
   0x5 LB: > { %s834_s24 = sadd.s32 4294967295, %s1109_s23   ;;  %s23_s25 = sadd.s32 1, %s1101_s21  ;;  %s1109_s23 = sphi %s1155_s23, %s14_s23   ;;  %s1105_s22 = sphi %s1153_s22, %s1373_s22   ;;  %s1101_s21 = sphi %s1151_s21, %s1372_s21   ;;  %s1097_s20 = sphi %s1149_s20, %s1371_s20   ;;  %s1093_s19 = sphi %s1147_s19, %s1370_s19   ;;  %s1089_s18 = sphi %s1145_s18, %s1369_s18   ;;  %s1085_s17 = sphi %s1143_s17, %s1368_s17   ;;  %s1081_s16 = sphi %s1141_s16, %s1367_s16   ;;  %s1077_s15 = sphi %s1139_s15, %s1366_s15  }
   0x6   : > { %p24_p0 = scmp.ge.s32.totalorder %s23_s25, 3  ;;  %s26_s26 = sadd.s32 1, %s1105_s22 }
   0x7   : > { %s30_s27 = sadd.s32 %s1101_s21, %s1105_s22  ;;  %s35_s28 = sadd.s32 1, %s1089_s18 }
   0x8   : > { %s1375_s25 = smov (%p24_p0, %s23_s25), 0  ;;  %s1377_s26 = smov (!%p24_p0, %s26_s26), %s1105_s22 }
   0x9   : > { %p42_p1 = scmp.ne.s32.totalorder %s1089_s18, %s1085_s17  ;;  %p43_p2 = scmp.eq.s32.totalorder %s1109_s23, 0 }
   0xa   : > { %p28_p3 = scmp.ge.s32.totalorder %s1377_s26, 8  ;;  %s103_s29 = sadd.s32 1, %s1081_s16 }
   0xb   : > { %p1197_p4 = por %p43_p2, %p42_p1  ;;  %p110_p5 = scmp.ne.s32.totalorder %s1081_s16, %s1077_s15 }
   0xc   : > { %s1379_s26 = smov (%p28_p3, %s1377_s26), 0  ;;  %p140_p7 = scmp.eq.s32.totalorder %s834_s24, 23 }
   0xd   : > { %1360 = sst [smem:[#allocation6_spill]] %s1379_s26  ;;  %p1205_p6 = por %p110_p5, %p43_p2 }
   0xe   : > { %s31_s6 = sadd.s32 %s1379_s26, %s1375_s25  ;;  %s100_s7 = ssub.s32 %s1105_s22, %s1379_s26 }
   0xf   : > { %s32_s8 = ssub.s32 %s30_s27, %s31_s6  ;;  %p101_p8 = scmp.eq.s32.totalorder %s100_s7, 0 }
  0x10   : > { %p33_p9 = scmp.eq.s32.totalorder %s32_s8, 0  ;;  %p1213_p10 = por %p140_p7, %p110_p5 }
  0x11   : > { %s1218_s10 = scalar_select %p101_p8, %s1081_s16, %s103_s29  }
  0x12   : > { %s1221_s11 = scalar_select %p33_p9, %s1089_s18, %s35_s28  }
  0x13   : > { %p837_p11 = scmp.ge.s32.totalorder %s1109_s23, 24 }
  0x15   : > { %168 = sbr.rel (%p837_p11) target bundleno = 37 (0x25), region = 24 }
  0x1a   : > { %171 = sbr.rel (!%p1197_p4) target bundleno = 31 (0x1f), region = 28  ;;  %s173_s12 = sand.u32 (%p1197_p4), 1, %s1089_s18  }
  0x1b   : > { %s894_s13 = sshll.u32 (%p1197_p4), %s30_s27, 3  ;;  %s838_s14 = sshll.u32 (%p1197_p4), %s173_s12, 4 }
  0x1c   : > { %s179_s7 = scalar_lea.vmem (%p1197_p4), %s1353_s0, %s894_s13  ;;  %s175_s29 = scalar_lea.vmem (%p1197_p4), [#allocation3], %s838_s14 }
  0x1d   : > { %v196_v0 = vld [vmem:[%s179_s7] sm:$0xff] (%p1197_p4)   ;;  %v200_v1 = vld [vmem:[%s179_s7 + $0x50] sm:$0xff] (%p1197_p4)  }
  0x1e   : > { %197 = vst [vmem:[%s175_s29] sm:$0xff] (%p1197_p4), %v196_v0   ;;  %201 = vst [vmem:[%s175_s29 + $0x8] sm:$0xff] (%p1197_p4), %v200_v1  }
  0x1f PF: > { %235 = sbr.rel (!%p1205_p6) target bundleno = 37 (0x25), region = 69  ;;  %s237_s28 = sand.u32 (%p1205_p6), 1, %s1081_s16  }
  0x20   : > { %s842_s30 = sshll.u32 (%p1205_p6), %s1105_s22, 2  ;;  %s841_s8 = sshll.u32 (%p1205_p6), %s237_s28, 3 }
  0x21   : > { %s241_s26 = scalar_lea.vmem (%p1205_p6), %s1356_s3, %s842_s30  ;;  %s239_s13 = scalar_lea.vmem (%p1205_p6), [#allocation4], %s841_s8 }
  0x22   : > { %v258_v2 = vld [vmem:[%s241_s26] sm:$0xf] (%p1205_p6) }
  0x23   : > { %v260_v3 = vld [vmem:[%s241_s26 + $0x20] sm:$0xf] (%p1205_p6)  ;;  %259 = vst [vmem:[%s239_s13] sm:$0xf] (%p1205_p6), %v258_v2 }
  0x24   : > { %261 = vst [vmem:[%s239_s13 + $0x4] sm:$0xf] %v260_v3 }
  0x25 PF: > { %p843_p12 = scmp.ge.s32.totalorder %s1109_s23, 1  ;;  %p288_p13 = scmp.lt.s32.totalorder %s1109_s23, 25 }
  0x27   : > { %p289_p0 = pnand %p843_p12, %p288_p13 }
  0x28   : > { %s295_s5 = sand.u32 (!%p289_p0), 1, %s1085_s17   ;;  %s302_s14 = sand.u32 (!%p289_p0), 1, %s1077_s15  }
  0x29   : > { %292 = sbr.rel (%p289_p0) target bundleno = 312 (0x138), region = 110  ;;  %s844_s24 = sshll.u32 (!%p289_p0), %s295_s5, 4 }
  0x2a   : > { %s1241_s6 = sshll.u32 (!%p289_p0), %s302_s14, 3  ;;  %s1243_s26 = scalar_lea.vmem (!%p289_p0), [#allocation3], %s844_s24 }
  0x2b   : > { %s304_s7 = scalar_lea.vmem (!%p289_p0), [#allocation4], %s1241_s6  ;;  %s1247_s29 = scalar_lea.vmem (!%p289_p0), [#allocation5], %s1241_s6 }
  0x2c   : > { %p847_p1 = scmp.ne.s32.totalorder (!%p289_p0), %s1093_s19, 0 }
  0x2e   : > { %335 = sbr.rel (%p847_p1) target bundleno = 53 (0x35), region = 122 }
  0x33   : > { %vm336_vm0 = vcmask 523264   ;;  %v1111_v4 = vmov 0.0  }
  0x34   : > { %337 = vst.msk [vmem:[#allocation2] sm:$0xff] %vm336_vm0, %v1111_v4  ;;  %338 = vst.msk [vmem:[#allocation2 + $0x8] sm:$0xff] %vm336_vm0, %v1111_v4 }
  0x35 PF: > { %s895_s15 = smul.u32 96, %s1093_s19  ;;  %v1112_v5 = vmov 0.0   ;;  %v431_v6 = vld [vmem:[%s1243_s26] sm:$0xf]  ;;  %vm1113_vm1 = vmmov 0   ;;  %vm384_vm5 = vcmask 523264  }
  0x36   : > { %915 = vmatprep.subr.bf16.mxu0 %v1112_v5  ;;  %927 = vmatprep.subr.bf16.mxu1 %v1112_v5  ;;  %v433_v8 = vld [vmem:[%s1243_s26 + $0x8] sm:$0xf]  ;;  %v439_v9 = vshrl.u32 %v431_v6, 16  ;;  %v442_v11 = vshll.u32 %v431_v6, 16  ;;  %v1268_v13 = vld [vmem:[%s1243_s26 + $0x4] sm:$0x1] }
  0x37   : > { %s1257_s30 = scalar_lea.vmem %s1354_s1, %s895_s15  ;;  %923 = vmatprep.mubr.msk.bf16.mxu0 %vm1113_vm1, %v1112_v5  ;;  %935 = vmatprep.mubr.msk.bf16.mxu1 %vm1113_vm1, %v1112_v5  ;;  %v434_v17 = vld [vmem:[%s1243_s26 + $0xc] sm:$0x1]  ;;  %v453_v18 = vshrl.u32 %v433_v8, 16  ;;  %v448_v22 = vshll.u32 %v1268_v13, 16  ;;  %vm435_vm2 = vsmask.f32 3328 }
  0x38   : > { %v1026_v7 = vld [vmem:[%s1257_s30 + $0x18] sm:$0xff]   ;;  %v1028_v12 = vld [vmem:[%s1257_s30 + $0x10] sm:$0xff]   ;;  %v441_v14 = vrot.slane %v439_v9, 4  ;;  %v444_v16 = vrot.slane %v442_v11, 5  ;;  %v1030_v19 = vld [vmem:[%s1257_s30 + $0x8] sm:$0xff]   ;;  %v456_v24 = vshll.u32 %v433_v8, 16 }
  0x39   : > { %v1027_v10 = vld [vmem:[%s1257_s30 + $0x38] sm:$0xff]   ;;  %916 = vmatpush3.bf16.msra.mxu0 %v1026_v7  ;;  %v1029_v15 = vld [vmem:[%s1257_s30 + $0x30] sm:$0xff]   ;;  %v1031_v20 = vld [vmem:[%s1257_s30 + $0x28] sm:$0xff]   ;;  %v455_v23 = vrot.slane %v453_v18, 4  ;;  %vm436_vm3 = vsmask.f32 7440 }
  0x3a   : > { %928 = vmatpush3.bf16.msra.mxu1 %v1027_v10  ;;  %917 = vmatprep.subr.bf16.mxu0 %v1112_v5  ;;  %v445_v21 = vor.u32 %v444_v16, %v441_v14  ;;  %v462_v25 = vshll.u32 %v434_v17, 16  ;;  %v1032_v26 = vld [vmem:[%s1257_s30] sm:$0xff]   ;;  %vm1282_vm4 = vmor %vm435_vm2, %vm436_vm3  ;;  %v450_v30 = vrot.slane %v448_v22, 5  ;;  %v458_v31 = vrot.slane %v456_v24, 5  ;;  %v1035_v35 = vld [vmem:[%s1257_s30 + $0x58] sm:$0xff]   ;;  %p888_p2 = scmp.ne.s32.totalorder %s1093_s19, 2 }
  0x3b   : > { %929 = vmatprep.subr.bf16.mxu1 %v1112_v5  ;;  %v1033_v27 = vld [vmem:[%s1257_s30 + $0x20] sm:$0xff]   ;;  %v1036_v40 = vld [vmem:[%s1257_s30 + $0x50] sm:$0xff]   ;;  %v552_v42 = vld [vmem:[%s1243_s26 + $0x8] sm:$0xe]  ;;  %vm557_vm6 = vcmask 1042432   ;;  %vm558_vm7 = vcmask 1046532  }
  0x3c   : > { %v446_v29 = vrot.slane %v445_v21, 4  ;;  %v1034_v32 = vld [vmem:[%s1243_s26] ss:$8 sps:$4 sm:$0xff]   ;;  %v459_v33 = vor.u32 %v458_v31, %v455_v23  ;;  %v464_v34 = vrot.slane %v462_v25, 5  ;;  %v562_v43 = vrot.slane %v1268_v13, 5  ;;  %vm559_vm8 = vmor %vm557_vm6, %vm558_vm7 }
  0x3d   : > { %918 = vmatpush3.bf16.msra.mxu0 %v1028_v12  ;;  %v551_v41 = vld [vmem:[%s1243_s26] sm:$0xe]  ;;  %v566_v44 = vrot.slane %v434_v17, 5  ;;  %v1037_v45 = vld [vmem:[%s1257_s30 + $0x48] sm:$0xff]   ;;  %v872_v47 = vrot.slane %v552_v42, 9 }
  0x3e   : > { %930 = vmatpush3.bf16.msra.mxu1 %v1029_v15  ;;  %919 = vmatprep.subr.bf16.mxu0 %v1112_v5  ;;  %v451_v36 = vsel %vm1282_vm4, %v446_v29, %v450_v30  ;;  %v460_v37 = vrot.slane %v459_v33, 4  ;;  %v871_v46 = vrot.slane %v551_v41, 9  ;;  %v1038_v48 = vld [vmem:[%s1257_s30 + $0x40] sm:$0xff]   ;;  %v340_v62 = vld [vmem:[#allocation2 + $0x8] sm:$0xff] }
  0x3f   : > { %931 = vmatprep.subr.bf16.mxu1 %v1112_v5  ;;  %v567_v50 = vsel %vm559_vm8, %v872_v47, %v566_v44  ;;  %v339_v59 = vld [vmem:[#allocation2] sm:$0xff] }
  0x40   : > { %v465_v38 = vsel %vm1282_vm4, %v460_v37, %v464_v34  ;;  %v563_v49 = vsel %vm559_vm8, %v871_v46, %v562_v43 }
  0x41   : > { %920 = vmatpush3.bf16.msra.mxu0 %v1030_v19  ;;  %v865_v39 = vcombine.low %v451_v36, %v465_v38  ;;  %v882_v51 = vcombine.low %v563_v49, %v567_v50 }
  0x42   : > { %932 = vmatpush3.bf16.msra.mxu1 %v1031_v20  ;;  %921 = vmatprep.subr.bf16.mxu0 %v1112_v5 }
  0x43   : > { %933 = vmatprep.subr.bf16.mxu1 %v1112_v5 }
  0x45   : > { %922 = vmatpush3.bf16.msra.mxu0 %v1032_v26 }
  0x46   : > { %934 = vmatpush3.bf16.msra.mxu1 %v1033_v27  ;;  %939 = vmatprep.subr.bf16.mxu0 %v1112_v5 }
  0x48   : > { %924 = vmatmul.mubr.msk.bf16.vlgmr.msra.gmra.mxu0 %vm384_vm5, %v1034_v32 }
  0x49   : > { %940 = vmatpush3.bf16.msra.mxu0 %v1035_v35  ;;  %947 = vmatprep.mubr.msk.bf16.mxu0 %vm1113_vm1, %v1112_v5 }
  0x4a   : > { %941 = vmatprep.subr.bf16.mxu0 %v1112_v5  ;;  %936 = vmatmul.mubr.msk.bf16.vlgmr.msra.gmra.mxu1 %vm384_vm5, %v865_v39 }
  0x4d   : > { %942 = vmatpush3.bf16.msra.mxu0 %v1036_v40 }
  0x4e   : > { %943 = vmatprep.subr.bf16.mxu0 %v1112_v5 }
  0x51   : > { %944 = vmatpush3.bf16.msra.mxu0 %v1037_v45 }
  0x52   : > { %945 = vmatprep.subr.bf16.mxu0 %v1112_v5 }
  0x55   : > { %946 = vmatpush3.bf16.msra.mxu0 %v1038_v48 }
  0x58   : > { %948 = vmatmul.mubr.msk.bf16.vlgmr.msra.gmra.mxu0 %vm384_vm5, %v882_v51 }
 0x108   : > { %v422_v52 = vpop.f32.mrf.mxu0 }
 0x109   : > { %v429_v61 = vadd.f32 %v422_v52, %v339_v59 }
 0x10a   : > { %v925_v53 = vpop.f32.mrf.mxu0  ;;  %v542_v54 = vpop.f32.mrf.mxu1 }
 0x10b   : > { %v549_v63 = vadd.f32 %v542_v54, %v429_v61 }
 0x10c   : > { %v425_v55 = vpop.f32.mrf.mxu0  ;;  %v937_v56 = vpop.f32.mrf.mxu1 }
 0x10d   : > { %v430_v0 = vadd.f32 %v425_v55, %v340_v62 }
 0x10e   : > { %v926_v57 = vpop.f32.mrf.mxu0  ;;  %v545_v58 = vpop.f32.mrf.mxu1 }
 0x10f   : > { %v550_v4 = vadd.f32 %v545_v58, %v430_v0 }
 0x110   : > { %v938_v60 = vpop.f32.mrf.mxu1 }
 0x118   : > { %v644_v1 = vpop.f32.mrf.mxu0 }
 0x119   : > { %v651_v2 = vadd.f32 %v644_v1, %v549_v63 }
 0x11a   : > { %v949_v3 = vpop.f32.mrf.mxu0 }
 0x11b   : > { %653 = vst.msk [vmem:[#allocation2] sm:$0xff] %vm384_vm5, %v651_v2  ;;  %658 = sbr.rel (%p888_p2) target bundleno = 304 (0x130), region = 126 }
 0x11c   : > { %v647_v5 = vpop.f32.mrf.mxu0 }
 0x11d   : > { %v652_v6 = vadd.f32 %v647_v5, %v550_v4 }
 0x11e   : > { %v950_v7 = vpop.f32.mrf.mxu0 }
 0x11f   : > { %654 = vst.msk [vmem:[#allocation2 + $0x8] sm:$0xff] %vm384_vm5, %v652_v6 }
 0x120   : > { %v889_v9 = vld [vmem:[%s1355_s2] ss:$0 sm:$0xff]  ;;  %v897_v10 = vld [vmem:[%s304_s7] sm:$0xff]   ;;  %vm680_vm9 = vcmask 519168  }
 0x121   : > { %v898_v12 = vunpack.c.l.bf16 %v897_v10  ;;  %v899_v14 = vunpack.c.h.bf16 %v897_v10 }
 0x122   : > { %v659_v8 = vld [vmem:[#allocation2] sm:$0xff] }
 0x123   : > { %v668_v11 = vadd.f32 %v889_v9, %v659_v8 }
 0x125   : > { %v674_v16 = vadd.f32 %v898_v12, %v668_v11 }
 0x126   : > { %v660_v13 = vld [vmem:[#allocation2 + $0x8] sm:$0xff] }
 0x127   : > { %v669_v15 = vadd.f32 %v889_v9, %v660_v13  ;;  %v676_v18 = vmax.f32 %v674_v16, 0.0 }
 0x129   : > { %v675_v17 = vadd.f32 %v899_v14, %v669_v15  ;;  %v678_v20 = vpack.c.bf16 %v676_v18, %v676_v18 }
 0x12b   : > { %v677_v19 = vmax.f32 %v675_v17, 0.0  ;;  %681 = vst.msk [vmem:[%s1247_s29] sm:$0xf] %vm680_vm9, %v678_v20 }
 0x12d   : > { %v679_v21 = vpack.c.bf16 %v677_v19, %v677_v19 }
 0x12f   : > { %682 = vst.msk [vmem:[%s1247_s29 + $0x4] sm:$0xf] %vm680_vm9, %v679_v21 }
 0x130 PF: > { %689 = sbr.rel (!%p1213_p10) target bundleno = 312 (0x138), region = 130  ;;  %s891_s19 = sshll.u32 (%p1213_p10), %s1097_s20, 2 }
 0x131   : > { %s691_s5 = scalar_lea.vmem (%p1213_p10), %s1357_s4, %s891_s19 }
 0x132   : > { %v708_v22 = vld [vmem:[%s1247_s29] sm:$0xf] (%p1213_p10) }
 0x133   : > { %709 = vst [vmem:[%s691_s5] sm:$0xf] (%p1213_p10), %v708_v22 }
 0x136   : > { %v710_v23 = vld [vmem:[%s1247_s29 + $0x4] sm:$0xf] }
 0x137   : > { %711 = vst [vmem:[%s691_s5 + $0x20] sm:$0xf] %v710_v23 }
 0x138 PF: > { %s14_s23 = sadd.s32 1, %s1109_s23   ;;  %s1365_s9 = sld [smem:[#allocation6_spill]] }
 0x139   : > { %p11_p3 = scmp.ge.s32.totalorder %s14_s23, 26   ;;  %s1366_s15 = smov %s1081_s16 }
 0x13a   : > { %s1367_s16 = smov %s1218_s10  ;;  %s1368_s17 = smov %s1089_s18 }
 0x13b   : > { %s1369_s18 = smov %s1221_s11  ;;  %s1370_s19 = smov %s1101_s21 }
 0x13c   : > { %s1371_s20 = smov %s1105_s22  ;;  %s1372_s21 = smov %s1375_s25 }
 0x13d   :  { %13 = sbr.rel (!%p11_p3) target bundleno = 5 (0x5), region = 213 }
 0x13e   : > { %s1373_s22 = smov %s1365_s9 }

// kernel: resnet_encoder_stride1.22
= control target key start
LH: loop header
LB: loop body
LE: loop exit
PB: predicated region body
PF: predicated region fallthrough
CT: control target
= control target key end

     0   :  { %s1022_s12 = smov 0   ;;  %s1024_s13 = smov 0   ;;  %s1196_s0 = inlined_call_operand.vmem [shape: bf16[4,10,5,64], index: 0, kind: input, shape index: {}]   ;;  %s1197_s1 = inlined_call_operand.vmem [shape: bf16[9,64,128], index: 1, kind: input, shape index: {}]   ;;  %s1198_s2 = inlined_call_operand.vmem [shape: f32[1,128], index: 2, kind: input, shape index: {}]   ;;  %s1199_s3 = inlined_call_operand.vmem [shape: bf16[2,4,4,128], index: 3, kind: output, shape index: {}]  }
   0x1   :  { %s1026_s14 = smov 0   ;;  %s1028_s15 = smov 0  }
   0x2   :  { %s1030_s16 = smov 0   ;;  %s1032_s17 = smov 0  }
   0x3   :  { %s1034_s18 = smov 0   ;;  %s1036_s19 = smov 0  }
   0x4   :  { %s1038_s20 = smov 0  }
   0x5 LB: > { %s724_s21 = sadd.s32 4294967295, %s996_s20   ;;  %s22_s22 = sadd.s32 1, %s988_s18  ;;  %s996_s20 = sphi %s1038_s20, %s13_s20   ;;  %s992_s19 = sphi %s1036_s19, %s1208_s19   ;;  %s988_s18 = sphi %s1034_s18, %s1207_s18   ;;  %s984_s17 = sphi %s1032_s17, %s1206_s17   ;;  %s980_s16 = sphi %s1030_s16, %s1205_s16   ;;  %s976_s15 = sphi %s1028_s15, %s1204_s15   ;;  %s972_s14 = sphi %s1026_s14, %s1203_s14   ;;  %s968_s13 = sphi %s1024_s13, %s1202_s13   ;;  %s964_s12 = sphi %s1022_s12, %s1201_s12  }
   0x6   : > { %p23_p0 = scmp.ge.s32.totalorder %s22_s22, 3  ;;  %s25_s23 = sadd.s32 1, %s992_s19 }
   0x7   : > { %s726_s24 = sshll.u32 %s992_s19, 1  ;;  %s36_s25 = sadd.s32 1, %s976_s15 }
   0x8   : > { %s1210_s22 = smov (%p23_p0, %s22_s22), 0  ;;  %s1212_s23 = smov (!%p23_p0, %s25_s23), %s992_s19 }
   0x9   : > { %s30_s26 = sadd.s32 %s988_s18, %s726_s24  ;;  %p43_p1 = scmp.ne.s32.totalorder %s976_s15, %s972_s14 }
   0xa   : > { %p27_p2 = scmp.ge.s32.totalorder %s1212_s23, 4  ;;  %p44_p3 = scmp.eq.s32.totalorder %s996_s20, 0 }
   0xb   : > { %s104_s27 = sadd.s32 1, %s968_s13  ;;  %p114_p4 = scmp.ne.s32.totalorder %s968_s13, %s964_s12 }
   0xc   : > { %s1214_s23 = smov (%p27_p2, %s1212_s23), 0  ;;  %p45_p5 = por %p44_p3, %p43_p1 }
   0xd   : > { %p115_p6 = scmp.eq.s32.totalorder %s724_s21, 11  ;;  %s727_s28 = sshll.u32 %s1214_s23, 1 }
   0xe   : > { %s101_s29 = ssub.s32 %s992_s19, %s1214_s23  ;;  %s32_s30 = sadd.s32 %s727_s28, %s1210_s22 }
   0xf   : > { %p102_p7 = scmp.eq.s32.totalorder %s101_s29, 0  ;;  %s33_s4 = ssub.s32 %s30_s26, %s32_s30 }
  0x10   : > { %p1088_p8 = por %p115_p6, %p114_p4  ;;  %p34_p9 = scmp.eq.s32.totalorder %s33_s4, 0 }
  0x11   : > { %s1093_s6 = scalar_select %p102_p7, %s968_s13, %s104_s27  }
  0x12   : > { %s1096_s7 = scalar_select %p34_p9, %s976_s15, %s36_s25  }
  0x13   : > { %p729_p10 = scmp.ge.s32.totalorder %s996_s20, 12 }
  0x15   : > { %143 = sbr.rel (%p729_p10) target bundleno = 32 (0x20), region = 24 }
  0x1a   : > { %146 = sbr.rel (!%p45_p5) target bundleno = 32 (0x20), region = 28  ;;  %s148_s8 = sand.u32 (%p45_p5), 1, %s976_s15  }
  0x1b   : > { %s732_s9 = sshll.u32 (%p45_p5), %s30_s26, 2  ;;  %s730_s10 = sshll.u32 (%p45_p5), %s148_s8, 4 }
  0x1c   : > { %s154_s24 = scalar_lea.vmem (%p45_p5), %s1196_s0, %s732_s9  ;;  %s150_s28 = scalar_lea.vmem (%p45_p5), [#allocation3], %s730_s10 }
  0x1d   : > { %v171_v0 = vld [vmem:[%s154_s24] sm:$0xf] (%p45_p5)  ;;  %v173_v1 = vld [vmem:[%s154_s24 + $0x28] sm:$0xf] (%p45_p5)  ;;  %v175_v2 = vld [vmem:[%s154_s24 + $0x50] sm:$0xf] (%p45_p5) }
  0x1e   : > { %172 = vst [vmem:[%s150_s28] sm:$0xf] (%p45_p5), %v171_v0  ;;  %174 = vst [vmem:[%s150_s28 + $0x4] sm:$0xf] (%p45_p5), %v173_v1  ;;  %v177_v3 = vld [vmem:[%s154_s24 + $0x78] sm:$0xf] (%p45_p5) }
  0x1f   : > { %176 = vst [vmem:[%s150_s28 + $0x8] sm:$0xf] %v175_v2  ;;  %178 = vst [vmem:[%s150_s28 + $0xc] sm:$0xf] %v177_v3 }
  0x20 PF: > { %p733_p11 = scmp.ge.s32.totalorder %s996_s20, 1  ;;  %p209_p12 = scmp.lt.s32.totalorder %s996_s20, 13 }
  0x22   : > { %p210_p13 = pnand %p733_p11, %p209_p12 }
  0x23   : > { %s216_s25 = sand.u32 (!%p210_p13), 1, %s972_s14   ;;  %s235_s26 = sand.u32 (!%p210_p13), 1, %s964_s12  }
  0x24   : > { %213 = sbr.rel (%p210_p13) target bundleno = 303 (0x12f), region = 69  ;;  %s734_s27 = sshll.u32 (!%p210_p13), %s216_s25, 4 }
  0x25   : > { %s735_s29 = sshll.u32 (!%p210_p13), %s235_s26, 2  ;;  %s1107_s30 = scalar_lea.vmem (!%p210_p13), [#allocation3], %s734_s27 }
  0x26   : > { %s1109_s4 = scalar_lea.vmem (!%p210_p13), [#allocation4], %s735_s29  ;;  %p736_p0 = scmp.ne.s32.totalorder (!%p210_p13), %s980_s16, 0 }
  0x29   : > { %244 = sbr.rel (%p736_p0) target bundleno = 48 (0x30), region = 77 }
  0x2e   : > { %v998_v4 = vmov 0.0  }
  0x2f   : > { %245 = vst [vmem:[#allocation2] sm:$0xff] %v998_v4 }
  0x30 PF: > { %s782_s8 = smul.u32 96, %s980_s16  ;;  %v999_v5 = vmov 0.0   ;;  %vm1000_vm0 = vmmov 0   ;;  %v1001_v8 = vmov 1983009808   ;;  %v267_v10 = vlaneseq  ;;  %p776_p1 = scmp.ne.s32.totalorder %s980_s16, 2 }
  0x31   : > { %798 = vmatprep.subr.bf16.mxu0 %v999_v5  ;;  %810 = vmatprep.subr.bf16.mxu1 %v999_v5  ;;  %v265_v9 = vunpack.c.l.s4 %v1001_v8  ;;  %v924_v17 = vld.sshfl [vmem:[%s1107_s30] sm:$0xf pattern:$0x76325410]  ;;  %vm295_vm1 = vcmask 523264  }
  0x32   : > { %s1118_s9 = scalar_lea.vmem %s1197_s1, %s782_s8  ;;  %806 = vmatprep.mubr.msk.bf16.mxu0 %vm1000_vm0, %v999_v5  ;;  %818 = vmatprep.mubr.msk.bf16.mxu1 %vm1000_vm0, %v999_v5  ;;  %v268_v14 = vshrl.u32 %v267_v10, 7  ;;  %v925_v20 = vld.sshfl [vmem:[%s1107_s30 + $0x8] sm:$0xf pattern:$0x76325410] }
  0x33   : > { %v910_v6 = vld [vmem:[%s1118_s9 + $0x18] sm:$0xff]   ;;  %v912_v11 = vld [vmem:[%s1118_s9 + $0x10] sm:$0xff]   ;;  %v266_v13 = vunpack.c.0.s8 %v265_v9  ;;  %v914_v15 = vld [vmem:[%s1118_s9 + $0x8] sm:$0xff]   ;;  %vm453_vm2 = vsmask.f32 1280 }
  0x34   : > { %v911_v7 = vld [vmem:[%s1118_s9 + $0x38] sm:$0xff]   ;;  %799 = vmatpush3.bf16.msra.mxu0 %v910_v6  ;;  %v913_v12 = vld [vmem:[%s1118_s9 + $0x30] sm:$0xff]   ;;  %v915_v16 = vld [vmem:[%s1118_s9 + $0x28] sm:$0xff]   ;;  %vm454_vm3 = vsmask.f32 3336 }
  0x35   : > { %800 = vmatprep.subr.bf16.mxu0 %v999_v5  ;;  %811 = vmatpush3.bf16.msra.mxu1 %v911_v7  ;;  %v916_v18 = vld [vmem:[%s1118_s9] sm:$0xff]   ;;  %v269_v19 = vsub.s32 %v266_v13, %v268_v14  ;;  %v760_v22 = vld.sshfl [vmem:[%s1107_s30] sm:$0x13 pattern:$0x76325410]  ;;  %vm455_vm5 = vmor %vm453_vm2, %vm454_vm3 }
  0x36   : > { %812 = vmatprep.subr.bf16.mxu1 %v999_v5  ;;  %v918_v21 = vld [vmem:[%s1118_s9 + $0x20] sm:$0xff]   ;;  %v761_v23 = vld.sshfl [vmem:[%s1107_s30 + $0x4] sm:$0x13 pattern:$0x76325410]  ;;  %v444_v24 = vcombine.high %v760_v22, %v760_v22  ;;  %v461_v27 = vshrl.u32 %v760_v22, 16 }
  0x37   : > { %v919_v25 = vld [vmem:[%s1118_s9 + $0x58] sm:$0xff]   ;;  %v452_v26 = vcombine.high %v761_v23, %v761_v23  ;;  %vm456_vm4 = vsmask.f32 5392  ;;  %v464_v28 = vshll.u32 %v760_v22, 16  ;;  %v475_v30 = vshrl.u32 %v761_v23, 16  ;;  %v921_v36 = vld [vmem:[%s1118_s9 + $0x50] sm:$0xff]  }
  0x38   : > { %801 = vmatpush3.bf16.msra.mxu0 %v912_v11  ;;  %v470_v29 = vshll.u32 %v444_v24, 16  ;;  %v478_v31 = vshll.u32 %v761_v23, 16  ;;  %vm457_vm6 = vmor %vm455_vm5, %vm456_vm4  ;;  %vm458_vm7 = vsmask.f32 7448  ;;  %v463_v33 = vrot.slane %v461_v27, 6  ;;  %v922_v43 = vld [vmem:[%s1118_s9 + $0x48] sm:$0xff]  }
  0x39   : > { %802 = vmatprep.subr.bf16.mxu0 %v999_v5  ;;  %813 = vmatpush3.bf16.msra.mxu1 %v913_v12  ;;  %v484_v32 = vshll.u32 %v452_v26, 16  ;;  %v466_v34 = vrot.slane %v464_v28, 7  ;;  %v477_v35 = vrot.slane %v475_v30, 6  ;;  %vm459_vm8 = vmor %vm457_vm6, %vm458_vm7  ;;  %v923_v48 = vld [vmem:[%s1118_s9 + $0x40] sm:$0xff]  }
  0x3a   : > { %814 = vmatprep.subr.bf16.mxu1 %v999_v5  ;;  %v480_v37 = vrot.slane %v478_v31, 7  ;;  %v472_v39 = vrot.slane %v470_v29, 7  ;;  %v246_v58 = vld [vmem:[#allocation2] sm:$0xff] }
  0x3b   : > { %v467_v38 = vor.u32 %v466_v34, %v463_v33  ;;  %v486_v41 = vrot.slane %v484_v32, 7 }
  0x3c   : > { %803 = vmatpush3.bf16.msra.mxu0 %v914_v15  ;;  %v481_v40 = vor.u32 %v480_v37, %v477_v35 }
  0x3d   : > { %804 = vmatprep.subr.bf16.mxu0 %v999_v5  ;;  %815 = vmatpush3.bf16.msra.mxu1 %v915_v16  ;;  %v468_v42 = vrot.slane %v467_v38, 2 }
  0x3e   : > { %816 = vmatprep.subr.bf16.mxu1 %v999_v5  ;;  %v482_v44 = vrot.slane %v481_v40, 2 }
  0x3f   : > { %v473_v45 = vsel %vm459_vm8, %v468_v42, %v472_v39 }
  0x40   : > { %805 = vmatpush3.bf16.msra.mxu0 %v916_v18  ;;  %v487_v46 = vsel %vm459_vm8, %v482_v44, %v486_v41 }
  0x41   : > { %817 = vmatpush3.bf16.msra.mxu1 %v918_v21  ;;  %822 = vmatprep.subr.bf16.mxu0 %v999_v5  ;;  %v500_v47 = vcombine.low %v473_v45, %v487_v46 }
  0x43   : > { %807 = vmatmul.mubr.msk.bf16.vlgmr.msra.gmra.mxu0 %vm295_vm1, %v924_v17  ;;  %v507_v49 = vrot.slane %v500_v47, %v269_v19 }
  0x44   : > { %823 = vmatpush3.bf16.msra.mxu0 %v919_v25  ;;  %819 = vmatmul.mubr.msk.bf16.vlgmr.msra.gmra.mxu1 %vm295_vm1, %v925_v20 }
  0x45   : > { %824 = vmatprep.subr.bf16.mxu0 %v999_v5  ;;  %830 = vmatprep.mubr.msk.bf16.mxu0 %vm1000_vm0, %v999_v5 }
  0x48   : > { %825 = vmatpush3.bf16.msra.mxu0 %v921_v36 }
  0x49   : > { %826 = vmatprep.subr.bf16.mxu0 %v999_v5 }
  0x4c   : > { %827 = vmatpush3.bf16.msra.mxu0 %v922_v43 }
  0x4d   : > { %828 = vmatprep.subr.bf16.mxu0 %v999_v5 }
  0x50   : > { %829 = vmatpush3.bf16.msra.mxu0 %v923_v48 }
  0x53   : > { %831 = vmatmul.mubr.msk.bf16.vlgmr.msra.gmra.mxu0 %vm295_vm1, %v507_v49 }
 0x103   : > { %v333_v50 = vpop.f32.mrf.mxu0 }
 0x104   : > { %v426_v51 = vpop.f32.mrf.mxu1  ;;  %v339_v59 = vadd.f32 %v333_v50, %v246_v58 }
 0x105   : > { %v808_v52 = vpop.f32.mrf.mxu0 }
 0x106   : > { %v820_v53 = vpop.f32.mrf.mxu1  ;;  %v432_v60 = vadd.f32 %v426_v51, %v339_v59 }
 0x107   : > { %v336_v54 = vpop.f32.mrf.mxu0 }
 0x108   : > { %v429_v55 = vpop.f32.mrf.mxu1 }
 0x109   : > { %v809_v56 = vpop.f32.mrf.mxu0 }
 0x10a   : > { %v821_v57 = vpop.f32.mrf.mxu1 }
 0x113   : > { %v569_v61 = vpop.f32.mrf.mxu0 }
 0x114   : > { %v575_v62 = vadd.f32 %v569_v61, %v432_v60 }
 0x115   : > { %v832_v63 = vpop.f32.mrf.mxu0  ;;  %580 = sbr.rel (%p776_p1) target bundleno = 295 (0x127), region = 81 }
 0x116   : > { %576 = vst [vmem:[#allocation2] sm:$0xff] %v575_v62 }
 0x117   : > { %v572_v0 = vpop.f32.mrf.mxu0 }
 0x119   : > { %v833_v1 = vpop.f32.mrf.mxu0 }
 0x11a   : > { %v777_v3 = vld [vmem:[%s1198_s2] ss:$0 sm:$0xff] }
 0x11d   : > { %v581_v2 = vld [vmem:[#allocation2] sm:$0xff] }
 0x11e   : > { %v589_v4 = vadd.f32 %v777_v3, %v581_v2 }
 0x120   : > { %v590_v5 = vmax.f32 %v589_v4, 0.0 }
 0x122   : > { %v594_v6 = vpack.c.bf16 %v590_v5, %v590_v5  ;;  %v592_v7 = vcombine.high %v590_v5, %v590_v5 }
 0x124   : > { %596 = vst [vmem:[%s1109_s4] sm:$0x3] %v594_v6  ;;  %v595_v8 = vpack.c.bf16 %v592_v7, %v592_v7 }
 0x126   : > { %597 = vst [vmem:[%s1109_s4 + $0x2] sm:$0x3] %v595_v8 }
 0x127 PF: > { %604 = sbr.rel (!%p1088_p8) target bundleno = 303 (0x12f), region = 85  ;;  %s779_s16 = sshll.u32 (%p1088_p8), %s984_s17, 1 }
 0x128   : > { %s606_s28 = scalar_lea.vmem (%p1088_p8), %s1199_s3, %s779_s16 }
 0x12b   : > { %v623_v9 = vld [vmem:[%s1109_s4] sm:$0x3] (%p1088_p8) }
 0x12c   : > { %624 = vst [vmem:[%s606_s28] sm:$0x3] %v623_v9 }
 0x12d   : > { %v625_v10 = vld [vmem:[%s1109_s4 + $0x2] sm:$0x3] }
 0x12e   : > { %626 = vst [vmem:[%s606_s28 + $0x8] sm:$0x3] %v625_v10 }
 0x12f PF: > { %s13_s20 = sadd.s32 1, %s996_s20   ;;  %s1201_s12 = smov %s968_s13 }
 0x130   : > { %p10_p2 = scmp.ge.s32.totalorder %s13_s20, 14   ;;  %s1202_s13 = smov %s1093_s6 }
 0x131   : > { %s1203_s14 = smov %s976_s15  ;;  %s1204_s15 = smov %s1096_s7 }
 0x132   : > { %s1205_s16 = smov %s988_s18  ;;  %s1206_s17 = smov %s992_s19 }
 0x133   : > { %s1207_s18 = smov %s1210_s22  ;;  %s1208_s19 = smov %s1214_s23 }
 0x134   :  { %12 = sbr.rel (!%p10_p2) target bundleno = 5 (0x5), region = 154 }

// kernel: resnet_encoder_stride1.23
= control target key start
LH: loop header
LB: loop body
LE: loop exit
PB: predicated region body
PF: predicated region fallthrough
CT: control target
= control target key end

     0   :  { %s640_s12 = smov 0   ;;  %s642_s13 = smov 0   ;;  %s752_s0 = inlined_call_operand.vmem [shape: bf16[2,8,4,64], index: 0, kind: input, shape index: {}]   ;;  %s753_s1 = inlined_call_operand.vmem [shape: bf16[1,64,128], index: 1, kind: input, shape index: {}]   ;;  %s754_s2 = inlined_call_operand.vmem [shape: f32[1,128], index: 2, kind: input, shape index: {}]   ;;  %s755_s3 = inlined_call_operand.vmem [shape: bf16[2,4,4,128], index: 3, kind: output, shape index: {}]  }
   0x1   :  { %s644_s14 = smov 0   ;;  %s646_s15 = smov 0  }
   0x2   :  { %s648_s16 = smov 0   ;;  %s650_s17 = smov 0  }
   0x3   :  { %s652_s18 = smov 0  }
   0x4 LB: > { %s458_s19 = sadd.s32 4294967295, %s615_s18   ;;  %s25_s20 = sadd.s32 1, %s611_s17  ;;  %s615_s18 = sphi %s652_s18, %s13_s18   ;;  %s611_s17 = sphi %s650_s17, %s762_s17   ;;  %s607_s16 = sphi %s648_s16, %s761_s16   ;;  %s603_s15 = sphi %s646_s15, %s760_s15   ;;  %s599_s14 = sphi %s644_s14, %s759_s14   ;;  %s595_s13 = sphi %s642_s13, %s758_s13   ;;  %s591_s12 = sphi %s640_s12, %s757_s12  }
   0x5   : > { %p27_p0 = scmp.ge.s32.totalorder %s25_s20, 4  ;;  %s460_s21 = sshll.u32 %s611_s17, 1 }
   0x6   : > { %s36_s22 = sadd.s32 1, %s603_s15  ;;  %p43_p1 = scmp.ne.s32.totalorder %s603_s15, %s599_s14 }
   0x7   : > { %s764_s20 = smov (%p27_p0, %s25_s20), 0  ;;  %p44_p2 = scmp.eq.s32.totalorder %s615_s18, 0 }
   0x8   : > { %s104_s23 = sadd.s32 1, %s595_s13  ;;  %s461_s24 = sshll.u32 %s764_s20, 1 }
   0x9   : > { %s101_s25 = ssub.s32 %s611_s17, %s764_s20  ;;  %s33_s26 = ssub.s32 %s460_s21, %s461_s24 }
   0xa   : > { %p45_p3 = por %p44_p2, %p43_p1  ;;  %p34_p4 = scmp.eq.s32.totalorder %s33_s26, 0 }
   0xb   : > { %p102_p5 = scmp.eq.s32.totalorder %s101_s25, 0  ;;  %p114_p6 = scmp.ne.s32.totalorder %s595_s13, %s591_s12 }
   0xc   : > { %p115_p7 = scmp.eq.s32.totalorder %s458_s19, 3  ;;  %p463_p9 = scmp.ge.s32.totalorder %s615_s18, 4 }
   0xd   : > { %s691_s27 = scalar_select %p34_p4, %s603_s15, %s36_s22  }
   0xe   : > { %s694_s28 = scalar_select %p102_p5, %s595_s13, %s104_s23  }
   0xf   : > { %p696_p8 = por %p115_p7, %p114_p6  ;;  %143 = sbr.rel (%p463_p9) target bundleno = 25 (0x19), region = 24 }
  0x14   : > { %146 = sbr.rel (!%p45_p3) target bundleno = 25 (0x19), region = 28  ;;  %s148_s30 = sand.u32 (%p45_p3), 1, %s603_s15  }
  0x15   : > { %s480_s4 = sshll.u32 (%p45_p3), %s611_s17, 2  ;;  %s464_s5 = sshll.u32 (%p45_p3), %s148_s30, 2 }
  0x16   : > { %s154_s8 = scalar_lea.vmem (%p45_p3), %s752_s0, %s480_s4  ;;  %s150_s9 = scalar_lea.vmem (%p45_p3), [#allocation3], %s464_s5 }
  0x17   : > { %v171_v0 = vld [vmem:[%s154_s8] sm:$0x3] (%p45_p3)  ;;  %v173_v1 = vld [vmem:[%s154_s8 + $0x10] sm:$0x3] (%p45_p3) }
  0x18   : > { %172 = vst [vmem:[%s150_s9] sm:$0x3] (%p45_p3), %v171_v0  ;;  %174 = vst [vmem:[%s150_s9 + $0x2] sm:$0x3] (%p45_p3), %v173_v1 }
  0x19 PF: > { %p467_p10 = scmp.ge.s32.totalorder %s615_s18, 1  ;;  %p193_p11 = scmp.lt.s32.totalorder %s615_s18, 5 }
  0x1b   : > { %p194_p12 = pnand %p467_p10, %p193_p11 }
  0x1c   : > { %s200_s22 = sand.u32 (!%p194_p12), 1, %s599_s14   ;;  %s219_s4 = sand.u32 (!%p194_p12), 1, %s591_s12  }
  0x1d   : > { %197 = sbr.rel (%p194_p12) target bundleno = 259 (0x103), region = 62  ;;  %s468_s23 = sshll.u32 (!%p194_p12), %s200_s22, 2 }
  0x1e   : > { %s202_s26 = scalar_lea.vmem (!%p194_p12), [#allocation3], %s468_s23  ;;  %s469_s7 = sshll.u32 (!%p194_p12), %s219_s4, 2 }
  0x1f   : > { %s221_s8 = scalar_lea.vmem (!%p194_p12), [#allocation4], %s469_s7 }
  0x22   : > { %v557_v2 = vld [vmem:[%s753_s1 + $0x18] sm:$0xff]   ;;  %v617_v3 = vmov 0.0   ;;  %v250_v4 = vlaneseq  ;;  %v558_v5 = vld [vmem:[%s753_s1 + $0x10] sm:$0xff]   ;;  %vm618_vm0 = vmmov 0   ;;  %v619_v6 = vmov 1983009808  }
  0x23   : > { %486 = vmatprep.subr.bf16.mxu0 %v617_v3  ;;  %494 = vmatprep.mubr.msk.bf16.mxu0 %vm618_vm0, %v617_v3  ;;  %v248_v7 = vunpack.c.l.s4 %v619_v6  ;;  %v559_v9 = vld [vmem:[%s753_s1 + $0x8] sm:$0xff]   ;;  %v231_v10 = vld [vmem:[%s202_s26] sm:$0x3]  ;;  %v232_v11 = vld [vmem:[%s202_s26 + $0x2] sm:$0x3]  ;;  %vm278_vm1 = vcmask 523264  }
  0x24   : > { %487 = vmatpush3.bf16.msra.mxu0 %v557_v2  ;;  %v251_v8 = vshrl.u32 %v250_v4, 7  ;;  %v246_v13 = vcombine.low %v231_v10, %v232_v11  ;;  %v560_v15 = vld [vmem:[%s753_s1] sm:$0xff]   ;;  %s477_s12 = sshll.u32 (%p696_p8), %s607_s16, 1 }
  0x25   : > { %488 = vmatprep.subr.bf16.mxu0 %v617_v3  ;;  %v249_v12 = vunpack.c.0.s8 %v248_v7  ;;  %v475_v17 = vld [vmem:[%s754_s2] ss:$0 sm:$0xff]  ;;  %s351_s11 = scalar_lea.vmem (%p696_p8), %s755_s3, %s477_s12 }
  0x27   : > { %v252_v14 = vsub.s32 %v249_v12, %v251_v8 }
  0x28   : > { %489 = vmatpush3.bf16.msra.mxu0 %v558_v5 }
  0x29   : > { %490 = vmatprep.subr.bf16.mxu0 %v617_v3  ;;  %v253_v16 = vrot.slane %v246_v13, %v252_v14 }
  0x2c   : > { %491 = vmatpush3.bf16.msra.mxu0 %v559_v9 }
  0x2d   : > { %492 = vmatprep.subr.bf16.mxu0 %v617_v3 }
  0x30   : > { %493 = vmatpush3.bf16.msra.mxu0 %v560_v15 }
  0x33   : > { %495 = vmatmul.mubr.msk.bf16.vlgmr.msra.gmra.mxu0 %vm278_vm1, %v253_v16 }
  0xf3   : > { %v316_v18 = vpop.f32.mrf.mxu0 }
  0xf4   : > { %v335_v19 = vadd.f32 %v475_v17, %v316_v18 }
  0xf5   : > { %v496_v20 = vpop.f32.mrf.mxu0 }
  0xf6   : > { %v337_v21 = vcombine.high %v335_v19, %v335_v19  ;;  %v339_v22 = vpack.c.bf16 %v335_v19, %v335_v19  ;;  %349 = sbr.rel (!%p696_p8) target bundleno = 259 (0x103), region = 78 }
  0xf7   : > { %v319_v23 = vpop.f32.mrf.mxu0 }
  0xf8   : > { %v340_v24 = vpack.c.bf16 %v337_v21, %v337_v21  ;;  %341 = vst [vmem:[%s221_s8] sm:$0x3] %v339_v22 }
  0xf9   : > { %v497_v25 = vpop.f32.mrf.mxu0 }
  0xfa   : > { %342 = vst [vmem:[%s221_s8 + $0x2] sm:$0x3] %v340_v24 }
  0xff   : > { %v368_v26 = vld [vmem:[%s221_s8] sm:$0x3] }
 0x100   : > { %369 = vst [vmem:[%s351_s11] sm:$0x3] %v368_v26 }
 0x101   : > { %v370_v27 = vld [vmem:[%s221_s8 + $0x2] sm:$0x3] }
 0x102   : > { %371 = vst [vmem:[%s351_s11 + $0x8] sm:$0x3] %v370_v27 }
 0x103 PF: > { %s13_s18 = sadd.s32 1, %s615_s18   ;;  %s757_s12 = smov %s595_s13 }
 0x104   : > { %p10_p13 = scmp.ge.s32.totalorder %s13_s18, 6   ;;  %s758_s13 = smov %s694_s28 }
 0x105   : > { %s759_s14 = smov %s603_s15  ;;  %s760_s15 = smov %s691_s27 }
 0x106   : > { %s761_s16 = smov %s611_s17  ;;  %s762_s17 = smov %s764_s20 }
 0x107   :  { %12 = sbr.rel (!%p10_p13) target bundleno = 4 (0x4), region = 144 }

// kernel: resnet_encoder_stride1.25
= control target key start
LH: loop header
LB: loop body
LE: loop exit
PB: predicated region body
PF: predicated region fallthrough
CT: control target
= control target key end

     0   :  { %s1198_s12 = smov 0   ;;  %s1200_s13 = smov 0   ;;  %s1409_s0 = inlined_call_operand.vmem [shape: bf16[2,6,6,128], index: 0, kind: input, shape index: {}]   ;;  %s1410_s1 = inlined_call_operand.vmem [shape: bf16[9,128,128], index: 1, kind: input, shape index: {}]   ;;  %s1411_s2 = inlined_call_operand.vmem [shape: f32[1,128], index: 2, kind: input, shape index: {}]   ;;  %s1412_s3 = inlined_call_operand.vmem [shape: bf16[2,4,4,128], index: 3, kind: output, shape index: {}]  }
   0x1   :  { %s1202_s14 = smov 0   ;;  %s1204_s15 = smov 0  }
   0x2   :  { %s1206_s16 = smov 0   ;;  %s1208_s17 = smov 0  }
   0x3   :  { %s1210_s18 = smov 0   ;;  %s1212_s19 = smov 0  }
   0x4   :  { %s1214_s20 = smov 0  }
   0x5 LB: > { %s22_s21 = sadd.s32 1, %s1164_s18  ;;  %s25_s22 = sadd.s32 1, %s1168_s19  ;;  %s1172_s20 = sphi %s1214_s20, %s13_s20   ;;  %s1168_s19 = sphi %s1212_s19, %s1424_s19   ;;  %s1164_s18 = sphi %s1210_s18, %s1423_s18   ;;  %s1160_s17 = sphi %s1208_s17, %s1422_s17   ;;  %s1156_s16 = sphi %s1206_s16, %s1421_s16   ;;  %s1152_s15 = sphi %s1204_s15, %s1420_s15   ;;  %s1148_s14 = sphi %s1202_s14, %s1419_s14   ;;  %s1144_s13 = sphi %s1200_s13, %s1418_s13   ;;  %s1140_s12 = sphi %s1198_s12, %s1417_s12  }
   0x6   : > { %p23_p0 = scmp.ge.s32.totalorder %s22_s21, 3  ;;  %s830_s23 = sadd.s32 4294967295, %s1172_s20  }
   0x7   : > { %s29_s24 = sadd.s32 %s1164_s18, %s1168_s19  ;;  %p41_p1 = scmp.ne.s32.totalorder %s1152_s15, %s1148_s14 }
   0x8   : > { %s1426_s21 = smov (%p23_p0, %s22_s21), 0  ;;  %s1428_s22 = smov (!%p23_p0, %s25_s22), %s1168_s19 }
   0x9   : > { %p42_p2 = scmp.eq.s32.totalorder %s1172_s20, 0  ;;  %p27_p3 = scmp.ge.s32.totalorder %s1428_s22, 4 }
   0xa   : > { %s34_s25 = sadd.s32 1, %s1152_s15  ;;  %p112_p5 = scmp.ne.s32.totalorder %s1144_s13, %s1140_s12 }
   0xb   : > { %p1255_p4 = por %p42_p2, %p41_p1  ;;  %s1430_s22 = smov (%p27_p3, %s1428_s22), 0 }
   0xc   : > { %s102_s27 = sadd.s32 1, %s1144_s13  ;;  %p113_p6 = scmp.eq.s32.totalorder %s830_s23, 11 }
   0xd   : > { %s30_s28 = sadd.s32 %s1430_s22, %s1426_s21  ;;  %s99_s29 = ssub.s32 %s1168_s19, %s1430_s22 }
   0xe   : > { %s31_s30 = ssub.s32 %s29_s24, %s30_s28  ;;  %p100_p7 = scmp.eq.s32.totalorder %s99_s29, 0 }
   0xf   : > { %p32_p8 = scmp.eq.s32.totalorder %s31_s30, 0  ;;  %p1268_p9 = por %p113_p6, %p112_p5 }
  0x10   : > { %s1273_s5 = scalar_select %p100_p7, %s1144_s13, %s102_s27  }
  0x11   : > { %s1276_s6 = scalar_select %p32_p8, %s1152_s15, %s34_s25  }
  0x12   : > { %p833_p10 = scmp.ge.s32.totalorder %s1172_s20, 12 }
  0x14   : > { %141 = sbr.rel (%p833_p10) target bundleno = 30 (0x1e), region = 24 }
  0x19   : > { %144 = sbr.rel (!%p1255_p4) target bundleno = 30 (0x1e), region = 28  ;;  %s146_s7 = sand.u32 (%p1255_p4), 1, %s1152_s15  }
  0x1a   : > { %s835_s8 = sshll.u32 (%p1255_p4), %s29_s24, 2  ;;  %s834_s9 = sshll.u32 (%p1255_p4), %s146_s7, 3 }
  0x1b   : > { %s151_s23 = scalar_lea.vmem (%p1255_p4), %s1409_s0, %s835_s8  ;;  %s148_s27 = scalar_lea.vmem (%p1255_p4), [#allocation3], %s834_s9 }
  0x1c   : > { %v168_v0 = vld [vmem:[%s151_s23] sm:$0xf] (%p1255_p4)  ;;  %v170_v1 = vld [vmem:[%s151_s23 + $0x18] sm:$0xf] (%p1255_p4) }
  0x1d   : > { %169 = vst [vmem:[%s148_s27] sm:$0xf] (%p1255_p4), %v168_v0  ;;  %171 = vst [vmem:[%s148_s27 + $0x4] sm:$0xf] (%p1255_p4), %v170_v1 }
  0x1e PF: > { %p836_p11 = scmp.ge.s32.totalorder %s1172_s20, 1  ;;  %p198_p12 = scmp.lt.s32.totalorder %s1172_s20, 13 }
  0x20   : > { %p199_p13 = pnand %p836_p11, %p198_p12 }
  0x21   : > { %s205_s24 = sand.u32 (!%p199_p13), 1, %s1148_s14   ;;  %s224_s25 = sand.u32 (!%p199_p13), 1, %s1140_s12  }
  0x22   : > { %202 = sbr.rel (%p199_p13) target bundleno = 333 (0x14d), region = 69  ;;  %s837_s26 = sshll.u32 (!%p199_p13), %s205_s24, 3 }
  0x23   : > { %s838_s28 = sshll.u32 (!%p199_p13), %s224_s25, 2  ;;  %s1289_s29 = scalar_lea.vmem (!%p199_p13), [#allocation3], %s837_s26 }
  0x24   : > { %s1291_s30 = scalar_lea.vmem (!%p199_p13), [#allocation4], %s838_s28  ;;  %p839_p0 = scmp.ne.s32.totalorder (!%p199_p13), %s1156_s16, 0 }
  0x27   : > { %232 = sbr.rel (%p839_p0) target bundleno = 46 (0x2e), region = 77 }
  0x2c   : > { %v1174_v2 = vmov 0.0  }
  0x2d   : > { %233 = vst [vmem:[#allocation2] sm:$0xff] %v1174_v2 }
  0x2e PF: > { %s912_s7 = smul.u32 192, %s1156_s16  ;;  %v1175_v3 = vmov 0.0   ;;  %vm1176_vm0 = vmmov 0   ;;  %v263_v21 = vlaneseq  ;;  %v1177_v24 = vmov 1983009808   ;;  %p906_p1 = scmp.ne.s32.totalorder %s1156_s16, 2 }
  0x2f   : > { %940 = vmatprep.subr.bf16.mxu0 %v1175_v3  ;;  %960 = vmatprep.subr.bf16.mxu1 %v1175_v3  ;;  %v850_v8 = vld.sshfl [vmem:[%s1289_s29] sm:$0x13 pattern:$0x76325410]  ;;  %v261_v25 = vunpack.c.l.s4 %v1177_v24  ;;  %vm377_vm1 = vsmask.f32 1280 }
  0x30   : > { %s1300_s8 = scalar_lea.vmem %s1410_s1, %s912_s7  ;;  %956 = vmatprep.mubr.msk.bf16.mxu0 %vm1176_vm0, %v1175_v3  ;;  %976 = vmatprep.mubr.msk.bf16.mxu1 %vm1176_vm0, %v1175_v3  ;;  %v385_v11 = vshrl.u32 %v850_v8, 16  ;;  %v388_v12 = vshll.u32 %v850_v8, 16  ;;  %v368_v15 = vcombine.high %v850_v8, %v850_v8  ;;  %v851_v26 = vld.sshfl [vmem:[%s1289_s29 + $0x4] sm:$0x13 pattern:$0x76325410] }
  0x31   : > { %v1076_v4 = vld [vmem:[%s1300_s8 + $0x38] sm:$0xff]   ;;  %v1078_v6 = vld [vmem:[%s1300_s8 + $0x30] sm:$0xff]   ;;  %v1080_v9 = vld [vmem:[%s1300_s8 + $0x28] sm:$0xff]   ;;  %v376_v28 = vcombine.high %v851_v26, %v851_v26  ;;  %vm378_vm2 = vsmask.f32 3336  ;;  %v399_v29 = vshrl.u32 %v851_v26, 16  ;;  %v262_v35 = vunpack.c.0.s8 %v261_v25 }
  0x32   : > { %v1077_v5 = vld [vmem:[%s1300_s8 + $0x78] sm:$0xff]   ;;  %941 = vmatpush3.bf16.msra.mxu0 %v1076_v4  ;;  %v1079_v7 = vld [vmem:[%s1300_s8 + $0x70] sm:$0xff]   ;;  %v1081_v10 = vld [vmem:[%s1300_s8 + $0x68] sm:$0xff]   ;;  %v387_v16 = vrot.slane %v385_v11, 6  ;;  %v390_v17 = vrot.slane %v388_v12, 7  ;;  %v394_v22 = vshll.u32 %v368_v15, 16 }
  0x33   : > { %942 = vmatprep.subr.bf16.mxu0 %v1175_v3  ;;  %961 = vmatpush3.bf16.msra.mxu1 %v1077_v5  ;;  %v1082_v13 = vld [vmem:[%s1300_s8 + $0x20] sm:$0xff]   ;;  %v1084_v18 = vld [vmem:[%s1300_s8 + $0x18] sm:$0xff]   ;;  %v1086_v20 = vld [vmem:[%s1300_s8 + $0x10] sm:$0xff]   ;;  %vm380_vm3 = vsmask.f32 5392  ;;  %v402_v30 = vshll.u32 %v851_v26, 16 }
  0x34   : > { %962 = vmatprep.subr.bf16.mxu1 %v1175_v3  ;;  %v1083_v14 = vld [vmem:[%s1300_s8 + $0x60] sm:$0xff]   ;;  %v1085_v19 = vld [vmem:[%s1300_s8 + $0x58] sm:$0xff]   ;;  %v1087_v23 = vld [vmem:[%s1300_s8 + $0x50] sm:$0xff]   ;;  %v391_v27 = vor.u32 %v390_v17, %v387_v16  ;;  %vm382_vm4 = vsmask.f32 7448  ;;  %v264_v31 = vshrl.u32 %v263_v21, 7 }
  0x35   : > { %vm379_vm5 = vmor %vm377_vm1, %vm378_vm2  ;;  %v396_v32 = vrot.slane %v394_v22, 7  ;;  %v408_v33 = vshll.u32 %v376_v28, 16  ;;  %v1088_v34 = vld [vmem:[%s1300_s8 + $0x8] sm:$0xff]   ;;  %v401_v37 = vrot.slane %v399_v29, 6  ;;  %v404_v38 = vrot.slane %v402_v30, 7  ;;  %v1090_v47 = vld [vmem:[%s1300_s8] sm:$0xff]  }
  0x36   : > { %943 = vmatpush3.bf16.msra.mxu0 %v1078_v6  ;;  %vm381_vm6 = vmor %vm379_vm5, %vm380_vm3  ;;  %v392_v36 = vrot.slane %v391_v27, 2  ;;  %v1089_v40 = vld [vmem:[%s1300_s8 + $0x48] sm:$0xff]   ;;  %v265_v44 = vsub.s32 %v262_v35, %v264_v31  ;;  %v1092_v48 = vld [vmem:[%s1300_s8 + $0x40] sm:$0xff]   ;;  %vm550_vm8 = vcmask 1040384   ;;  %vm551_vm9 = vcmask 1042434  }
  0x37   : > { %944 = vmatprep.subr.bf16.mxu0 %v1175_v3  ;;  %963 = vmatpush3.bf16.msra.mxu1 %v1079_v7  ;;  %vm1332_vm7 = vmor %vm381_vm6, %vm382_vm4  ;;  %v405_v41 = vor.u32 %v404_v38, %v401_v37  ;;  %v410_v42 = vrot.slane %v408_v33, 7  ;;  %v1101_v43 = vld.sshfl [vmem:[%s1289_s29] sm:$0xf pattern:$0x76325410]  ;;  %v1093_v51 = vld [vmem:[%s1300_s8 + $0xb8] sm:$0xff]  }
  0x38   : > { %964 = vmatprep.subr.bf16.mxu1 %v1175_v3  ;;  %v397_v45 = vsel %vm1332_vm7, %v392_v36, %v396_v32  ;;  %v1094_v53 = vld [vmem:[%s1300_s8 + $0xb0] sm:$0xff]   ;;  %v1095_v54 = vld [vmem:[%s1300_s8 + $0xa8] sm:$0xff]   ;;  %v1096_v55 = vld [vmem:[%s1300_s8 + $0xa0] sm:$0xff]   ;;  %vm553_vm11 = vcmask 1044484   ;;  %vm555_vm13 = vcmask 1046534  }
  0x39   : > { %v406_v46 = vrot.slane %v405_v41, 2  ;;  %v877_v56 = vld.sshfl [vmem:[%s1289_s29] sm:$0x12 pattern:$0x76325410]  ;;  %vm552_vm10 = vmor %vm550_vm8, %vm551_vm9  ;;  %v1097_v58 = vld [vmem:[%s1300_s8 + $0x98] sm:$0xff]  }
  0x3a   : > { %945 = vmatpush3.bf16.msra.mxu0 %v1080_v9  ;;  %v878_v57 = vld.sshfl [vmem:[%s1289_s29 + $0x4] sm:$0x12 pattern:$0x76325410]  ;;  %v541_v59 = vcombine.high %v877_v56, %v877_v56  ;;  %vm554_vm12 = vmor %vm552_vm10, %vm553_vm11  ;;  %v879_v62 = vrot.slane %v877_v56, 9  ;;  %v1100_v7 = vld [vmem:[%s1300_s8 + $0x80] sm:$0xff]  }
  0x3b   : > { %946 = vmatprep.subr.bf16.mxu0 %v1175_v3  ;;  %965 = vmatpush3.bf16.msra.mxu1 %v1081_v10  ;;  %v411_v49 = vsel %vm1332_vm7, %v406_v46, %v410_v42  ;;  %v549_v60 = vcombine.high %v878_v57, %v878_v57  ;;  %v1098_v61 = vld [vmem:[%s1300_s8 + $0x90] sm:$0xff]   ;;  %v880_v0 = vrot.slane %v878_v57, 9  ;;  %vm556_vm14 = vmor %vm554_vm12, %vm555_vm13  ;;  %v1099_v2 = vld [vmem:[%s1300_s8 + $0x88] sm:$0xff]  }
  0x3c   : > { %966 = vmatprep.subr.bf16.mxu1 %v1175_v3  ;;  %v432_v50 = vcombine.low %v397_v45, %v411_v49  ;;  %v559_v63 = vrot.slane %v541_v59, 7  ;;  %v234_v17 = vld [vmem:[#allocation2] sm:$0xff] }
  0x3d   : > { %v563_v1 = vrot.slane %v549_v60, 7 }
  0x3e   : > { %947 = vmatpush3.bf16.msra.mxu0 %v1082_v13  ;;  %v439_v52 = vrot.slane %v432_v50, %v265_v44  ;;  %v560_v4 = vsel %vm556_vm14, %v879_v62, %v559_v63 }
  0x3f   : > { %948 = vmatprep.subr.bf16.mxu0 %v1175_v3  ;;  %967 = vmatpush3.bf16.msra.mxu1 %v1083_v14  ;;  %v564_v5 = vsel %vm556_vm14, %v880_v0, %v563_v1 }
  0x40   : > { %968 = vmatprep.subr.bf16.mxu1 %v1175_v3  ;;  %v585_v6 = vcombine.low %v560_v4, %v564_v5 }
  0x42   : > { %949 = vmatpush3.bf16.msra.mxu0 %v1084_v18  ;;  %v592_v8 = vrot.slane %v585_v6, %v265_v44 }
  0x43   : > { %950 = vmatprep.subr.bf16.mxu0 %v1175_v3  ;;  %969 = vmatpush3.bf16.msra.mxu1 %v1085_v19 }
  0x44   : > { %970 = vmatprep.subr.bf16.mxu1 %v1175_v3 }
  0x46   : > { %951 = vmatpush3.bf16.msra.mxu0 %v1086_v20 }
  0x47   : > { %952 = vmatprep.subr.bf16.mxu0 %v1175_v3  ;;  %971 = vmatpush3.bf16.msra.mxu1 %v1087_v23 }
  0x48   : > { %972 = vmatprep.subr.bf16.mxu1 %v1175_v3 }
  0x4a   : > { %953 = vmatpush3.bf16.msra.mxu0 %v1088_v34 }
  0x4b   : > { %954 = vmatprep.subr.bf16.mxu0 %v1175_v3  ;;  %973 = vmatpush3.bf16.msra.mxu1 %v1089_v40 }
  0x4c   : > { %974 = vmatprep.subr.bf16.mxu1 %v1175_v3 }
  0x4e   : > { %955 = vmatpush3.bf16.msra.mxu0 %v1090_v47 }
  0x4f   : > { %975 = vmatpush3.bf16.msra.mxu1 %v1092_v48  ;;  %980 = vmatprep.subr.bf16.mxu0 %v1175_v3 }
  0x51   : > { %957 = vmatmul.mubr.bf16.vlgmr.msra.gmra.mxu0 %v1101_v43 }
  0x52   : > { %981 = vmatpush3.bf16.msra.mxu0 %v1093_v51  ;;  %977 = vmatmul.mubr.bf16.vlgmr.msra.gmra.mxu1 %v439_v52 }
  0x53   : > { %982 = vmatprep.subr.bf16.mxu0 %v1175_v3  ;;  %996 = vmatprep.mubr.msk.bf16.mxu0 %vm1176_vm0, %v1175_v3 }
  0x56   : > { %983 = vmatpush3.bf16.msra.mxu0 %v1094_v53 }
  0x57   : > { %984 = vmatprep.subr.bf16.mxu0 %v1175_v3 }
  0x5a   : > { %985 = vmatpush3.bf16.msra.mxu0 %v1095_v54 }
  0x5b   : > { %986 = vmatprep.subr.bf16.mxu0 %v1175_v3 }
  0x5e   : > { %987 = vmatpush3.bf16.msra.mxu0 %v1096_v55 }
  0x5f   : > { %988 = vmatprep.subr.bf16.mxu0 %v1175_v3 }
  0x62   : > { %989 = vmatpush3.bf16.msra.mxu0 %v1097_v58 }
  0x63   : > { %990 = vmatprep.subr.bf16.mxu0 %v1175_v3 }
  0x66   : > { %991 = vmatpush3.bf16.msra.mxu0 %v1098_v61 }
  0x67   : > { %992 = vmatprep.subr.bf16.mxu0 %v1175_v3 }
  0x6a   : > { %993 = vmatpush3.bf16.msra.mxu0 %v1099_v2 }
  0x6b   : > { %994 = vmatprep.subr.bf16.mxu0 %v1175_v3 }
  0x6e   : > { %995 = vmatpush3.bf16.msra.mxu0 %v1100_v7 }
  0x71   : > { %997 = vmatmul.mubr.bf16.vlgmr.msra.gmra.mxu0 %v592_v8 }
 0x111   : > { %v350_v9 = vpop.f32.mrf.mxu0 }
 0x112   : > { %v523_v10 = vpop.f32.mrf.mxu1  ;;  %v356_v18 = vadd.f32 %v350_v9, %v234_v17 }
 0x113   : > { %v958_v11 = vpop.f32.mrf.mxu0 }
 0x114   : > { %v978_v12 = vpop.f32.mrf.mxu1  ;;  %v529_v19 = vadd.f32 %v523_v10, %v356_v18 }
 0x115   : > { %v353_v13 = vpop.f32.mrf.mxu0 }
 0x116   : > { %v526_v14 = vpop.f32.mrf.mxu1 }
 0x117   : > { %v959_v15 = vpop.f32.mrf.mxu0 }
 0x118   : > { %v979_v16 = vpop.f32.mrf.mxu1 }
 0x131   : > { %v676_v20 = vpop.f32.mrf.mxu0 }
 0x132   : > { %v682_v21 = vadd.f32 %v676_v20, %v529_v19 }
 0x133   : > { %v998_v22 = vpop.f32.mrf.mxu0  ;;  %687 = sbr.rel (%p906_p1) target bundleno = 325 (0x145), region = 81 }
 0x134   : > { %683 = vst [vmem:[#allocation2] sm:$0xff] %v682_v21 }
 0x135   : > { %v679_v23 = vpop.f32.mrf.mxu0 }
 0x137   : > { %v999_v3 = vpop.f32.mrf.mxu0 }
 0x138   : > { %v907_v25 = vld [vmem:[%s1411_s2] ss:$0 sm:$0xff] }
 0x13b   : > { %v688_v24 = vld [vmem:[#allocation2] sm:$0xff] }
 0x13c   : > { %v696_v26 = vadd.f32 %v907_v25, %v688_v24 }
 0x13e   : > { %v697_v27 = vmax.f32 %v696_v26, 0.0 }
 0x140   : > { %v701_v28 = vpack.c.bf16 %v697_v27, %v697_v27  ;;  %v699_v29 = vcombine.high %v697_v27, %v697_v27 }
 0x142   : > { %703 = vst [vmem:[%s1291_s30] sm:$0x3] %v701_v28  ;;  %v702_v30 = vpack.c.bf16 %v699_v29, %v699_v29 }
 0x144   : > { %704 = vst [vmem:[%s1291_s30 + $0x2] sm:$0x3] %v702_v30 }
 0x145 PF: > { %711 = sbr.rel (!%p1268_p9) target bundleno = 333 (0x14d), region = 85  ;;  %s909_s16 = sshll.u32 (%p1268_p9), %s1160_s17, 1 }
 0x146   : > { %s713_s27 = scalar_lea.vmem (%p1268_p9), %s1412_s3, %s909_s16 }
 0x149   : > { %v730_v31 = vld [vmem:[%s1291_s30] sm:$0x3] (%p1268_p9) }
 0x14a   : > { %731 = vst [vmem:[%s713_s27] sm:$0x3] %v730_v31 }
 0x14b   : > { %v732_v32 = vld [vmem:[%s1291_s30 + $0x2] sm:$0x3] }
 0x14c   : > { %733 = vst [vmem:[%s713_s27 + $0x8] sm:$0x3] %v732_v32 }
 0x14d PF: > { %s13_s20 = sadd.s32 1, %s1172_s20   ;;  %s1417_s12 = smov %s1144_s13 }
 0x14e   : > { %p10_p2 = scmp.ge.s32.totalorder %s13_s20, 14   ;;  %s1418_s13 = smov %s1273_s5 }
 0x14f   : > { %s1419_s14 = smov %s1152_s15  ;;  %s1420_s15 = smov %s1276_s6 }
 0x150   : > { %s1421_s16 = smov %s1164_s18  ;;  %s1422_s17 = smov %s1168_s19 }
 0x151   : > { %s1423_s18 = smov %s1426_s21  ;;  %s1424_s19 = smov %s1430_s22 }
 0x152   :  { %12 = sbr.rel (!%p10_p2) target bundleno = 5 (0x5), region = 153 }

// kernel: resnet_encoder_stride1.24
= control target key start
LH: loop header
LB: loop body
LE: loop exit
PB: predicated region body
PF: predicated region fallthrough
CT: control target
= control target key end

     0   :  { %s1319_s15 = smov 0   ;;  %s1321_s16 = smov 0   ;;  %s1549_s0 = inlined_call_operand.vmem [shape: bf16[2,6,6,128], index: 0, kind: input, shape index: {}]   ;;  %s1550_s1 = inlined_call_operand.vmem [shape: bf16[9,128,128], index: 1, kind: input, shape index: {}]   ;;  %s1551_s2 = inlined_call_operand.vmem [shape: f32[1,128], index: 2, kind: input, shape index: {}]   ;;  %s1552_s3 = inlined_call_operand.vmem [shape: bf16[2,4,4,128], index: 3, kind: input, shape index: {}]   ;;  %s1553_s4 = inlined_call_operand.vmem [shape: bf16[2,4,4,128], index: 4, kind: output, shape index: {}]  }
   0x1   :  { %s1323_s17 = smov 0   ;;  %s1325_s18 = smov 0  }
   0x2   :  { %s1327_s19 = smov 0   ;;  %s1329_s20 = smov 0  }
   0x3   :  { %s1331_s21 = smov 0   ;;  %s1333_s22 = smov 0  }
   0x4   :  { %s1335_s23 = smov 0  }
   0x5 LB: > { %s943_s24 = sadd.s32 4294967295, %s1288_s23   ;;  %s23_s25 = sadd.s32 1, %s1280_s21  ;;  %s1288_s23 = sphi %s1335_s23, %s14_s23   ;;  %s1284_s22 = sphi %s1333_s22, %s1569_s22   ;;  %s1280_s21 = sphi %s1331_s21, %s1568_s21   ;;  %s1276_s20 = sphi %s1329_s20, %s1567_s20   ;;  %s1272_s19 = sphi %s1327_s19, %s1566_s19   ;;  %s1268_s18 = sphi %s1325_s18, %s1565_s18   ;;  %s1264_s17 = sphi %s1323_s17, %s1564_s17   ;;  %s1260_s16 = sphi %s1321_s16, %s1563_s16   ;;  %s1256_s15 = sphi %s1319_s15, %s1562_s15  }
   0x6   : > { %p24_p0 = scmp.ge.s32.totalorder %s23_s25, 3  ;;  %s26_s26 = sadd.s32 1, %s1284_s22 }
   0x7   : > { %s30_s27 = sadd.s32 %s1280_s21, %s1284_s22  ;;  %s35_s28 = sadd.s32 1, %s1268_s18 }
   0x8   : > { %s1571_s25 = smov (%p24_p0, %s23_s25), 0  ;;  %s1573_s26 = smov (!%p24_p0, %s26_s26), %s1284_s22 }
   0x9   : > { %p42_p1 = scmp.ne.s32.totalorder %s1268_s18, %s1264_s17  ;;  %p43_p2 = scmp.eq.s32.totalorder %s1288_s23, 0 }
   0xa   : > { %p28_p3 = scmp.ge.s32.totalorder %s1573_s26, 4  ;;  %s103_s29 = sadd.s32 1, %s1260_s16 }
   0xb   : > { %p1377_p4 = por %p43_p2, %p42_p1  ;;  %p110_p5 = scmp.ne.s32.totalorder %s1260_s16, %s1256_s15 }
   0xc   : > { %s1575_s26 = smov (%p28_p3, %s1573_s26), 0  ;;  %p140_p7 = scmp.eq.s32.totalorder %s943_s24, 11 }
   0xd   : > { %1556 = sst [smem:[#allocation6_spill]] %s1575_s26  ;;  %p1385_p6 = por %p110_p5, %p43_p2 }
   0xe   : > { %s31_s6 = sadd.s32 %s1575_s26, %s1571_s25  ;;  %s100_s7 = ssub.s32 %s1284_s22, %s1575_s26 }
   0xf   : > { %s32_s8 = ssub.s32 %s30_s27, %s31_s6  ;;  %p101_p8 = scmp.eq.s32.totalorder %s100_s7, 0 }
  0x10   : > { %p33_p9 = scmp.eq.s32.totalorder %s32_s8, 0  ;;  %p1393_p10 = por %p140_p7, %p110_p5 }
  0x11   : > { %s1398_s10 = scalar_select %p101_p8, %s1260_s16, %s103_s29  }
  0x12   : > { %s1401_s11 = scalar_select %p33_p9, %s1268_s18, %s35_s28  }
  0x13   : > { %p946_p11 = scmp.ge.s32.totalorder %s1288_s23, 12 }
  0x15   : > { %168 = sbr.rel (%p946_p11) target bundleno = 36 (0x24), region = 24 }
  0x1a   : > { %171 = sbr.rel (!%p1377_p4) target bundleno = 31 (0x1f), region = 28  ;;  %s173_s12 = sand.u32 (%p1377_p4), 1, %s1268_s18  }
  0x1b   : > { %s948_s13 = sshll.u32 (%p1377_p4), %s30_s27, 2  ;;  %s947_s14 = sshll.u32 (%p1377_p4), %s173_s12, 3 }
  0x1c   : > { %s178_s7 = scalar_lea.vmem (%p1377_p4), %s1549_s0, %s948_s13  ;;  %s175_s29 = scalar_lea.vmem (%p1377_p4), [#allocation3], %s947_s14 }
  0x1d   : > { %v195_v0 = vld [vmem:[%s178_s7] sm:$0xf] (%p1377_p4)  ;;  %v197_v1 = vld [vmem:[%s178_s7 + $0x18] sm:$0xf] (%p1377_p4) }
  0x1e   : > { %196 = vst [vmem:[%s175_s29] sm:$0xf] (%p1377_p4), %v195_v0  ;;  %198 = vst [vmem:[%s175_s29 + $0x4] sm:$0xf] (%p1377_p4), %v197_v1 }
  0x1f PF: > { %226 = sbr.rel (!%p1385_p6) target bundleno = 36 (0x24), region = 69  ;;  %s228_s28 = sand.u32 (%p1385_p6), 1, %s1260_s16  }
  0x20   : > { %s950_s30 = sshll.u32 (%p1385_p6), %s1284_s22, 1  ;;  %s949_s8 = sshll.u32 (%p1385_p6), %s228_s28, 2 }
  0x21   : > { %s232_s26 = scalar_lea.vmem (%p1385_p6), %s1552_s3, %s950_s30  ;;  %s230_s13 = scalar_lea.vmem (%p1385_p6), [#allocation4], %s949_s8 }
  0x22   : > { %v249_v2 = vld [vmem:[%s232_s26] sm:$0x3] (%p1385_p6)  ;;  %v251_v3 = vld [vmem:[%s232_s26 + $0x8] sm:$0x3] (%p1385_p6) }
  0x23   : > { %250 = vst [vmem:[%s230_s13] sm:$0x3] (%p1385_p6), %v249_v2  ;;  %252 = vst [vmem:[%s230_s13 + $0x2] sm:$0x3] (%p1385_p6), %v251_v3 }
  0x24 PF: > { %p951_p12 = scmp.ge.s32.totalorder %s1288_s23, 1  ;;  %p271_p13 = scmp.lt.s32.totalorder %s1288_s23, 13 }
  0x26   : > { %p272_p0 = pnand %p951_p12, %p271_p13 }
  0x27   : > { %s278_s5 = sand.u32 (!%p272_p0), 1, %s1264_s17   ;;  %s285_s14 = sand.u32 (!%p272_p0), 1, %s1256_s15  }
  0x28   : > { %275 = sbr.rel (%p272_p0) target bundleno = 341 (0x155), region = 103  ;;  %s952_s24 = sshll.u32 (!%p272_p0), %s278_s5, 3 }
  0x29   : > { %s1421_s6 = sshll.u32 (!%p272_p0), %s285_s14, 2  ;;  %s1423_s26 = scalar_lea.vmem (!%p272_p0), [#allocation3], %s952_s24 }
  0x2a   : > { %s287_s7 = scalar_lea.vmem (!%p272_p0), [#allocation4], %s1421_s6  ;;  %s1427_s29 = scalar_lea.vmem (!%p272_p0), [#allocation5], %s1421_s6 }
  0x2b   : > { %p955_p1 = scmp.ne.s32.totalorder (!%p272_p0), %s1272_s19, 0 }
  0x2d   : > { %318 = sbr.rel (%p955_p1) target bundleno = 52 (0x34), region = 115 }
  0x32   : > { %v1290_v4 = vmov 0.0  }
  0x33   : > { %319 = vst [vmem:[#allocation2] sm:$0xff] %v1290_v4 }
  0x34 PF: > { %s1028_s28 = smul.u32 192, %s1272_s19  ;;  %v1291_v5 = vmov 0.0   ;;  %vm1292_vm0 = vmmov 0   ;;  %v349_v23 = vlaneseq  ;;  %v1293_v26 = vmov 1983009808   ;;  %p1022_p2 = scmp.ne.s32.totalorder %s1272_s19, 2 }
  0x35   : > { %1056 = vmatprep.subr.bf16.mxu0 %v1291_v5  ;;  %1076 = vmatprep.subr.bf16.mxu1 %v1291_v5  ;;  %v966_v10 = vld.sshfl [vmem:[%s1423_s26] sm:$0x13 pattern:$0x76325410]  ;;  %v347_v27 = vunpack.c.l.s4 %v1293_v26  ;;  %vm463_vm1 = vsmask.f32 1280 }
  0x36   : > { %s1436_s30 = scalar_lea.vmem %s1550_s1, %s1028_s28  ;;  %1072 = vmatprep.mubr.msk.bf16.mxu0 %vm1292_vm0, %v1291_v5  ;;  %1092 = vmatprep.mubr.msk.bf16.mxu1 %vm1292_vm0, %v1291_v5  ;;  %v471_v13 = vshrl.u32 %v966_v10, 16  ;;  %v474_v14 = vshll.u32 %v966_v10, 16  ;;  %v454_v17 = vcombine.high %v966_v10, %v966_v10  ;;  %v967_v28 = vld.sshfl [vmem:[%s1423_s26 + $0x4] sm:$0x13 pattern:$0x76325410] }
  0x37   : > { %v1192_v6 = vld [vmem:[%s1436_s30 + $0x38] sm:$0xff]   ;;  %v1194_v8 = vld [vmem:[%s1436_s30 + $0x30] sm:$0xff]   ;;  %v1196_v11 = vld [vmem:[%s1436_s30 + $0x28] sm:$0xff]   ;;  %v462_v30 = vcombine.high %v967_v28, %v967_v28  ;;  %vm464_vm2 = vsmask.f32 3336  ;;  %v485_v31 = vshrl.u32 %v967_v28, 16  ;;  %v348_v37 = vunpack.c.0.s8 %v347_v27 }
  0x38   : > { %v1193_v7 = vld [vmem:[%s1436_s30 + $0x78] sm:$0xff]   ;;  %1057 = vmatpush3.bf16.msra.mxu0 %v1192_v6  ;;  %v1195_v9 = vld [vmem:[%s1436_s30 + $0x70] sm:$0xff]   ;;  %v1197_v12 = vld [vmem:[%s1436_s30 + $0x68] sm:$0xff]   ;;  %v473_v18 = vrot.slane %v471_v13, 6  ;;  %v476_v19 = vrot.slane %v474_v14, 7  ;;  %v480_v24 = vshll.u32 %v454_v17, 16 }
  0x39   : > { %1058 = vmatprep.subr.bf16.mxu0 %v1291_v5  ;;  %1077 = vmatpush3.bf16.msra.mxu1 %v1193_v7  ;;  %v1198_v15 = vld [vmem:[%s1436_s30 + $0x20] sm:$0xff]   ;;  %v1200_v20 = vld [vmem:[%s1436_s30 + $0x18] sm:$0xff]   ;;  %v1202_v22 = vld [vmem:[%s1436_s30 + $0x10] sm:$0xff]   ;;  %vm466_vm3 = vsmask.f32 5392  ;;  %v488_v32 = vshll.u32 %v967_v28, 16 }
  0x3a   : > { %1078 = vmatprep.subr.bf16.mxu1 %v1291_v5  ;;  %v1199_v16 = vld [vmem:[%s1436_s30 + $0x60] sm:$0xff]   ;;  %v1201_v21 = vld [vmem:[%s1436_s30 + $0x58] sm:$0xff]   ;;  %v1203_v25 = vld [vmem:[%s1436_s30 + $0x50] sm:$0xff]   ;;  %v477_v29 = vor.u32 %v476_v19, %v473_v18  ;;  %vm468_vm4 = vsmask.f32 7448  ;;  %v350_v33 = vshrl.u32 %v349_v23, 7 }
  0x3b   : > { %vm465_vm5 = vmor %vm463_vm1, %vm464_vm2  ;;  %v482_v34 = vrot.slane %v480_v24, 7  ;;  %v494_v35 = vshll.u32 %v462_v30, 16  ;;  %v1204_v36 = vld [vmem:[%s1436_s30 + $0x8] sm:$0xff]   ;;  %v487_v39 = vrot.slane %v485_v31, 6  ;;  %v490_v40 = vrot.slane %v488_v32, 7  ;;  %v1206_v49 = vld [vmem:[%s1436_s30] sm:$0xff]  }
  0x3c   : > { %1059 = vmatpush3.bf16.msra.mxu0 %v1194_v8  ;;  %vm467_vm6 = vmor %vm465_vm5, %vm466_vm3  ;;  %v478_v38 = vrot.slane %v477_v29, 2  ;;  %v1205_v42 = vld [vmem:[%s1436_s30 + $0x48] sm:$0xff]   ;;  %v351_v46 = vsub.s32 %v348_v37, %v350_v33  ;;  %v1208_v50 = vld [vmem:[%s1436_s30 + $0x40] sm:$0xff]   ;;  %vm636_vm8 = vcmask 1040384   ;;  %vm637_vm9 = vcmask 1042434  }
  0x3d   : > { %1060 = vmatprep.subr.bf16.mxu0 %v1291_v5  ;;  %1079 = vmatpush3.bf16.msra.mxu1 %v1195_v9  ;;  %vm1468_vm7 = vmor %vm467_vm6, %vm468_vm4  ;;  %v491_v43 = vor.u32 %v490_v40, %v487_v39  ;;  %v496_v44 = vrot.slane %v494_v35, 7  ;;  %v1217_v45 = vld.sshfl [vmem:[%s1423_s26] sm:$0xf pattern:$0x76325410]  ;;  %v1209_v53 = vld [vmem:[%s1436_s30 + $0xb8] sm:$0xff]  }
  0x3e   : > { %1080 = vmatprep.subr.bf16.mxu1 %v1291_v5  ;;  %v483_v47 = vsel %vm1468_vm7, %v478_v38, %v482_v34  ;;  %v1210_v55 = vld [vmem:[%s1436_s30 + $0xb0] sm:$0xff]   ;;  %v1211_v56 = vld [vmem:[%s1436_s30 + $0xa8] sm:$0xff]   ;;  %v1212_v57 = vld [vmem:[%s1436_s30 + $0xa0] sm:$0xff]   ;;  %vm639_vm11 = vcmask 1044484   ;;  %vm641_vm13 = vcmask 1046534  }
  0x3f   : > { %v492_v48 = vrot.slane %v491_v43, 2  ;;  %v993_v58 = vld.sshfl [vmem:[%s1423_s26] sm:$0x12 pattern:$0x76325410]  ;;  %vm638_vm10 = vmor %vm636_vm8, %vm637_vm9  ;;  %v1213_v60 = vld [vmem:[%s1436_s30 + $0x98] sm:$0xff]  }
  0x40   : > { %1061 = vmatpush3.bf16.msra.mxu0 %v1196_v11  ;;  %v994_v59 = vld.sshfl [vmem:[%s1423_s26 + $0x4] sm:$0x12 pattern:$0x76325410]  ;;  %v627_v61 = vcombine.high %v993_v58, %v993_v58  ;;  %vm640_vm12 = vmor %vm638_vm10, %vm639_vm11  ;;  %v995_v0 = vrot.slane %v993_v58, 9  ;;  %v1216_v9 = vld [vmem:[%s1436_s30 + $0x80] sm:$0xff]  }
  0x41   : > { %1062 = vmatprep.subr.bf16.mxu0 %v1291_v5  ;;  %1081 = vmatpush3.bf16.msra.mxu1 %v1197_v12  ;;  %v497_v51 = vsel %vm1468_vm7, %v492_v48, %v496_v44  ;;  %v635_v62 = vcombine.high %v994_v59, %v994_v59  ;;  %v1214_v63 = vld [vmem:[%s1436_s30 + $0x90] sm:$0xff]   ;;  %v996_v2 = vrot.slane %v994_v59, 9  ;;  %vm642_vm14 = vmor %vm640_vm12, %vm641_vm13  ;;  %v1215_v4 = vld [vmem:[%s1436_s30 + $0x88] sm:$0xff]  }
  0x42   : > { %1082 = vmatprep.subr.bf16.mxu1 %v1291_v5  ;;  %v518_v52 = vcombine.low %v483_v47, %v497_v51  ;;  %v645_v1 = vrot.slane %v627_v61, 7  ;;  %v320_v19 = vld [vmem:[#allocation2] sm:$0xff] }
  0x43   : > { %v649_v3 = vrot.slane %v635_v62, 7 }
  0x44   : > { %1063 = vmatpush3.bf16.msra.mxu0 %v1198_v15  ;;  %v525_v54 = vrot.slane %v518_v52, %v351_v46  ;;  %v646_v6 = vsel %vm642_vm14, %v995_v0, %v645_v1 }
  0x45   : > { %1064 = vmatprep.subr.bf16.mxu0 %v1291_v5  ;;  %1083 = vmatpush3.bf16.msra.mxu1 %v1199_v16  ;;  %v650_v7 = vsel %vm642_vm14, %v996_v2, %v649_v3 }
  0x46   : > { %1084 = vmatprep.subr.bf16.mxu1 %v1291_v5  ;;  %v671_v8 = vcombine.low %v646_v6, %v650_v7 }
  0x48   : > { %1065 = vmatpush3.bf16.msra.mxu0 %v1200_v20  ;;  %v678_v10 = vrot.slane %v671_v8, %v351_v46 }
  0x49   : > { %1066 = vmatprep.subr.bf16.mxu0 %v1291_v5  ;;  %1085 = vmatpush3.bf16.msra.mxu1 %v1201_v21 }
  0x4a   : > { %1086 = vmatprep.subr.bf16.mxu1 %v1291_v5 }
  0x4c   : > { %1067 = vmatpush3.bf16.msra.mxu0 %v1202_v22 }
  0x4d   : > { %1068 = vmatprep.subr.bf16.mxu0 %v1291_v5  ;;  %1087 = vmatpush3.bf16.msra.mxu1 %v1203_v25 }
  0x4e   : > { %1088 = vmatprep.subr.bf16.mxu1 %v1291_v5 }
  0x50   : > { %1069 = vmatpush3.bf16.msra.mxu0 %v1204_v36 }
  0x51   : > { %1070 = vmatprep.subr.bf16.mxu0 %v1291_v5  ;;  %1089 = vmatpush3.bf16.msra.mxu1 %v1205_v42 }
  0x52   : > { %1090 = vmatprep.subr.bf16.mxu1 %v1291_v5 }
  0x54   : > { %1071 = vmatpush3.bf16.msra.mxu0 %v1206_v49 }
  0x55   : > { %1091 = vmatpush3.bf16.msra.mxu1 %v1208_v50  ;;  %1096 = vmatprep.subr.bf16.mxu0 %v1291_v5 }
  0x57   : > { %1073 = vmatmul.mubr.bf16.vlgmr.msra.gmra.mxu0 %v1217_v45 }
  0x58   : > { %1097 = vmatpush3.bf16.msra.mxu0 %v1209_v53  ;;  %1093 = vmatmul.mubr.bf16.vlgmr.msra.gmra.mxu1 %v525_v54 }
  0x59   : > { %1098 = vmatprep.subr.bf16.mxu0 %v1291_v5  ;;  %1112 = vmatprep.mubr.msk.bf16.mxu0 %vm1292_vm0, %v1291_v5 }
  0x5c   : > { %1099 = vmatpush3.bf16.msra.mxu0 %v1210_v55 }
  0x5d   : > { %1100 = vmatprep.subr.bf16.mxu0 %v1291_v5 }
  0x60   : > { %1101 = vmatpush3.bf16.msra.mxu0 %v1211_v56 }
  0x61   : > { %1102 = vmatprep.subr.bf16.mxu0 %v1291_v5 }
  0x64   : > { %1103 = vmatpush3.bf16.msra.mxu0 %v1212_v57 }
  0x65   : > { %1104 = vmatprep.subr.bf16.mxu0 %v1291_v5 }
  0x68   : > { %1105 = vmatpush3.bf16.msra.mxu0 %v1213_v60 }
  0x69   : > { %1106 = vmatprep.subr.bf16.mxu0 %v1291_v5 }
  0x6c   : > { %1107 = vmatpush3.bf16.msra.mxu0 %v1214_v63 }
  0x6d   : > { %1108 = vmatprep.subr.bf16.mxu0 %v1291_v5 }
  0x70   : > { %1109 = vmatpush3.bf16.msra.mxu0 %v1215_v4 }
  0x71   : > { %1110 = vmatprep.subr.bf16.mxu0 %v1291_v5 }
  0x74   : > { %1111 = vmatpush3.bf16.msra.mxu0 %v1216_v9 }
  0x77   : > { %1113 = vmatmul.mubr.bf16.vlgmr.msra.gmra.mxu0 %v678_v10 }
 0x117   : > { %v436_v11 = vpop.f32.mrf.mxu0 }
 0x118   : > { %v609_v12 = vpop.f32.mrf.mxu1  ;;  %v442_v20 = vadd.f32 %v436_v11, %v320_v19 }
 0x119   : > { %v1074_v13 = vpop.f32.mrf.mxu0 }
 0x11a   : > { %v1094_v14 = vpop.f32.mrf.mxu1  ;;  %v615_v21 = vadd.f32 %v609_v12, %v442_v20 }
 0x11b   : > { %v439_v15 = vpop.f32.mrf.mxu0 }
 0x11c   : > { %v612_v16 = vpop.f32.mrf.mxu1 }
 0x11d   : > { %v1075_v17 = vpop.f32.mrf.mxu0 }
 0x11e   : > { %v1095_v18 = vpop.f32.mrf.mxu1 }
 0x137   : > { %v762_v22 = vpop.f32.mrf.mxu0 }
 0x138   : > { %v768_v23 = vadd.f32 %v762_v22, %v615_v21 }
 0x139   : > { %v1114_v24 = vpop.f32.mrf.mxu0  ;;  %773 = sbr.rel (%p1022_p2) target bundleno = 333 (0x14d), region = 119 }
 0x13a   : > { %769 = vst [vmem:[#allocation2] sm:$0xff] %v768_v23 }
 0x13b   : > { %v765_v25 = vpop.f32.mrf.mxu0 }
 0x13d   : > { %v1115_v5 = vpop.f32.mrf.mxu0 }
 0x13e   : > { %v1023_v27 = vld [vmem:[%s1551_s2] ss:$0 sm:$0xff]  ;;  %v783_v28 = vld [vmem:[%s287_s7] sm:$0x3]  ;;  %v784_v29 = vld [vmem:[%s287_s7 + $0x2] sm:$0x3] }
 0x13f   : > { %v785_v30 = vunpack.c.l.bf16 %v783_v28  ;;  %v786_v32 = vunpack.c.l.bf16 %v784_v29 }
 0x141   : > { %v774_v26 = vld [vmem:[#allocation2] sm:$0xff]  ;;  %v789_v33 = vcombine.low %v785_v30, %v786_v32 }
 0x142   : > { %v782_v31 = vadd.f32 %v1023_v27, %v774_v26 }
 0x144   : > { %v791_v34 = vadd.f32 %v789_v33, %v782_v31 }
 0x146   : > { %v792_v35 = vmax.f32 %v791_v34, 0.0 }
 0x148   : > { %v796_v36 = vpack.c.bf16 %v792_v35, %v792_v35  ;;  %v794_v37 = vcombine.high %v792_v35, %v792_v35 }
 0x14a   : > { %798 = vst [vmem:[%s1427_s29] sm:$0x3] %v796_v36  ;;  %v797_v38 = vpack.c.bf16 %v794_v37, %v794_v37 }
 0x14c   : > { %799 = vst [vmem:[%s1427_s29 + $0x2] sm:$0x3] %v797_v38 }
 0x14d PF: > { %806 = sbr.rel (!%p1393_p10) target bundleno = 341 (0x155), region = 123  ;;  %s1025_s19 = sshll.u32 (%p1393_p10), %s1276_s20, 1 }
 0x14e   : > { %s808_s5 = scalar_lea.vmem (%p1393_p10), %s1553_s4, %s1025_s19 }
 0x151   : > { %v825_v39 = vld [vmem:[%s1427_s29] sm:$0x3] (%p1393_p10) }
 0x152   : > { %826 = vst [vmem:[%s808_s5] sm:$0x3] %v825_v39 }
 0x153   : > { %v827_v40 = vld [vmem:[%s1427_s29 + $0x2] sm:$0x3] }
 0x154   : > { %828 = vst [vmem:[%s808_s5 + $0x8] sm:$0x3] %v827_v40 }
 0x155 PF: > { %s14_s23 = sadd.s32 1, %s1288_s23   ;;  %s1561_s9 = sld [smem:[#allocation6_spill]] }
 0x156   : > { %p11_p3 = scmp.ge.s32.totalorder %s14_s23, 14   ;;  %s1562_s15 = smov %s1260_s16 }
 0x157   : > { %s1563_s16 = smov %s1398_s10  ;;  %s1564_s17 = smov %s1268_s18 }
 0x158   : > { %s1565_s18 = smov %s1401_s11  ;;  %s1566_s19 = smov %s1280_s21 }
 0x159   : > { %s1567_s20 = smov %s1284_s22  ;;  %s1568_s21 = smov %s1571_s25 }
 0x15a   :  { %13 = sbr.rel (!%p11_p3) target bundleno = 5 (0x5), region = 199 }
 0x15b   : > { %s1569_s22 = smov %s1561_s9 }

// kernel: resnet_encoder_stride1.27
= control target key start
LH: loop header
LB: loop body
LE: loop exit
PB: predicated region body
PF: predicated region fallthrough
CT: control target
= control target key end

     0   :  { %s1369_s12 = smov 0   ;;  %s1371_s13 = smov 0   ;;  %s1579_s0 = inlined_call_operand.vmem [shape: bf16[4,6,3,128], index: 0, kind: input, shape index: {}]   ;;  %s1580_s1 = inlined_call_operand.vmem [shape: bf16[9,128,256], index: 1, kind: input, shape index: {}]   ;;  %s1581_s2 = inlined_call_operand.vmem [shape: f32[1,256], index: 2, kind: input, shape index: {}]   ;;  %s1582_s3 = inlined_call_operand.vmem [shape: bf16[2,2,2,256], index: 3, kind: output, shape index: {}]  }
   0x1   :  { %s1373_s14 = smov 0   ;;  %s1375_s15 = smov 0  }
   0x2   :  { %s1377_s16 = smov 0   ;;  %s1379_s17 = smov 0  }
   0x3   :  { %s1381_s18 = smov 0   ;;  %s1383_s19 = smov 0  }
   0x4   :  { %s1385_s20 = smov 0  }
   0x5 LB: > { %s1012_s21 = sadd.s32 4294967295, %s1343_s20   ;;  %s22_s22 = sadd.s32 1, %s1335_s18  ;;  %s1343_s20 = sphi %s1385_s20, %s13_s20   ;;  %s1339_s19 = sphi %s1383_s19, %s1591_s19   ;;  %s1335_s18 = sphi %s1381_s18, %s1590_s18   ;;  %s1331_s17 = sphi %s1379_s17, %s1589_s17   ;;  %s1327_s16 = sphi %s1377_s16, %s1588_s16   ;;  %s1323_s15 = sphi %s1375_s15, %s1587_s15   ;;  %s1319_s14 = sphi %s1373_s14, %s1586_s14   ;;  %s1315_s13 = sphi %s1371_s13, %s1585_s13   ;;  %s1311_s12 = sphi %s1369_s12, %s1584_s12  }
   0x6   : > { %p23_p0 = scmp.ge.s32.totalorder %s22_s22, 3  ;;  %s25_s23 = sadd.s32 1, %s1339_s19 }
   0x7   : > { %s1014_s24 = sshll.u32 %s1339_s19, 1  ;;  %s36_s25 = sadd.s32 1, %s1323_s15 }
   0x8   : > { %s1593_s22 = smov (%p23_p0, %s22_s22), 0  ;;  %s1595_s23 = smov (!%p23_p0, %s25_s23), %s1339_s19 }
   0x9   : > { %s30_s26 = sadd.s32 %s1335_s18, %s1014_s24  ;;  %p43_p1 = scmp.ne.s32.totalorder %s1323_s15, %s1319_s14 }
   0xa   : > { %p27_p2 = scmp.ge.s32.totalorder %s1595_s23, 2  ;;  %p44_p3 = scmp.eq.s32.totalorder %s1343_s20, 0 }
   0xb   : > { %s104_s27 = sadd.s32 1, %s1315_s13  ;;  %p114_p4 = scmp.ne.s32.totalorder %s1315_s13, %s1311_s12 }
   0xc   : > { %s1597_s23 = smov (%p27_p2, %s1595_s23), 0  ;;  %p45_p5 = por %p44_p3, %p43_p1 }
   0xd   : > { %p115_p6 = scmp.eq.s32.totalorder %s1012_s21, 5  ;;  %s1015_s28 = sshll.u32 %s1597_s23, 1 }
   0xe   : > { %s101_s29 = ssub.s32 %s1339_s19, %s1597_s23  ;;  %s32_s30 = sadd.s32 %s1015_s28, %s1593_s22 }
   0xf   : > { %p102_p7 = scmp.eq.s32.totalorder %s101_s29, 0  ;;  %s33_s4 = ssub.s32 %s30_s26, %s32_s30 }
  0x10   : > { %p1435_p8 = por %p115_p6, %p114_p4  ;;  %p34_p9 = scmp.eq.s32.totalorder %s33_s4, 0 }
  0x11   : > { %s1440_s6 = scalar_select %p102_p7, %s1315_s13, %s104_s27  }
  0x12   : > { %s1443_s7 = scalar_select %p34_p9, %s1323_s15, %s36_s25  }
  0x13   : > { %p1017_p10 = scmp.ge.s32.totalorder %s1343_s20, 6 }
  0x15   : > { %143 = sbr.rel (%p1017_p10) target bundleno = 32 (0x20), region = 24 }
  0x1a   : > { %146 = sbr.rel (!%p45_p5) target bundleno = 32 (0x20), region = 28  ;;  %s148_s8 = sand.u32 (%p45_p5), 1, %s1323_s15  }
  0x1b   : > { %s1020_s9 = sshll.u32 (%p45_p5), %s30_s26, 1  ;;  %s1018_s10 = sshll.u32 (%p45_p5), %s148_s8, 3 }
  0x1c   : > { %s154_s24 = scalar_lea.vmem (%p45_p5), %s1579_s0, %s1020_s9  ;;  %s150_s28 = scalar_lea.vmem (%p45_p5), [#allocation3], %s1018_s10 }
  0x1d   : > { %v171_v0 = vld [vmem:[%s154_s24] sm:$0x3] (%p45_p5)  ;;  %v173_v1 = vld [vmem:[%s154_s24 + $0xc] sm:$0x3] (%p45_p5)  ;;  %v175_v2 = vld [vmem:[%s154_s24 + $0x18] sm:$0x3] (%p45_p5) }
  0x1e   : > { %172 = vst [vmem:[%s150_s28] sm:$0x3] (%p45_p5), %v171_v0  ;;  %174 = vst [vmem:[%s150_s28 + $0x2] sm:$0x3] (%p45_p5), %v173_v1  ;;  %v177_v3 = vld [vmem:[%s154_s24 + $0x24] sm:$0x3] (%p45_p5) }
  0x1f   : > { %176 = vst [vmem:[%s150_s28 + $0x4] sm:$0x3] %v175_v2  ;;  %178 = vst [vmem:[%s150_s28 + $0x6] sm:$0x3] %v177_v3 }
  0x20 PF: > { %p1021_p11 = scmp.ge.s32.totalorder %s1343_s20, 1  ;;  %p209_p12 = scmp.lt.s32.totalorder %s1343_s20, 7 }
  0x22   : > { %p210_p13 = pnand %p1021_p11, %p209_p12 }
  0x23   : > { %s216_s25 = sand.u32 (!%p210_p13), 1, %s1319_s14   ;;  %s235_s26 = sand.u32 (!%p210_p13), 1, %s1311_s12  }
  0x24   : > { %213 = sbr.rel (%p210_p13) target bundleno = 348 (0x15c), region = 69  ;;  %s1022_s27 = sshll.u32 (!%p210_p13), %s216_s25, 3 }
  0x25   : > { %s1023_s29 = sshll.u32 (!%p210_p13), %s235_s26, 2  ;;  %s1454_s30 = scalar_lea.vmem (!%p210_p13), [#allocation3], %s1022_s27 }
  0x26   : > { %s1456_s4 = scalar_lea.vmem (!%p210_p13), [#allocation4], %s1023_s29  ;;  %p1024_p0 = scmp.ne.s32.totalorder (!%p210_p13), %s1327_s16, 0 }
  0x29   : > { %244 = sbr.rel (%p1024_p0) target bundleno = 48 (0x30), region = 77 }
  0x2e   : > { %v1345_v4 = vmov 0.0  }
  0x2f   : > { %245 = vst [vmem:[#allocation2] sm:$0xff] %v1345_v4 }
  0x30 PF: > { %s1124_s8 = smul.u32 384, %s1327_s16  ;;  %v1346_v5 = vmov 0   ;;  %v1347_v24 = vmov 1966171168   ;;  %v275_v26 = vlaneseq  ;;  %v247_v30 = vld [vmem:[%s1454_s30] sm:$0x1] }
  0x31   : > { %399 = vmatprep.mubr.bf16.mxu0 %v1346_v5  ;;  %566 = vmatprep.mubr.bf16.mxu1 %v1346_v5  ;;  %v273_v25 = vunpack.c.l.s4 %v1347_v24  ;;  %v248_v32 = vld [vmem:[%s1454_s30 + $0x2] sm:$0x1]  ;;  %v1043_v36 = vld [vmem:[%s1454_s30 + $0x4] sm:$0x1]  ;;  %v1044_v37 = vld [vmem:[%s1454_s30 + $0x6] sm:$0x1] }
  0x32   : > { %s1465_s9 = scalar_lea.vmem %s1580_s1, %s1124_s8  ;;  %v1491_v34 = vshrl.u32 %v275_v26, 7  ;;  %v271_v41 = vcombine.low %v247_v30, %v248_v32  ;;  %v438_v45 = vcombine.low %v1043_v36, %v1044_v37  ;;  %vm600_vm0 = vsmask.f32 256  ;;  %p1115_p1 = scmp.ne.s32.totalorder %s1327_s16, 2 }
  0x33   : > { %v1201_v6 = vld [vmem:[%s1465_s9 + $0x74] ss:$8 sps:$4 sm:$0xff]   ;;  %v1203_v7 = vld [vmem:[%s1465_s9 + $0x70] ss:$8 sps:$4 sm:$0xff]   ;;  %v1207_v10 = vld [vmem:[%s1465_s9 + $0x64] ss:$8 sps:$4 sm:$0xff]   ;;  %v274_v33 = vunpack.c.0.s8 %v273_v25 }
  0x34   : > { %367 = vmatprep.subr.bf16.mxu0 %v1201_v6  ;;  %v1204_v8 = vld [vmem:[%s1465_s9 + $0xf4] ss:$8 sps:$4 sm:$0xff]   ;;  %v1206_v9 = vld [vmem:[%s1465_s9 + $0xf0] ss:$8 sps:$4 sm:$0xff]   ;;  %v1209_v11 = vld [vmem:[%s1465_s9 + $0x60] ss:$8 sps:$4 sm:$0xff]  }
  0x35   : > { %368 = vmatpush1.bf16.msra.mxu0 %v1203_v7  ;;  %534 = vmatprep.subr.bf16.mxu1 %v1204_v8  ;;  %v1210_v12 = vld [vmem:[%s1465_s9 + $0xe4] ss:$8 sps:$4 sm:$0xff]   ;;  %v1212_v13 = vld [vmem:[%s1465_s9 + $0xe0] ss:$8 sps:$4 sm:$0xff]   ;;  %v1213_v14 = vld [vmem:[%s1465_s9 + $0x54] ss:$8 sps:$4 sm:$0xff]   ;;  %v1500_v42 = vsub.s32 %v274_v33, %v1491_v34 }
  0x36   : > { %535 = vmatpush1.bf16.msra.mxu1 %v1206_v9  ;;  %369 = vmatprep.subr.bf16.mxu0 %v1207_v10  ;;  %v1215_v15 = vld [vmem:[%s1465_s9 + $0x50] ss:$8 sps:$4 sm:$0xff]   ;;  %v1216_v16 = vld [vmem:[%s1465_s9 + $0xd4] ss:$8 sps:$4 sm:$0xff]   ;;  %v1219_v17 = vld [vmem:[%s1465_s9 + $0x44] ss:$8 sps:$4 sm:$0xff]  }
  0x37   : > { %536 = vmatprep.subr.bf16.mxu1 %v1210_v12  ;;  %v1218_v18 = vld [vmem:[%s1465_s9 + $0xd0] ss:$8 sps:$4 sm:$0xff]   ;;  %v1222_v19 = vld [vmem:[%s1465_s9 + $0xc4] ss:$8 sps:$4 sm:$0xff]   ;;  %v1221_v20 = vld [vmem:[%s1465_s9 + $0x40] ss:$8 sps:$4 sm:$0xff]   ;;  %v278_v48 = vrot.slane %v271_v41, %v1500_v42  ;;  %v445_v51 = vrot.slane %v438_v45, %v1500_v42 }
  0x38   : > { %v1225_v21 = vld [vmem:[%s1465_s9 + $0x34] ss:$8 sps:$4 sm:$0xff]   ;;  %v1224_v22 = vld [vmem:[%s1465_s9 + $0xc0] ss:$8 sps:$4 sm:$0xff]   ;;  %v1227_v27 = vld [vmem:[%s1465_s9 + $0x30] ss:$8 sps:$4 sm:$0xff]  }
  0x39   : > { %370 = vmatpush1.bf16.msra.mxu0 %v1209_v11  ;;  %v1228_v23 = vld [vmem:[%s1465_s9 + $0xb4] ss:$8 sps:$4 sm:$0xff]   ;;  %v1231_v28 = vld [vmem:[%s1465_s9 + $0x24] ss:$8 sps:$4 sm:$0xff]   ;;  %v1230_v29 = vld [vmem:[%s1465_s9 + $0xb0] ss:$8 sps:$4 sm:$0xff]   ;;  %v285_v53 = vrot.slane %v278_v48, %v1500_v42  ;;  %v452_v55 = vrot.slane %v445_v51, %v1500_v42 }
  0x3a   : > { %371 = vmatprep.subr.bf16.mxu0 %v1213_v14  ;;  %537 = vmatpush1.bf16.msra.mxu1 %v1212_v13  ;;  %v1234_v31 = vld [vmem:[%s1465_s9 + $0xa4] ss:$8 sps:$4 sm:$0xff]   ;;  %v1233_v35 = vld [vmem:[%s1465_s9 + $0x20] ss:$8 sps:$4 sm:$0xff]   ;;  %v1237_v38 = vld [vmem:[%s1465_s9 + $0x14] ss:$8 sps:$4 sm:$0xff]  }
  0x3b   : > { %538 = vmatprep.subr.bf16.mxu1 %v1216_v16  ;;  %v1236_v39 = vld [vmem:[%s1465_s9 + $0xa0] ss:$8 sps:$4 sm:$0xff]   ;;  %v1240_v40 = vld [vmem:[%s1465_s9 + $0x94] ss:$8 sps:$4 sm:$0xff]   ;;  %v1239_v43 = vld [vmem:[%s1465_s9 + $0x10] ss:$8 sps:$4 sm:$0xff]  }
  0x3c   : > { %v1243_v44 = vld [vmem:[%s1465_s9 + $0x4] ss:$8 sps:$4 sm:$0xff]   ;;  %v1242_v46 = vld [vmem:[%s1465_s9 + $0x90] ss:$8 sps:$4 sm:$0xff]   ;;  %v1245_v49 = vld [vmem:[%s1465_s9] ss:$8 sps:$4 sm:$0xff]  }
  0x3d   : > { %372 = vmatpush1.bf16.msra.mxu0 %v1215_v15  ;;  %v1246_v47 = vld [vmem:[%s1465_s9 + $0x84] ss:$8 sps:$4 sm:$0xff]   ;;  %v1251_v50 = vld [vmem:[%s1465_s9 + $0x174] ss:$8 sps:$4 sm:$0xff]   ;;  %v1248_v52 = vld [vmem:[%s1465_s9 + $0x80] ss:$8 sps:$4 sm:$0xff]  }
  0x3e   : > { %373 = vmatprep.subr.bf16.mxu0 %v1219_v17  ;;  %539 = vmatpush1.bf16.msra.mxu1 %v1218_v18  ;;  %vm601_vm1 = vsmask.f32 1284  ;;  %vm603_vm2 = vsmask.f32 2312  ;;  %v1249_v54 = vld [vmem:[%s1465_s9 + $0x170] ss:$8 sps:$4 sm:$0xff]  }
  0x3f   : > { %540 = vmatprep.subr.bf16.mxu1 %v1222_v19  ;;  %v1254_v56 = vld [vmem:[%s1465_s9 + $0x164] ss:$8 sps:$4 sm:$0xff]   ;;  %vm602_vm3 = vmor %vm600_vm0, %vm601_vm1  ;;  %vm605_vm5 = vsmask.f32 3340  ;;  %v1252_v57 = vld [vmem:[%s1465_s9 + $0x160] ss:$8 sps:$4 sm:$0xff]  }
  0x40   : > { %vm604_vm4 = vmor %vm602_vm3, %vm603_vm2  ;;  %v1257_v58 = vld [vmem:[%s1465_s9 + $0x154] ss:$8 sps:$4 sm:$0xff]   ;;  %vm607_vm7 = vsmask.f32 4368  ;;  %v1255_v60 = vld [vmem:[%s1465_s9 + $0x150] ss:$8 sps:$4 sm:$0xff]  }
  0x41   : > { %374 = vmatpush1.bf16.msra.mxu0 %v1221_v20  ;;  %vm606_vm6 = vmor %vm604_vm4, %vm605_vm5  ;;  %v1078_v59 = vld.sshfl [vmem:[%s1454_s30] sm:$0x11 pattern:$0x75316420]  ;;  %vm609_vm9 = vsmask.f32 5396 }
  0x42   : > { %375 = vmatprep.subr.bf16.mxu0 %v1225_v21  ;;  %541 = vmatpush1.bf16.msra.mxu1 %v1224_v22  ;;  %vm608_vm8 = vmor %vm606_vm6, %vm607_vm7  ;;  %v1260_v61 = vld [vmem:[%s1465_s9 + $0x144] ss:$8 sps:$4 sm:$0xff]   ;;  %v1079_v62 = vld.sshfl [vmem:[%s1454_s30 + $0x2] sm:$0x11 pattern:$0x75316420]  ;;  %v591_v0 = vcombine.high %v1078_v59, %v1078_v59 }
  0x43   : > { %542 = vmatprep.subr.bf16.mxu1 %v1228_v23  ;;  %vm610_vm10 = vmor %vm608_vm8, %vm609_vm9  ;;  %vm611_vm11 = vsmask.f32 6424  ;;  %v1258_v63 = vld [vmem:[%s1465_s9 + $0x140] ss:$8 sps:$4 sm:$0xff]   ;;  %v599_v1 = vcombine.high %v1079_v62, %v1079_v62  ;;  %v1263_v2 = vld [vmem:[%s1465_s9 + $0x134] ss:$8 sps:$4 sm:$0xff]  }
  0x44   : > { %vm612_vm12 = vmor %vm610_vm10, %vm611_vm11  ;;  %vm613_vm13 = vsmask.f32 7452  ;;  %v1261_v3 = vld [vmem:[%s1465_s9 + $0x130] ss:$8 sps:$4 sm:$0xff]   ;;  %v616_v4 = vshrl.u32 %v1078_v59, 16  ;;  %v625_v6 = vshrl.u32 %v1079_v62, 16 }
  0x45   : > { %376 = vmatpush1.bf16.msra.mxu0 %v1227_v27  ;;  %v630_v7 = vshll.u32 %v599_v1, 16  ;;  %v1266_v8 = vld [vmem:[%s1465_s9 + $0x124] ss:$8 sps:$4 sm:$0xff]   ;;  %vm614_vm14 = vmor %vm612_vm12, %vm613_vm13  ;;  %v1264_v9 = vld [vmem:[%s1465_s9 + $0x120] ss:$8 sps:$4 sm:$0xff]  }
  0x46   : > { %377 = vmatprep.subr.bf16.mxu0 %v1231_v28  ;;  %543 = vmatpush1.bf16.msra.mxu1 %v1230_v29  ;;  %v1269_v12 = vld [vmem:[%s1465_s9 + $0x114] ss:$8 sps:$4 sm:$0xff]   ;;  %v1267_v14 = vld [vmem:[%s1465_s9 + $0x110] ss:$8 sps:$4 sm:$0xff]   ;;  %v1272_v15 = vld [vmem:[%s1465_s9 + $0x104] ss:$8 sps:$4 sm:$0xff]  }
  0x47   : > { %544 = vmatprep.subr.bf16.mxu1 %v1234_v31  ;;  %v632_v11 = vsel %vm614_vm14, %v625_v6, %v630_v7  ;;  %v1270_v17 = vld [vmem:[%s1465_s9 + $0x100] ss:$8 sps:$4 sm:$0xff]  }
  0x48   : > { %v246_v28 = vld [vmem:[#allocation2] sm:$0xff] }
  0x49   : > { %378 = vmatpush1.bf16.msra.mxu0 %v1233_v35 }
  0x4a   : > { %379 = vmatprep.subr.bf16.mxu0 %v1237_v38  ;;  %545 = vmatpush1.bf16.msra.mxu1 %v1236_v39 }
  0x4b   : > { %546 = vmatprep.subr.bf16.mxu1 %v1240_v40 }
  0x4d   : > { %380 = vmatpush1.bf16.msra.mxu0 %v1239_v43 }
  0x4e   : > { %381 = vmatprep.subr.bf16.mxu0 %v1243_v44  ;;  %547 = vmatpush1.bf16.msra.mxu1 %v1242_v46 }
  0x4f   : > { %548 = vmatprep.subr.bf16.mxu1 %v1246_v47 }
  0x51   : > { %382 = vmatpush1.bf16.msra.mxu0 %v1245_v49 }
  0x52   : > { %749 = vmatprep.subr.bf16.mxu0 %v1251_v50  ;;  %549 = vmatpush1.bf16.msra.mxu1 %v1248_v52 }
  0x54   : > { %400 = vmatmul.mubr.bf16.vlgmr.msra.gmra.mxu0 %v285_v53 }
  0x55   : > { %750 = vmatpush1.bf16.msra.mxu0 %v1249_v54  ;;  %781 = vmatprep.mubr.bf16.mxu0 %v1346_v5  ;;  %v621_v5 = vshll.u32 %v591_v0, 16 }
  0x56   : > { %567 = vmatmul.mubr.bf16.vlgmr.msra.gmra.mxu1 %v452_v55  ;;  %751 = vmatprep.subr.bf16.mxu0 %v1254_v56 }
  0x57   : > { %v623_v10 = vsel %vm614_vm14, %v616_v4, %v621_v5 }
  0x58   : > { %v653_v13 = vcombine.low %v623_v10, %v632_v11 }
  0x59   : > { %752 = vmatpush1.bf16.msra.mxu0 %v1252_v57 }
  0x5a   : > { %753 = vmatprep.subr.bf16.mxu0 %v1257_v58  ;;  %v660_v16 = vrot.slane %v653_v13, %v1500_v42 }
  0x5c   : > { %v667_v18 = vrot.slane %v660_v16, %v1500_v42 }
  0x5d   : > { %754 = vmatpush1.bf16.msra.mxu0 %v1255_v60 }
  0x5e   : > { %755 = vmatprep.subr.bf16.mxu0 %v1260_v61 }
  0x61   : > { %756 = vmatpush1.bf16.msra.mxu0 %v1258_v63 }
  0x62   : > { %757 = vmatprep.subr.bf16.mxu0 %v1263_v2 }
  0x65   : > { %758 = vmatpush1.bf16.msra.mxu0 %v1261_v3 }
  0x66   : > { %759 = vmatprep.subr.bf16.mxu0 %v1266_v8 }
  0x69   : > { %760 = vmatpush1.bf16.msra.mxu0 %v1264_v9 }
  0x6a   : > { %761 = vmatprep.subr.bf16.mxu0 %v1269_v12 }
  0x6d   : > { %762 = vmatpush1.bf16.msra.mxu0 %v1267_v14 }
  0x6e   : > { %763 = vmatprep.subr.bf16.mxu0 %v1272_v15 }
  0x71   : > { %764 = vmatpush1.bf16.msra.mxu0 %v1270_v17 }
  0x74   : > { %782 = vmatmul.mubr.bf16.vlgmr.msra.gmra.mxu0 %v667_v18 }
 0x114   : > { %v401_v19 = vpop.f32.mrf.mxu0 }
 0x116   : > { %v403_v20 = vpop.f32.mrf.mxu0  ;;  %v568_v21 = vpop.f32.mrf.mxu1 }
 0x117   : > { %v410_v27 = vcombine.low %v401_v19, %v403_v20 }
 0x118   : > { %v405_v22 = vpop.f32.mrf.mxu0  ;;  %v570_v23 = vpop.f32.mrf.mxu1 }
 0x119   : > { %v412_v29 = vadd.f32 %v410_v27, %v246_v28  ;;  %v577_v30 = vcombine.low %v568_v21, %v570_v23 }
 0x11a   : > { %v406_v24 = vpop.f32.mrf.mxu0  ;;  %v572_v25 = vpop.f32.mrf.mxu1 }
 0x11b   : > { %v579_v33 = vadd.f32 %v577_v30, %v412_v29 }
 0x11c   : > { %v573_v26 = vpop.f32.mrf.mxu1 }
 0x134   : > { %v783_v31 = vpop.f32.mrf.mxu0 }
 0x136   : > { %v785_v32 = vpop.f32.mrf.mxu0 }
 0x137   : > { %v792_v35 = vcombine.low %v783_v31, %v785_v32  ;;  %799 = sbr.rel (%p1115_p1) target bundleno = 340 (0x154), region = 81 }
 0x138   : > { %v787_v36 = vpop.f32.mrf.mxu0 }
 0x139   : > { %v794_v37 = vadd.f32 %v792_v35, %v579_v33 }
 0x13a   : > { %v788_v38 = vpop.f32.mrf.mxu0 }
 0x13b   : > { %795 = vst [vmem:[#allocation2] sm:$0xff] %v794_v37 }
 0x13c   : > { %v801_v39 = vld [vmem:[%s1581_s2] sm:$0x3]  ;;  %v805_v40 = vsub.s32 0, %v1491_v34  ;;  %v809_v41 = vsub.s32 1, %v1491_v34  ;;  %v1348_v45 = vmov 1983009808  }
 0x13d   : > { %v817_v46 = vunpack.c.l.s4 %v1348_v45 }
 0x13e   : > { %v806_v43 = vrot.slane %v801_v39, %v805_v40  ;;  %v810_v44 = vrot.slane %v801_v39, %v809_v41 }
 0x13f   : > { %v818_v49 = vunpack.c.0.s8 %v817_v46 }
 0x140   : > { %v811_v48 = vcombine.low %v806_v43, %v810_v44 }
 0x141   : > { %v821_v51 = vsub.s32 %v818_v49, %v1491_v34 }
 0x142   : > { %v800_v47 = vld [vmem:[#allocation2] sm:$0xff] }
 0x143   : > { %v813_v50 = vadd.f32 %v811_v48, %v800_v47 }
 0x145   : > { %v814_v52 = vmax.f32 %v813_v50, 0.0 }
 0x147   : > { %v822_v53 = vrot.slane %v814_v52, %v821_v51 }
 0x149   : > { %v830_v54 = vrot.slane %v822_v53, %v821_v51  ;;  %v823_v55 = vcombine.high %v822_v53, %v822_v53 }
 0x14b   : > { %v831_v56 = vcombine.high %v830_v54, %v830_v54  ;;  %v838_v57 = vrot.slane %v823_v55, %v821_v51 }
 0x14d   : > { %v1116_v58 = vpack.c.bf16 %v831_v56, %v830_v54  ;;  %v839_v59 = vcombine.high %v838_v57, %v838_v57 }
 0x14f   : > { %v859_v60 = vrot.slane %v1116_v58, %v1500_v42  ;;  %v1117_v61 = vpack.c.bf16 %v839_v59, %v838_v57 }
 0x151   : > { %1118 = vst.sshfl [vmem:[%s1456_s4] sm:$0x5 pattern:$0x73625140] %v859_v60  ;;  %v874_v62 = vrot.slane %v1117_v61, %v1500_v42 }
 0x153   : > { %1119 = vst.sshfl [vmem:[%s1456_s4 + $0x2] sm:$0x5 pattern:$0x73625140] %v874_v62 }
 0x154 PF: > { %892 = sbr.rel (!%p1435_p8) target bundleno = 348 (0x15c), region = 85  ;;  %s1121_s16 = sshll.u32 (%p1435_p8), %s1331_s17, 1 }
 0x155   : > { %s894_s28 = scalar_lea.vmem (%p1435_p8), %s1582_s3, %s1121_s16 }
 0x158   : > { %v911_v34 = vld [vmem:[%s1456_s4] sm:$0x3] (%p1435_p8) }
 0x159   : > { %912 = vst [vmem:[%s894_s28] sm:$0x3] %v911_v34 }
 0x15a   : > { %v913_v63 = vld [vmem:[%s1456_s4 + $0x2] sm:$0x3] }
 0x15b   : > { %914 = vst [vmem:[%s894_s28 + $0x4] sm:$0x3] %v913_v63 }
 0x15c PF: > { %s13_s20 = sadd.s32 1, %s1343_s20   ;;  %s1584_s12 = smov %s1315_s13 }
 0x15d   : > { %p10_p2 = scmp.ge.s32.totalorder %s13_s20, 8   ;;  %s1585_s13 = smov %s1440_s6 }
 0x15e   : > { %s1586_s14 = smov %s1323_s15  ;;  %s1587_s15 = smov %s1443_s7 }
 0x15f   : > { %s1588_s16 = smov %s1335_s18  ;;  %s1589_s17 = smov %s1339_s19 }
 0x160   : > { %s1590_s18 = smov %s1593_s22  ;;  %s1591_s19 = smov %s1597_s23 }
 0x161   :  { %12 = sbr.rel (!%p10_p2) target bundleno = 5 (0x5), region = 154 }

// kernel: resnet_encoder_stride1.28
= control target key start
LH: loop header
LB: loop body
LE: loop exit
PB: predicated region body
PF: predicated region fallthrough
CT: control target
= control target key end

     0   :  { %s795_s12 = smov 0   ;;  %s797_s13 = smov 0   ;;  %s942_s0 = inlined_call_operand.vmem [shape: bf16[2,4,2,128], index: 0, kind: input, shape index: {}]   ;;  %s943_s1 = inlined_call_operand.vmem [shape: bf16[1,128,256], index: 1, kind: input, shape index: {}]   ;;  %s944_s2 = inlined_call_operand.vmem [shape: f32[1,256], index: 2, kind: input, shape index: {}]   ;;  %s945_s3 = inlined_call_operand.vmem [shape: bf16[2,2,2,256], index: 3, kind: output, shape index: {}]  }
   0x1   :  { %s799_s14 = smov 0   ;;  %s801_s15 = smov 0  }
   0x2   :  { %s803_s16 = smov 0   ;;  %s805_s17 = smov 0  }
   0x3   :  { %s807_s18 = smov 0  }
   0x4 LB: > { %s598_s19 = sadd.s32 4294967295, %s770_s18   ;;  %s25_s20 = sadd.s32 1, %s766_s17  ;;  %s770_s18 = sphi %s807_s18, %s13_s18   ;;  %s766_s17 = sphi %s805_s17, %s952_s17   ;;  %s762_s16 = sphi %s803_s16, %s951_s16   ;;  %s758_s15 = sphi %s801_s15, %s950_s15   ;;  %s754_s14 = sphi %s799_s14, %s949_s14   ;;  %s750_s13 = sphi %s797_s13, %s948_s13   ;;  %s746_s12 = sphi %s795_s12, %s947_s12  }
   0x5   : > { %p27_p0 = scmp.ge.s32.totalorder %s25_s20, 2  ;;  %s600_s21 = sshll.u32 %s766_s17, 1 }
   0x6   : > { %s36_s22 = sadd.s32 1, %s758_s15  ;;  %p43_p1 = scmp.ne.s32.totalorder %s758_s15, %s754_s14 }
   0x7   : > { %s954_s20 = smov (%p27_p0, %s25_s20), 0  ;;  %p44_p2 = scmp.eq.s32.totalorder %s770_s18, 0 }
   0x8   : > { %s104_s23 = sadd.s32 1, %s750_s13  ;;  %s601_s24 = sshll.u32 %s954_s20, 1 }
   0x9   : > { %s101_s25 = ssub.s32 %s766_s17, %s954_s20  ;;  %s33_s26 = ssub.s32 %s600_s21, %s601_s24 }
   0xa   : > { %p45_p3 = por %p44_p2, %p43_p1  ;;  %p34_p4 = scmp.eq.s32.totalorder %s33_s26, 0 }
   0xb   : > { %p102_p5 = scmp.eq.s32.totalorder %s101_s25, 0  ;;  %p114_p6 = scmp.ne.s32.totalorder %s750_s13, %s746_s12 }
   0xc   : > { %p115_p7 = scmp.eq.s32.totalorder %s598_s19, 1  ;;  %p603_p9 = scmp.ge.s32.totalorder %s770_s18, 2 }
   0xd   : > { %s846_s27 = scalar_select %p34_p4, %s758_s15, %s36_s22  }
   0xe   : > { %s849_s28 = scalar_select %p102_p5, %s750_s13, %s104_s23  }
   0xf   : > { %p851_p8 = por %p115_p7, %p114_p6  ;;  %143 = sbr.rel (%p603_p9) target bundleno = 25 (0x19), region = 24 }
  0x14   : > { %146 = sbr.rel (!%p45_p3) target bundleno = 25 (0x19), region = 28  ;;  %s148_s30 = sand.u32 (%p45_p3), 1, %s758_s15  }
  0x15   : > { %s153_s6 = scalar_lea.vmem (%p45_p3), %s942_s0, %s600_s21  ;;  %s604_s7 = sshll.u32 (%p45_p3), %s148_s30, 1 }
  0x16   : > { %v170_v0 = vld [vmem:[%s153_s6] sm:$0x1] (%p45_p3)  ;;  %v172_v1 = vld [vmem:[%s153_s6 + $0x4] sm:$0x1] (%p45_p3)  ;;  %s150_s8 = scalar_lea.vmem (%p45_p3), [#allocation3], %s604_s7 }
  0x17   : > { %171 = vst [vmem:[%s150_s8] sm:$0x1] (%p45_p3), %v170_v0  ;;  %173 = vst [vmem:[%s150_s8 + $0x1] sm:$0x1] (%p45_p3), %v172_v1 }
  0x19 PF: > { %p606_p10 = scmp.ge.s32.totalorder %s770_s18, 1  ;;  %p192_p11 = scmp.lt.s32.totalorder %s770_s18, 3 }
  0x1b   : > { %p193_p12 = pnand %p606_p10, %p192_p11 }
  0x1c   : > { %s199_s7 = sand.u32 (!%p193_p12), 1, %s754_s14   ;;  %s218_s21 = sand.u32 (!%p193_p12), 1, %s746_s12  }
  0x1d   : > { %196 = sbr.rel (%p193_p12) target bundleno = 287 (0x11f), region = 62  ;;  %s607_s19 = sshll.u32 (!%p193_p12), %s199_s7, 1 }
  0x1e   : > { %s201_s26 = scalar_lea.vmem (!%p193_p12), [#allocation3], %s607_s19  ;;  %s608_s22 = sshll.u32 (!%p193_p12), %s218_s21, 2 }
  0x1f   : > { %s220_s14 = scalar_lea.vmem (!%p193_p12), [#allocation4], %s608_s22 }
  0x22   : > { %v692_v2 = vld [vmem:[%s943_s1 + $0x74] ss:$8 sps:$4 sm:$0xff]   ;;  %v694_v3 = vld [vmem:[%s943_s1 + $0x70] ss:$8 sps:$4 sm:$0xff]   ;;  %v772_v4 = vmov 0   ;;  %v257_v14 = vlaneseq  ;;  %s630_s23 = sshll.u32 (%p851_p8), %s762_s16, 1 }
  0x23   : > { %381 = vmatprep.mubr.bf16.mxu0 %v772_v4  ;;  %349 = vmatprep.subr.bf16.mxu0 %v692_v2  ;;  %v695_v5 = vld [vmem:[%s943_s1 + $0x64] ss:$8 sps:$4 sm:$0xff]   ;;  %v697_v6 = vld [vmem:[%s943_s1 + $0x60] ss:$8 sps:$4 sm:$0xff]   ;;  %v698_v7 = vld [vmem:[%s943_s1 + $0x54] ss:$8 sps:$4 sm:$0xff]   ;;  %s492_s25 = scalar_lea.vmem (%p851_p8), %s945_s3, %s630_s23 }
  0x24   : > { %350 = vmatpush1.bf16.msra.mxu0 %v694_v3  ;;  %v700_v8 = vld [vmem:[%s943_s1 + $0x50] ss:$8 sps:$4 sm:$0xff]   ;;  %v701_v9 = vld [vmem:[%s943_s1 + $0x44] ss:$8 sps:$4 sm:$0xff]   ;;  %v703_v10 = vld [vmem:[%s943_s1 + $0x40] ss:$8 sps:$4 sm:$0xff]  }
  0x25   : > { %351 = vmatprep.subr.bf16.mxu0 %v695_v5  ;;  %v704_v11 = vld [vmem:[%s943_s1 + $0x34] ss:$8 sps:$4 sm:$0xff]   ;;  %v773_v12 = vmov 1966171168   ;;  %v706_v15 = vld [vmem:[%s943_s1 + $0x30] ss:$8 sps:$4 sm:$0xff]  }
  0x26   : > { %v255_v13 = vunpack.c.l.s4 %v773_v12  ;;  %v707_v16 = vld [vmem:[%s943_s1 + $0x24] ss:$8 sps:$4 sm:$0xff]   ;;  %v258_v18 = vshrl.u32 %v257_v14, 7  ;;  %v709_v19 = vld [vmem:[%s943_s1 + $0x20] ss:$8 sps:$4 sm:$0xff]  }
  0x27   : > { %v230_v20 = vld [vmem:[%s201_s26] sm:$0x1]  ;;  %v231_v21 = vld [vmem:[%s201_s26 + $0x1] sm:$0x1]  ;;  %v710_v22 = vld [vmem:[%s943_s1 + $0x14] ss:$8 sps:$4 sm:$0xff]  }
  0x28   : > { %352 = vmatpush1.bf16.msra.mxu0 %v697_v6  ;;  %v256_v17 = vunpack.c.0.s8 %v255_v13  ;;  %v253_v23 = vcombine.low %v230_v20, %v231_v21  ;;  %v712_v25 = vld [vmem:[%s943_s1 + $0x10] ss:$8 sps:$4 sm:$0xff]   ;;  %v713_v26 = vld [vmem:[%s943_s1 + $0x4] ss:$8 sps:$4 sm:$0xff]   ;;  %v715_v28 = vld [vmem:[%s943_s1] ss:$8 sps:$4 sm:$0xff]  }
  0x29   : > { %353 = vmatprep.subr.bf16.mxu0 %v698_v7  ;;  %v404_v30 = vsub.s32 0, %v258_v18  ;;  %v408_v31 = vsub.s32 1, %v258_v18  ;;  %v400_v32 = vld [vmem:[%s944_s2] sm:$0x3]  ;;  %v774_v33 = vmov 1983009808  }
  0x2a   : > { %v259_v24 = vsub.s32 %v256_v17, %v258_v18  ;;  %v415_v34 = vunpack.c.l.s4 %v774_v33 }
  0x2b   : > { %v405_v35 = vrot.slane %v400_v32, %v404_v30  ;;  %v409_v36 = vrot.slane %v400_v32, %v408_v31 }
  0x2c   : > { %354 = vmatpush1.bf16.msra.mxu0 %v700_v8  ;;  %v260_v27 = vrot.slane %v253_v23, %v259_v24  ;;  %v416_v37 = vunpack.c.0.s8 %v415_v34 }
  0x2d   : > { %355 = vmatprep.subr.bf16.mxu0 %v701_v9  ;;  %v410_v39 = vcombine.low %v405_v35, %v409_v36 }
  0x2e   : > { %v267_v29 = vrot.slane %v260_v27, %v259_v24  ;;  %v419_v42 = vsub.s32 %v416_v37, %v258_v18 }
  0x30   : > { %356 = vmatpush1.bf16.msra.mxu0 %v703_v10 }
  0x31   : > { %357 = vmatprep.subr.bf16.mxu0 %v704_v11 }
  0x34   : > { %358 = vmatpush1.bf16.msra.mxu0 %v706_v15 }
  0x35   : > { %359 = vmatprep.subr.bf16.mxu0 %v707_v16 }
  0x38   : > { %360 = vmatpush1.bf16.msra.mxu0 %v709_v19 }
  0x39   : > { %361 = vmatprep.subr.bf16.mxu0 %v710_v22 }
  0x3c   : > { %362 = vmatpush1.bf16.msra.mxu0 %v712_v25 }
  0x3d   : > { %363 = vmatprep.subr.bf16.mxu0 %v713_v26 }
  0x40   : > { %364 = vmatpush1.bf16.msra.mxu0 %v715_v28 }
  0x43   : > { %382 = vmatmul.mubr.bf16.vlgmr.msra.gmra.mxu0 %v267_v29 }
 0x103   : > { %v383_v38 = vpop.f32.mrf.mxu0 }
 0x105   : > { %v385_v40 = vpop.f32.mrf.mxu0 }
 0x106   : > { %v392_v41 = vcombine.low %v383_v38, %v385_v40 }
 0x107   : > { %v387_v43 = vpop.f32.mrf.mxu0 }
 0x108   : > { %v412_v44 = vadd.f32 %v410_v39, %v392_v41 }
 0x109   : > { %v388_v45 = vpop.f32.mrf.mxu0 }
 0x10a   : > { %v420_v46 = vrot.slane %v412_v44, %v419_v42 }
 0x10c   : > { %v421_v47 = vcombine.high %v420_v46, %v420_v46  ;;  %v428_v48 = vrot.slane %v420_v46, %v419_v42 }
 0x10e   : > { %v429_v49 = vcombine.high %v428_v48, %v428_v48  ;;  %v436_v50 = vrot.slane %v421_v47, %v419_v42 }
 0x110   : > { %v437_v51 = vcombine.high %v436_v50, %v436_v50  ;;  %v625_v52 = vpack.c.bf16 %v429_v49, %v428_v48 }
 0x112   : > { %v457_v53 = vrot.slane %v625_v52, %v259_v24  ;;  %v626_v54 = vpack.c.bf16 %v437_v51, %v436_v50  ;;  %490 = sbr.rel (!%p851_p8) target bundleno = 287 (0x11f), region = 78 }
 0x114   : > { %v472_v55 = vrot.slane %v626_v54, %v259_v24  ;;  %627 = vst.sshfl [vmem:[%s220_s14] sm:$0x5 pattern:$0x73625140] %v457_v53 }
 0x116   : > { %628 = vst.sshfl [vmem:[%s220_s14 + $0x2] sm:$0x5 pattern:$0x73625140] %v472_v55 }
 0x11b   : > { %v509_v56 = vld [vmem:[%s220_s14] sm:$0x3] }
 0x11c   : > { %510 = vst [vmem:[%s492_s25] sm:$0x3] %v509_v56 }
 0x11d   : > { %v511_v57 = vld [vmem:[%s220_s14 + $0x2] sm:$0x3] }
 0x11e   : > { %512 = vst [vmem:[%s492_s25 + $0x4] sm:$0x3] %v511_v57 }
 0x11f PF: > { %s13_s18 = sadd.s32 1, %s770_s18   ;;  %s947_s12 = smov %s750_s13 }
 0x120   : > { %p10_p13 = scmp.ge.s32.totalorder %s13_s18, 4   ;;  %s948_s13 = smov %s849_s28 }
 0x121   : > { %s949_s14 = smov %s758_s15  ;;  %s950_s15 = smov %s846_s27 }
 0x122   : > { %s951_s16 = smov %s766_s17  ;;  %s952_s17 = smov %s954_s20 }
 0x123   :  { %12 = sbr.rel (!%p10_p13) target bundleno = 4 (0x4), region = 144 }

// kernel: resnet_encoder_stride1.30
= control target key start
LH: loop header
LB: loop body
LE: loop exit
PB: predicated region body
PF: predicated region fallthrough
CT: control target
= control target key end

     0   :  { %s1852_s12 = smov 0   ;;  %s1854_s13 = smov 0   ;;  %s2129_s0 = inlined_call_operand.vmem [shape: bf16[2,4,4,256], index: 0, kind: input, shape index: {}]   ;;  %s2130_s1 = inlined_call_operand.vmem [shape: bf16[9,256,256], index: 1, kind: input, shape index: {}]   ;;  %s2131_s2 = inlined_call_operand.vmem [shape: f32[1,256], index: 2, kind: input, shape index: {}]   ;;  %s2132_s3 = inlined_call_operand.vmem [shape: bf16[2,2,2,256], index: 3, kind: output, shape index: {}]  }
   0x1   :  { %s1856_s14 = smov 0   ;;  %s1858_s15 = smov 0  }
   0x2   :  { %s1860_s16 = smov 0   ;;  %s1862_s17 = smov 0  }
   0x3   :  { %s1864_s18 = smov 0   ;;  %s1866_s19 = smov 0  }
   0x4   :  { %s1868_s20 = smov 0  }
   0x5 LB: > { %s22_s21 = sadd.s32 1, %s1819_s18  ;;  %s25_s22 = sadd.s32 1, %s1823_s19  ;;  %s1827_s20 = sphi %s1868_s20, %s13_s20   ;;  %s1823_s19 = sphi %s1866_s19, %s2142_s19   ;;  %s1819_s18 = sphi %s1864_s18, %s2141_s18   ;;  %s1815_s17 = sphi %s1862_s17, %s2140_s17   ;;  %s1811_s16 = sphi %s1860_s16, %s2139_s16   ;;  %s1807_s15 = sphi %s1858_s15, %s2138_s15   ;;  %s1803_s14 = sphi %s1856_s14, %s2137_s14   ;;  %s1799_s13 = sphi %s1854_s13, %s2136_s13   ;;  %s1795_s12 = sphi %s1852_s12, %s2135_s12  }
   0x6   : > { %p23_p0 = scmp.ge.s32.totalorder %s22_s21, 3  ;;  %s1343_s23 = sadd.s32 4294967295, %s1827_s20  }
   0x7   : > { %s29_s24 = sadd.s32 %s1819_s18, %s1823_s19  ;;  %p41_p1 = scmp.ne.s32.totalorder %s1807_s15, %s1803_s14 }
   0x8   : > { %s2144_s21 = smov (%p23_p0, %s22_s21), 0  ;;  %s2146_s22 = smov (!%p23_p0, %s25_s22), %s1823_s19 }
   0x9   : > { %p42_p2 = scmp.eq.s32.totalorder %s1827_s20, 0  ;;  %p27_p3 = scmp.ge.s32.totalorder %s2146_s22, 2 }
   0xa   : > { %s34_s25 = sadd.s32 1, %s1807_s15  ;;  %p112_p5 = scmp.ne.s32.totalorder %s1799_s13, %s1795_s12 }
   0xb   : > { %p1909_p4 = por %p42_p2, %p41_p1  ;;  %s2148_s22 = smov (%p27_p3, %s2146_s22), 0 }
   0xc   : > { %s102_s27 = sadd.s32 1, %s1799_s13  ;;  %p113_p6 = scmp.eq.s32.totalorder %s1343_s23, 5 }
   0xd   : > { %s30_s28 = sadd.s32 %s2148_s22, %s2144_s21  ;;  %s99_s29 = ssub.s32 %s1823_s19, %s2148_s22 }
   0xe   : > { %s31_s30 = ssub.s32 %s29_s24, %s30_s28  ;;  %p100_p7 = scmp.eq.s32.totalorder %s99_s29, 0 }
   0xf   : > { %p32_p8 = scmp.eq.s32.totalorder %s31_s30, 0  ;;  %p1922_p9 = por %p113_p6, %p112_p5 }
  0x10   : > { %s1927_s5 = scalar_select %p100_p7, %s1799_s13, %s102_s27  }
  0x11   : > { %s1930_s6 = scalar_select %p32_p8, %s1807_s15, %s34_s25  }
  0x12   : > { %p1346_p10 = scmp.ge.s32.totalorder %s1827_s20, 6 }
  0x14   : > { %141 = sbr.rel (%p1346_p10) target bundleno = 30 (0x1e), region = 24 }
  0x19   : > { %144 = sbr.rel (!%p1909_p4) target bundleno = 30 (0x1e), region = 28  ;;  %s146_s7 = sand.u32 (%p1909_p4), 1, %s1807_s15  }
  0x1a   : > { %s1536_s8 = sshll.u32 (%p1909_p4), %s29_s24, 2  ;;  %s1347_s9 = sshll.u32 (%p1909_p4), %s146_s7, 3 }
  0x1b   : > { %s152_s23 = scalar_lea.vmem (%p1909_p4), %s2129_s0, %s1536_s8  ;;  %s148_s27 = scalar_lea.vmem (%p1909_p4), [#allocation3], %s1347_s9 }
  0x1c   : > { %v169_v0 = vld [vmem:[%s152_s23] sm:$0xf] (%p1909_p4)  ;;  %v171_v1 = vld [vmem:[%s152_s23 + $0x10] sm:$0xf] (%p1909_p4) }
  0x1d   : > { %170 = vst [vmem:[%s148_s27] sm:$0xf] (%p1909_p4), %v169_v0  ;;  %172 = vst [vmem:[%s148_s27 + $0x4] sm:$0xf] (%p1909_p4), %v171_v1 }
  0x1e PF: > { %p1350_p11 = scmp.ge.s32.totalorder %s1827_s20, 1  ;;  %p199_p12 = scmp.lt.s32.totalorder %s1827_s20, 7 }
  0x20   : > { %p200_p13 = pnand %p1350_p11, %p199_p12 }
  0x21   : > { %s206_s24 = sand.u32 (!%p200_p13), 1, %s1803_s14   ;;  %s225_s25 = sand.u32 (!%p200_p13), 1, %s1795_s12  }
  0x22   : > { %203 = sbr.rel (%p200_p13) target bundleno = 410 (0x19a), region = 69  ;;  %s1351_s26 = sshll.u32 (!%p200_p13), %s206_s24, 3 }
  0x23   : > { %s1352_s28 = sshll.u32 (!%p200_p13), %s225_s25, 2  ;;  %s1943_s29 = scalar_lea.vmem (!%p200_p13), [#allocation3], %s1351_s26 }
  0x24   : > { %s1945_s30 = scalar_lea.vmem (!%p200_p13), [#allocation4], %s1352_s28  ;;  %p1353_p0 = scmp.ne.s32.totalorder (!%p200_p13), %s1811_s16, 0 }
  0x27   : > { %232 = sbr.rel (%p1353_p0) target bundleno = 46 (0x2e), region = 77 }
  0x2c   : > { %v1829_v2 = vmov 0.0  }
  0x2d   : > { %233 = vst [vmem:[#allocation2] sm:$0xff] %v1829_v2 }
  0x2e PF: > { %s1537_s7 = smul.u32 768, %s1811_s16  ;;  %v1354_v3 = vld.sshfl [vmem:[%s1943_s29] sm:$0x3 pattern:$0x75316420]  ;;  %v293_v4 = vlaneseq  ;;  %p1527_p1 = scmp.ne.s32.totalorder %s1811_s16, 2 }
  0x2f   : > { %v1355_v5 = vld.sshfl [vmem:[%s1943_s29 + $0x4] sm:$0x3 pattern:$0x75316420]  ;;  %v1830_v6 = vmov 1966171168  }
  0x30   : > { %s1954_s8 = scalar_lea.vmem %s2130_s1, %s1537_s7  ;;  %v291_v7 = vunpack.c.l.s4 %v1830_v6  ;;  %v1956_v8 = vshrl.u32 %v293_v4, 7  ;;  %v289_v11 = vcombine.low %v1354_v3, %v1355_v5  ;;  %vm540_vm0 = vsmask.f32 256 }
  0x31   : > { %v1613_v9 = vld [vmem:[%s1954_s8 + $0x74] ss:$8 sps:$4 sm:$0xff]   ;;  %v1615_v10 = vld [vmem:[%s1954_s8 + $0x70] ss:$8 sps:$4 sm:$0xff]   ;;  %v1619_v15 = vld [vmem:[%s1954_s8 + $0x64] ss:$8 sps:$4 sm:$0xff]  }
  0x32   : > { %v292_v12 = vunpack.c.0.s8 %v291_v7  ;;  %474 = vmatprep.subr.bf16.mxu0 %v1613_v9  ;;  %v1616_v13 = vld [vmem:[%s1954_s8 + $0x174] ss:$8 sps:$4 sm:$0xff]   ;;  %v1618_v14 = vld [vmem:[%s1954_s8 + $0x170] ss:$8 sps:$4 sm:$0xff]   ;;  %v1621_v16 = vld [vmem:[%s1954_s8 + $0x60] ss:$8 sps:$4 sm:$0xff]  }
  0x33   : > { %475 = vmatpush1.bf16.msra.mxu0 %v1615_v10  ;;  %794 = vmatprep.subr.bf16.mxu1 %v1616_v13  ;;  %v1622_v18 = vld [vmem:[%s1954_s8 + $0x164] ss:$8 sps:$4 sm:$0xff]   ;;  %v1624_v19 = vld [vmem:[%s1954_s8 + $0x160] ss:$8 sps:$4 sm:$0xff]   ;;  %v1625_v21 = vld [vmem:[%s1954_s8 + $0x54] ss:$8 sps:$4 sm:$0xff]  }
  0x34   : > { %v1965_v17 = vsub.s32 %v292_v12, %v1956_v8  ;;  %795 = vmatpush1.bf16.msra.mxu1 %v1618_v14  ;;  %476 = vmatprep.subr.bf16.mxu0 %v1619_v15  ;;  %v1627_v22 = vld [vmem:[%s1954_s8 + $0x50] ss:$8 sps:$4 sm:$0xff]   ;;  %v1628_v23 = vld [vmem:[%s1954_s8 + $0x154] ss:$8 sps:$4 sm:$0xff]   ;;  %v1631_v25 = vld [vmem:[%s1954_s8 + $0x44] ss:$8 sps:$4 sm:$0xff]  }
  0x35   : > { %796 = vmatprep.subr.bf16.mxu1 %v1622_v18  ;;  %v1630_v26 = vld [vmem:[%s1954_s8 + $0x150] ss:$8 sps:$4 sm:$0xff]   ;;  %v1634_v28 = vld [vmem:[%s1954_s8 + $0x144] ss:$8 sps:$4 sm:$0xff]   ;;  %v1633_v29 = vld [vmem:[%s1954_s8 + $0x40] ss:$8 sps:$4 sm:$0xff]  }
  0x36   : > { %v1970_v20 = vrot.slane %v289_v11, %v1965_v17  ;;  %v1637_v30 = vld [vmem:[%s1954_s8 + $0x34] ss:$8 sps:$4 sm:$0xff]   ;;  %v1636_v31 = vld [vmem:[%s1954_s8 + $0x140] ss:$8 sps:$4 sm:$0xff]   ;;  %v1639_v33 = vld [vmem:[%s1954_s8 + $0x30] ss:$8 sps:$4 sm:$0xff]  }
  0x37   : > { %477 = vmatpush1.bf16.msra.mxu0 %v1621_v16  ;;  %v1640_v32 = vld [vmem:[%s1954_s8 + $0x134] ss:$8 sps:$4 sm:$0xff]   ;;  %v1643_v34 = vld [vmem:[%s1954_s8 + $0x24] ss:$8 sps:$4 sm:$0xff]   ;;  %v1642_v35 = vld [vmem:[%s1954_s8 + $0x130] ss:$8 sps:$4 sm:$0xff]  }
  0x38   : > { %v297_v24 = vcombine.high %v1970_v20, %v1970_v20  ;;  %478 = vmatprep.subr.bf16.mxu0 %v1625_v21  ;;  %797 = vmatpush1.bf16.msra.mxu1 %v1624_v19  ;;  %v1646_v36 = vld [vmem:[%s1954_s8 + $0x124] ss:$8 sps:$4 sm:$0xff]   ;;  %v1645_v37 = vld [vmem:[%s1954_s8 + $0x20] ss:$8 sps:$4 sm:$0xff]   ;;  %v1649_v38 = vld [vmem:[%s1954_s8 + $0x14] ss:$8 sps:$4 sm:$0xff]  }
  0x39   : > { %798 = vmatprep.subr.bf16.mxu1 %v1628_v23  ;;  %v1648_v39 = vld [vmem:[%s1954_s8 + $0x120] ss:$8 sps:$4 sm:$0xff]   ;;  %v1652_v40 = vld [vmem:[%s1954_s8 + $0x114] ss:$8 sps:$4 sm:$0xff]   ;;  %v1651_v41 = vld [vmem:[%s1954_s8 + $0x10] ss:$8 sps:$4 sm:$0xff]  }
  0x3a   : > { %v311_v27 = vrot.slane %v297_v24, %v1965_v17  ;;  %v1655_v42 = vld [vmem:[%s1954_s8 + $0x4] ss:$8 sps:$4 sm:$0xff]   ;;  %v1654_v43 = vld [vmem:[%s1954_s8 + $0x110] ss:$8 sps:$4 sm:$0xff]   ;;  %v1657_v45 = vld [vmem:[%s1954_s8] ss:$8 sps:$4 sm:$0xff]  }
  0x3b   : > { %479 = vmatpush1.bf16.msra.mxu0 %v1627_v22  ;;  %v1658_v44 = vld [vmem:[%s1954_s8 + $0x104] ss:$8 sps:$4 sm:$0xff]   ;;  %v1661_v46 = vld [vmem:[%s1954_s8 + $0xf4] ss:$8 sps:$4 sm:$0xff]   ;;  %v1660_v47 = vld [vmem:[%s1954_s8 + $0x100] ss:$8 sps:$4 sm:$0xff]  }
  0x3c   : > { %506 = vmatprep.mubr.bf16.mxu0 %v311_v27  ;;  %480 = vmatprep.subr.bf16.mxu0 %v1631_v25  ;;  %v1664_v48 = vld [vmem:[%s1954_s8 + $0x1f4] ss:$8 sps:$4 sm:$0xff]   ;;  %v1663_v49 = vld [vmem:[%s1954_s8 + $0xf0] ss:$8 sps:$4 sm:$0xff]   ;;  %v1667_v50 = vld [vmem:[%s1954_s8 + $0xe4] ss:$8 sps:$4 sm:$0xff]  }
  0x3d   : > { %799 = vmatpush1.bf16.msra.mxu1 %v1630_v26  ;;  %v1666_v51 = vld [vmem:[%s1954_s8 + $0x1f0] ss:$8 sps:$4 sm:$0xff]   ;;  %v1670_v52 = vld [vmem:[%s1954_s8 + $0x1e4] ss:$8 sps:$4 sm:$0xff]   ;;  %v1669_v53 = vld [vmem:[%s1954_s8 + $0xe0] ss:$8 sps:$4 sm:$0xff]  }
  0x3e   : > { %800 = vmatprep.subr.bf16.mxu1 %v1634_v28  ;;  %v1673_v54 = vld [vmem:[%s1954_s8 + $0xd4] ss:$8 sps:$4 sm:$0xff]   ;;  %v1672_v55 = vld [vmem:[%s1954_s8 + $0x1e0] ss:$8 sps:$4 sm:$0xff]   ;;  %vm541_vm1 = vsmask.f32 1284 }
  0x3f   : > { %481 = vmatpush1.bf16.msra.mxu0 %v1633_v29  ;;  %v1676_v56 = vld [vmem:[%s1954_s8 + $0x1d4] ss:$8 sps:$4 sm:$0xff]   ;;  %v1390_v57 = vld.sshfl [vmem:[%s1943_s29] sm:$0x33 pattern:$0x75316420]  ;;  %vm542_vm6 = vmor %vm540_vm0, %vm541_vm1 }
  0x40   : > { %482 = vmatprep.subr.bf16.mxu0 %v1637_v30  ;;  %v1675_v58 = vld [vmem:[%s1954_s8 + $0xd0] ss:$8 sps:$4 sm:$0xff]   ;;  %vm543_vm2 = vsmask.f32 2312  ;;  %v1679_v59 = vld [vmem:[%s1954_s8 + $0xc4] ss:$8 sps:$4 sm:$0xff]   ;;  %v531_v0 = vcombine.high %v1390_v57, %v1390_v57 }
  0x41   : > { %801 = vmatpush1.bf16.msra.mxu1 %v1636_v31  ;;  %vm545_vm3 = vsmask.f32 3340  ;;  %v1678_v60 = vld [vmem:[%s1954_s8 + $0x1d0] ss:$8 sps:$4 sm:$0xff]   ;;  %vm547_vm4 = vsmask.f32 4368  ;;  %vm544_vm7 = vmor %vm542_vm6, %vm543_vm2 }
  0x42   : > { %802 = vmatprep.subr.bf16.mxu1 %v1640_v32  ;;  %v1682_v61 = vld [vmem:[%s1954_s8 + $0x1c4] ss:$8 sps:$4 sm:$0xff]   ;;  %vm549_vm5 = vsmask.f32 5396  ;;  %v1681_v62 = vld [vmem:[%s1954_s8 + $0xc0] ss:$8 sps:$4 sm:$0xff]   ;;  %vm546_vm9 = vmor %vm544_vm7, %vm545_vm3 }
  0x43   : > { %483 = vmatpush1.bf16.msra.mxu0 %v1639_v33  ;;  %v1685_v63 = vld [vmem:[%s1954_s8 + $0xb4] ss:$8 sps:$4 sm:$0xff]   ;;  %v1684_v2 = vld [vmem:[%s1954_s8 + $0x1c0] ss:$8 sps:$4 sm:$0xff]   ;;  %vm551_vm8 = vsmask.f32 6424  ;;  %vm548_vm11 = vmor %vm546_vm9, %vm547_vm4  ;;  %v304_v33 = vrot.slane %v1970_v20, %v1965_v17 }
  0x44   : > { %484 = vmatprep.subr.bf16.mxu0 %v1643_v34  ;;  %v1391_v1 = vld.sshfl [vmem:[%s1943_s29 + $0x4] sm:$0x33 pattern:$0x75316420]  ;;  %vm553_vm10 = vsmask.f32 7452  ;;  %vm550_vm12 = vmor %vm548_vm11, %vm549_vm5 }
  0x45   : > { %803 = vmatpush1.bf16.msra.mxu1 %v1642_v35  ;;  %v539_v3 = vcombine.high %v1391_v1, %v1391_v1  ;;  %v1688_v4 = vld [vmem:[%s1954_s8 + $0x1b4] ss:$8 sps:$4 sm:$0xff]   ;;  %v556_v5 = vshrl.u32 %v1390_v57, 16  ;;  %v1687_v6 = vld [vmem:[%s1954_s8 + $0xb0] ss:$8 sps:$4 sm:$0xff]   ;;  %v561_v7 = vshll.u32 %v531_v0, 16  ;;  %vm552_vm13 = vmor %vm550_vm12, %vm551_vm8 }
  0x46   : > { %804 = vmatprep.subr.bf16.mxu1 %v1646_v36  ;;  %v565_v9 = vshrl.u32 %v1391_v1, 16  ;;  %v1691_v11 = vld [vmem:[%s1954_s8 + $0xa4] ss:$8 sps:$4 sm:$0xff]   ;;  %v1690_v12 = vld [vmem:[%s1954_s8 + $0x1b0] ss:$8 sps:$4 sm:$0xff]   ;;  %vm554_vm14 = vmor %vm552_vm13, %vm553_vm10 }
  0x47   : > { %485 = vmatpush1.bf16.msra.mxu0 %v1645_v37  ;;  %v570_v10 = vshll.u32 %v539_v3, 16  ;;  %v1694_v13 = vld [vmem:[%s1954_s8 + $0x1a4] ss:$8 sps:$4 sm:$0xff]   ;;  %v1693_v14 = vld [vmem:[%s1954_s8 + $0xa0] ss:$8 sps:$4 sm:$0xff]   ;;  %v563_v15 = vsel %vm554_vm14, %v556_v5, %v561_v7 }
  0x48   : > { %486 = vmatprep.subr.bf16.mxu0 %v1649_v38  ;;  %v1697_v18 = vld [vmem:[%s1954_s8 + $0x94] ss:$8 sps:$4 sm:$0xff]   ;;  %v1696_v21 = vld [vmem:[%s1954_s8 + $0x1a0] ss:$8 sps:$4 sm:$0xff]   ;;  %v1699_v24 = vld [vmem:[%s1954_s8 + $0x90] ss:$8 sps:$4 sm:$0xff]  }
  0x49   : > { %805 = vmatpush1.bf16.msra.mxu1 %v1648_v39  ;;  %v572_v16 = vsel %vm554_vm14, %v565_v9, %v570_v10  ;;  %v1700_v22 = vld [vmem:[%s1954_s8 + $0x194] ss:$8 sps:$4 sm:$0xff]   ;;  %v1703_v25 = vld [vmem:[%s1954_s8 + $0x84] ss:$8 sps:$4 sm:$0xff]   ;;  %v1702_v27 = vld [vmem:[%s1954_s8 + $0x190] ss:$8 sps:$4 sm:$0xff]  }
  0x4a   : > { %806 = vmatprep.subr.bf16.mxu1 %v1652_v40  ;;  %v609_v19 = vcombine.low %v563_v15, %v572_v16  ;;  %v1706_v28 = vld [vmem:[%s1954_s8 + $0x184] ss:$8 sps:$4 sm:$0xff]   ;;  %v1705_v30 = vld [vmem:[%s1954_s8 + $0x80] ss:$8 sps:$4 sm:$0xff]   ;;  %v1711_v31 = vld [vmem:[%s1954_s8 + $0x274] ss:$8 sps:$4 sm:$0xff]  }
  0x4b   : > { %487 = vmatpush1.bf16.msra.mxu0 %v1651_v41  ;;  %v1708_v32 = vld [vmem:[%s1954_s8 + $0x180] ss:$8 sps:$4 sm:$0xff]   ;;  %v1709_v34 = vld [vmem:[%s1954_s8 + $0x270] ss:$8 sps:$4 sm:$0xff]   ;;  %v1714_v36 = vld [vmem:[%s1954_s8 + $0x264] ss:$8 sps:$4 sm:$0xff]  }
  0x4c   : > { %488 = vmatprep.subr.bf16.mxu0 %v1655_v42  ;;  %v616_v23 = vrot.slane %v609_v19, %v1965_v17  ;;  %v1712_v37 = vld [vmem:[%s1954_s8 + $0x260] ss:$8 sps:$4 sm:$0xff]   ;;  %v1717_v39 = vld [vmem:[%s1954_s8 + $0x254] ss:$8 sps:$4 sm:$0xff]   ;;  %v1715_v41 = vld [vmem:[%s1954_s8 + $0x250] ss:$8 sps:$4 sm:$0xff]  }
  0x4d   : > { %807 = vmatpush1.bf16.msra.mxu1 %v1654_v43  ;;  %v1459_v38 = vld.sshfl [vmem:[%s1943_s29] sm:$0x30 pattern:$0x75316420]  ;;  %v1720_v43 = vld [vmem:[%s1954_s8 + $0x244] ss:$8 sps:$4 sm:$0xff]  }
  0x4e   : > { %808 = vmatprep.subr.bf16.mxu1 %v1658_v44  ;;  %v617_v26 = vcombine.high %v616_v23, %v616_v23  ;;  %v624_v35 = vrot.slane %v616_v23, %v1965_v17  ;;  %v1460_v20 = vld.sshfl [vmem:[%s1943_s29 + $0x4] sm:$0x30 pattern:$0x75316420]  ;;  %v1745_v0 = vld [vmem:[%s1954_s8 + $0x2b0] ss:$8 sps:$4 sm:$0xff]  }
  0x4f   : > { %489 = vmatpush1.bf16.msra.mxu0 %v1657_v45  ;;  %v1494_v40 = vcombine.high %v1459_v38, %v1460_v20  ;;  %v1718_v45 = vld [vmem:[%s1954_s8 + $0x240] ss:$8 sps:$4 sm:$0xff]   ;;  %v1738_v57 = vld [vmem:[%s1954_s8 + $0x2e4] ss:$8 sps:$4 sm:$0xff]   ;;  %v1753_v3 = vld [vmem:[%s1954_s8 + $0x294] ss:$8 sps:$4 sm:$0xff]  }
  0x50   : > { %490 = vmatprep.subr.bf16.mxu0 %v1661_v46  ;;  %v631_v29 = vrot.slane %v617_v26, %v1965_v17  ;;  %v1750_v1 = vld [vmem:[%s1954_s8 + $0x2a4] ss:$8 sps:$4 sm:$0xff]  }
  0x51   : > { %809 = vmatpush1.bf16.msra.mxu1 %v1660_v47  ;;  %v903_v42 = vrot.slane %v1494_v40, %v1965_v17  ;;  %v1723_v47 = vld [vmem:[%s1954_s8 + $0x234] ss:$8 sps:$4 sm:$0xff]   ;;  %v1756_v5 = vld [vmem:[%s1954_s8 + $0x284] ss:$8 sps:$4 sm:$0xff]  }
  0x52   : > { %810 = vmatprep.subr.bf16.mxu1 %v1664_v48  ;;  %826 = vmatprep.mubr.bf16.mxu1 %v631_v29  ;;  %v1721_v48 = vld [vmem:[%s1954_s8 + $0x230] ss:$8 sps:$4 sm:$0xff]   ;;  %v234_v19 = vld [vmem:[#allocation2] sm:$0xff] }
  0x53   : > { %491 = vmatpush2.bf16.msra.mxu0 %v1663_v49  ;;  %v904_v44 = vcombine.high %v903_v42, %v903_v42  ;;  %v1726_v49 = vld [vmem:[%s1954_s8 + $0x224] ss:$8 sps:$4 sm:$0xff]   ;;  %v911_v7 = vrot.slane %v903_v42, %v1965_v17 }
  0x54   : > { %492 = vmatprep.subr.bf16.mxu0 %v1667_v50  ;;  %v1724_v50 = vld [vmem:[%s1954_s8 + $0x220] ss:$8 sps:$4 sm:$0xff]  }
  0x55   : > { %811 = vmatpush2.bf16.msra.mxu1 %v1666_v51  ;;  %v918_v46 = vrot.slane %v904_v44, %v1965_v17  ;;  %v1729_v51 = vld [vmem:[%s1954_s8 + $0x214] ss:$8 sps:$4 sm:$0xff]  }
  0x56   : > { %812 = vmatprep.subr.bf16.mxu1 %v1670_v52  ;;  %v1727_v52 = vld [vmem:[%s1954_s8 + $0x210] ss:$8 sps:$4 sm:$0xff]  }
  0x57   : > { %493 = vmatpush2.bf16.msra.mxu0 %v1669_v53  ;;  %v1732_v53 = vld [vmem:[%s1954_s8 + $0x204] ss:$8 sps:$4 sm:$0xff]  }
  0x58   : > { %494 = vmatprep.subr.bf16.mxu0 %v1673_v54  ;;  %v1730_v54 = vld [vmem:[%s1954_s8 + $0x200] ss:$8 sps:$4 sm:$0xff]  }
  0x59   : > { %813 = vmatpush2.bf16.msra.mxu1 %v1672_v55  ;;  %v1735_v55 = vld [vmem:[%s1954_s8 + $0x2f4] ss:$8 sps:$4 sm:$0xff]  }
  0x5a   : > { %814 = vmatprep.subr.bf16.mxu1 %v1676_v56  ;;  %v1733_v56 = vld [vmem:[%s1954_s8 + $0x2f0] ss:$8 sps:$4 sm:$0xff]  }
  0x5b   : > { %495 = vmatpush2.bf16.msra.mxu0 %v1675_v58  ;;  %v1736_v58 = vld [vmem:[%s1954_s8 + $0x2e0] ss:$8 sps:$4 sm:$0xff]  }
  0x5c   : > { %496 = vmatprep.subr.bf16.mxu0 %v1679_v59  ;;  %v1741_v59 = vld [vmem:[%s1954_s8 + $0x2d4] ss:$8 sps:$4 sm:$0xff]  }
  0x5d   : > { %815 = vmatpush2.bf16.msra.mxu1 %v1678_v60  ;;  %v1739_v60 = vld [vmem:[%s1954_s8 + $0x2d0] ss:$8 sps:$4 sm:$0xff]  }
  0x5e   : > { %816 = vmatprep.subr.bf16.mxu1 %v1682_v61  ;;  %v1744_v61 = vld [vmem:[%s1954_s8 + $0x2c4] ss:$8 sps:$4 sm:$0xff]  }
  0x5f   : > { %497 = vmatpush2.bf16.msra.mxu0 %v1681_v62  ;;  %v1742_v62 = vld [vmem:[%s1954_s8 + $0x2c0] ss:$8 sps:$4 sm:$0xff]  }
  0x60   : > { %498 = vmatprep.subr.bf16.mxu0 %v1685_v63  ;;  %v1747_v63 = vld [vmem:[%s1954_s8 + $0x2b4] ss:$8 sps:$4 sm:$0xff]  }
  0x61   : > { %817 = vmatpush2.bf16.msra.mxu1 %v1684_v2  ;;  %v1748_v2 = vld [vmem:[%s1954_s8 + $0x2a0] ss:$8 sps:$4 sm:$0xff]  }
  0x62   : > { %818 = vmatprep.subr.bf16.mxu1 %v1688_v4  ;;  %v1751_v4 = vld [vmem:[%s1954_s8 + $0x290] ss:$8 sps:$4 sm:$0xff]  }
  0x63   : > { %499 = vmatpush2.bf16.msra.mxu0 %v1687_v6  ;;  %v1754_v6 = vld [vmem:[%s1954_s8 + $0x280] ss:$8 sps:$4 sm:$0xff]  }
  0x64   : > { %500 = vmatprep.subr.bf16.mxu0 %v1691_v11 }
  0x65   : > { %819 = vmatpush2.bf16.msra.mxu1 %v1690_v12 }
  0x66   : > { %820 = vmatprep.subr.bf16.mxu1 %v1694_v13 }
  0x67   : > { %501 = vmatpush2.bf16.msra.mxu0 %v1693_v14 }
  0x68   : > { %502 = vmatprep.subr.bf16.mxu0 %v1697_v18 }
  0x69   : > { %821 = vmatpush2.bf16.msra.mxu1 %v1696_v21 }
  0x6a   : > { %822 = vmatprep.subr.bf16.mxu1 %v1700_v22 }
  0x6b   : > { %503 = vmatpush2.bf16.msra.mxu0 %v1699_v24 }
  0x6c   : > { %504 = vmatprep.subr.bf16.mxu0 %v1703_v25 }
  0x6d   : > { %823 = vmatpush2.bf16.msra.mxu1 %v1702_v27 }
  0x6e   : > { %824 = vmatprep.subr.bf16.mxu1 %v1706_v28 }
  0x6f   : > { %505 = vmatpush2.bf16.msra.mxu0 %v1705_v30 }
  0x70   : > { %1081 = vmatprep.subr.bf16.mxu0 %v1711_v31 }
  0x71   : > { %825 = vmatpush2.bf16.msra.mxu1 %v1708_v32 }
  0x72   : > { %507 = vmatmul.mubr.bf16.vlgmr.msra.gmra.mxu0 %v304_v33 }
  0x73   : > { %1082 = vmatpush1.bf16.msra.mxu0 %v1709_v34  ;;  %1113 = vmatprep.mubr.bf16.mxu0 %v918_v46 }
  0x74   : > { %827 = vmatmul.mubr.bf16.vlgmr.msra.gmra.mxu1 %v624_v35  ;;  %1083 = vmatprep.subr.bf16.mxu0 %v1714_v36 }
  0x77   : > { %1084 = vmatpush1.bf16.msra.mxu0 %v1712_v37 }
  0x78   : > { %1085 = vmatprep.subr.bf16.mxu0 %v1717_v39 }
  0x7b   : > { %1086 = vmatpush1.bf16.msra.mxu0 %v1715_v41 }
  0x7c   : > { %1087 = vmatprep.subr.bf16.mxu0 %v1720_v43 }
  0x7f   : > { %1088 = vmatpush1.bf16.msra.mxu0 %v1718_v45 }
  0x80   : > { %1089 = vmatprep.subr.bf16.mxu0 %v1723_v47 }
  0x83   : > { %1090 = vmatpush1.bf16.msra.mxu0 %v1721_v48 }
  0x84   : > { %1091 = vmatprep.subr.bf16.mxu0 %v1726_v49 }
  0x87   : > { %1092 = vmatpush1.bf16.msra.mxu0 %v1724_v50 }
  0x88   : > { %1093 = vmatprep.subr.bf16.mxu0 %v1729_v51 }
  0x8b   : > { %1094 = vmatpush1.bf16.msra.mxu0 %v1727_v52 }
  0x8c   : > { %1095 = vmatprep.subr.bf16.mxu0 %v1732_v53 }
  0x8f   : > { %1096 = vmatpush1.bf16.msra.mxu0 %v1730_v54 }
  0x90   : > { %1097 = vmatprep.subr.bf16.mxu0 %v1735_v55 }
  0x93   : > { %1098 = vmatpush2.bf16.msra.mxu0 %v1733_v56 }
  0x94   : > { %1099 = vmatprep.subr.bf16.mxu0 %v1738_v57 }
  0x97   : > { %1100 = vmatpush2.bf16.msra.mxu0 %v1736_v58 }
  0x98   : > { %1101 = vmatprep.subr.bf16.mxu0 %v1741_v59 }
  0x9b   : > { %1102 = vmatpush2.bf16.msra.mxu0 %v1739_v60 }
  0x9c   : > { %1103 = vmatprep.subr.bf16.mxu0 %v1744_v61 }
  0x9f   : > { %1104 = vmatpush2.bf16.msra.mxu0 %v1742_v62 }
  0xa0   : > { %1105 = vmatprep.subr.bf16.mxu0 %v1747_v63 }
  0xa3   : > { %1106 = vmatpush2.bf16.msra.mxu0 %v1745_v0 }
  0xa4   : > { %1107 = vmatprep.subr.bf16.mxu0 %v1750_v1 }
  0xa7   : > { %1108 = vmatpush2.bf16.msra.mxu0 %v1748_v2 }
  0xa8   : > { %1109 = vmatprep.subr.bf16.mxu0 %v1753_v3 }
  0xab   : > { %1110 = vmatpush2.bf16.msra.mxu0 %v1751_v4 }
  0xac   : > { %1111 = vmatprep.subr.bf16.mxu0 %v1756_v5 }
  0xaf   : > { %1112 = vmatpush2.bf16.msra.mxu0 %v1754_v6 }
  0xb2   : > { %1114 = vmatmul.mubr.bf16.vlgmr.msra.gmra.mxu0 %v911_v7 }
 0x132   : > { %v508_v9 = vpop.f32.mrf.mxu0 }
 0x134   : > { %v510_v10 = vpop.f32.mrf.mxu0  ;;  %v828_v11 = vpop.f32.mrf.mxu1 }
 0x135   : > { %v517_v18 = vcombine.low %v508_v9, %v510_v10 }
 0x136   : > { %v512_v12 = vpop.f32.mrf.mxu0  ;;  %v830_v13 = vpop.f32.mrf.mxu1 }
 0x137   : > { %v519_v21 = vadd.f32 %v517_v18, %v234_v19  ;;  %v837_v22 = vcombine.low %v828_v11, %v830_v13 }
 0x138   : > { %v513_v14 = vpop.f32.mrf.mxu0  ;;  %v832_v15 = vpop.f32.mrf.mxu1 }
 0x139   : > { %v839_v25 = vadd.f32 %v837_v22, %v519_v21 }
 0x13a   : > { %v833_v16 = vpop.f32.mrf.mxu1 }
 0x172   : > { %v1115_v23 = vpop.f32.mrf.mxu0 }
 0x174   : > { %v1117_v24 = vpop.f32.mrf.mxu0 }
 0x175   : > { %v1124_v26 = vcombine.low %v1115_v23, %v1117_v24  ;;  %1131 = sbr.rel (%p1527_p1) target bundleno = 402 (0x192), region = 81 }
 0x176   : > { %v1119_v27 = vpop.f32.mrf.mxu0 }
 0x177   : > { %v1126_v28 = vadd.f32 %v1124_v26, %v839_v25 }
 0x178   : > { %v1120_v29 = vpop.f32.mrf.mxu0 }
 0x179   : > { %1127 = vst [vmem:[#allocation2] sm:$0xff] %v1126_v28 }
 0x17a   : > { %v1133_v30 = vld [vmem:[%s2131_s2] sm:$0x3]  ;;  %v1137_v31 = vsub.s32 0, %v1956_v8  ;;  %v1141_v32 = vsub.s32 1, %v1956_v8  ;;  %v1831_v35 = vmov 1983009808  }
 0x17b   : > { %v1149_v36 = vunpack.c.l.s4 %v1831_v35 }
 0x17c   : > { %v1138_v33 = vrot.slane %v1133_v30, %v1137_v31  ;;  %v1142_v34 = vrot.slane %v1133_v30, %v1141_v32 }
 0x17d   : > { %v1150_v39 = vunpack.c.0.s8 %v1149_v36 }
 0x17e   : > { %v1143_v38 = vcombine.low %v1138_v33, %v1142_v34 }
 0x17f   : > { %v1153_v40 = vsub.s32 %v1150_v39, %v1956_v8 }
 0x180   : > { %v1132_v37 = vld [vmem:[#allocation2] sm:$0xff] }
 0x181   : > { %v1145_v20 = vadd.f32 %v1143_v38, %v1132_v37 }
 0x183   : > { %v1146_v41 = vmax.f32 %v1145_v20, 0.0 }
 0x185   : > { %v1154_v42 = vrot.slane %v1146_v41, %v1153_v40 }
 0x187   : > { %v1162_v43 = vrot.slane %v1154_v42, %v1153_v40  ;;  %v1155_v44 = vcombine.high %v1154_v42, %v1154_v42 }
 0x189   : > { %v1163_v45 = vcombine.high %v1162_v43, %v1162_v43  ;;  %v1170_v46 = vrot.slane %v1155_v44, %v1153_v40 }
 0x18b   : > { %v1528_v47 = vpack.c.bf16 %v1163_v45, %v1162_v43  ;;  %v1171_v48 = vcombine.high %v1170_v46, %v1170_v46 }
 0x18d   : > { %v1191_v49 = vrot.slane %v1528_v47, %v1965_v17  ;;  %v1529_v50 = vpack.c.bf16 %v1171_v48, %v1170_v46 }
 0x18f   : > { %1530 = vst.sshfl [vmem:[%s1945_s30] sm:$0x5 pattern:$0x73625140] %v1191_v49  ;;  %v1206_v51 = vrot.slane %v1529_v50, %v1965_v17 }
 0x191   : > { %1531 = vst.sshfl [vmem:[%s1945_s30 + $0x2] sm:$0x5 pattern:$0x73625140] %v1206_v51 }
 0x192 PF: > { %1224 = sbr.rel (!%p1922_p9) target bundleno = 410 (0x19a), region = 85  ;;  %s1533_s16 = sshll.u32 (%p1922_p9), %s1815_s17, 1 }
 0x193   : > { %s1226_s27 = scalar_lea.vmem (%p1922_p9), %s2132_s3, %s1533_s16 }
 0x196   : > { %v1243_v8 = vld [vmem:[%s1945_s30] sm:$0x3] (%p1922_p9) }
 0x197   : > { %1244 = vst [vmem:[%s1226_s27] sm:$0x3] %v1243_v8 }
 0x198   : > { %v1245_v52 = vld [vmem:[%s1945_s30 + $0x2] sm:$0x3] }
 0x199   : > { %1246 = vst [vmem:[%s1226_s27 + $0x4] sm:$0x3] %v1245_v52 }
 0x19a PF: > { %s13_s20 = sadd.s32 1, %s1827_s20   ;;  %s2135_s12 = smov %s1799_s13 }
 0x19b   : > { %p10_p2 = scmp.ge.s32.totalorder %s13_s20, 8   ;;  %s2136_s13 = smov %s1927_s5 }
 0x19c   : > { %s2137_s14 = smov %s1807_s15  ;;  %s2138_s15 = smov %s1930_s6 }
 0x19d   : > { %s2139_s16 = smov %s1819_s18  ;;  %s2140_s17 = smov %s1823_s19 }
 0x19e   : > { %s2141_s18 = smov %s2144_s21  ;;  %s2142_s19 = smov %s2148_s22 }
 0x19f   :  { %12 = sbr.rel (!%p10_p2) target bundleno = 5 (0x5), region = 153 }

// kernel: resnet_encoder_stride1.29
= control target key start
LH: loop header
LB: loop body
LE: loop exit
PB: predicated region body
PF: predicated region fallthrough
CT: control target
= control target key end

     0   :  { %s1980_s15 = smov 0   ;;  %s1982_s16 = smov 0   ;;  %s2276_s0 = inlined_call_operand.vmem [shape: bf16[2,4,4,256], index: 0, kind: input, shape index: {}]   ;;  %s2277_s1 = inlined_call_operand.vmem [shape: bf16[9,256,256], index: 1, kind: input, shape index: {}]   ;;  %s2278_s2 = inlined_call_operand.vmem [shape: f32[1,256], index: 2, kind: input, shape index: {}]   ;;  %s2279_s3 = inlined_call_operand.vmem [shape: bf16[2,2,2,256], index: 3, kind: input, shape index: {}]   ;;  %s2280_s4 = inlined_call_operand.vmem [shape: bf16[2,2,2,256], index: 4, kind: output, shape index: {}]  }
   0x1   :  { %s1984_s17 = smov 0   ;;  %s1986_s18 = smov 0  }
   0x2   :  { %s1988_s19 = smov 0   ;;  %s1990_s20 = smov 0  }
   0x3   :  { %s1992_s21 = smov 0   ;;  %s1994_s22 = smov 0  }
   0x4   :  { %s1996_s23 = smov 0  }
   0x5 LB: > { %s1463_s24 = sadd.s32 4294967295, %s1950_s23   ;;  %s23_s25 = sadd.s32 1, %s1942_s21  ;;  %s1950_s23 = sphi %s1996_s23, %s14_s23   ;;  %s1946_s22 = sphi %s1994_s22, %s2294_s22   ;;  %s1942_s21 = sphi %s1992_s21, %s2293_s21   ;;  %s1938_s20 = sphi %s1990_s20, %s2292_s20   ;;  %s1934_s19 = sphi %s1988_s19, %s2291_s19   ;;  %s1930_s18 = sphi %s1986_s18, %s2290_s18   ;;  %s1926_s17 = sphi %s1984_s17, %s2289_s17   ;;  %s1922_s16 = sphi %s1982_s16, %s2288_s16   ;;  %s1918_s15 = sphi %s1980_s15, %s2287_s15  }
   0x6   : > { %p24_p0 = scmp.ge.s32.totalorder %s23_s25, 3  ;;  %s26_s26 = sadd.s32 1, %s1946_s22 }
   0x7   : > { %s30_s27 = sadd.s32 %s1942_s21, %s1946_s22  ;;  %s35_s28 = sadd.s32 1, %s1930_s18 }
   0x8   : > { %s2296_s25 = smov (%p24_p0, %s23_s25), 0  ;;  %s2298_s26 = smov (!%p24_p0, %s26_s26), %s1946_s22 }
   0x9   : > { %p42_p1 = scmp.ne.s32.totalorder %s1930_s18, %s1926_s17  ;;  %p43_p2 = scmp.eq.s32.totalorder %s1950_s23, 0 }
   0xa   : > { %p28_p3 = scmp.ge.s32.totalorder %s2298_s26, 2  ;;  %s103_s29 = sadd.s32 1, %s1922_s16 }
   0xb   : > { %p2038_p4 = por %p43_p2, %p42_p1  ;;  %p110_p5 = scmp.ne.s32.totalorder %s1922_s16, %s1918_s15 }
   0xc   : > { %s2300_s26 = smov (%p28_p3, %s2298_s26), 0  ;;  %p140_p7 = scmp.eq.s32.totalorder %s1463_s24, 5 }
   0xd   : > { %2283 = sst [smem:[#allocation6_spill]] %s2300_s26  ;;  %p2046_p6 = por %p110_p5, %p43_p2 }
   0xe   : > { %s31_s6 = sadd.s32 %s2300_s26, %s2296_s25  ;;  %s100_s7 = ssub.s32 %s1946_s22, %s2300_s26 }
   0xf   : > { %s32_s8 = ssub.s32 %s30_s27, %s31_s6  ;;  %p101_p8 = scmp.eq.s32.totalorder %s100_s7, 0 }
  0x10   : > { %p33_p9 = scmp.eq.s32.totalorder %s32_s8, 0  ;;  %p2054_p10 = por %p140_p7, %p110_p5 }
  0x11   : > { %s2059_s10 = scalar_select %p101_p8, %s1922_s16, %s103_s29  }
  0x12   : > { %s2062_s11 = scalar_select %p33_p9, %s1930_s18, %s35_s28  }
  0x13   : > { %p1466_p11 = scmp.ge.s32.totalorder %s1950_s23, 6 }
  0x15   : > { %168 = sbr.rel (%p1466_p11) target bundleno = 36 (0x24), region = 24 }
  0x1a   : > { %171 = sbr.rel (!%p2038_p4) target bundleno = 31 (0x1f), region = 28  ;;  %s173_s12 = sand.u32 (%p2038_p4), 1, %s1930_s18  }
  0x1b   : > { %s1659_s13 = sshll.u32 (%p2038_p4), %s30_s27, 2  ;;  %s1467_s14 = sshll.u32 (%p2038_p4), %s173_s12, 3 }
  0x1c   : > { %s179_s7 = scalar_lea.vmem (%p2038_p4), %s2276_s0, %s1659_s13  ;;  %s175_s29 = scalar_lea.vmem (%p2038_p4), [#allocation3], %s1467_s14 }
  0x1d   : > { %v196_v0 = vld [vmem:[%s179_s7] sm:$0xf] (%p2038_p4)  ;;  %v198_v1 = vld [vmem:[%s179_s7 + $0x10] sm:$0xf] (%p2038_p4) }
  0x1e   : > { %197 = vst [vmem:[%s175_s29] sm:$0xf] (%p2038_p4), %v196_v0  ;;  %199 = vst [vmem:[%s175_s29 + $0x4] sm:$0xf] (%p2038_p4), %v198_v1 }
  0x1f PF: > { %227 = sbr.rel (!%p2046_p6) target bundleno = 36 (0x24), region = 69  ;;  %s229_s28 = sand.u32 (%p2046_p6), 1, %s1922_s16  }
  0x20   : > { %s1471_s30 = sshll.u32 (%p2046_p6), %s1946_s22, 1  ;;  %s1470_s8 = sshll.u32 (%p2046_p6), %s229_s28, 2 }
  0x21   : > { %s233_s26 = scalar_lea.vmem (%p2046_p6), %s2279_s3, %s1471_s30  ;;  %s231_s13 = scalar_lea.vmem (%p2046_p6), [#allocation4], %s1470_s8 }
  0x22   : > { %v250_v2 = vld [vmem:[%s233_s26] sm:$0x3] (%p2046_p6)  ;;  %v252_v3 = vld [vmem:[%s233_s26 + $0x4] sm:$0x3] (%p2046_p6) }
  0x23   : > { %251 = vst [vmem:[%s231_s13] sm:$0x3] (%p2046_p6), %v250_v2  ;;  %253 = vst [vmem:[%s231_s13 + $0x2] sm:$0x3] (%p2046_p6), %v252_v3 }
  0x24 PF: > { %p1472_p12 = scmp.ge.s32.totalorder %s1950_s23, 1  ;;  %p272_p13 = scmp.lt.s32.totalorder %s1950_s23, 7 }
  0x26   : > { %p273_p0 = pnand %p1472_p12, %p272_p13 }
  0x27   : > { %s279_s5 = sand.u32 (!%p273_p0), 1, %s1926_s17   ;;  %s286_s14 = sand.u32 (!%p273_p0), 1, %s1918_s15  }
  0x28   : > { %276 = sbr.rel (%p273_p0) target bundleno = 419 (0x1a3), region = 103  ;;  %s1473_s24 = sshll.u32 (!%p273_p0), %s279_s5, 3 }
  0x29   : > { %s2082_s6 = sshll.u32 (!%p273_p0), %s286_s14, 2  ;;  %s2084_s26 = scalar_lea.vmem (!%p273_p0), [#allocation3], %s1473_s24 }
  0x2a   : > { %s288_s7 = scalar_lea.vmem (!%p273_p0), [#allocation4], %s2082_s6  ;;  %s2088_s29 = scalar_lea.vmem (!%p273_p0), [#allocation5], %s2082_s6 }
  0x2b   : > { %p1476_p1 = scmp.ne.s32.totalorder (!%p273_p0), %s1934_s19, 0 }
  0x2d   : > { %318 = sbr.rel (%p1476_p1) target bundleno = 52 (0x34), region = 115 }
  0x32   : > { %v1952_v4 = vmov 0.0  }
  0x33   : > { %319 = vst [vmem:[#allocation2] sm:$0xff] %v1952_v4 }
  0x34 PF: > { %s1660_s15 = smul.u32 768, %s1934_s19  ;;  %v1477_v5 = vld.sshfl [vmem:[%s2084_s26] sm:$0x3 pattern:$0x75316420]  ;;  %v379_v6 = vlaneseq  ;;  %p1650_p2 = scmp.ne.s32.totalorder %s1934_s19, 2 }
  0x35   : > { %v1478_v7 = vld.sshfl [vmem:[%s2084_s26 + $0x4] sm:$0x3 pattern:$0x75316420]  ;;  %v1953_v8 = vmov 1966171168  }
  0x36   : > { %s2097_s30 = scalar_lea.vmem %s2277_s1, %s1660_s15  ;;  %v377_v9 = vunpack.c.l.s4 %v1953_v8  ;;  %v2099_v10 = vshrl.u32 %v379_v6, 7  ;;  %v375_v13 = vcombine.low %v1477_v5, %v1478_v7  ;;  %vm626_vm0 = vsmask.f32 256 }
  0x37   : > { %v1736_v11 = vld [vmem:[%s2097_s30 + $0x74] ss:$8 sps:$4 sm:$0xff]   ;;  %v1738_v12 = vld [vmem:[%s2097_s30 + $0x70] ss:$8 sps:$4 sm:$0xff]   ;;  %v1742_v17 = vld [vmem:[%s2097_s30 + $0x64] ss:$8 sps:$4 sm:$0xff]  }
  0x38   : > { %v378_v14 = vunpack.c.0.s8 %v377_v9  ;;  %560 = vmatprep.subr.bf16.mxu0 %v1736_v11  ;;  %v1739_v15 = vld [vmem:[%s2097_s30 + $0x174] ss:$8 sps:$4 sm:$0xff]   ;;  %v1741_v16 = vld [vmem:[%s2097_s30 + $0x170] ss:$8 sps:$4 sm:$0xff]   ;;  %v1744_v18 = vld [vmem:[%s2097_s30 + $0x60] ss:$8 sps:$4 sm:$0xff]  }
  0x39   : > { %561 = vmatpush1.bf16.msra.mxu0 %v1738_v12  ;;  %880 = vmatprep.subr.bf16.mxu1 %v1739_v15  ;;  %v1745_v20 = vld [vmem:[%s2097_s30 + $0x164] ss:$8 sps:$4 sm:$0xff]   ;;  %v1747_v21 = vld [vmem:[%s2097_s30 + $0x160] ss:$8 sps:$4 sm:$0xff]   ;;  %v1748_v23 = vld [vmem:[%s2097_s30 + $0x54] ss:$8 sps:$4 sm:$0xff]  }
  0x3a   : > { %v2108_v19 = vsub.s32 %v378_v14, %v2099_v10  ;;  %881 = vmatpush1.bf16.msra.mxu1 %v1741_v16  ;;  %562 = vmatprep.subr.bf16.mxu0 %v1742_v17  ;;  %v1750_v24 = vld [vmem:[%s2097_s30 + $0x50] ss:$8 sps:$4 sm:$0xff]   ;;  %v1751_v25 = vld [vmem:[%s2097_s30 + $0x154] ss:$8 sps:$4 sm:$0xff]   ;;  %v1754_v27 = vld [vmem:[%s2097_s30 + $0x44] ss:$8 sps:$4 sm:$0xff]  }
  0x3b   : > { %882 = vmatprep.subr.bf16.mxu1 %v1745_v20  ;;  %v1753_v28 = vld [vmem:[%s2097_s30 + $0x150] ss:$8 sps:$4 sm:$0xff]   ;;  %v1757_v30 = vld [vmem:[%s2097_s30 + $0x144] ss:$8 sps:$4 sm:$0xff]   ;;  %v1756_v31 = vld [vmem:[%s2097_s30 + $0x40] ss:$8 sps:$4 sm:$0xff]  }
  0x3c   : > { %v2113_v22 = vrot.slane %v375_v13, %v2108_v19  ;;  %v1760_v32 = vld [vmem:[%s2097_s30 + $0x34] ss:$8 sps:$4 sm:$0xff]   ;;  %v1759_v33 = vld [vmem:[%s2097_s30 + $0x140] ss:$8 sps:$4 sm:$0xff]   ;;  %v1762_v35 = vld [vmem:[%s2097_s30 + $0x30] ss:$8 sps:$4 sm:$0xff]  }
  0x3d   : > { %563 = vmatpush1.bf16.msra.mxu0 %v1744_v18  ;;  %v1763_v34 = vld [vmem:[%s2097_s30 + $0x134] ss:$8 sps:$4 sm:$0xff]   ;;  %v1766_v36 = vld [vmem:[%s2097_s30 + $0x24] ss:$8 sps:$4 sm:$0xff]   ;;  %v1765_v37 = vld [vmem:[%s2097_s30 + $0x130] ss:$8 sps:$4 sm:$0xff]  }
  0x3e   : > { %v383_v26 = vcombine.high %v2113_v22, %v2113_v22  ;;  %564 = vmatprep.subr.bf16.mxu0 %v1748_v23  ;;  %883 = vmatpush1.bf16.msra.mxu1 %v1747_v21  ;;  %v1769_v38 = vld [vmem:[%s2097_s30 + $0x124] ss:$8 sps:$4 sm:$0xff]   ;;  %v1768_v39 = vld [vmem:[%s2097_s30 + $0x20] ss:$8 sps:$4 sm:$0xff]   ;;  %v1772_v40 = vld [vmem:[%s2097_s30 + $0x14] ss:$8 sps:$4 sm:$0xff]  }
  0x3f   : > { %884 = vmatprep.subr.bf16.mxu1 %v1751_v25  ;;  %v1771_v41 = vld [vmem:[%s2097_s30 + $0x120] ss:$8 sps:$4 sm:$0xff]   ;;  %v1775_v42 = vld [vmem:[%s2097_s30 + $0x114] ss:$8 sps:$4 sm:$0xff]   ;;  %v1774_v43 = vld [vmem:[%s2097_s30 + $0x10] ss:$8 sps:$4 sm:$0xff]  }
  0x40   : > { %v397_v29 = vrot.slane %v383_v26, %v2108_v19  ;;  %v1778_v44 = vld [vmem:[%s2097_s30 + $0x4] ss:$8 sps:$4 sm:$0xff]   ;;  %v1777_v45 = vld [vmem:[%s2097_s30 + $0x110] ss:$8 sps:$4 sm:$0xff]   ;;  %v1780_v47 = vld [vmem:[%s2097_s30] ss:$8 sps:$4 sm:$0xff]  }
  0x41   : > { %565 = vmatpush1.bf16.msra.mxu0 %v1750_v24  ;;  %v1781_v46 = vld [vmem:[%s2097_s30 + $0x104] ss:$8 sps:$4 sm:$0xff]   ;;  %v1784_v48 = vld [vmem:[%s2097_s30 + $0xf4] ss:$8 sps:$4 sm:$0xff]   ;;  %v1783_v49 = vld [vmem:[%s2097_s30 + $0x100] ss:$8 sps:$4 sm:$0xff]  }
  0x42   : > { %592 = vmatprep.mubr.bf16.mxu0 %v397_v29  ;;  %566 = vmatprep.subr.bf16.mxu0 %v1754_v27  ;;  %v1787_v50 = vld [vmem:[%s2097_s30 + $0x1f4] ss:$8 sps:$4 sm:$0xff]   ;;  %v1786_v51 = vld [vmem:[%s2097_s30 + $0xf0] ss:$8 sps:$4 sm:$0xff]   ;;  %v1790_v52 = vld [vmem:[%s2097_s30 + $0xe4] ss:$8 sps:$4 sm:$0xff]  }
  0x43   : > { %885 = vmatpush1.bf16.msra.mxu1 %v1753_v28  ;;  %v1789_v53 = vld [vmem:[%s2097_s30 + $0x1f0] ss:$8 sps:$4 sm:$0xff]   ;;  %v1793_v54 = vld [vmem:[%s2097_s30 + $0x1e4] ss:$8 sps:$4 sm:$0xff]   ;;  %v1792_v55 = vld [vmem:[%s2097_s30 + $0xe0] ss:$8 sps:$4 sm:$0xff]  }
  0x44   : > { %886 = vmatprep.subr.bf16.mxu1 %v1757_v30  ;;  %v1796_v56 = vld [vmem:[%s2097_s30 + $0xd4] ss:$8 sps:$4 sm:$0xff]   ;;  %v1795_v57 = vld [vmem:[%s2097_s30 + $0x1e0] ss:$8 sps:$4 sm:$0xff]   ;;  %vm627_vm1 = vsmask.f32 1284 }
  0x45   : > { %567 = vmatpush1.bf16.msra.mxu0 %v1756_v31  ;;  %v1799_v58 = vld [vmem:[%s2097_s30 + $0x1d4] ss:$8 sps:$4 sm:$0xff]   ;;  %v1513_v59 = vld.sshfl [vmem:[%s2084_s26] sm:$0x33 pattern:$0x75316420]  ;;  %vm628_vm6 = vmor %vm626_vm0, %vm627_vm1 }
  0x46   : > { %568 = vmatprep.subr.bf16.mxu0 %v1760_v32  ;;  %v1798_v60 = vld [vmem:[%s2097_s30 + $0xd0] ss:$8 sps:$4 sm:$0xff]   ;;  %vm629_vm2 = vsmask.f32 2312  ;;  %v1802_v61 = vld [vmem:[%s2097_s30 + $0xc4] ss:$8 sps:$4 sm:$0xff]   ;;  %v617_v2 = vcombine.high %v1513_v59, %v1513_v59 }
  0x47   : > { %887 = vmatpush1.bf16.msra.mxu1 %v1759_v33  ;;  %vm631_vm3 = vsmask.f32 3340  ;;  %v1801_v62 = vld [vmem:[%s2097_s30 + $0x1d0] ss:$8 sps:$4 sm:$0xff]   ;;  %vm633_vm4 = vsmask.f32 4368  ;;  %vm630_vm7 = vmor %vm628_vm6, %vm629_vm2 }
  0x48   : > { %888 = vmatprep.subr.bf16.mxu1 %v1763_v34  ;;  %v1805_v63 = vld [vmem:[%s2097_s30 + $0x1c4] ss:$8 sps:$4 sm:$0xff]   ;;  %vm635_vm5 = vsmask.f32 5396  ;;  %v1804_v0 = vld [vmem:[%s2097_s30 + $0xc0] ss:$8 sps:$4 sm:$0xff]   ;;  %vm632_vm9 = vmor %vm630_vm7, %vm631_vm3 }
  0x49   : > { %569 = vmatpush1.bf16.msra.mxu0 %v1762_v35  ;;  %v1808_v1 = vld [vmem:[%s2097_s30 + $0xb4] ss:$8 sps:$4 sm:$0xff]   ;;  %v1807_v4 = vld [vmem:[%s2097_s30 + $0x1c0] ss:$8 sps:$4 sm:$0xff]   ;;  %vm637_vm8 = vsmask.f32 6424  ;;  %vm634_vm11 = vmor %vm632_vm9, %vm633_vm4  ;;  %v390_v35 = vrot.slane %v2113_v22, %v2108_v19 }
  0x4a   : > { %570 = vmatprep.subr.bf16.mxu0 %v1766_v36  ;;  %v1514_v3 = vld.sshfl [vmem:[%s2084_s26 + $0x4] sm:$0x33 pattern:$0x75316420]  ;;  %vm639_vm10 = vsmask.f32 7452  ;;  %vm636_vm12 = vmor %vm634_vm11, %vm635_vm5 }
  0x4b   : > { %889 = vmatpush1.bf16.msra.mxu1 %v1765_v37  ;;  %v625_v5 = vcombine.high %v1514_v3, %v1514_v3  ;;  %v1811_v6 = vld [vmem:[%s2097_s30 + $0x1b4] ss:$8 sps:$4 sm:$0xff]   ;;  %v642_v7 = vshrl.u32 %v1513_v59, 16  ;;  %v1810_v8 = vld [vmem:[%s2097_s30 + $0xb0] ss:$8 sps:$4 sm:$0xff]   ;;  %v647_v9 = vshll.u32 %v617_v2, 16  ;;  %vm638_vm13 = vmor %vm636_vm12, %vm637_vm8 }
  0x4c   : > { %890 = vmatprep.subr.bf16.mxu1 %v1769_v38  ;;  %v651_v11 = vshrl.u32 %v1514_v3, 16  ;;  %v1814_v13 = vld [vmem:[%s2097_s30 + $0xa4] ss:$8 sps:$4 sm:$0xff]   ;;  %v1813_v14 = vld [vmem:[%s2097_s30 + $0x1b0] ss:$8 sps:$4 sm:$0xff]   ;;  %vm640_vm14 = vmor %vm638_vm13, %vm639_vm10 }
  0x4d   : > { %571 = vmatpush1.bf16.msra.mxu0 %v1768_v39  ;;  %v656_v12 = vshll.u32 %v625_v5, 16  ;;  %v1817_v15 = vld [vmem:[%s2097_s30 + $0x1a4] ss:$8 sps:$4 sm:$0xff]   ;;  %v1816_v16 = vld [vmem:[%s2097_s30 + $0xa0] ss:$8 sps:$4 sm:$0xff]   ;;  %v649_v17 = vsel %vm640_vm14, %v642_v7, %v647_v9 }
  0x4e   : > { %572 = vmatprep.subr.bf16.mxu0 %v1772_v40  ;;  %v1820_v20 = vld [vmem:[%s2097_s30 + $0x94] ss:$8 sps:$4 sm:$0xff]   ;;  %v1819_v23 = vld [vmem:[%s2097_s30 + $0x1a0] ss:$8 sps:$4 sm:$0xff]   ;;  %v1822_v26 = vld [vmem:[%s2097_s30 + $0x90] ss:$8 sps:$4 sm:$0xff]  }
  0x4f   : > { %891 = vmatpush1.bf16.msra.mxu1 %v1771_v41  ;;  %v658_v18 = vsel %vm640_vm14, %v651_v11, %v656_v12  ;;  %v1823_v24 = vld [vmem:[%s2097_s30 + $0x194] ss:$8 sps:$4 sm:$0xff]   ;;  %v1826_v27 = vld [vmem:[%s2097_s30 + $0x84] ss:$8 sps:$4 sm:$0xff]   ;;  %v1825_v29 = vld [vmem:[%s2097_s30 + $0x190] ss:$8 sps:$4 sm:$0xff]  }
  0x50   : > { %892 = vmatprep.subr.bf16.mxu1 %v1775_v42  ;;  %v695_v21 = vcombine.low %v649_v17, %v658_v18  ;;  %v1829_v30 = vld [vmem:[%s2097_s30 + $0x184] ss:$8 sps:$4 sm:$0xff]   ;;  %v1828_v32 = vld [vmem:[%s2097_s30 + $0x80] ss:$8 sps:$4 sm:$0xff]   ;;  %v1834_v33 = vld [vmem:[%s2097_s30 + $0x274] ss:$8 sps:$4 sm:$0xff]  }
  0x51   : > { %573 = vmatpush1.bf16.msra.mxu0 %v1774_v43  ;;  %v1831_v34 = vld [vmem:[%s2097_s30 + $0x180] ss:$8 sps:$4 sm:$0xff]   ;;  %v1832_v36 = vld [vmem:[%s2097_s30 + $0x270] ss:$8 sps:$4 sm:$0xff]   ;;  %v1837_v38 = vld [vmem:[%s2097_s30 + $0x264] ss:$8 sps:$4 sm:$0xff]  }
  0x52   : > { %574 = vmatprep.subr.bf16.mxu0 %v1778_v44  ;;  %v702_v25 = vrot.slane %v695_v21, %v2108_v19  ;;  %v1835_v39 = vld [vmem:[%s2097_s30 + $0x260] ss:$8 sps:$4 sm:$0xff]   ;;  %v1840_v41 = vld [vmem:[%s2097_s30 + $0x254] ss:$8 sps:$4 sm:$0xff]   ;;  %v1838_v43 = vld [vmem:[%s2097_s30 + $0x250] ss:$8 sps:$4 sm:$0xff]  }
  0x53   : > { %893 = vmatpush1.bf16.msra.mxu1 %v1777_v45  ;;  %v1582_v40 = vld.sshfl [vmem:[%s2084_s26] sm:$0x30 pattern:$0x75316420]  ;;  %v1843_v45 = vld [vmem:[%s2097_s30 + $0x244] ss:$8 sps:$4 sm:$0xff]  }
  0x54   : > { %894 = vmatprep.subr.bf16.mxu1 %v1781_v46  ;;  %v703_v28 = vcombine.high %v702_v25, %v702_v25  ;;  %v710_v37 = vrot.slane %v702_v25, %v2108_v19  ;;  %v1583_v22 = vld.sshfl [vmem:[%s2084_s26 + $0x4] sm:$0x30 pattern:$0x75316420]  ;;  %v1868_v2 = vld [vmem:[%s2097_s30 + $0x2b0] ss:$8 sps:$4 sm:$0xff]  }
  0x55   : > { %575 = vmatpush1.bf16.msra.mxu0 %v1780_v47  ;;  %v1617_v42 = vcombine.high %v1582_v40, %v1583_v22  ;;  %v1841_v47 = vld [vmem:[%s2097_s30 + $0x240] ss:$8 sps:$4 sm:$0xff]   ;;  %v1861_v59 = vld [vmem:[%s2097_s30 + $0x2e4] ss:$8 sps:$4 sm:$0xff]   ;;  %v1876_v5 = vld [vmem:[%s2097_s30 + $0x294] ss:$8 sps:$4 sm:$0xff]  }
  0x56   : > { %576 = vmatprep.subr.bf16.mxu0 %v1784_v48  ;;  %v717_v31 = vrot.slane %v703_v28, %v2108_v19  ;;  %v1873_v3 = vld [vmem:[%s2097_s30 + $0x2a4] ss:$8 sps:$4 sm:$0xff]  }
  0x57   : > { %895 = vmatpush1.bf16.msra.mxu1 %v1783_v49  ;;  %v989_v44 = vrot.slane %v1617_v42, %v2108_v19  ;;  %v1846_v49 = vld [vmem:[%s2097_s30 + $0x234] ss:$8 sps:$4 sm:$0xff]   ;;  %v1879_v7 = vld [vmem:[%s2097_s30 + $0x284] ss:$8 sps:$4 sm:$0xff]  }
  0x58   : > { %896 = vmatprep.subr.bf16.mxu1 %v1787_v50  ;;  %912 = vmatprep.mubr.bf16.mxu1 %v717_v31  ;;  %v1844_v50 = vld [vmem:[%s2097_s30 + $0x230] ss:$8 sps:$4 sm:$0xff]   ;;  %v320_v21 = vld [vmem:[#allocation2] sm:$0xff] }
  0x59   : > { %577 = vmatpush2.bf16.msra.mxu0 %v1786_v51  ;;  %v990_v46 = vcombine.high %v989_v44, %v989_v44  ;;  %v1849_v51 = vld [vmem:[%s2097_s30 + $0x224] ss:$8 sps:$4 sm:$0xff]   ;;  %v997_v9 = vrot.slane %v989_v44, %v2108_v19 }
  0x5a   : > { %578 = vmatprep.subr.bf16.mxu0 %v1790_v52  ;;  %v1847_v52 = vld [vmem:[%s2097_s30 + $0x220] ss:$8 sps:$4 sm:$0xff]  }
  0x5b   : > { %897 = vmatpush2.bf16.msra.mxu1 %v1789_v53  ;;  %v1004_v48 = vrot.slane %v990_v46, %v2108_v19  ;;  %v1852_v53 = vld [vmem:[%s2097_s30 + $0x214] ss:$8 sps:$4 sm:$0xff]  }
  0x5c   : > { %898 = vmatprep.subr.bf16.mxu1 %v1793_v54  ;;  %v1850_v54 = vld [vmem:[%s2097_s30 + $0x210] ss:$8 sps:$4 sm:$0xff]  }
  0x5d   : > { %579 = vmatpush2.bf16.msra.mxu0 %v1792_v55  ;;  %v1855_v55 = vld [vmem:[%s2097_s30 + $0x204] ss:$8 sps:$4 sm:$0xff]  }
  0x5e   : > { %580 = vmatprep.subr.bf16.mxu0 %v1796_v56  ;;  %v1853_v56 = vld [vmem:[%s2097_s30 + $0x200] ss:$8 sps:$4 sm:$0xff]  }
  0x5f   : > { %899 = vmatpush2.bf16.msra.mxu1 %v1795_v57  ;;  %v1858_v57 = vld [vmem:[%s2097_s30 + $0x2f4] ss:$8 sps:$4 sm:$0xff]  }
  0x60   : > { %900 = vmatprep.subr.bf16.mxu1 %v1799_v58  ;;  %v1856_v58 = vld [vmem:[%s2097_s30 + $0x2f0] ss:$8 sps:$4 sm:$0xff]  }
  0x61   : > { %581 = vmatpush2.bf16.msra.mxu0 %v1798_v60  ;;  %v1859_v60 = vld [vmem:[%s2097_s30 + $0x2e0] ss:$8 sps:$4 sm:$0xff]  }
  0x62   : > { %582 = vmatprep.subr.bf16.mxu0 %v1802_v61  ;;  %v1864_v61 = vld [vmem:[%s2097_s30 + $0x2d4] ss:$8 sps:$4 sm:$0xff]  }
  0x63   : > { %901 = vmatpush2.bf16.msra.mxu1 %v1801_v62  ;;  %v1862_v62 = vld [vmem:[%s2097_s30 + $0x2d0] ss:$8 sps:$4 sm:$0xff]  }
  0x64   : > { %902 = vmatprep.subr.bf16.mxu1 %v1805_v63  ;;  %v1867_v63 = vld [vmem:[%s2097_s30 + $0x2c4] ss:$8 sps:$4 sm:$0xff]  }
  0x65   : > { %583 = vmatpush2.bf16.msra.mxu0 %v1804_v0  ;;  %v1865_v0 = vld [vmem:[%s2097_s30 + $0x2c0] ss:$8 sps:$4 sm:$0xff]  }
  0x66   : > { %584 = vmatprep.subr.bf16.mxu0 %v1808_v1  ;;  %v1870_v1 = vld [vmem:[%s2097_s30 + $0x2b4] ss:$8 sps:$4 sm:$0xff]  }
  0x67   : > { %903 = vmatpush2.bf16.msra.mxu1 %v1807_v4  ;;  %v1871_v4 = vld [vmem:[%s2097_s30 + $0x2a0] ss:$8 sps:$4 sm:$0xff]  }
  0x68   : > { %904 = vmatprep.subr.bf16.mxu1 %v1811_v6  ;;  %v1874_v6 = vld [vmem:[%s2097_s30 + $0x290] ss:$8 sps:$4 sm:$0xff]  }
  0x69   : > { %585 = vmatpush2.bf16.msra.mxu0 %v1810_v8  ;;  %v1877_v8 = vld [vmem:[%s2097_s30 + $0x280] ss:$8 sps:$4 sm:$0xff]  }
  0x6a   : > { %586 = vmatprep.subr.bf16.mxu0 %v1814_v13 }
  0x6b   : > { %905 = vmatpush2.bf16.msra.mxu1 %v1813_v14 }
  0x6c   : > { %906 = vmatprep.subr.bf16.mxu1 %v1817_v15 }
  0x6d   : > { %587 = vmatpush2.bf16.msra.mxu0 %v1816_v16 }
  0x6e   : > { %588 = vmatprep.subr.bf16.mxu0 %v1820_v20 }
  0x6f   : > { %907 = vmatpush2.bf16.msra.mxu1 %v1819_v23 }
  0x70   : > { %908 = vmatprep.subr.bf16.mxu1 %v1823_v24 }
  0x71   : > { %589 = vmatpush2.bf16.msra.mxu0 %v1822_v26 }
  0x72   : > { %590 = vmatprep.subr.bf16.mxu0 %v1826_v27 }
  0x73   : > { %909 = vmatpush2.bf16.msra.mxu1 %v1825_v29 }
  0x74   : > { %910 = vmatprep.subr.bf16.mxu1 %v1829_v30 }
  0x75   : > { %591 = vmatpush2.bf16.msra.mxu0 %v1828_v32 }
  0x76   : > { %1167 = vmatprep.subr.bf16.mxu0 %v1834_v33 }
  0x77   : > { %911 = vmatpush2.bf16.msra.mxu1 %v1831_v34 }
  0x78   : > { %593 = vmatmul.mubr.bf16.vlgmr.msra.gmra.mxu0 %v390_v35 }
  0x79   : > { %1168 = vmatpush1.bf16.msra.mxu0 %v1832_v36  ;;  %1199 = vmatprep.mubr.bf16.mxu0 %v1004_v48 }
  0x7a   : > { %913 = vmatmul.mubr.bf16.vlgmr.msra.gmra.mxu1 %v710_v37  ;;  %1169 = vmatprep.subr.bf16.mxu0 %v1837_v38 }
  0x7d   : > { %1170 = vmatpush1.bf16.msra.mxu0 %v1835_v39 }
  0x7e   : > { %1171 = vmatprep.subr.bf16.mxu0 %v1840_v41 }
  0x81   : > { %1172 = vmatpush1.bf16.msra.mxu0 %v1838_v43 }
  0x82   : > { %1173 = vmatprep.subr.bf16.mxu0 %v1843_v45 }
  0x85   : > { %1174 = vmatpush1.bf16.msra.mxu0 %v1841_v47 }
  0x86   : > { %1175 = vmatprep.subr.bf16.mxu0 %v1846_v49 }
  0x89   : > { %1176 = vmatpush1.bf16.msra.mxu0 %v1844_v50 }
  0x8a   : > { %1177 = vmatprep.subr.bf16.mxu0 %v1849_v51 }
  0x8d   : > { %1178 = vmatpush1.bf16.msra.mxu0 %v1847_v52 }
  0x8e   : > { %1179 = vmatprep.subr.bf16.mxu0 %v1852_v53 }
  0x91   : > { %1180 = vmatpush1.bf16.msra.mxu0 %v1850_v54 }
  0x92   : > { %1181 = vmatprep.subr.bf16.mxu0 %v1855_v55 }
  0x95   : > { %1182 = vmatpush1.bf16.msra.mxu0 %v1853_v56 }
  0x96   : > { %1183 = vmatprep.subr.bf16.mxu0 %v1858_v57 }
  0x99   : > { %1184 = vmatpush2.bf16.msra.mxu0 %v1856_v58 }
  0x9a   : > { %1185 = vmatprep.subr.bf16.mxu0 %v1861_v59 }
  0x9d   : > { %1186 = vmatpush2.bf16.msra.mxu0 %v1859_v60 }
  0x9e   : > { %1187 = vmatprep.subr.bf16.mxu0 %v1864_v61 }
  0xa1   : > { %1188 = vmatpush2.bf16.msra.mxu0 %v1862_v62 }
  0xa2   : > { %1189 = vmatprep.subr.bf16.mxu0 %v1867_v63 }
  0xa5   : > { %1190 = vmatpush2.bf16.msra.mxu0 %v1865_v0 }
  0xa6   : > { %1191 = vmatprep.subr.bf16.mxu0 %v1870_v1 }
  0xa9   : > { %1192 = vmatpush2.bf16.msra.mxu0 %v1868_v2 }
  0xaa   : > { %1193 = vmatprep.subr.bf16.mxu0 %v1873_v3 }
  0xad   : > { %1194 = vmatpush2.bf16.msra.mxu0 %v1871_v4 }
  0xae   : > { %1195 = vmatprep.subr.bf16.mxu0 %v1876_v5 }
  0xb1   : > { %1196 = vmatpush2.bf16.msra.mxu0 %v1874_v6 }
  0xb2   : > { %1197 = vmatprep.subr.bf16.mxu0 %v1879_v7 }
  0xb5   : > { %1198 = vmatpush2.bf16.msra.mxu0 %v1877_v8 }
  0xb8   : > { %1200 = vmatmul.mubr.bf16.vlgmr.msra.gmra.mxu0 %v997_v9 }
 0x138   : > { %v594_v11 = vpop.f32.mrf.mxu0 }
 0x13a   : > { %v596_v12 = vpop.f32.mrf.mxu0  ;;  %v914_v13 = vpop.f32.mrf.mxu1 }
 0x13b   : > { %v603_v20 = vcombine.low %v594_v11, %v596_v12 }
 0x13c   : > { %v598_v14 = vpop.f32.mrf.mxu0  ;;  %v916_v15 = vpop.f32.mrf.mxu1 }
 0x13d   : > { %v605_v23 = vadd.f32 %v603_v20, %v320_v21  ;;  %v923_v24 = vcombine.low %v914_v13, %v916_v15 }
 0x13e   : > { %v599_v16 = vpop.f32.mrf.mxu0  ;;  %v918_v17 = vpop.f32.mrf.mxu1 }
 0x13f   : > { %v925_v27 = vadd.f32 %v923_v24, %v605_v23 }
 0x140   : > { %v919_v18 = vpop.f32.mrf.mxu1 }
 0x178   : > { %v1201_v25 = vpop.f32.mrf.mxu0 }
 0x17a   : > { %v1203_v26 = vpop.f32.mrf.mxu0 }
 0x17b   : > { %v1210_v28 = vcombine.low %v1201_v25, %v1203_v26  ;;  %1217 = sbr.rel (%p1650_p2) target bundleno = 411 (0x19b), region = 119 }
 0x17c   : > { %v1205_v29 = vpop.f32.mrf.mxu0 }
 0x17d   : > { %v1212_v30 = vadd.f32 %v1210_v28, %v925_v27 }
 0x17e   : > { %v1206_v31 = vpop.f32.mrf.mxu0 }
 0x17f   : > { %1213 = vst [vmem:[#allocation2] sm:$0xff] %v1212_v30 }
 0x180   : > { %v1219_v32 = vld [vmem:[%s2278_s2] sm:$0x3]  ;;  %v1223_v33 = vsub.s32 0, %v2099_v10  ;;  %v1227_v34 = vsub.s32 1, %v2099_v10  ;;  %v1232_v35 = vld [vmem:[%s288_s7] sm:$0x3] }
 0x181   : > { %v1233_v36 = vld [vmem:[%s288_s7 + $0x2] sm:$0x3]  ;;  %v1234_v39 = vunpack.c.l.bf16 %v1232_v35  ;;  %v1954_v41 = vmov 1983009808  }
 0x182   : > { %v1224_v37 = vrot.slane %v1219_v32, %v1223_v33  ;;  %v1228_v38 = vrot.slane %v1219_v32, %v1227_v34  ;;  %v1235_v40 = vunpack.c.l.bf16 %v1233_v36  ;;  %v1240_v22 = vunpack.c.l.s4 %v1954_v41 }
 0x184   : > { %v1229_v43 = vcombine.low %v1224_v37, %v1228_v38  ;;  %v1238_v44 = vcombine.low %v1234_v39, %v1235_v40  ;;  %v1241_v45 = vunpack.c.0.s8 %v1240_v22 }
 0x186   : > { %v1218_v42 = vld [vmem:[#allocation2] sm:$0xff]  ;;  %v1244_v47 = vsub.s32 %v1241_v45, %v2099_v10 }
 0x187   : > { %v1231_v46 = vadd.f32 %v1229_v43, %v1218_v42 }
 0x188   : > { %v1245_v48 = vrot.slane %v1238_v44, %v1244_v47 }
 0x18a   : > { %v1247_v49 = vadd.f32 %v1245_v48, %v1231_v46 }
 0x18c   : > { %v1248_v50 = vmax.f32 %v1247_v49, 0.0 }
 0x18e   : > { %v1256_v51 = vrot.slane %v1248_v50, %v1244_v47 }
 0x190   : > { %v1264_v52 = vrot.slane %v1256_v51, %v1244_v47  ;;  %v1257_v53 = vcombine.high %v1256_v51, %v1256_v51 }
 0x192   : > { %v1265_v54 = vcombine.high %v1264_v52, %v1264_v52  ;;  %v1272_v55 = vrot.slane %v1257_v53, %v1244_v47 }
 0x194   : > { %v1651_v56 = vpack.c.bf16 %v1265_v54, %v1264_v52  ;;  %v1273_v57 = vcombine.high %v1272_v55, %v1272_v55 }
 0x196   : > { %v1293_v58 = vrot.slane %v1651_v56, %v2108_v19  ;;  %v1652_v59 = vpack.c.bf16 %v1273_v57, %v1272_v55 }
 0x198   : > { %1653 = vst.sshfl [vmem:[%s2088_s29] sm:$0x5 pattern:$0x73625140] %v1293_v58  ;;  %v1308_v60 = vrot.slane %v1652_v59, %v2108_v19 }
 0x19a   : > { %1654 = vst.sshfl [vmem:[%s2088_s29 + $0x2] sm:$0x5 pattern:$0x73625140] %v1308_v60 }
 0x19b PF: > { %1326 = sbr.rel (!%p2054_p10) target bundleno = 419 (0x1a3), region = 123  ;;  %s1656_s19 = sshll.u32 (%p2054_p10), %s1938_s20, 1 }
 0x19c   : > { %s1328_s5 = scalar_lea.vmem (%p2054_p10), %s2280_s4, %s1656_s19 }
 0x19f   : > { %v1345_v10 = vld [vmem:[%s2088_s29] sm:$0x3] (%p2054_p10) }
 0x1a0   : > { %1346 = vst [vmem:[%s1328_s5] sm:$0x3] %v1345_v10 }
 0x1a1   : > { %v1347_v61 = vld [vmem:[%s2088_s29 + $0x2] sm:$0x3] }
 0x1a2   : > { %1348 = vst [vmem:[%s1328_s5 + $0x4] sm:$0x3] %v1347_v61 }
 0x1a3 PF: > { %s14_s23 = sadd.s32 1, %s1950_s23   ;;  %s2286_s9 = sld [smem:[#allocation6_spill]] }
 0x1a4   : > { %p11_p3 = scmp.ge.s32.totalorder %s14_s23, 8   ;;  %s2287_s15 = smov %s1922_s16 }
 0x1a5   : > { %s2288_s16 = smov %s2059_s10  ;;  %s2289_s17 = smov %s1930_s18 }
 0x1a6   : > { %s2290_s18 = smov %s2062_s11  ;;  %s2291_s19 = smov %s1942_s21 }
 0x1a7   : > { %s2292_s20 = smov %s1946_s22  ;;  %s2293_s21 = smov %s2296_s25 }
 0x1a8   :  { %13 = sbr.rel (!%p11_p3) target bundleno = 5 (0x5), region = 199 }
 0x1a9   : > { %s2294_s22 = smov %s2286_s9 }

</bundles_post_ra>
